<compile_context>
chip_gen: v6e
topology: v6e:2x2x1
jax: 0.10.0
libtpu: 0.0.40
codegen_flags: <defaults>
</compile_context>

<pallas_src>
import math

import jax
import jax.numpy as jnp
from jax.experimental import pallas as pl
from jax.experimental.pallas import tpu as pltpu

FEA_DIM = 64  # DTN embedding feature width (fixed by the module)


# ------------------------------ kernel ---------------------------------------


def _icd_kernel(
    # ---- batch-blocked inputs (VMEM) ----
    u_tok_ref,   # (tb, s_u) int32   user-log token ids
    i_tok_ref,   # (tb, s_i) int32   item-log token ids
    u_len_ref,   # (tb, 1)   f32     valid lengths (user logs)
    i_len_ref,   # (tb, 1)   f32     valid lengths (item logs)
    # ---- weights (constant blocks, VMEM-resident) ----
    l_emb_ref,   # (Vu_pad, 64) bf16
    i_emb_ref,   # (Vi_pad, 64) bf16
    know_ref,    # (tb, K)      f32   knowledge vectors (batch-blocked)
    w_pool_ref, b_pool_ref,      # (128, 2K) bf16 / (1, 2K) f32  blockdiag(l_w,i_w)
    w_tdd_ref, b_tdd_ref,        # (2K, 3K)  bf16 / (1, 3K) f32  [[wt,0,0],[0,wkd,wed]]
    w1_ref, b1_ref,              # (K, 512)  bf16 (already |w|) / (1, 512) f32
    w2_ref, b2_ref,              # (512, 256)
    w3_ref, b3_ref,              # (256, out_w-3K) zero-padded
    # ---- output ----
    out_ref,     # (tb, out_w) f32   [theta | diff | disc | y | pad]
):
    tb = u_tok_ref.shape[0]
    k = know_ref.shape[1]

    # ---- DTN masked mean as a counts-matrix MXU matmul ----------------------
    # The affine feature_net commutes with the masked mean, so we pool raw
    # embeddings first (one matmul) and apply Linear(64->K) once per row.
    def pool(tok_ref, len_ref, emb_ref):
        seq = tok_ref.shape[1]
        vpad = emb_ref.shape[0]
        tok = tok_ref[...]                       # (tb, S) int32
        length = len_ref[...]                    # (tb, 1) f32
        vocab = jax.lax.broadcasted_iota(jnp.int32, (tb, vpad), 1)
        counts = jnp.zeros((tb, vpad), jnp.float32)
        for p in range(seq):                     # static, short (seq length)
            hit = jnp.logical_and(vocab == tok[:, p:p + 1], length > float(p))
            counts = counts + hit.astype(jnp.float32)
        psum = jnp.dot(counts.astype(jnp.bfloat16), emb_ref[...],
                       preferred_element_type=jnp.float32)       # (tb, 64)
        denom = jnp.where(length > 0.0, length, 1.0)             # 0-len guard
        return psum / denom

    def dense(x, w_ref, b_ref):
        return jnp.dot(x.astype(jnp.bfloat16), w_ref[...],
                       preferred_element_type=jnp.float32) + b_ref[...]

    sig = jax.nn.sigmoid

    u_pool = pool(u_tok_ref, u_len_ref, l_emb_ref)               # (tb, 64) f32
    i_pool = pool(i_tok_ref, i_len_ref, i_emb_ref)               # (tb, 64) f32

    # ---- packed dense stack --------------------------------------------------
    traits = dense(jnp.concatenate([u_pool, i_pool], axis=-1),
                   w_pool_ref, b_pool_ref)                       # (tb, 2K)
    tdd = sig(dense(traits, w_tdd_ref, b_tdd_ref))               # (tb, 3K)
    theta = tdd[:, :k]
    diff = tdd[:, k:2 * k]
    disc = tdd[:, 2 * k:3 * k]

    x = disc * (theta - diff) * know_ref[...]                    # (tb, K) f32
    # TODO(synk): Dropout(p=0.5) omitted (eval-mode identity).
    h1 = sig(dense(x, w1_ref, b1_ref))                           # PosLinear |w|
    h2 = sig(dense(h1, w2_ref, b2_ref))
    y_slab = sig(dense(h2, w3_ref, b3_ref))                      # (tb, out_w-3K)

    # ---- single lane-dense full-width store ----------------------------------
    out_ref[...] = jnp.concatenate([tdd, y_slab], axis=-1)


# ------------------------------ wrapper ---------------------------------------


def _round_up(n, m):
    return ((n + m - 1) // m) * m


def _pad_rows(x, n_rows):
    pad = n_rows - x.shape[0]
    if pad <= 0:
        return x
    return jnp.concatenate(
        [x, jnp.zeros((pad,) + x.shape[1:], x.dtype)], axis=0)


def icd_forward(params, u2i, u_mask, i2u, i_mask, i2k, tb=128):
    """Fused ICD (ncd) forward. `tb` = batch rows per grid step (>=8,
    multiple of 8); 128 (v7x) / 256 (v5e, v6e) for real batches."""
    B, s_u = u2i.shape
    _, s_i = i2u.shape
    K = i2k.shape[1]
    b_pad = _round_up(B, tb)
    out_w = _round_up(3 * K + 1, 128)            # lane-dense output width
    y_w = out_w - 3 * K                          # lanes holding y (+ pad)

    # ---- batch-blocked inputs ------------------------------------------------
    u_tok = _pad_rows(u2i.astype(jnp.int32), b_pad)
    i_tok = _pad_rows(i2u.astype(jnp.int32), b_pad)
    u_len = _pad_rows(u_mask.astype(jnp.float32).reshape(-1, 1), b_pad)
    i_len = _pad_rows(i_mask.astype(jnp.float32).reshape(-1, 1), b_pad)
    know = _pad_rows(i2k.astype(jnp.float32), b_pad)

    # ---- weight packing (all hoisted out of the kernel) -----------------------
    bf16 = jnp.bfloat16
    # vocab padded to a multiple of 128 (clean lane dim for the counts matmul)
    l_emb_p = _pad_rows(params["l_emb"], _round_up(params["l_emb"].shape[0], 128))
    i_emb_p = _pad_rows(params["i_emb"], _round_up(params["i_emb"].shape[0], 128))

    z64k = jnp.zeros((FEA_DIM, K), bf16)
    w_pool = jnp.concatenate(                     # blockdiag(l_w, i_w): (128, 2K)
        [jnp.concatenate([params["l_w"], z64k], axis=1),
         jnp.concatenate([z64k, params["i_w"]], axis=1)], axis=0)
    b_pool = jnp.concatenate([params["l_b"], params["i_b"]], axis=1)   # (1, 2K)

    zkk = jnp.zeros((K, K), bf16)
    w_tdd = jnp.concatenate(                      # (2K, 3K)
        [jnp.concatenate([params["wt"], zkk, zkk], axis=1),
         jnp.concatenate([zkk, params["wkd"], params["wed"]], axis=1)], axis=0)
    b_tdd = jnp.concatenate([params["bt"], params["bkd"], params["bed"]], axis=1)

    # PosLinear: 2*relu(-w) + w == |w| (exact), hoisted out of the kernel.
    w1a = jnp.abs(params["w1"])
    w2a = jnp.abs(params["w2"])
    w3a = jnp.abs(params["w3"])                                         # (256, 1)
    w3p = jnp.concatenate(
        [w3a, jnp.zeros((w3a.shape[0], y_w - 1), w3a.dtype)], axis=1)   # (256, y_w)
    b3p = jnp.concatenate(
        [params["b3"], jnp.zeros((1, y_w - 1), jnp.float32)], axis=1)   # (1, y_w)

    # ---- specs ----------------------------------------------------------------
    batch_blk = lambda i: (i, 0)
    const_blk = lambda i: (0, 0)
    full = lambda a: pl.BlockSpec(a.shape, const_blk)

    in_specs = [
        pl.BlockSpec((tb, s_u), batch_blk),       # u_tok
        pl.BlockSpec((tb, s_i), batch_blk),       # i_tok
        pl.BlockSpec((tb, 1), batch_blk),         # u_len
        pl.BlockSpec((tb, 1), batch_blk),         # i_len
        full(l_emb_p), full(i_emb_p),
        pl.BlockSpec((tb, K), batch_blk),         # know
        full(w_pool), full(b_pool),
        full(w_tdd), full(b_tdd),
        full(w1a), full(params["b1"]),
        full(w2a), full(params["b2"]),
        full(w3p), full(b3p),
    ]

    # ---- VMEM budget from actual footprint (double-buffered blocks) ----------
    def _nbytes(shape, dtype):
        return math.prod(shape) * jnp.dtype(dtype).itemsize

    block_bytes = (_nbytes((tb, s_u), jnp.int32) + _nbytes((tb, s_i), jnp.int32)
                   + 2 * _nbytes((tb, 1), jnp.float32)
                   + _nbytes((tb, K), jnp.float32)
                   + _nbytes((tb, out_w), jnp.float32))
    weight_bytes = sum(_nbytes(a.shape, a.dtype) for a in
                       (l_emb_p, i_emb_p, w_pool, b_pool, w_tdd, b_tdd,
                        w1a, params["b1"], w2a, params["b2"], w3p, b3p))
    vmem_limit = int(min(max(2 * (block_bytes + weight_bytes) + (8 << 20),
                             16 << 20), 64 << 20))

    slab = pl.pallas_call(
        _icd_kernel,
        out_shape=jax.ShapeDtypeStruct((b_pad, out_w), jnp.float32),
        grid_spec=pltpu.PrefetchScalarGridSpec(
            num_scalar_prefetch=0,
            grid=(b_pad // tb,),
            in_specs=in_specs,
            out_specs=pl.BlockSpec((tb, out_w), batch_blk)),
        compiler_params=pltpu.CompilerParams(
            dimension_semantics=("parallel",),    # megacore batch split (v7x)
            vmem_limit_bytes=vmem_limit),
    )(u_tok, i_tok, u_len, i_len,
      l_emb_p, i_emb_p, know,
      w_pool, b_pool, w_tdd, b_tdd,
      w1a, params["b1"], w2a, params["b2"], w3p, b3p)

    theta = slab[:B, 0:K]
    diff = slab[:B, K:2 * K]
    disc = slab[:B, 2 * K:3 * K]
    y = slab[:B, 3 * K]
    return y, theta, disc, diff


# ------------------------------ params ----------------------------------------


def _xavier(key, out_dim, in_dim):
    std = math.sqrt(2.0 / (in_dim + out_dim))
    return std * jax.random.normal(key, (out_dim, in_dim), jnp.float32)


def init_params(key, user_n, item_n, know_n):
    l1, l2 = 512, 256
    ks = jax.random.split(key, 10)
    bf16 = jnp.bfloat16
    p = {}
    # DTN embedding tables (xavier init, matching the module's init loop)
    p["l_emb"] = _xavier(ks[0], 2 * item_n + 1, FEA_DIM).astype(bf16)
    p["i_emb"] = _xavier(ks[1], 2 * user_n + 1, FEA_DIM).astype(bf16)
    # DTN feature_net Linear(64->K), stored transposed (in, out)
    p["l_w"] = _xavier(ks[2], know_n, FEA_DIM).T.astype(bf16)
    p["l_b"] = jnp.zeros((1, know_n), jnp.float32)
    p["i_w"] = _xavier(ks[3], know_n, FEA_DIM).T.astype(bf16)
    p["i_b"] = jnp.zeros((1, know_n), jnp.float32)
    # NCDMNet linears (transposed, biases as (1, out))
    p["wt"] = _xavier(ks[4], know_n, know_n).T.astype(bf16)
    p["bt"] = jnp.zeros((1, know_n), jnp.float32)
    p["wkd"] = _xavier(ks[5], know_n, know_n).T.astype(bf16)
    p["bkd"] = jnp.zeros((1, know_n), jnp.float32)
    p["wed"] = _xavier(ks[6], know_n, know_n).T.astype(bf16)
    p["bed"] = jnp.zeros((1, know_n), jnp.float32)
    # int_fc PosLinear stack
    p["w1"] = _xavier(ks[7], 512, know_n).T.astype(bf16)
    p["b1"] = jnp.zeros((1, l1), jnp.float32)
    p["w2"] = _xavier(ks[8], l2, l1).T.astype(bf16)
    p["b2"] = jnp.zeros((1, l2), jnp.float32)
    p["w3"] = _xavier(ks[9], 1, l2).T.astype(bf16)
    p["b3"] = jnp.zeros((1, 1), jnp.float32)
    return p


# ------------------------------ reference --------------------------------------


def icd_reference(params, u2i, u_mask, i2u, i_mask, i2k):
    """Pure-JAX reference (same bf16 weight rounding, f32 math)."""
    f32 = jnp.float32

    def dense(x, w, b):
        return jnp.dot(x.astype(jnp.bfloat16).astype(f32), w.astype(f32)) + b

    def dtn(tbl, w, b, toks, lens):
        emb = jnp.take(tbl.astype(f32), toks, axis=0)        # (B, S, 64)
        s = toks.shape[1]
        m = (jnp.arange(s)[None, :] < lens[:, None]).astype(f32)
        denom = jnp.where(lens[:, None] > 0, lens[:, None], 1.0)
        pooled = jnp.sum(emb * m[:, :, None], axis=1) / denom
        return dense(pooled, w, b)

    sig = jax.nn.sigmoid
    u_t = dtn(params["l_emb"], params["l_w"], params["l_b"], u2i, u_mask)
    v_t = dtn(params["i_emb"], params["i_w"], params["i_b"], i2u, i_mask)
    theta = sig(dense(u_t, params["wt"], params["bt"]))
    diff = sig(dense(v_t, params["wkd"], params["bkd"]))
    disc = sig(dense(v_t, params["wed"], params["bed"]))
    x = disc * (theta - diff) * i2k
    h1 = sig(dense(x, jnp.abs(params["w1"]), params["b1"]))
    h2 = sig(dense(h1, jnp.abs(params["w2"]), params["b2"]))
    y = sig(dense(h2, jnp.abs(params["w3"]), params["b3"]))
    return y.reshape(-1), theta, disc, diff


# ------------------------------ main -------------------------------------------

if __name__ == "__main__":
    user_n, item_n, know_n = 8, 8, 32
    B, s_u, s_i = 12, 7, 5

    key = jax.random.PRNGKey(0)
    kp, k1, k2, k3, k4, k5 = jax.random.split(key, 6)

    params = init_params(kp, user_n, item_n, know_n)

    u2i = jax.random.randint(k1, (B, s_u), 0, 2 * item_n + 1, dtype=jnp.int32)
    i2u = jax.random.randint(k2, (B, s_i), 0, 2 * user_n + 1, dtype=jnp.int32)
    u_mask = jax.random.randint(k3, (B,), 1, s_u + 1).astype(jnp.float32)
    i_mask = jax.random.randint(k4, (B,), 1, s_i + 1).astype(jnp.float32)
    i2k = (jax.random.uniform(k5, (B, know_n)) > 0.5).astype(jnp.float32)

    y_r, th_r, ds_r, df_r = icd_reference(params, u2i, u_mask, i2u, i_mask, i2k)

    fwd = jax.jit(icd_forward, static_argnames=("tb",))
    # tb=128: production-style single-block tile; tb=8: exercises a 2-step grid.
    for tb in (128, 8):
        y, theta, disc, diff = fwd(params, u2i, u_mask, i2u, i_mask, i2k, tb=tb)
        jax.block_until_ready((y, theta, disc, diff))

        assert y.shape == (B,)
        assert theta.shape == (B, know_n)
        assert disc.shape == (B, know_n)
        assert diff.shape == (B, know_n)

        for got, ref in ((y, y_r), (theta, th_r), (disc, ds_r), (diff, df_r)):
            err = float(jnp.max(jnp.abs(got - ref)))
            assert jnp.allclose(got, ref, atol=2e-2, rtol=2e-2), (tb, err)

    print("KERNEL_OK")
</pallas_src>

<mosaic_0001>
module attributes {stable_mosaic.version = 11 : i64} {
  func.func @_icd_kernel(%arg0: i32, %arg1: memref<128x7xi32, #tpu.memory_space<vmem>>, %arg2: memref<128x5xi32, #tpu.memory_space<vmem>>, %arg3: memref<128x1xf32, #tpu.memory_space<vmem>>, %arg4: memref<128x1xf32, #tpu.memory_space<vmem>>, %arg5: memref<128x64xbf16, #tpu.memory_space<vmem>>, %arg6: memref<128x64xbf16, #tpu.memory_space<vmem>>, %arg7: memref<128x32xf32, #tpu.memory_space<vmem>>, %arg8: memref<128x64xbf16, #tpu.memory_space<vmem>>, %arg9: memref<1x64xf32, #tpu.memory_space<vmem>>, %arg10: memref<64x96xbf16, #tpu.memory_space<vmem>>, %arg11: memref<1x96xf32, #tpu.memory_space<vmem>>, %arg12: memref<32x512xbf16, #tpu.memory_space<vmem>>, %arg13: memref<1x512xf32, #tpu.memory_space<vmem>>, %arg14: memref<512x256xbf16, #tpu.memory_space<vmem>>, %arg15: memref<1x256xf32, #tpu.memory_space<vmem>>, %arg16: memref<256x32xbf16, #tpu.memory_space<vmem>>, %arg17: memref<1x32xf32, #tpu.memory_space<vmem>>, %arg18: memref<128x128xf32, #tpu.memory_space<vmem>>) attributes {dimension_semantics = [#tpu.dimension_semantics<parallel>], iteration_bounds = array<i64: 1>, scalar_prefetch = 0 : i64, scratch_operands = 0 : i64, tpu.core_type = #tpu.core_type<tc>, window_params = [{transform_indices = @transform_0, window_bounds = array<i64: 128, 7>}, {transform_indices = @transform_1, window_bounds = array<i64: 128, 5>}, {transform_indices = @transform_2, window_bounds = array<i64: 128, 1>}, {transform_indices = @transform_3, window_bounds = array<i64: 128, 1>}, {pipeline_mode = #tpu.pipeline_mode<synchronous>, transform_indices = @transform_4, window_bounds = array<i64: 128, 64>}, {pipeline_mode = #tpu.pipeline_mode<synchronous>, transform_indices = @transform_5, window_bounds = array<i64: 128, 64>}, {transform_indices = @transform_6, window_bounds = array<i64: 128, 32>}, {pipeline_mode = #tpu.pipeline_mode<synchronous>, transform_indices = @transform_7, window_bounds = array<i64: 128, 64>}, {pipeline_mode = #tpu.pipeline_mode<synchronous>, transform_indices = @transform_8, window_bounds = array<i64: 1, 64>}, {pipeline_mode = #tpu.pipeline_mode<synchronous>, transform_indices = @transform_9, window_bounds = array<i64: 64, 96>}, {pipeline_mode = #tpu.pipeline_mode<synchronous>, transform_indices = @transform_10, window_bounds = array<i64: 1, 96>}, {pipeline_mode = #tpu.pipeline_mode<synchronous>, transform_indices = @transform_11, window_bounds = array<i64: 32, 512>}, {pipeline_mode = #tpu.pipeline_mode<synchronous>, transform_indices = @transform_12, window_bounds = array<i64: 1, 512>}, {pipeline_mode = #tpu.pipeline_mode<synchronous>, transform_indices = @transform_13, window_bounds = array<i64: 512, 256>}, {pipeline_mode = #tpu.pipeline_mode<synchronous>, transform_indices = @transform_14, window_bounds = array<i64: 1, 256>}, {pipeline_mode = #tpu.pipeline_mode<synchronous>, transform_indices = @transform_15, window_bounds = array<i64: 256, 32>}, {pipeline_mode = #tpu.pipeline_mode<synchronous>, transform_indices = @transform_16, window_bounds = array<i64: 1, 32>}, {transform_indices = @transform_17, window_bounds = array<i64: 128, 128>}]} {
    %c0 = arith.constant 0 : index
    %c0_0 = arith.constant 0 : index
    %0 = vector.load %arg1[%c0, %c0_0] : memref<128x7xi32, #tpu.memory_space<vmem>>, vector<128x7xi32>
    %c0_1 = arith.constant 0 : index
    %c0_2 = arith.constant 0 : index
    %1 = vector.load %arg3[%c0_1, %c0_2] : memref<128x1xf32, #tpu.memory_space<vmem>>, vector<128x1xf32>
    %2 = tpu.iota {dimensions = array<i32: 1>} : vector<128x128xi32>
    %cst = arith.constant 0.000000e+00 : f32
    %3 = vector.broadcast %cst : f32 to vector<128x128xf32>
    %4 = vector.extract_strided_slice %0 {offsets = [0, 0], sizes = [128, 1], strides = [1, 1]} : vector<128x7xi32> to vector<128x1xi32>
    %5 = vector.broadcast %4 : vector<128x1xi32> to vector<128x128xi32>
    %6 = arith.cmpi eq, %2, %5 : vector<128x128xi32>
    %cst_3 = arith.constant 0.000000e+00 : f32
    %7 = vector.broadcast %cst_3 : f32 to vector<128x1xf32>
    %8 = arith.cmpf ogt, %1, %7 : vector<128x1xf32>
    %9 = vector.broadcast %8 : vector<128x1xi1> to vector<128x128xi1>
    %10 = arith.andi %6, %9 : vector<128x128xi1>
    %11 = arith.extui %10 : vector<128x128xi1> to vector<128x128xi32>
    %12 = arith.sitofp %11 : vector<128x128xi32> to vector<128x128xf32>
    %13 = arith.addf %3, %12 : vector<128x128xf32>
    %14 = vector.extract_strided_slice %0 {offsets = [0, 1], sizes = [128, 1], strides = [1, 1]} : vector<128x7xi32> to vector<128x1xi32>
    %15 = vector.broadcast %14 : vector<128x1xi32> to vector<128x128xi32>
    %16 = arith.cmpi eq, %2, %15 : vector<128x128xi32>
    %cst_4 = arith.constant 1.000000e+00 : f32
    %17 = vector.broadcast %cst_4 : f32 to vector<128x1xf32>
    %18 = arith.cmpf ogt, %1, %17 : vector<128x1xf32>
    %19 = vector.broadcast %18 : vector<128x1xi1> to vector<128x128xi1>
    %20 = arith.andi %16, %19 : vector<128x128xi1>
    %21 = arith.extui %20 : vector<128x128xi1> to vector<128x128xi32>
    %22 = arith.sitofp %21 : vector<128x128xi32> to vector<128x128xf32>
    %23 = arith.addf %13, %22 : vector<128x128xf32>
    %24 = vector.extract_strided_slice %0 {offsets = [0, 2], sizes = [128, 1], strides = [1, 1]} : vector<128x7xi32> to vector<128x1xi32>
    %25 = vector.broadcast %24 : vector<128x1xi32> to vector<128x128xi32>
    %26 = arith.cmpi eq, %2, %25 : vector<128x128xi32>
    %cst_5 = arith.constant 2.000000e+00 : f32
    %27 = vector.broadcast %cst_5 : f32 to vector<128x1xf32>
    %28 = arith.cmpf ogt, %1, %27 : vector<128x1xf32>
    %29 = vector.broadcast %28 : vector<128x1xi1> to vector<128x128xi1>
    %30 = arith.andi %26, %29 : vector<128x128xi1>
    %31 = arith.extui %30 : vector<128x128xi1> to vector<128x128xi32>
    %32 = arith.sitofp %31 : vector<128x128xi32> to vector<128x128xf32>
    %33 = arith.addf %23, %32 : vector<128x128xf32>
    %34 = vector.extract_strided_slice %0 {offsets = [0, 3], sizes = [128, 1], strides = [1, 1]} : vector<128x7xi32> to vector<128x1xi32>
    %35 = vector.broadcast %34 : vector<128x1xi32> to vector<128x128xi32>
    %36 = arith.cmpi eq, %2, %35 : vector<128x128xi32>
    %cst_6 = arith.constant 3.000000e+00 : f32
    %37 = vector.broadcast %cst_6 : f32 to vector<128x1xf32>
    %38 = arith.cmpf ogt, %1, %37 : vector<128x1xf32>
    %39 = vector.broadcast %38 : vector<128x1xi1> to vector<128x128xi1>
    %40 = arith.andi %36, %39 : vector<128x128xi1>
    %41 = arith.extui %40 : vector<128x128xi1> to vector<128x128xi32>
    %42 = arith.sitofp %41 : vector<128x128xi32> to vector<128x128xf32>
    %43 = arith.addf %33, %42 : vector<128x128xf32>
    %44 = vector.extract_strided_slice %0 {offsets = [0, 4], sizes = [128, 1], strides = [1, 1]} : vector<128x7xi32> to vector<128x1xi32>
    %45 = vector.broadcast %44 : vector<128x1xi32> to vector<128x128xi32>
    %46 = arith.cmpi eq, %2, %45 : vector<128x128xi32>
    %cst_7 = arith.constant 4.000000e+00 : f32
    %47 = vector.broadcast %cst_7 : f32 to vector<128x1xf32>
    %48 = arith.cmpf ogt, %1, %47 : vector<128x1xf32>
    %49 = vector.broadcast %48 : vector<128x1xi1> to vector<128x128xi1>
    %50 = arith.andi %46, %49 : vector<128x128xi1>
    %51 = arith.extui %50 : vector<128x128xi1> to vector<128x128xi32>
    %52 = arith.sitofp %51 : vector<128x128xi32> to vector<128x128xf32>
    %53 = arith.addf %43, %52 : vector<128x128xf32>
    %54 = vector.extract_strided_slice %0 {offsets = [0, 5], sizes = [128, 1], strides = [1, 1]} : vector<128x7xi32> to vector<128x1xi32>
    %55 = vector.broadcast %54 : vector<128x1xi32> to vector<128x128xi32>
    %56 = arith.cmpi eq, %2, %55 : vector<128x128xi32>
    %cst_8 = arith.constant 5.000000e+00 : f32
    %57 = vector.broadcast %cst_8 : f32 to vector<128x1xf32>
    %58 = arith.cmpf ogt, %1, %57 : vector<128x1xf32>
    %59 = vector.broadcast %58 : vector<128x1xi1> to vector<128x128xi1>
    %60 = arith.andi %56, %59 : vector<128x128xi1>
    %61 = arith.extui %60 : vector<128x128xi1> to vector<128x128xi32>
    %62 = arith.sitofp %61 : vector<128x128xi32> to vector<128x128xf32>
    %63 = arith.addf %53, %62 : vector<128x128xf32>
    %64 = vector.extract_strided_slice %0 {offsets = [0, 6], sizes = [128, 1], strides = [1, 1]} : vector<128x7xi32> to vector<128x1xi32>
    %65 = vector.broadcast %64 : vector<128x1xi32> to vector<128x128xi32>
    %66 = arith.cmpi eq, %2, %65 : vector<128x128xi32>
    %cst_9 = arith.constant 6.000000e+00 : f32
    %67 = vector.broadcast %cst_9 : f32 to vector<128x1xf32>
    %68 = arith.cmpf ogt, %1, %67 : vector<128x1xf32>
    %69 = vector.broadcast %68 : vector<128x1xi1> to vector<128x128xi1>
    %70 = arith.andi %66, %69 : vector<128x128xi1>
    %71 = arith.extui %70 : vector<128x128xi1> to vector<128x128xi32>
    %72 = arith.sitofp %71 : vector<128x128xi32> to vector<128x128xf32>
    %73 = arith.addf %63, %72 : vector<128x128xf32>
    %74 = arith.truncf %73 : vector<128x128xf32> to vector<128x128xbf16>
    %c0_10 = arith.constant 0 : index
    %c0_11 = arith.constant 0 : index
    %75 = vector.load %arg5[%c0_10, %c0_11] : memref<128x64xbf16, #tpu.memory_space<vmem>>, vector<128x64xbf16>
    %cst_12 = arith.constant dense<0.000000e+00> : vector<128x64xf32>
    %76 = tpu.matmul %74, %75, %cst_12 {dimension_numbers = #tpu.dot_dimension_numbers<[1], [0], [0], [1], [0, 0, 1, 1], [], []>} : vector<128x128xbf16>, vector<128x64xbf16>, vector<128x64xf32> -> vector<128x64xf32>
    %cst_13 = arith.constant 0.000000e+00 : f32
    %77 = vector.broadcast %cst_13 : f32 to vector<128x1xf32>
    %78 = arith.cmpf ogt, %1, %77 : vector<128x1xf32>
    %cst_14 = arith.constant 1.000000e+00 : f32
    %79 = vector.broadcast %cst_14 : f32 to vector<128x1xf32>
    %80 = arith.select %78, %1, %79 : vector<128x1xi1>, vector<128x1xf32>
    %81 = vector.broadcast %80 : vector<128x1xf32> to vector<128x64xf32>
    %82 = arith.divf %76, %81 : vector<128x64xf32>
    %c0_15 = arith.constant 0 : index
    %c0_16 = arith.constant 0 : index
    %83 = vector.load %arg2[%c0_15, %c0_16] : memref<128x5xi32, #tpu.memory_space<vmem>>, vector<128x5xi32>
    %c0_17 = arith.constant 0 : index
    %c0_18 = arith.constant 0 : index
    %84 = vector.load %arg4[%c0_17, %c0_18] : memref<128x1xf32, #tpu.memory_space<vmem>>, vector<128x1xf32>
    %85 = tpu.iota {dimensions = array<i32: 1>} : vector<128x128xi32>
    %cst_19 = arith.constant 0.000000e+00 : f32
    %86 = vector.broadcast %cst_19 : f32 to vector<128x128xf32>
    %87 = vector.extract_strided_slice %83 {offsets = [0, 0], sizes = [128, 1], strides = [1, 1]} : vector<128x5xi32> to vector<128x1xi32>
    %88 = vector.broadcast %87 : vector<128x1xi32> to vector<128x128xi32>
    %89 = arith.cmpi eq, %85, %88 : vector<128x128xi32>
    %cst_20 = arith.constant 0.000000e+00 : f32
    %90 = vector.broadcast %cst_20 : f32 to vector<128x1xf32>
    %91 = arith.cmpf ogt, %84, %90 : vector<128x1xf32>
    %92 = vector.broadcast %91 : vector<128x1xi1> to vector<128x128xi1>
    %93 = arith.andi %89, %92 : vector<128x128xi1>
    %94 = arith.extui %93 : vector<128x128xi1> to vector<128x128xi32>
    %95 = arith.sitofp %94 : vector<128x128xi32> to vector<128x128xf32>
    %96 = arith.addf %86, %95 : vector<128x128xf32>
    %97 = vector.extract_strided_slice %83 {offsets = [0, 1], sizes = [128, 1], strides = [1, 1]} : vector<128x5xi32> to vector<128x1xi32>
    %98 = vector.broadcast %97 : vector<128x1xi32> to vector<128x128xi32>
    %99 = arith.cmpi eq, %85, %98 : vector<128x128xi32>
    %cst_21 = arith.constant 1.000000e+00 : f32
    %100 = vector.broadcast %cst_21 : f32 to vector<128x1xf32>
    %101 = arith.cmpf ogt, %84, %100 : vector<128x1xf32>
    %102 = vector.broadcast %101 : vector<128x1xi1> to vector<128x128xi1>
    %103 = arith.andi %99, %102 : vector<128x128xi1>
    %104 = arith.extui %103 : vector<128x128xi1> to vector<128x128xi32>
    %105 = arith.sitofp %104 : vector<128x128xi32> to vector<128x128xf32>
    %106 = arith.addf %96, %105 : vector<128x128xf32>
    %107 = vector.extract_strided_slice %83 {offsets = [0, 2], sizes = [128, 1], strides = [1, 1]} : vector<128x5xi32> to vector<128x1xi32>
    %108 = vector.broadcast %107 : vector<128x1xi32> to vector<128x128xi32>
    %109 = arith.cmpi eq, %85, %108 : vector<128x128xi32>
    %cst_22 = arith.constant 2.000000e+00 : f32
    %110 = vector.broadcast %cst_22 : f32 to vector<128x1xf32>
    %111 = arith.cmpf ogt, %84, %110 : vector<128x1xf32>
    %112 = vector.broadcast %111 : vector<128x1xi1> to vector<128x128xi1>
    %113 = arith.andi %109, %112 : vector<128x128xi1>
    %114 = arith.extui %113 : vector<128x128xi1> to vector<128x128xi32>
    %115 = arith.sitofp %114 : vector<128x128xi32> to vector<128x128xf32>
    %116 = arith.addf %106, %115 : vector<128x128xf32>
    %117 = vector.extract_strided_slice %83 {offsets = [0, 3], sizes = [128, 1], strides = [1, 1]} : vector<128x5xi32> to vector<128x1xi32>
    %118 = vector.broadcast %117 : vector<128x1xi32> to vector<128x128xi32>
    %119 = arith.cmpi eq, %85, %118 : vector<128x128xi32>
    %cst_23 = arith.constant 3.000000e+00 : f32
    %120 = vector.broadcast %cst_23 : f32 to vector<128x1xf32>
    %121 = arith.cmpf ogt, %84, %120 : vector<128x1xf32>
    %122 = vector.broadcast %121 : vector<128x1xi1> to vector<128x128xi1>
    %123 = arith.andi %119, %122 : vector<128x128xi1>
    %124 = arith.extui %123 : vector<128x128xi1> to vector<128x128xi32>
    %125 = arith.sitofp %124 : vector<128x128xi32> to vector<128x128xf32>
    %126 = arith.addf %116, %125 : vector<128x128xf32>
    %127 = vector.extract_strided_slice %83 {offsets = [0, 4], sizes = [128, 1], strides = [1, 1]} : vector<128x5xi32> to vector<128x1xi32>
    %128 = vector.broadcast %127 : vector<128x1xi32> to vector<128x128xi32>
    %129 = arith.cmpi eq, %85, %128 : vector<128x128xi32>
    %cst_24 = arith.constant 4.000000e+00 : f32
    %130 = vector.broadcast %cst_24 : f32 to vector<128x1xf32>
    %131 = arith.cmpf ogt, %84, %130 : vector<128x1xf32>
    %132 = vector.broadcast %131 : vector<128x1xi1> to vector<128x128xi1>
    %133 = arith.andi %129, %132 : vector<128x128xi1>
    %134 = arith.extui %133 : vector<128x128xi1> to vector<128x128xi32>
    %135 = arith.sitofp %134 : vector<128x128xi32> to vector<128x128xf32>
    %136 = arith.addf %126, %135 : vector<128x128xf32>
    %137 = arith.truncf %136 : vector<128x128xf32> to vector<128x128xbf16>
    %c0_25 = arith.constant 0 : index
    %c0_26 = arith.constant 0 : index
    %138 = vector.load %arg6[%c0_25, %c0_26] : memref<128x64xbf16, #tpu.memory_space<vmem>>, vector<128x64xbf16>
    %cst_27 = arith.constant dense<0.000000e+00> : vector<128x64xf32>
    %139 = tpu.matmul %137, %138, %cst_27 {dimension_numbers = #tpu.dot_dimension_numbers<[1], [0], [0], [1], [0, 0, 1, 1], [], []>} : vector<128x128xbf16>, vector<128x64xbf16>, vector<128x64xf32> -> vector<128x64xf32>
    %cst_28 = arith.constant 0.000000e+00 : f32
    %140 = vector.broadcast %cst_28 : f32 to vector<128x1xf32>
    %141 = arith.cmpf ogt, %84, %140 : vector<128x1xf32>
    %cst_29 = arith.constant 1.000000e+00 : f32
    %142 = vector.broadcast %cst_29 : f32 to vector<128x1xf32>
    %143 = arith.select %141, %84, %142 : vector<128x1xi1>, vector<128x1xf32>
    %144 = vector.broadcast %143 : vector<128x1xf32> to vector<128x64xf32>
    %145 = arith.divf %139, %144 : vector<128x64xf32>
    %146 = tpu.concatenate %82, %145 in 1 : vector<128x64xf32>, vector<128x64xf32> -> vector<128x128xf32>
    %147 = arith.truncf %146 : vector<128x128xf32> to vector<128x128xbf16>
    %c0_30 = arith.constant 0 : index
    %c0_31 = arith.constant 0 : index
    %148 = vector.load %arg8[%c0_30, %c0_31] : memref<128x64xbf16, #tpu.memory_space<vmem>>, vector<128x64xbf16>
    %cst_32 = arith.constant dense<0.000000e+00> : vector<128x64xf32>
    %149 = tpu.matmul %147, %148, %cst_32 {dimension_numbers = #tpu.dot_dimension_numbers<[1], [0], [0], [1], [0, 0, 1, 1], [], []>} : vector<128x128xbf16>, vector<128x64xbf16>, vector<128x64xf32> -> vector<128x64xf32>
    %c0_33 = arith.constant 0 : index
    %c0_34 = arith.constant 0 : index
    %150 = vector.load %arg9[%c0_33, %c0_34] : memref<1x64xf32, #tpu.memory_space<vmem>>, vector<1x64xf32>
    %151 = vector.broadcast %150 : vector<1x64xf32> to vector<128x64xf32>
    %152 = arith.addf %149, %151 : vector<128x64xf32>
    %153 = arith.truncf %152 : vector<128x64xf32> to vector<128x64xbf16>
    %c0_35 = arith.constant 0 : index
    %c0_36 = arith.constant 0 : index
    %154 = vector.load %arg10[%c0_35, %c0_36] : memref<64x96xbf16, #tpu.memory_space<vmem>>, vector<64x96xbf16>
    %cst_37 = arith.constant dense<0.000000e+00> : vector<128x96xf32>
    %155 = tpu.matmul %153, %154, %cst_37 {dimension_numbers = #tpu.dot_dimension_numbers<[1], [0], [0], [1], [0, 0, 1, 1], [], []>} : vector<128x64xbf16>, vector<64x96xbf16>, vector<128x96xf32> -> vector<128x96xf32>
    %c0_38 = arith.constant 0 : index
    %c0_39 = arith.constant 0 : index
    %156 = vector.load %arg11[%c0_38, %c0_39] : memref<1x96xf32, #tpu.memory_space<vmem>>, vector<1x96xf32>
    %157 = vector.broadcast %156 : vector<1x96xf32> to vector<128x96xf32>
    %158 = arith.addf %155, %157 : vector<128x96xf32>
    %159 = arith.negf %158 : vector<128x96xf32>
    %160 = math.exp %159 : vector<128x96xf32>
    %cst_40 = arith.constant 1.000000e+00 : f32
    %161 = vector.broadcast %cst_40 : f32 to vector<128x96xf32>
    %162 = arith.addf %161, %160 : vector<128x96xf32>
    %163 = arith.divf %161, %162 : vector<128x96xf32>
    %164 = vector.extract_strided_slice %163 {offsets = [0, 0], sizes = [128, 32], strides = [1, 1]} : vector<128x96xf32> to vector<128x32xf32>
    %165 = vector.extract_strided_slice %163 {offsets = [0, 32], sizes = [128, 32], strides = [1, 1]} : vector<128x96xf32> to vector<128x32xf32>
    %166 = vector.extract_strided_slice %163 {offsets = [0, 64], sizes = [128, 32], strides = [1, 1]} : vector<128x96xf32> to vector<128x32xf32>
    %167 = arith.subf %164, %165 : vector<128x32xf32>
    %168 = arith.mulf %166, %167 : vector<128x32xf32>
    %c0_41 = arith.constant 0 : index
    %c0_42 = arith.constant 0 : index
    %169 = vector.load %arg7[%c0_41, %c0_42] : memref<128x32xf32, #tpu.memory_space<vmem>>, vector<128x32xf32>
    %170 = arith.mulf %168, %169 : vector<128x32xf32>
    %171 = arith.truncf %170 : vector<128x32xf32> to vector<128x32xbf16>
    %c0_43 = arith.constant 0 : index
    %c0_44 = arith.constant 0 : index
    %172 = vector.load %arg12[%c0_43, %c0_44] : memref<32x512xbf16, #tpu.memory_space<vmem>>, vector<32x512xbf16>
    %cst_45 = arith.constant dense<0.000000e+00> : vector<128x512xf32>
    %173 = tpu.matmul %171, %172, %cst_45 {dimension_numbers = #tpu.dot_dimension_numbers<[1], [0], [0], [1], [0, 0, 1, 1], [], []>} : vector<128x32xbf16>, vector<32x512xbf16>, vector<128x512xf32> -> vector<128x512xf32>
    %c0_46 = arith.constant 0 : index
    %c0_47 = arith.constant 0 : index
    %174 = vector.load %arg13[%c0_46, %c0_47] : memref<1x512xf32, #tpu.memory_space<vmem>>, vector<1x512xf32>
    %175 = vector.broadcast %174 : vector<1x512xf32> to vector<128x512xf32>
    %176 = arith.addf %173, %175 : vector<128x512xf32>
    %177 = arith.negf %176 : vector<128x512xf32>
    %178 = math.exp %177 : vector<128x512xf32>
    %cst_48 = arith.constant 1.000000e+00 : f32
    %179 = vector.broadcast %cst_48 : f32 to vector<128x512xf32>
    %180 = arith.addf %179, %178 : vector<128x512xf32>
    %181 = arith.divf %179, %180 : vector<128x512xf32>
    %182 = arith.truncf %181 : vector<128x512xf32> to vector<128x512xbf16>
    %c0_49 = arith.constant 0 : index
    %c0_50 = arith.constant 0 : index
    %183 = vector.load %arg14[%c0_49, %c0_50] : memref<512x256xbf16, #tpu.memory_space<vmem>>, vector<512x256xbf16>
    %cst_51 = arith.constant dense<0.000000e+00> : vector<128x256xf32>
    %184 = tpu.matmul %182, %183, %cst_51 {dimension_numbers = #tpu.dot_dimension_numbers<[1], [0], [0], [1], [0, 0, 1, 1], [], []>} : vector<128x512xbf16>, vector<512x256xbf16>, vector<128x256xf32> -> vector<128x256xf32>
    %c0_52 = arith.constant 0 : index
    %c0_53 = arith.constant 0 : index
    %185 = vector.load %arg15[%c0_52, %c0_53] : memref<1x256xf32, #tpu.memory_space<vmem>>, vector<1x256xf32>
    %186 = vector.broadcast %185 : vector<1x256xf32> to vector<128x256xf32>
    %187 = arith.addf %184, %186 : vector<128x256xf32>
    %188 = arith.negf %187 : vector<128x256xf32>
    %189 = math.exp %188 : vector<128x256xf32>
    %cst_54 = arith.constant 1.000000e+00 : f32
    %190 = vector.broadcast %cst_54 : f32 to vector<128x256xf32>
    %191 = arith.addf %190, %189 : vector<128x256xf32>
    %192 = arith.divf %190, %191 : vector<128x256xf32>
    %193 = arith.truncf %192 : vector<128x256xf32> to vector<128x256xbf16>
    %c0_55 = arith.constant 0 : index
    %c0_56 = arith.constant 0 : index
    %194 = vector.load %arg16[%c0_55, %c0_56] : memref<256x32xbf16, #tpu.memory_space<vmem>>, vector<256x32xbf16>
    %cst_57 = arith.constant dense<0.000000e+00> : vector<128x32xf32>
    %195 = tpu.matmul %193, %194, %cst_57 {dimension_numbers = #tpu.dot_dimension_numbers<[1], [0], [0], [1], [0, 0, 1, 1], [], []>} : vector<128x256xbf16>, vector<256x32xbf16>, vector<128x32xf32> -> vector<128x32xf32>
    %c0_58 = arith.constant 0 : index
    %c0_59 = arith.constant 0 : index
    %196 = vector.load %arg17[%c0_58, %c0_59] : memref<1x32xf32, #tpu.memory_space<vmem>>, vector<1x32xf32>
    %197 = vector.broadcast %196 : vector<1x32xf32> to vector<128x32xf32>
    %198 = arith.addf %195, %197 : vector<128x32xf32>
    %199 = arith.negf %198 : vector<128x32xf32>
    %200 = math.exp %199 : vector<128x32xf32>
    %cst_60 = arith.constant 1.000000e+00 : f32
    %201 = vector.broadcast %cst_60 : f32 to vector<128x32xf32>
    %202 = arith.addf %201, %200 : vector<128x32xf32>
    %203 = arith.divf %201, %202 : vector<128x32xf32>
    %204 = tpu.concatenate %163, %203 in 1 : vector<128x96xf32>, vector<128x32xf32> -> vector<128x128xf32>
    %c0_61 = arith.constant 0 : index
    %c0_62 = arith.constant 0 : index
    %205 = vector.load %arg18[%c0_61, %c0_62] : memref<128x128xf32, #tpu.memory_space<vmem>>, vector<128x128xf32>
    tpu.vector_store %arg18[%c0_61, %c0_62], %204 {strides = array<i32>} : memref<128x128xf32, #tpu.memory_space<vmem>>, vector<128x128xf32>,
    return
  }
  func.func @transform_0(%arg0: i32) -> (i32, i32) {
    %c0_i32 = arith.constant 0 : i32
    %c0_i32_0 = arith.constant 0 : i32
    return %arg0, %c0_i32 : i32, i32
  }
  func.func @transform_1(%arg0: i32) -> (i32, i32) {
    %c0_i32 = arith.constant 0 : i32
    %c0_i32_0 = arith.constant 0 : i32
    return %arg0, %c0_i32 : i32, i32
  }
  func.func @transform_2(%arg0: i32) -> (i32, i32) {
    %c0_i32 = arith.constant 0 : i32
    %c0_i32_0 = arith.constant 0 : i32
    return %arg0, %c0_i32 : i32, i32
  }
  func.func @transform_3(%arg0: i32) -> (i32, i32) {
    %c0_i32 = arith.constant 0 : i32
    %c0_i32_0 = arith.constant 0 : i32
    return %arg0, %c0_i32 : i32, i32
  }
  func.func @transform_4(%arg0: i32) -> (i32, i32) {
    %c0_i32 = arith.constant 0 : i32
    %c0_i32_0 = arith.constant 0 : i32
    %c0_i32_1 = arith.constant 0 : i32
    return %c0_i32, %c0_i32_0 : i32, i32
  }
  func.func @transform_5(%arg0: i32) -> (i32, i32) {
    %c0_i32 = arith.constant 0 : i32
    %c0_i32_0 = arith.constant 0 : i32
    %c0_i32_1 = arith.constant 0 : i32
    return %c0_i32, %c0_i32_0 : i32, i32
  }
  func.func @transform_6(%arg0: i32) -> (i32, i32) {
    %c0_i32 = arith.constant 0 : i32
    %c0_i32_0 = arith.constant 0 : i32
    return %arg0, %c0_i32 : i32, i32
  }
  func.func @transform_7(%arg0: i32) -> (i32, i32) {
    %c0_i32 = arith.constant 0 : i32
    %c0_i32_0 = arith.constant 0 : i32
    %c0_i32_1 = arith.constant 0 : i32
    return %c0_i32, %c0_i32_0 : i32, i32
  }
  func.func @transform_8(%arg0: i32) -> (i32, i32) {
    %c0_i32 = arith.constant 0 : i32
    %c0_i32_0 = arith.constant 0 : i32
    %c0_i32_1 = arith.constant 0 : i32
    return %c0_i32, %c0_i32_0 : i32, i32
  }
  func.func @transform_9(%arg0: i32) -> (i32, i32) {
    %c0_i32 = arith.constant 0 : i32
    %c0_i32_0 = arith.constant 0 : i32
    %c0_i32_1 = arith.constant 0 : i32
    return %c0_i32, %c0_i32_0 : i32, i32
  }
  func.func @transform_10(%arg0: i32) -> (i32, i32) {
    %c0_i32 = arith.constant 0 : i32
    %c0_i32_0 = arith.constant 0 : i32
    %c0_i32_1 = arith.constant 0 : i32
    return %c0_i32, %c0_i32_0 : i32, i32
  }
  func.func @transform_11(%arg0: i32) -> (i32, i32) {
    %c0_i32 = arith.constant 0 : i32
    %c0_i32_0 = arith.constant 0 : i32
    %c0_i32_1 = arith.constant 0 : i32
    return %c0_i32, %c0_i32_0 : i32, i32
  }
  func.func @transform_12(%arg0: i32) -> (i32, i32) {
    %c0_i32 = arith.constant 0 : i32
    %c0_i32_0 = arith.constant 0 : i32
    %c0_i32_1 = arith.constant 0 : i32
    return %c0_i32, %c0_i32_0 : i32, i32
  }
  func.func @transform_13(%arg0: i32) -> (i32, i32) {
    %c0_i32 = arith.constant 0 : i32
    %c0_i32_0 = arith.constant 0 : i32
    %c0_i32_1 = arith.constant 0 : i32
    return %c0_i32, %c0_i32_0 : i32, i32
  }
  func.func @transform_14(%arg0: i32) -> (i32, i32) {
    %c0_i32 = arith.constant 0 : i32
    %c0_i32_0 = arith.constant 0 : i32
    %c0_i32_1 = arith.constant 0 : i32
    return %c0_i32, %c0_i32_0 : i32, i32
  }
  func.func @transform_15(%arg0: i32) -> (i32, i32) {
    %c0_i32 = arith.constant 0 : i32
    %c0_i32_0 = arith.constant 0 : i32
    %c0_i32_1 = arith.constant 0 : i32
    return %c0_i32, %c0_i32_0 : i32, i32
  }
  func.func @transform_16(%arg0: i32) -> (i32, i32) {
    %c0_i32 = arith.constant 0 : i32
    %c0_i32_0 = arith.constant 0 : i32
    %c0_i32_1 = arith.constant 0 : i32
    return %c0_i32, %c0_i32_0 : i32, i32
  }
  func.func @transform_17(%arg0: i32) -> (i32, i32) {
    %c0_i32 = arith.constant 0 : i32
    %c0_i32_0 = arith.constant 0 : i32
    return %arg0, %c0_i32 : i32, i32
  }
}

</mosaic_0001>

<bundles_post_ra>
// kernel: icd_forward.1
= control target key start
LH: loop header
LB: loop body
LE: loop exit
PB: predicated region body
PF: predicated region fallthrough
CT: control target
= control target key end

     0   :  { %v12839_v0 = vmov 5   ;;  %v12885_v1 = vmov 0   ;;  %v12849_v6 = vmov 6   ;;  %v12841_v9 = vmov 1   ;;  %s12819_s0 = inlined_call_operand.vmem [shape: s32[128,7], index: 0, kind: input, shape index: {}]   ;;  %s12820_s2 = inlined_call_operand.vmem [shape: f32[128,1], index: 2, kind: input, shape index: {}]   ;;  %s12821_s1 = inlined_call_operand.vmem [shape: s32[128,5], index: 1, kind: input, shape index: {}]   ;;  %s12822_s4 = inlined_call_operand.vmem [shape: bf16[128,64], index: 4, kind: input, shape index: {}]   ;;  %s12823_s3 = inlined_call_operand.vmem [shape: f32[128,1], index: 3, kind: input, shape index: {}]   ;;  %s12824_s5 = inlined_call_operand.vmem [shape: bf16[128,64], index: 5, kind: input, shape index: {}]   ;;  %s12825_s7 = inlined_call_operand.vmem [shape: bf16[128,64], index: 7, kind: input, shape index: {}]   ;;  %s12826_s9 = inlined_call_operand.vmem [shape: bf16[64,96], index: 9, kind: input, shape index: {}]   ;;  %s12827_s8 = inlined_call_operand.vmem [shape: f32[1,64], index: 8, kind: input, shape index: {}]   ;;  %s12828_s10 = inlined_call_operand.vmem [shape: f32[1,96], index: 10, kind: input, shape index: {}]   ;;  %s12829_s6 = inlined_call_operand.vmem [shape: f32[128,32], index: 6, kind: input, shape index: {}]   ;;  %s12830_s11 = inlined_call_operand.vmem [shape: bf16[32,512], index: 11, kind: input, shape index: {}]   ;;  %s12831_s13 = inlined_call_operand.vmem [shape: bf16[512,256], index: 13, kind: input, shape index: {}]   ;;  %s12832_s12 = inlined_call_operand.vmem [shape: f32[1,512], index: 12, kind: input, shape index: {}]   ;;  %s12833_s15 = inlined_call_operand.vmem [shape: bf16[256,32], index: 15, kind: input, shape index: {}]   ;;  %s12834_s14 = inlined_call_operand.vmem [shape: f32[1,256], index: 14, kind: input, shape index: {}]   ;;  %s12835_s16 = inlined_call_operand.vmem [shape: f32[1,32], index: 16, kind: input, shape index: {}]   ;;  %s12836_s17 = inlined_call_operand.vmem [shape: f32[128,128], index: 17, kind: output, shape index: {}]  }
   0x1   :  { %12940 = sst [smem:[#allocation82_spill]] %s12819_s0  ;;  %7016 = vset.pattern.permute.xlu0 %v12839_v0  ;;  %6927 = vset.pattern.permute.xlu1 %v12885_v1  ;;  %v1956_v24 = vld [vmem:[%s12821_s1] sm:$0xff]  ;;  %v8141_v25 = vld [vmem:[%s12821_s1 + $0x10] sm:$0xff]  ;;  %v12843_v26 = vmov 2   ;;  %v12847_v35 = vmov 3   ;;  %v12845_v38 = vmov 4  }
   0x2   :  { %12941 = sst [smem:[#allocation83_spill]] %s12820_s2  ;;  %v1960_v27 = vld [vmem:[%s12821_s1 + $0x20] sm:$0xff]  ;;  %v8154_v28 = vld [vmem:[%s12821_s1 + $0x30] sm:$0xff] }
   0x3   :  { %s12942_s26 = sld [smem:[#allocation82_spill]]  ;;  %v1964_v30 = vld [vmem:[%s12821_s1 + $0x40] sm:$0xff]  ;;  %v8168_v31 = vld [vmem:[%s12821_s1 + $0x50] sm:$0xff] }
   0x4   :  { %s12943_s19 = sld [smem:[#allocation83_spill]]  ;;  %v1968_v33 = vld [vmem:[%s12821_s1 + $0x60] sm:$0xff]  ;;  %v8179_v34 = vld [vmem:[%s12821_s1 + $0x70] sm:$0xff] }
   0x9   :  { %v8029_v2 = vld [vmem:[%s12942_s26 + $0x60] sm:$0xff]  ;;  %v8034_v3 = vld [vmem:[%s12942_s26 + $0x10] sm:$0xff]  ;;  %v8041_v4 = vld [vmem:[%s12942_s26 + $0x18] sm:$0xff] }
   0xa   :  { %1248 = vperm.xlu0 %7016, %v8029_v2   ;;  %98 = vperm.xlu1 %6927, %v8034_v3   ;;  %v8046_v5 = vld [vmem:[%s12943_s19 + $0x8] sm:$0xff]  ;;  %v8060_v8 = vld [vmem:[%s12942_s26] sm:$0xff]  ;;  %v8090_v14 = vld [vmem:[%s12943_s19 + $0x10] sm:$0xff] }
   0xb   :  { %12944 = vst [vmem:[#allocation2_spill] sm:$0xff] %v8046_v5  ;;  %v8054_v7 = vld [vmem:[%s12942_s26 + $0x28] sm:$0xff]  ;;  %vm12897_vm0 = vcmp.gt.f32.partialorder %v8046_v5, 0.0  ;;  %v8071_v11 = vld [vmem:[%s12943_s19] sm:$0xff]  ;;  %12946 = vst [vmem:[#allocation4_spill] sm:$0xff] %v8090_v14  ;;  %vm12900_vm2 = vcmp.gt.f32.partialorder %v8090_v14, 0.0 }
   0xc   :  { %v172_v10 = vsel %vm12897_vm0, 1, %v12885_v1  ;;  %12945 = vst [vmem:[#allocation3_spill] sm:$0xff] %v8071_v11  ;;  %v8077_v12 = vld [vmem:[%s12942_s26 + $0x8] sm:$0xff]  ;;  %v8082_v13 = vld [vmem:[%s12942_s26 + $0x20] sm:$0xff]  ;;  %vm379_vm1 = vcmp.gt.f32.partialorder %v8071_v11, 1.0  ;;  %v8097_v16 = vld [vmem:[%s12942_s26 + $0x30] sm:$0xff] }
   0xd   :  { %v395_v15 = vsel %vm379_vm1, 1, %v12885_v1  ;;  %v8104_v17 = vld [vmem:[%s12943_s19 + $0x18] sm:$0xff]  ;;  %v173_v18 = vsel %vm12900_vm2, 1, %v12885_v1  ;;  %v8113_v19 = vld [vmem:[%s12942_s26 + $0x40] sm:$0xff]  ;;  %v8123_v21 = vld [vmem:[%s12942_s26 + $0x50] sm:$0xff]  ;;  %vm381_vm4 = vcmp.gt.f32.partialorder %v8090_v14, 1.0 }
   0xe   :  { %7021 = vset.pattern.permute.xlu0 %v12849_v6  ;;  %101 = vperm.xlu1 %6927, %v8041_v4   ;;  %12947 = vst [vmem:[#allocation5_spill] sm:$0xff] %v8104_v17  ;;  %vm12896_vm3 = vcmp.gt.f32.partialorder %v8104_v17, 0.0  ;;  %v71_v22 = vld [vmem:[%s12942_s26 + $0x70] sm:$0xff]  ;;  %v397_v23 = vsel %vm381_vm4, 1, %v12885_v1  ;;  %vm604_vm5 = vcmp.gt.f32.partialorder %v8046_v5, 2.0  ;;  %vm605_vm6 = vcmp.gt.f32.partialorder %v8090_v14, 2.0 }
   0xf   :  { %1472 = vperm.xlu0 %7021, %v8029_v2   ;;  %v174_v20 = vsel %vm12896_vm3, 1, %v12885_v1  ;;  %v620_v29 = vsel %vm604_vm5, 1, %v12885_v1  ;;  %v621_v32 = vsel %vm605_vm6, 1, %v12885_v1  ;;  %vm828_vm7 = vcmp.gt.f32.partialorder %v8046_v5, 3.0  ;;  %v8214_v40 = vld [vmem:[%s12943_s19 + $0x20] sm:$0xff]  ;;  %v8223_v42 = vld [vmem:[%s12943_s19 + $0x28] sm:$0xff] }
  0x10   :  { %v844_v36 = vsel %vm828_vm7, 1, %v12885_v1  ;;  %vm829_vm8 = vcmp.gt.f32.partialorder %v8090_v14, 3.0  ;;  %vm1052_vm9 = vcmp.gt.f32.partialorder %v8046_v5, 4.0  ;;  %vm1053_vm10 = vcmp.gt.f32.partialorder %v8090_v14, 4.0  ;;  %12948 = vst [vmem:[#allocation6_spill] sm:$0xff] %v8214_v40  ;;  %12949 = vst [vmem:[#allocation7_spill] sm:$0xff] %v8223_v42 }
  0x11   :  { %v845_v37 = vsel %vm829_vm8, 1, %v12885_v1  ;;  %v1068_v39 = vsel %vm1052_vm9, 1, %v12885_v1  ;;  %v1069_v41 = vsel %vm1053_vm10, 1, %v12885_v1  ;;  %vm12899_vm11 = vcmp.gt.f32.partialorder %v8214_v40, 0.0  ;;  %v8274_v57 = vld [vmem:[%s12943_s19 + $0x38] sm:$0xff] }
  0x12   :  { %107 = vperm.xlu1 %6927, %v8054_v7   ;;  %v175_v43 = vsel %vm12899_vm11, 1, %v12885_v1  ;;  %vm12895_vm12 = vcmp.gt.f32.partialorder %v8223_v42, 0.0  ;;  %vm383_vm13 = vcmp.gt.f32.partialorder %v8214_v40, 1.0  ;;  %vm1276_vm14 = vcmp.gt.f32.partialorder %v8046_v5, 5.0  ;;  %12954 = vst [vmem:[#allocation12_spill] sm:$0xff] %v8274_v57  ;;  %v8284_v60 = vld [vmem:[%s12942_s26 + $0x38] sm:$0xff] }
  0x13   :  { %7022 = vset.pattern.permute.xlu0 %v12841_v9  ;;  %v176_v44 = vsel %vm12895_vm12, 1, %v12885_v1  ;;  %v399_v48 = vsel %vm383_vm13, 1, %v12885_v1  ;;  %v1292_v56 = vsel %vm1276_vm14, 1, %v12885_v1  ;;  %vm12894_vm15 = vcmp.gt.f32.partialorder %v8274_v57, 0.0 }
  0x14   :  { %316 = vperm.xlu0 %7022, %v8060_v8   ;;  %v178_v63 = vsel %vm12894_vm15, 1, %v12885_v1  ;;  %vm1278_vm4 = vcmp.gt.f32.partialorder %v8104_v17, 5.0  ;;  %vm607_vm5 = vcmp.gt.f32.partialorder %v8214_v40, 2.0  ;;  %vm12902_vm6 = vcmp.gt.f32.partialorder %v8071_v11, 0.0 }
  0x15   :  { %vm1500_vm7 = vcmp.gt.f32.partialorder %v8046_v5, 6.0  ;;  %vm380_vm8 = vcmp.gt.f32.partialorder %v8046_v5, 1.0  ;;  %vm382_vm9 = vcmp.gt.f32.partialorder %v8104_v17, 1.0  ;;  %vm603_vm10 = vcmp.gt.f32.partialorder %v8071_v11, 2.0 }
  0x16   :  { %191 = vperm.xlu1 %6927, %v172_v10   ;;  %vm606_vm14 = vcmp.gt.f32.partialorder %v8104_v17, 2.0 }
  0x18   :  { %322 = vperm.xlu0 %7022, %v8034_v3  }
  0x1a   :  { %6928 = vset.pattern.permute.xlu1 %v12841_v9 }
  0x1b   :  { %319 = vperm.xlu1 %6928, %v8077_v12  }
  0x1c   :  { %328 = vperm.xlu0 %7022, %v8082_v13  }
  0x1f   :  { %6929 = vset.pattern.permute.xlu1 %v12885_v1 }
  0x20   :  { %412 = vperm.xlu1 %6929, %v395_v15   ;;  %334 = vperm.xlu0 %7022, %v8097_v16  }
  0x24   :  { %194 = vperm.xlu1 %6929, %v173_v18   ;;  %340 = vperm.xlu0 %7022, %v8113_v19   ;;  %v8305_v18 = vld [vmem:[%s12943_s19 + $0x30] sm:$0xff] }
  0x25   :  { %12958 = vst [vmem:[#allocation16_spill] sm:$0xff] %v8305_v18  ;;  %vm385_vm1 = vcmp.gt.f32.partialorder %v8305_v18, 1.0  ;;  %vm609_vm13 = vcmp.gt.f32.partialorder %v8305_v18, 2.0 }
  0x28   :  { %197 = vperm.xlu1 %6929, %v174_v20   ;;  %346 = vperm.xlu0 %7022, %v8123_v21  }
  0x2c   :  { %6930 = vset.pattern.permute.xlu1 %v12841_v9  ;;  %352 = vperm.xlu0 %7022, %v8029_v2  }
  0x2d   :  { %325 = vperm.xlu1 %6930, %v8041_v4  }
  0x30   :  { %358 = vperm.xlu0 %7022, %v71_v22  }
  0x31   :  { %6931 = vset.pattern.permute.xlu1 %v12885_v1 }
  0x32   :  { %418 = vperm.xlu1 %6931, %v397_v23   ;;  %v401_v23 = vsel %vm385_vm1, 1, %v12885_v1  ;;  %vm827_vm1 = vcmp.gt.f32.partialorder %v8071_v11, 3.0 }
  0x34   :  { %2213 = vperm.xlu0 %7022, %v1956_v24  }
  0x36   :  { %6932 = vset.pattern.permute.xlu1 %v12843_v26 }
  0x37   :  { %540 = vperm.xlu1 %6932, %v8060_v8  }
  0x38   :  { %2219 = vperm.xlu0 %7022, %v8141_v25  }
  0x3b   :  { %543 = vperm.xlu1 %6932, %v8077_v12  }
  0x3c   :  { %2225 = vperm.xlu0 %7022, %v1960_v27  }
  0x3f   :  { %6933 = vset.pattern.permute.xlu1 %v12885_v1 }
  0x40   :  { %2231 = vperm.xlu0 %7022, %v8154_v28   ;;  %639 = vperm.xlu1 %6933, %v620_v29  }
  0x44   :  { %2237 = vperm.xlu0 %7022, %v1964_v30   ;;  %6934 = vset.pattern.permute.xlu1 %v12843_v26 }
  0x45   :  { %549 = vperm.xlu1 %6934, %v8041_v4  }
  0x48   :  { %2243 = vperm.xlu0 %7022, %v8168_v31  }
  0x49   :  { %6935 = vset.pattern.permute.xlu1 %v12885_v1 }
  0x4a   :  { %642 = vperm.xlu1 %6935, %v621_v32  }
  0x4c   :  { %2249 = vperm.xlu0 %7022, %v1968_v33  }
  0x4e   :  { %6936 = vset.pattern.permute.xlu1 %v12847_v35 }
  0x4f   :  { %764 = vperm.xlu1 %6936, %v8060_v8  }
  0x50   :  { %2255 = vperm.xlu0 %7022, %v8179_v34  }
  0x53   :  { %767 = vperm.xlu1 %6936, %v8077_v12  }
  0x54   :  { %7077 = vset.pattern.permute.xlu0 %v12843_v26 }
  0x55   :  { %546 = vperm.xlu0 %7077, %v8034_v3  }
  0x57   :  { %6937 = vset.pattern.permute.xlu1 %v12885_v1 }
  0x58   :  { %863 = vperm.xlu1 %6937, %v844_v36   ;;  %v1294_v36 = vsel %vm1278_vm4, 1, %v12885_v1  ;;  %vm830_vm4 = vcmp.gt.f32.partialorder %v8104_v17, 3.0 }
  0x59   :  { %552 = vperm.xlu0 %7077, %v8082_v13  }
  0x5c   :  { %6938 = vset.pattern.permute.xlu1 %v12847_v35 }
  0x5d   :  { %558 = vperm.xlu0 %7077, %v8097_v16   ;;  %773 = vperm.xlu1 %6938, %v8041_v4  }
  0x61   :  { %564 = vperm.xlu0 %7077, %v8113_v19   ;;  %6939 = vset.pattern.permute.xlu1 %v12885_v1 }
  0x62   :  { %866 = vperm.xlu1 %6939, %v845_v37  }
  0x65   :  { %570 = vperm.xlu0 %7077, %v8123_v21  }
  0x66   :  { %6940 = vset.pattern.permute.xlu1 %v12845_v38 }
  0x67   :  { %988 = vperm.xlu1 %6940, %v8060_v8  }
  0x69   :  { %576 = vperm.xlu0 %7077, %v8029_v2  }
  0x6b   :  { %991 = vperm.xlu1 %6940, %v8077_v12  }
  0x6d   :  { %582 = vperm.xlu0 %7077, %v71_v22  }
  0x6f   :  { %6941 = vset.pattern.permute.xlu1 %v12885_v1 }
  0x70   :  { %1087 = vperm.xlu1 %6941, %v1068_v39  }
  0x71   :  { %2443 = vperm.xlu0 %7077, %v8141_v25  }
  0x74   :  { %6942 = vset.pattern.permute.xlu1 %v12845_v38 }
  0x75   :  { %2455 = vperm.xlu0 %7077, %v8154_v28   ;;  %997 = vperm.xlu1 %6942, %v8041_v4  }
  0x79   :  { %2467 = vperm.xlu0 %7077, %v8168_v31   ;;  %6943 = vset.pattern.permute.xlu1 %v12885_v1 }
  0x7a   :  { %1090 = vperm.xlu1 %6943, %v1069_v41   ;;  %v623_v41 = vsel %vm607_vm5, 1, %v12885_v1  ;;  %vm1502_vm5 = vcmp.gt.f32.partialorder %v8104_v17, 6.0 }
  0x7d   :  { %2479 = vperm.xlu0 %7077, %v8179_v34  }
  0x7e   :  { %200 = vperm.xlu1 %6943, %v175_v43  }
  0x81   :  { %7082 = vset.pattern.permute.xlu0 %v12847_v35 }
  0x82   :  { %770 = vperm.xlu0 %7082, %v8034_v3   ;;  %203 = vperm.xlu1 %6943, %v176_v44  }
  0x85   :  { %v8235_v45 = vpop.permute.xlu1 %98  ;;  %v8237_v46 = vpop.permute.xlu0 %1248 }
  0x86   :  { %12950 = vst [vmem:[#allocation8_spill] sm:$0xff] %v8237_v46  ;;  %776 = vperm.xlu0 %7082, %v8082_v13   ;;  %6944 = vset.pattern.permute.xlu1 %v12841_v9  ;;  %v12985_v46 = vmov 4  }
  0x87   :  { %331 = vperm.xlu1 %6944, %v8054_v7  }
  0x89   :  { %v8243_v47 = vpop.permute.xlu1 %101 }
  0x8a   :  { %788 = vperm.xlu0 %7082, %v8113_v19   ;;  %v8247_v49 = vpop.permute.xlu0 %1472 }
  0x8b   :  { %12951 = vst [vmem:[#allocation9_spill] sm:$0xff] %v8247_v49  ;;  %6945 = vset.pattern.permute.xlu1 %v12885_v1 }
  0x8c   :  { %424 = vperm.xlu1 %6945, %v399_v48  }
  0x8d   :  { %v8250_v50 = vpop.permute.xlu1 %107 }
  0x8e   :  { %12952 = vst [vmem:[#allocation10_spill] sm:$0xff] %v8250_v50  ;;  %800 = vperm.xlu0 %7082, %v8029_v2  }
  0x8f   :  { %v8253_v51 = vpop.permute.xlu0 %316 }
  0x90   :  { %6946 = vset.pattern.permute.xlu1 %v12839_v0 }
  0x91   :  { %v8256_v52 = vpop.permute.xlu1 %191  ;;  %1212 = vperm.xlu1 %6946, %v8060_v8  }
  0x92   :  { %2667 = vperm.xlu0 %7082, %v8141_v25  }
  0x93   :  { %v8260_v53 = vpop.permute.xlu0 %322 }
  0x95   :  { %1215 = vperm.xlu1 %6946, %v8077_v12  }
  0x96   :  { %v8264_v54 = vpop.permute.xlu1 %319  ;;  %2679 = vperm.xlu0 %7082, %v8154_v28  }
  0x97   :  { %v8267_v55 = vpop.permute.xlu0 %328 }
  0x98   :  { %12953 = vst [vmem:[#allocation11_spill] sm:$0xff] %v8267_v55 }
  0x99   :  { %6947 = vset.pattern.permute.xlu1 %v12885_v1 }
  0x9a   :  { %2691 = vperm.xlu0 %7082, %v8168_v31   ;;  %1311 = vperm.xlu1 %6947, %v1292_v56   ;;  %v171_v56 = vsel %vm12902_vm6, 1, %v12885_v1 }
  0x9b   :  { %v8277_v58 = vpop.permute.xlu1 %412  ;;  %v8279_v59 = vpop.permute.xlu0 %334 }
  0x9c   :  { %12955 = vst [vmem:[#allocation13_spill] sm:$0xff] %v8279_v59 }
  0x9e   :  { %2703 = vperm.xlu0 %7082, %v8179_v34   ;;  %113 = vperm.xlu1 %6947, %v8284_v60  }
  0x9f   :  { %v8289_v61 = vpop.permute.xlu1 %194  ;;  %v8291_v62 = vpop.permute.xlu0 %340 }
  0xa0   :  { %12956 = vst [vmem:[#allocation14_spill] sm:$0xff] %v8291_v62 }
  0xa2   :  { %7087 = vset.pattern.permute.xlu0 %v12845_v38  ;;  %209 = vperm.xlu1 %6947, %v178_v63  }
  0xa3   :  { %v8297_v10 = vpop.permute.xlu1 %197  ;;  %994 = vperm.xlu0 %7087, %v8034_v3   ;;  %v8300_v15 = vpop.permute.xlu0 %346 }
  0xa4   :  { %12957 = vst [vmem:[#allocation15_spill] sm:$0xff] %v8300_v15 }
  0xa6   :  { %6948 = vset.pattern.permute.xlu1 %v12841_v9  ;;  %v619_v9 = vsel %vm603_vm10, 1, %v12885_v1  ;;  %vm831_vm10 = vcmp.gt.f32.partialorder %v8214_v40, 3.0 }
  0xa7   :  { %1000 = vperm.xlu0 %7087, %v8082_v13   ;;  %337 = vperm.xlu1 %6948, %v8284_v60   ;;  %v8311_v20 = vpop.permute.xlu0 %352 }
  0xa8   :  { %12959 = vst [vmem:[#allocation17_spill] sm:$0xff] %v8311_v20  ;;  %v8313_v22 = vpop.permute.xlu1 %325  ;;  %v7139_v20 = vld [vmem:[%s12822_s4 + $0x18] sm:$0xff]  }
  0xab   :  { %1012 = vperm.xlu0 %7087, %v8113_v19   ;;  %6949 = vset.pattern.permute.xlu1 %v12885_v1  ;;  %v8318_v24 = vpop.permute.xlu0 %358 }
  0xac   :  { %12960 = vst [vmem:[#allocation18_spill] sm:$0xff] %v8318_v24  ;;  %430 = vperm.xlu1 %6949, %v401_v23  }
  0xad   :  { %v8320_v27 = vpop.permute.xlu1 %418 }
  0xae   :  { %vm461_vm3 = vcmp.eq.s32.totalorder %v8320_v27, 1 }
  0xaf   :  { %1024 = vperm.xlu0 %7087, %v8029_v2   ;;  %v8323_v29 = vpop.permute.xlu0 %2213 }
  0xb0   :  { %12961 = vst [vmem:[#allocation19_spill] sm:$0xff] %v8323_v29  ;;  %6950 = vset.pattern.permute.xlu1 %v12839_v0  ;;  %v398_v0 = vsel %vm382_vm9, 1, %v12885_v1  ;;  %vm384_vm9 = vcmp.gt.f32.partialorder %v8223_v42, 1.0 }
  0xb1   :  { %1218 = vperm.xlu1 %6950, %v8034_v3  }
  0xb2   :  { %v8327_v30 = vpop.permute.xlu1 %540 }
  0xb3   :  { %2891 = vperm.xlu0 %7087, %v8141_v25   ;;  %v8330_v32 = vpop.permute.xlu0 %2219 }
  0xb4   :  { %12962 = vst [vmem:[#allocation20_spill] sm:$0xff] %v8330_v32 }
  0xb5   :  { %1221 = vperm.xlu1 %6950, %v8041_v4  }
  0xb6   :  { %v8334_v33 = vpop.permute.xlu1 %543 }
  0xb7   :  { %2903 = vperm.xlu0 %7087, %v8154_v28   ;;  %v8337_v2 = vpop.permute.xlu0 %2225 }
  0xb8   :  { %12963 = vst [vmem:[#allocation21_spill] sm:$0xff] %v8337_v2 }
  0xb9   :  { %6951 = vset.pattern.permute.xlu1 %v12885_v1 }
  0xba   :  { %1317 = vperm.xlu1 %6951, %v1294_v36   ;;  %v396_v36 = vsel %vm380_vm8, 1, %v12885_v1  ;;  %vm1054_vm8 = vcmp.gt.f32.partialorder %v8104_v17, 4.0  ;;  %v400_v17 = vsel %vm384_vm9, 1, %v12885_v1  ;;  %vm1499_vm9 = vcmp.gt.f32.partialorder %v8071_v11, 6.0 }
  0xbb   :  { %2915 = vperm.xlu0 %7087, %v8168_v31   ;;  %v8342_v25 = vpop.permute.xlu1 %639  ;;  %v8344_v37 = vpop.permute.xlu0 %2231 }
  0xbc   :  { %12964 = vst [vmem:[#allocation22_spill] sm:$0xff] %v8344_v37  ;;  %vm684_vm2 = vcmp.eq.s32.totalorder %v8342_v25, 1 }
  0xbe   :  { %6952 = vset.pattern.permute.xlu1 %v12843_v26 }
  0xbf   :  { %2927 = vperm.xlu0 %7087, %v8179_v34   ;;  %555 = vperm.xlu1 %6952, %v8054_v7   ;;  %v8350_v28 = vpop.permute.xlu0 %2237 }
  0xc0   :  { %12965 = vst [vmem:[#allocation23_spill] sm:$0xff] %v8350_v28  ;;  %v8352_v39 = vpop.permute.xlu1 %549  ;;  %v12976_v28 = vmov 3  }
  0xc3   :  { %7092 = vset.pattern.permute.xlu0 %v12885_v1  ;;  %6953 = vset.pattern.permute.xlu1 %v12885_v1  ;;  %v8357_v31 = vpop.permute.xlu0 %2243 }
  0xc4   :  { %12966 = vst [vmem:[#allocation24_spill] sm:$0xff] %v8357_v31  ;;  %92 = vperm.xlu0 %7092, %v8060_v8   ;;  %648 = vperm.xlu1 %6953, %v623_v41   ;;  %v1070_v31 = vsel %vm1054_vm8, 1, %v12885_v1  ;;  %vm1055_vm8 = vcmp.gt.f32.partialorder %v8214_v40, 4.0 }
  0xc5   :  { %v8360_v43 = vpop.permute.xlu1 %642 }
  0xc7   :  { %v8362_v34 = vpop.permute.xlu0 %2249 }
  0xc8   :  { %12967 = vst [vmem:[#allocation25_spill] sm:$0xff] %v8362_v34  ;;  %95 = vperm.xlu0 %7092, %v8077_v12   ;;  %6954 = vset.pattern.permute.xlu1 %v12849_v6 }
  0xc9   :  { %1436 = vperm.xlu1 %6954, %v8060_v8   ;;  %v1516_v8 = vsel %vm1500_vm7, 1, %v12885_v1  ;;  %vm1051_vm7 = vcmp.gt.f32.partialorder %v8071_v11, 4.0 }
  0xca   :  { %v8367_v44 = vpop.permute.xlu1 %764 }
  0xcb   :  { %v8370_v48 = vpop.permute.xlu0 %2255 }
  0xcc   :  { %12968 = vst [vmem:[#allocation26_spill] sm:$0xff] %v8370_v48  ;;  %104 = vperm.xlu0 %7092, %v8082_v13   ;;  %v843_v48 = vsel %vm827_vm1, 1, %v12885_v1  ;;  %vm834_vm1 = vcmp.gt.f32.partialorder %v8274_v57, 3.0 }
  0xcd   :  { %1439 = vperm.xlu1 %6954, %v8077_v12   ;;  %v850_v32 = vsel %vm834_vm1, 1, %v12885_v1  ;;  %vm1058_vm1 = vcmp.gt.f32.partialorder %v8274_v57, 4.0 }
  0xce   :  { %v8378_v63 = vpop.permute.xlu1 %767 }
  0xd0   :  { %188 = vperm.xlu0 %7092, %v171_v56   ;;  %v8382_v23 = vpop.permute.xlu0 %546 }
  0xd1   :  { %6955 = vset.pattern.permute.xlu1 %v12885_v1 }
  0xd2   :  { %1535 = vperm.xlu1 %6955, %v1516_v8  }
  0xd3   :  { %v8387_v12 = vpop.permute.xlu1 %863 }
  0xd4   :  { %415 = vperm.xlu0 %7092, %v396_v36   ;;  %v8389_v41 = vpop.permute.xlu0 %552  ;;  %v625_v36 = vsel %vm609_vm13, 1, %v12885_v1  ;;  %vm1275_vm13 = vcmp.gt.f32.partialorder %v8071_v11, 5.0 }
  0xd5   :  { %12969 = vst [vmem:[#allocation27_spill] sm:$0xff] %v8389_v41 }
  0xd6   :  { %6956 = vset.pattern.permute.xlu1 %v12843_v26 }
  0xd7   :  { %561 = vperm.xlu1 %6956, %v8284_v60  }
  0xd8   :  { %421 = vperm.xlu0 %7092, %v398_v0   ;;  %v8396_v56 = vpop.permute.xlu1 %773  ;;  %v8398_v8 = vpop.permute.xlu0 %558  ;;  %v622_v0 = vsel %vm606_vm14, 1, %v12885_v1  ;;  %vm12898_vm14 = vcmp.gt.f32.partialorder %v8305_v18, 0.0 }
  0xd9   :  { %12970 = vst [vmem:[#allocation28_spill] sm:$0xff] %v8398_v8  ;;  %v8579_v8 = vld [vmem:[%s12943_s19 + $0x40] sm:$0xff] }
  0xda   :  { %12998 = vst [vmem:[#allocation54_spill] sm:$0xff] %v8579_v8 }
  0xdb   :  { %6957 = vset.pattern.permute.xlu1 %v12885_v1 }
  0xdc   :  { %636 = vperm.xlu0 %7092, %v619_v9   ;;  %654 = vperm.xlu1 %6957, %v625_v36   ;;  %v8404_v26 = vpop.permute.xlu0 %564  ;;  %v846_v36 = vsel %vm830_vm4, 1, %v12885_v1  ;;  %vm386_vm4 = vcmp.gt.f32.partialorder %v8274_v57, 1.0 }
  0xdd   :  { %12971 = vst [vmem:[#allocation29_spill] sm:$0xff] %v8404_v26  ;;  %v8406_v38 = vpop.permute.xlu1 %866 }
  0xe0   :  { %645 = vperm.xlu0 %7092, %v622_v0   ;;  %6958 = vset.pattern.permute.xlu1 %v12849_v6  ;;  %v8411_v35 = vpop.permute.xlu0 %570 }
  0xe1   :  { %12972 = vst [vmem:[#allocation30_spill] sm:$0xff] %v8411_v35  ;;  %1442 = vperm.xlu1 %6958, %v8034_v3   ;;  %v1518_v3 = vsel %vm1502_vm5, 1, %v12885_v1  ;;  %vm1277_vm5 = vcmp.gt.f32.partialorder %v8090_v14, 5.0 }
  0xe2   :  { %v8415_v34 = vpop.permute.xlu1 %988  ;;  %v1293_v24 = vsel %vm1277_vm5, 1, %v12885_v1  ;;  %vm833_vm5 = vcmp.gt.f32.partialorder %v8305_v18, 3.0 }
  0xe4   :  { %860 = vperm.xlu0 %7092, %v843_v48   ;;  %v8418_v9 = vpop.permute.xlu0 %576  ;;  %v1067_v48 = vsel %vm1051_vm7, 1, %v12885_v1  ;;  %vm608_vm7 = vcmp.gt.f32.partialorder %v8223_v42, 2.0 }
  0xe5   :  { %12973 = vst [vmem:[#allocation31_spill] sm:$0xff] %v8418_v9  ;;  %1445 = vperm.xlu1 %6958, %v8041_v4   ;;  %v1071_v9 = vsel %vm1055_vm8, 1, %v12885_v1  ;;  %vm1056_vm8 = vcmp.gt.f32.partialorder %v8223_v42, 4.0 }
  0xe6   :  { %v8423_v0 = vpop.permute.xlu1 %991 }
  0xe8   :  { %869 = vperm.xlu0 %7092, %v846_v36   ;;  %v8427_v6 = vpop.permute.xlu0 %582 }
  0xe9   :  { %12974 = vst [vmem:[#allocation32_spill] sm:$0xff] %v8427_v6  ;;  %6959 = vset.pattern.permute.xlu1 %v12885_v1  ;;  %v402_v6 = vsel %vm386_vm4, 1, %v12885_v1  ;;  %vm832_vm4 = vcmp.gt.f32.partialorder %v8223_v42, 3.0 }
  0xea   :  { %1541 = vperm.xlu1 %6959, %v1518_v3  }
  0xeb   :  { %v8432_v5 = vpop.permute.xlu1 %1087 }
  0xec   :  { %1084 = vperm.xlu0 %7092, %v1067_v48   ;;  %v8434_v4 = vpop.permute.xlu0 %2443  ;;  %v847_v48 = vsel %vm831_vm10, 1, %v12885_v1  ;;  %vm610_vm10 = vcmp.gt.f32.partialorder %v8274_v57, 2.0 }
  0xed   :  { %12975 = vst [vmem:[#allocation33_spill] sm:$0xff] %v8434_v4 }
  0xee   :  { %6960 = vset.pattern.permute.xlu1 %v12976_v28 }
  0xef   :  { %779 = vperm.xlu1 %6960, %v8054_v7  }
  0xf0   :  { %1093 = vperm.xlu0 %7092, %v1070_v31   ;;  %v8441_v36 = vpop.permute.xlu1 %997  ;;  %v8443_v3 = vpop.permute.xlu0 %2455  ;;  %v1291_v31 = vsel %vm1275_vm13, 1, %v12885_v1  ;;  %vm1501_vm13 = vcmp.gt.f32.partialorder %v8090_v14, 6.0  ;;  %v849_v14 = vsel %vm833_vm5, 1, %v12885_v1  ;;  %vm1280_vm5 = vcmp.gt.f32.partialorder %v8223_v42, 5.0 }
  0xf1   :  { %12977 = vst [vmem:[#allocation34_spill] sm:$0xff] %v8443_v3 }
  0xf3   :  { %6961 = vset.pattern.permute.xlu1 %v12885_v1 }
  0xf4   :  { %427 = vperm.xlu0 %7092, %v400_v17   ;;  %872 = vperm.xlu1 %6961, %v847_v48   ;;  %v8449_v37 = vpop.permute.xlu0 %2467  ;;  %v7135_v17 = vld [vmem:[%s12822_s4 + $0x38] sm:$0xff]   ;;  %v177_v48 = vsel %vm12898_vm14, 1, %v12885_v1  ;;  %vm238_vm14 = vcmp.eq.s32.totalorder %v8297_v10, 1 }
  0xf5   :  { %12978 = vst [vmem:[#allocation35_spill] sm:$0xff] %v8449_v37  ;;  %v8451_v2 = vpop.permute.xlu1 %1090  ;;  %6797 = vmatprep.subr.bf16.mxu1 %v7135_v17  ;;  %v7136_v37 = vld [vmem:[%s12822_s4 + $0x30] sm:$0xff]  }
  0xf6   :  { %6798 = vmatpush3.bf16.msra.mxu1 %v7135_v17  ;;  %v7137_v17 = vld [vmem:[%s12822_s4 + $0x28] sm:$0xff]  }
  0xf7   :  { %6799 = vmatprep.subr.bf16.mxu1 %v7136_v37 }
  0xf8   :  { %1308 = vperm.xlu0 %7092, %v1291_v31   ;;  %6962 = vset.pattern.permute.xlu1 %v12976_v28  ;;  %v8455_v3 = vpop.permute.xlu0 %2479  ;;  %v13027_v28 = vlaneseq }
  0xf9   :  { %12979 = vst [vmem:[#allocation36_spill] sm:$0xff] %v8455_v3  ;;  %782 = vperm.xlu1 %6962, %v8097_v16   ;;  %v8458_v4 = vpop.permute.xlu1 %200 }
  0xfa   :  { %12980 = vst [vmem:[#allocation37_spill] sm:$0xff] %v8458_v4  ;;  %6800 = vmatpush3.bf16.msra.mxu1 %v7136_v37 }
  0xfb   :  { %6801 = vmatprep.subr.bf16.mxu1 %v7137_v17 }
  0xfc   :  { %110 = vperm.xlu0 %7092, %v8097_v16  }
  0xfd   :  { %v8469_v31 = vpop.permute.xlu0 %770  ;;  %785 = vperm.xlu1 %6962, %v8284_v60   ;;  %v8472_v3 = vpop.permute.xlu1 %203 }
  0xfe   :  { %12981 = vst [vmem:[#allocation38_spill] sm:$0xff] %v8472_v3  ;;  %6802 = vmatpush3.bf16.msra.mxu1 %v7137_v17  ;;  %v624_v17 = vsel %vm608_vm7, 1, %v12885_v1 }
 0x100   :  { %206 = vperm.xlu0 %7092, %v177_v48  }
 0x101   :  { %6963 = vset.pattern.permute.xlu1 %v12885_v1  ;;  %v8480_v29 = vpop.permute.xlu0 %776 }
 0x102   :  { %12982 = vst [vmem:[#allocation39_spill] sm:$0xff] %v8480_v29  ;;  %881 = vperm.xlu1 %6963, %v850_v32   ;;  %v8483_v49 = vpop.permute.xlu1 %331  ;;  %v7138_v32 = vld [vmem:[%s12822_s4 + $0x20] sm:$0xff]   ;;  %v1296_v29 = vsel %vm1280_vm5, 1, %v12885_v1 }
 0x103   :  { %12983 = vst [vmem:[#allocation40_spill] sm:$0xff] %v8483_v49  ;;  %6803 = vmatprep.subr.bf16.mxu1 %v7138_v32 }
 0x104   :  { %433 = vperm.xlu0 %7092, %v402_v6   ;;  %6804 = vmatpush3.bf16.msra.mxu1 %v7138_v32  ;;  %v7140_v32 = vld [vmem:[%s12822_s4 + $0x10] sm:$0xff]  }
 0x105   :  { %v8489_v48 = vpop.permute.xlu0 %788  ;;  %6805 = vmatprep.subr.bf16.mxu1 %v7139_v20 }
 0x106   :  { %12984 = vst [vmem:[#allocation41_spill] sm:$0xff] %v8489_v48  ;;  %6964 = vset.pattern.permute.xlu1 %v12985_v46 }
 0x107   :  { %1003 = vperm.xlu1 %6964, %v8054_v7   ;;  %v8499_v37 = vpop.permute.xlu1 %424 }
 0x108   :  { %12986 = vst [vmem:[#allocation42_spill] sm:$0xff] %v8499_v37  ;;  %1314 = vperm.xlu0 %7092, %v1293_v24   ;;  %6806 = vmatpush3.bf16.msra.mxu1 %v7139_v20  ;;  %v7141_v20 = vld [vmem:[%s12822_s4 + $0x8] sm:$0xff]  }
 0x109   :  { %v8501_v6 = vpop.permute.xlu0 %800  ;;  %6807 = vmatprep.subr.bf16.mxu1 %v7140_v32 }
 0x10a   :  { %12987 = vst [vmem:[#allocation43_spill] sm:$0xff] %v8501_v6  ;;  %v1515_v6 = vsel %vm1499_vm9, 1, %v12885_v1  ;;  %vm1057_vm9 = vcmp.gt.f32.partialorder %v8305_v18, 4.0 }
 0x10b   :  { %6965 = vset.pattern.permute.xlu1 %v12885_v1  ;;  %v1073_v59 = vsel %vm1057_vm9, 1, %v12885_v1 }
 0x10c   :  { %651 = vperm.xlu0 %7092, %v624_v17   ;;  %1096 = vperm.xlu1 %6965, %v1071_v9   ;;  %v8510_v35 = vpop.permute.xlu1 %1212  ;;  %v626_v17 = vsel %vm610_vm10, 1, %v12885_v1  ;;  %vm387_vm10 = vcmp.gt.f32.partialorder %v8579_v8, 1.0 }
 0x10d   :  { %v8512_v24 = vpop.permute.xlu0 %2667  ;;  %6808 = vmatpush3.bf16.msra.mxu1 %v7140_v32  ;;  %v7142_v32 = vld [vmem:[%s12822_s4] sm:$0xff]  }
 0x10e   :  { %12988 = vst [vmem:[#allocation44_spill] sm:$0xff] %v8512_v24  ;;  %6809 = vmatprep.subr.bf16.mxu1 %v7141_v20 }
 0x110   :  { %1532 = vperm.xlu0 %7092, %v1515_v6   ;;  %6966 = vset.pattern.permute.xlu1 %v12985_v46  ;;  %v8520_v15 = vpop.permute.xlu1 %1215 }
 0x111   :  { %1006 = vperm.xlu1 %6966, %v8097_v16   ;;  %v8523_v9 = vpop.permute.xlu0 %2679  ;;  %6810 = vmatpush3.bf16.msra.mxu1 %v7141_v20  ;;  %v8551_v20 = vld [vmem:[%s12943_s19 + $0x48] sm:$0xff] }
 0x112   :  { %12989 = vst [vmem:[#allocation45_spill] sm:$0xff] %v8523_v9  ;;  %v1517_v9 = vsel %vm1501_vm13, 1, %v12885_v1  ;;  %6811 = vmatprep.subr.bf16.mxu1 %v7142_v32  ;;  %12993 = vst [vmem:[#allocation49_spill] sm:$0xff] %v8551_v20  ;;  %vm12891_vm7 = vcmp.gt.f32.partialorder %v8551_v20, 0.0  ;;  %vm12893_vm13 = vcmp.gt.f32.partialorder %v8579_v8, 0.0 }
 0x114   :  { %657 = vperm.xlu0 %7092, %v626_v17   ;;  %v1074_v17 = vsel %vm1058_vm1, 1, %v12885_v1  ;;  %vm388_vm1 = vcmp.gt.f32.partialorder %v8551_v20, 1.0 }
 0x115   :  { %1009 = vperm.xlu1 %6966, %v8284_v60   ;;  %v8532_v6 = vpop.permute.xlu1 %1311  ;;  %v8534_v24 = vpop.permute.xlu0 %2691  ;;  %6812 = vmatpush3.bf16.msra.mxu1 %v7142_v32  ;;  %v180_v32 = vsel %vm12891_vm7, 1, %v12885_v1  ;;  %vm1283_vm7 = vcmp.gt.f32.partialorder %v8579_v8, 5.0 }
 0x116   :  { %12990 = vst [vmem:[#allocation46_spill] sm:$0xff] %v8534_v24  ;;  %v848_v24 = vsel %vm832_vm4, 1, %v12885_v1  ;;  %vm1279_vm4 = vcmp.gt.f32.partialorder %v8214_v40, 5.0 }
 0x118   :  { %1538 = vperm.xlu0 %7092, %v1517_v9   ;;  %v8557_v9 = vld [vmem:[%s12942_s26 + $0x48] sm:$0xff] }
 0x119   :  { %6967 = vset.pattern.permute.xlu1 %v12885_v1  ;;  %v8543_v48 = vpop.permute.xlu1 %113  ;;  %v8545_v26 = vpop.permute.xlu0 %2703  ;;  %12994 = vst [vmem:[#allocation50_spill] sm:$0xff] %v8557_v9 }
 0x11a   :  { %12991 = vst [vmem:[#allocation47_spill] sm:$0xff] %v8543_v48  ;;  %12992 = vst [vmem:[#allocation48_spill] sm:$0xff] %v8545_v26  ;;  %1105 = vperm.xlu1 %6967, %v1074_v17   ;;  %v1072_v17 = vsel %vm1056_vm8, 1, %v12885_v1  ;;  %v12999_v48 = vmov 1  }
 0x11c   :  { %875 = vperm.xlu0 %7092, %v848_v24  }
 0x11d   :  { %v8560_v26 = vpop.permute.xlu1 %209 }
 0x11e   :  { %12995 = vst [vmem:[#allocation51_spill] sm:$0xff] %v8560_v26  ;;  %v8563_v62 = vpop.permute.xlu0 %994  ;;  %119 = vperm.xlu1 %6967, %v8557_v9  }
 0x120   :  { %878 = vperm.xlu0 %7092, %v849_v14  }
 0x122   :  { %215 = vperm.xlu1 %6967, %v180_v32   ;;  %v8571_v24 = vpop.permute.xlu1 %337  ;;  %v8573_v11 = vpop.permute.xlu0 %1000 }
 0x123   :  { %12996 = vst [vmem:[#allocation52_spill] sm:$0xff] %v8571_v24  ;;  %12997 = vst [vmem:[#allocation53_spill] sm:$0xff] %v8573_v11  ;;  %v403_v24 = vsel %vm387_vm10, 1, %v12885_v1 }
 0x124   :  { %1099 = vperm.xlu0 %7092, %v1072_v17  }
 0x126   :  { %6968 = vset.pattern.permute.xlu1 %v12999_v48  ;;  %v8583_v14 = vpop.permute.xlu0 %1012 }
 0x127   :  { %13000 = vst [vmem:[#allocation55_spill] sm:$0xff] %v8583_v14  ;;  %343 = vperm.xlu1 %6968, %v8557_v9   ;;  %v8587_v32 = vpop.permute.xlu1 %430  ;;  %v179_v14 = vsel %vm12893_vm13, 1, %v12885_v1 }
 0x128   :  { %13001 = vst [vmem:[#allocation56_spill] sm:$0xff] %v8587_v32  ;;  %1102 = vperm.xlu0 %7092, %v1073_v59   ;;  %v13005_v59 = vmov 5  }
 0x12a   :  { %v8590_v26 = vpop.permute.xlu0 %1024 }
 0x12b   :  { %13002 = vst [vmem:[#allocation57_spill] sm:$0xff] %v8590_v26  ;;  %6969 = vset.pattern.permute.xlu1 %v12885_v1 }
 0x12c   :  { %116 = vperm.xlu0 %7092, %v8113_v19   ;;  %436 = vperm.xlu1 %6969, %v403_v24   ;;  %v8595_v17 = vpop.permute.xlu1 %1218  ;;  %v404_v19 = vsel %vm388_vm1, 1, %v12885_v1  ;;  %vm1281_vm1 = vcmp.gt.f32.partialorder %v8305_v18, 5.0 }
 0x12d   :  { %13003 = vst [vmem:[#allocation58_spill] sm:$0xff] %v8595_v17  ;;  %v1297_v4 = vsel %vm1281_vm1, 1, %v12885_v1  ;;  %v8756_v17 = vand.u32 127, %v13027_v28 }
 0x12e   :  { %v8600_v11 = vpop.permute.xlu0 %2891 }
 0x12f   :  { %13004 = vst [vmem:[#allocation59_spill] sm:$0xff] %v8600_v11  ;;  %vm365_vm12 = vcmp.eq.s32.totalorder %v8756_v17, %v8260_v53  ;;  %vm811_vm6 = vcmp.eq.s32.totalorder %v8756_v17, %v8367_v44 }
 0x130   :  { %212 = vperm.xlu0 %7092, %v179_v14   ;;  %6970 = vset.pattern.permute.xlu1 %v13005_v59  ;;  %v8604_v26 = vpop.permute.xlu1 %1221  ;;  %v1295_v14 = vsel %vm1279_vm4, 1, %v12885_v1  ;;  %vm612_vm4 = vcmp.gt.f32.partialorder %v8551_v20, 2.0 }
 0x131   :  { %13006 = vst [vmem:[#allocation60_spill] sm:$0xff] %v8604_v26  ;;  %1224 = vperm.xlu1 %6970, %v8082_v13   ;;  %v8622_v13 = vld [vmem:[%s12943_s19 + $0x50] sm:$0xff] }
 0x132   :  { %v8608_v24 = vpop.permute.xlu0 %2903  ;;  %13009 = vst [vmem:[#allocation63_spill] sm:$0xff] %v8622_v13  ;;  %vm12892_vm8 = vcmp.gt.f32.partialorder %v8622_v13, 0.0  ;;  %vm389_vm5 = vcmp.gt.f32.partialorder %v8622_v13, 1.0  ;;  %vm613_vm11 = vcmp.gt.f32.partialorder %v8622_v13, 2.0 }
 0x133   :  { %13007 = vst [vmem:[#allocation61_spill] sm:$0xff] %v8608_v24 }
 0x134   :  { %439 = vperm.xlu0 %7092, %v404_v19  }
 0x135   :  { %1227 = vperm.xlu1 %6970, %v8054_v7   ;;  %v8613_v11 = vpop.permute.xlu1 %1317  ;;  %v8628_v7 = vld [vmem:[%s12943_s19 + $0x58] sm:$0xff] }
 0x136   :  { %v8616_v32 = vpop.permute.xlu0 %2915  ;;  %13010 = vst [vmem:[#allocation64_spill] sm:$0xff] %v8628_v7  ;;  %vm12889_vm9 = vcmp.gt.f32.partialorder %v8628_v7, 0.0  ;;  %vm390_vm10 = vcmp.gt.f32.partialorder %v8628_v7, 1.0  ;;  %vm614_vm1 = vcmp.gt.f32.partialorder %v8628_v7, 2.0 }
 0x137   :  { %13008 = vst [vmem:[#allocation62_spill] sm:$0xff] %v8616_v32  ;;  %v8638_v32 = vld [vmem:[%s12942_s26 + $0x58] sm:$0xff] }
 0x138   :  { %1320 = vperm.xlu0 %7092, %v1295_v14   ;;  %v181_v14 = vsel %vm12892_vm8, 1, %v12885_v1  ;;  %vm237_vm8 = vcmp.eq.s32.totalorder %v8289_v61, 1 }
 0x139   :  { %6971 = vset.pattern.permute.xlu1 %v12885_v1 }
 0x13a   :  { %1323 = vperm.xlu1 %6971, %v1296_v29   ;;  %v8630_v19 = vpop.permute.xlu1 %555  ;;  %v8632_v24 = vpop.permute.xlu0 %2927 }
 0x13b   :  { %13011 = vst [vmem:[#allocation65_spill] sm:$0xff] %v8630_v19  ;;  %13012 = vst [vmem:[#allocation66_spill] sm:$0xff] %v8632_v24  ;;  %v182_v19 = vsel %vm12889_vm9, 1, %v12885_v1  ;;  %vm459_vm9 = vcmp.eq.s32.totalorder %v8277_v58, 1 }
 0x13c   :  { %122 = vperm.xlu0 %7092, %v8123_v21   ;;  %v406_v21 = vsel %vm390_vm10, 1, %v12885_v1  ;;  %vm1503_vm10 = vcmp.gt.f32.partialorder %v8214_v40, 6.0  ;;  %v630_v40 = vsel %vm614_vm1, 1, %v12885_v1  ;;  %vm837_vm1 = vcmp.gt.f32.partialorder %v8622_v13, 3.0 }
 0x13d   :  { %v1519_v50 = vsel %vm1503_vm10, 1, %v12885_v1  ;;  %vm836_vm10 = vcmp.gt.f32.partialorder %v8551_v20, 3.0 }
 0x13e   :  { %125 = vperm.xlu1 %6971, %v8638_v32  }
 0x13f   :  { %v8647_v29 = vpop.permute.xlu0 %92  ;;  %v8649_v24 = vpop.permute.xlu1 %648 }
 0x140   :  { %13013 = vst [vmem:[#allocation67_spill] sm:$0xff] %v8649_v24  ;;  %218 = vperm.xlu0 %7092, %v181_v14   ;;  %v628_v14 = vsel %vm612_vm4, 1, %v12885_v1  ;;  %vm1505_vm4 = vcmp.gt.f32.partialorder %v8305_v18, 6.0  ;;  %v852_v18 = vsel %vm836_vm10, 1, %v12885_v1  ;;  %vm1061_vm10 = vcmp.gt.f32.partialorder %v8622_v13, 4.0 }
 0x141   :  { %v1077_v7 = vsel %vm1061_vm10, 1, %v12885_v1  ;;  %vm363_vm10 = vcmp.eq.s32.totalorder %v8756_v17, %v8253_v51 }
 0x142   :  { %221 = vperm.xlu1 %6971, %v182_v19   ;;  %vm8775_vm13 = vmand %vm363_vm10, %vm459_vm9  ;;  %vm236_vm9 = vcmp.eq.s32.totalorder %v8256_v52, 1  ;;  %v8812_v52 = vld [vmem:[%s12943_s19 + $0x70] sm:$0xff] }
 0x143   :  { %v8656_v49 = vpop.permute.xlu0 %95  ;;  %13036 = vst [vmem:[#allocation78_spill] sm:$0xff] %v8812_v52 }
 0x144   :  { %445 = vperm.xlu0 %7092, %v406_v21   ;;  %v8658_v41 = vpop.permute.xlu1 %1436  ;;  %v405_v21 = vsel %vm389_vm5, 1, %v12885_v1  ;;  %vm1282_vm5 = vcmp.gt.f32.partialorder %v8274_v57, 5.0  ;;  %vm140_vm15 = vcmp.eq.s32.totalorder %v8756_v17, %v8656_v49  ;;  %v8878_v49 = vld [vmem:[%s12943_s19 + $0x78] sm:$0xff] }
 0x145   :  { %13014 = vst [vmem:[#allocation68_spill] sm:$0xff] %v8658_v41  ;;  %v1298_v3 = vsel %vm1282_vm5, 1, %v12885_v1  ;;  %vm611_vm5 = vcmp.gt.f32.partialorder %v8579_v8, 2.0  ;;  %13043 = vst [vmem:[#allocation79_spill] sm:$0xff] %v8878_v49 }
 0x146   :  { %6972 = vset.pattern.permute.xlu1 %v12999_v48  ;;  %v13019_v48 = vmov 2  }
 0x147   :  { %v8664_v24 = vpop.permute.xlu0 %104  ;;  %349 = vperm.xlu1 %6972, %v8638_v32  }
 0x148   :  { %13015 = vst [vmem:[#allocation69_spill] sm:$0xff] %v8664_v24  ;;  %1326 = vperm.xlu0 %7092, %v1297_v4   ;;  %v8667_v19 = vpop.permute.xlu1 %1439 }
 0x14b   :  { %v8672_v37 = vpop.permute.xlu0 %188  ;;  %6973 = vset.pattern.permute.xlu1 %v12885_v1 }
 0x14c   :  { %663 = vperm.xlu0 %7092, %v628_v14   ;;  %442 = vperm.xlu1 %6973, %v405_v21   ;;  %v1521_v21 = vsel %vm1505_vm4, 1, %v12885_v1  ;;  %vm1060_vm4 = vcmp.gt.f32.partialorder %v8551_v20, 4.0 }
 0x14d   :  { %v8675_v55 = vpop.permute.xlu1 %1535 }
 0x14f   :  { %v8679_v4 = vpop.permute.xlu0 %415 }
 0x150   :  { %1544 = vperm.xlu0 %7092, %v1519_v50   ;;  %6974 = vset.pattern.permute.xlu1 %v13005_v59  ;;  %v853_v59 = vsel %vm837_vm1, 1, %v12885_v1 }
 0x151   :  { %1230 = vperm.xlu1 %6974, %v8097_v16  }
 0x152   :  { %v8684_v24 = vpop.permute.xlu1 %561 }
 0x153   :  { %13016 = vst [vmem:[#allocation70_spill] sm:$0xff] %v8684_v24  ;;  %v8687_v14 = vpop.permute.xlu0 %421 }
 0x154   :  { %669 = vperm.xlu0 %7092, %v630_v40  }
 0x155   :  { %1233 = vperm.xlu1 %6974, %v8284_v60  }
 0x157   :  { %v8693_v50 = vpop.permute.xlu0 %636  ;;  %v8695_v16 = vpop.permute.xlu1 %654 }
 0x158   :  { %13017 = vst [vmem:[#allocation71_spill] sm:$0xff] %v8695_v16  ;;  %1550 = vperm.xlu0 %7092, %v1521_v21   ;;  %v1076_v16 = vsel %vm1060_vm4, 1, %v12885_v1  ;;  %vm1504_vm4 = vcmp.gt.f32.partialorder %v8223_v42, 6.0 }
 0x159   :  { %6975 = vset.pattern.permute.xlu1 %v12885_v1 }
 0x15a   :  { %1329 = vperm.xlu1 %6975, %v1298_v3  }
 0x15b   :  { %v8701_v40 = vpop.permute.xlu0 %645 }
 0x15c   :  { %887 = vperm.xlu0 %7092, %v852_v18   ;;  %v8703_v24 = vpop.permute.xlu1 %1442  ;;  %v627_v18 = vsel %vm611_vm5, 1, %v12885_v1 }
 0x15d   :  { %13018 = vst [vmem:[#allocation72_spill] sm:$0xff] %v8703_v24 }
 0x15e   :  { %6976 = vset.pattern.permute.xlu1 %v13019_v48 }
 0x15f   :  { %v8709_v21 = vpop.permute.xlu0 %860  ;;  %567 = vperm.xlu1 %6976, %v8557_v9   ;;  %v7863_v9 = vld [vmem:[%s12942_s26 + $0x20] sm:$0xff] }
 0x160   :  { %890 = vperm.xlu0 %7092, %v853_v59   ;;  %v8712_v3 = vpop.permute.xlu1 %1445  ;;  %v8728_v59 = vld [vmem:[%s12943_s19 + $0x60] sm:$0xff] }
 0x161   :  { %13020 = vst [vmem:[#allocation73_spill] sm:$0xff] %v8712_v3  ;;  %13022 = vst [vmem:[#allocation75_spill] sm:$0xff] %v8728_v59  ;;  %v13023_v3 = vmov 6   ;;  %vm12890_vm1 = vcmp.gt.f32.partialorder %v8728_v59, 0.0 }
 0x163   :  { %v8717_v46 = vpop.permute.xlu0 %869  ;;  %6977 = vset.pattern.permute.xlu1 %v12885_v1 }
 0x164   :  { %1111 = vperm.xlu0 %7092, %v1076_v16   ;;  %660 = vperm.xlu1 %6977, %v627_v18   ;;  %v13026_v18 = vmov 0  }
 0x165   :  { %v8720_v20 = vpop.permute.xlu1 %1541  ;;  %v1299_v61 = vsel %vm1283_vm7, 1, %v13026_v18  ;;  %vm142_vm7 = vcmp.eq.s32.totalorder %v8756_v17, %v8243_v47  ;;  %v629_v53 = vsel %vm613_vm11, 1, %v13026_v18  ;;  %vm812_vm11 = vcmp.eq.s32.totalorder %v8756_v17, %v8378_v63 }
 0x166   :  { %13021 = vst [vmem:[#allocation74_spill] sm:$0xff] %v8720_v20  ;;  %v8742_v20 = vld [vmem:[%s12943_s19 + $0x68] sm:$0xff] }
 0x167   :  { %v8723_v24 = vpop.permute.xlu0 %1084  ;;  %13025 = vst [vmem:[#allocation77_spill] sm:$0xff] %v8742_v20  ;;  %vm392_vm5 = vcmp.gt.f32.partialorder %v8742_v20, 1.0 }
 0x168   :  { %1114 = vperm.xlu0 %7092, %v1077_v7   ;;  %6978 = vset.pattern.permute.xlu1 %v13023_v3  ;;  %v7864_v7 = vld [vmem:[%s12942_s26 + $0x60] sm:$0xff] }
 0x169   :  { %1448 = vperm.xlu1 %6978, %v7863_v9   ;;  %v7865_v9 = vld [vmem:[%s12942_s26 + $0x28] sm:$0xff] }
 0x16a   :  { %v8734_v16 = vpop.permute.xlu1 %779 }
 0x16b   :  { %13024 = vst [vmem:[#allocation76_spill] sm:$0xff] %v8734_v16  ;;  %v8737_v1 = vpop.permute.xlu0 %1093  ;;  %v183_v16 = vsel %vm12890_vm1, 1, %v13026_v18  ;;  %vm460_vm1 = vcmp.eq.s32.totalorder %v8679_v4, 1 }
 0x16c   :  { %128 = vperm.xlu0 %7092, %v7864_v7   ;;  %v1520_v7 = vsel %vm1504_vm4, 1, %v13026_v18  ;;  %vm364_vm4 = vcmp.eq.s32.totalorder %v8756_v17, %v8264_v54  ;;  %v7867_v54 = vld [vmem:[%s12942_s26 + $0x30] sm:$0xff] }
 0x16d   :  { %1451 = vperm.xlu1 %6978, %v7865_v9   ;;  %v408_v9 = vsel %vm392_vm5, 1, %v13026_v18  ;;  %vm141_vm5 = vcmp.eq.s32.totalorder %v8756_v17, %v8235_v45  ;;  %vm8788_vm0 = vmand %vm364_vm4, %vm460_vm1  ;;  %vm1132_vm4 = vcmp.eq.s32.totalorder %v8432_v5, 1  ;;  %v7866_v45 = vld [vmem:[%s12942_s26 + $0x70] sm:$0xff] }
 0x16e   :  { %vm8794_vm10 = vmand %vm141_vm5, %vm237_vm8  ;;  %vm589_vm8 = vcmp.eq.s32.totalorder %v8756_v17, %v8382_v23  ;;  %vm12901_vm5 = vcmp.gt.f32.partialorder %v8812_v52, 0.0 }
 0x16f   :  { %v8758_v26 = vpop.permute.xlu0 %427  ;;  %v8760_v41 = vpop.permute.xlu1 %872  ;;  %vm8802_vm1 = vmand %vm140_vm15, %vm236_vm9  ;;  %vm813_vm9 = vcmp.eq.s32.totalorder %v8756_v17, %v8469_v31 }
 0x170   :  { %224 = vperm.xlu0 %7092, %v183_v16   ;;  %v12903_v16 = vmov 0.0   ;;  %vm477_vm15 = vmand %vm365_vm12, %vm461_vm3  ;;  %vm588_vm3 = vcmp.eq.s32.totalorder %v8756_v17, %v8334_v33  ;;  %vm908_vm12 = vcmp.eq.s32.totalorder %v8387_v12, 1 }
 0x171   :  { %6979 = vset.pattern.permute.xlu1 %v13026_v18  ;;  %v6212_v51 = vsel %vm8794_vm10, 1.0, %v12903_v16  ;;  %v6211_v10 = vsel %vm8802_vm1, 1.0, %v12903_v16  ;;  %v6228_v33 = vsel %vm477_vm15, 1.0, %v12903_v16  ;;  %vm8887_vm10 = vmand %vm812_vm11, %vm908_vm12  ;;  %vm1036_vm1 = vcmp.eq.s32.totalorder %v8756_v17, %v8423_v0 }
 0x172   :  { %1547 = vperm.xlu1 %6979, %v1520_v7   ;;  %v8819_v7 = vsel %vm8775_vm13, 1.0, %v12903_v16  ;;  %vm8838_vm13 = vmand %vm142_vm7, %vm238_vm14  ;;  %vm685_vm14 = vcmp.eq.s32.totalorder %v8360_v43, 1  ;;  %vm139_vm7 = vcmp.eq.s32.totalorder %v8756_v17, %v8647_v29  ;;  %vm235_vm15 = vcmp.eq.s32.totalorder %v8672_v37, 1 }
 0x173   :  { %v8771_v28 = vpop.permute.xlu0 %1308  ;;  %v8883_v63 = vsel %vm8838_vm13, 1.0, %v12903_v16  ;;  %vm909_vm13 = vcmp.eq.s32.totalorder %v8406_v38, 1  ;;  %vm1356_vm12 = vcmp.eq.s32.totalorder %v8532_v6, 1  ;;  %v8914_v27 = vadd.f32 %v6228_v33, %v6212_v51 }
 0x174   :  { %451 = vperm.xlu0 %7092, %v408_v9   ;;  %v8781_v58 = vpop.permute.xlu1 %782  ;;  %v6227_v9 = vsel %vm8788_vm0, 1.0, %v12903_v16  ;;  %vm8850_vm0 = vmand %vm588_vm3, %vm684_vm2  ;;  %vm394_vm11 = vcmp.gt.f32.partialorder %v8878_v49, 1.0  ;;  %v6259_v29 = vsel %vm8887_vm10, 1.0, %v12903_v16  ;;  %vm1035_vm10 = vcmp.eq.s32.totalorder %v8756_v17, %v8415_v34 }
 0x175   :  { %vm8866_vm2 = vmand %vm589_vm8, %vm685_vm14  ;;  %v524_v43 = vadd.f32 %v6227_v9, %v6211_v10  ;;  %vm366_vm8 = vcmp.eq.s32.totalorder %v8756_v17, %v8313_v22  ;;  %v185_v9 = vsel %vm12901_vm5, 1, %v13026_v18  ;;  %v6243_v38 = vsel %vm8850_vm0, 1.0, %v12903_v16 }
 0x176   :  { %6980 = vset.pattern.permute.xlu1 %v13019_v48  ;;  %vm8904_vm3 = vmand %vm1036_vm1, %vm1132_vm4  ;;  %vm683_vm4 = vcmp.eq.s32.totalorder %v8693_v50, 1  ;;  %vm587_vm1 = vcmp.eq.s32.totalorder %v8756_v17, %v8327_v30  ;;  %vm1260_vm5 = vcmp.eq.s32.totalorder %v8756_v17, %v8520_v15  ;;  %v8951_v15 = vsel %vm8866_vm2, 1.0, %v12903_v16 }
 0x177   :  { %v8806_v4 = vpop.permute.xlu0 %110  ;;  %573 = vperm.xlu1 %6980, %v8638_v32   ;;  %vm8922_vm14 = vmand %vm813_vm9, %vm909_vm13  ;;  %v748_v51 = vadd.f32 %v6243_v38, %v524_v43  ;;  %vm462_vm9 = vcmp.eq.s32.totalorder %v8687_v14, 1  ;;  %vm814_vm13 = vcmp.eq.s32.totalorder %v8756_v17, %v8396_v56  ;;  %vm686_vm2 = vcmp.eq.s32.totalorder %v8701_v40, 1 }
 0x178   :  { %1332 = vperm.xlu0 %7092, %v1299_v61   ;;  %v8831_v47 = vpop.permute.xlu1 %785  ;;  %vm8937_vm0 = vmand %vm139_vm7, %vm235_vm15  ;;  %vm907_vm15 = vcmp.eq.s32.totalorder %v8709_v21, 1  ;;  %v410_v10 = vsel %vm394_vm11, 1, %v13026_v18  ;;  %vm1285_vm11 = vcmp.gt.f32.partialorder %v8622_v13, 5.0  ;;  %v6275_v25 = vsel %vm8904_vm3, 1.0, %v12903_v16 }
 0x179   :  { %vm8955_vm7 = vmand %vm1260_vm5, %vm1356_vm12  ;;  %v6210_v30 = vsel %vm8937_vm0, 1.0, %v12903_v16  ;;  %vm910_vm0 = vcmp.eq.s32.totalorder %v8717_v46, 1  ;;  %v972_v43 = vadd.f32 %v6259_v29, %v748_v51  ;;  %vm13060_vm3 = vcmp.eq.s32.totalorder %v8756_v17, %v8352_v39 }
 0x17a   :  { %vm8971_vm5 = vmand %vm587_vm1, %vm683_vm4  ;;  %vm1131_vm4 = vcmp.eq.s32.totalorder %v8723_v24, 1  ;;  %vm1506_vm1 = vcmp.gt.f32.partialorder %v8274_v57, 6.0  ;;  %v523_v21 = vadd.f32 %v8819_v7, %v6210_v30  ;;  %v1301_v40 = vsel %vm1285_vm11, 1, %v13026_v18 }
 0x17b   :  { %v8872_v61 = vpop.permute.xlu0 %206  ;;  %6981 = vset.pattern.permute.xlu1 %v13026_v18  ;;  %vm8992_vm12 = vmand %vm366_vm8, %vm462_vm9  ;;  %v6242_v23 = vsel %vm8971_vm5, 1.0, %v12903_v16  ;;  %vm1259_vm9 = vcmp.eq.s32.totalorder %v8756_v17, %v8510_v35  ;;  %vm1507_vm11 = vcmp.gt.f32.partialorder %v8579_v8, 6.0  ;;  %v6260_v24 = vsel %vm8922_vm14, 1.0, %v12903_v16 }
 0x17c   :  { %134 = vperm.xlu0 %7092, %v7866_v45   ;;  %666 = vperm.xlu1 %6981, %v629_v53   ;;  %vm9010_vm8 = vmand %vm811_vm6, %vm907_vm15  ;;  %vm1355_vm15 = vcmp.eq.s32.totalorder %v8771_v28, 1  ;;  %v6229_v35 = vsel %vm8992_vm12, 1.0, %v12903_v16  ;;  %v747_v7 = vadd.f32 %v6242_v23, %v523_v21  ;;  %v1522_v12 = vsel %vm1506_vm1, 1, %v13026_v18  ;;  %v13079_v23 = vld [vmem:[#allocation58_spill] sm:$0xff] }
 0x17d   :  { %v8909_v0 = vpop.permute.xlu1 %881  ;;  %vm9026_vm6 = vmand %vm13060_vm3, %vm686_vm2  ;;  %vm616_vm2 = vcmp.gt.f32.partialorder %v8742_v20, 2.0  ;;  %v6258_v34 = vsel %vm9010_vm8, 1.0, %v12903_v16  ;;  %vm1037_vm14 = vcmp.eq.s32.totalorder %v8756_v17, %v8563_v62  ;;  %v526_v31 = vadd.f32 %v6229_v35, %v8883_v63 }
 0x17e   :  { %vm9040_vm5 = vmand %vm1035_vm10, %vm1131_vm4  ;;  %vm1134_vm4 = vcmp.eq.s32.totalorder %v8737_v1, 1  ;;  %v6245_v38 = vsel %vm9026_vm6, 1.0, %v12903_v16  ;;  %v632_v5 = vsel %vm616_vm2, 1, %v13026_v18  ;;  %v971_v51 = vadd.f32 %v6258_v34, %v747_v7 }
 0x17f   :  { %v8942_v53 = vpop.permute.xlu0 %433  ;;  %vm9060_vm10 = vmand %vm814_vm13, %vm910_vm0  ;;  %vm1580_vm13 = vcmp.eq.s32.totalorder %v8675_v55, 1  ;;  %v6274_v28 = vsel %vm9040_vm5, 1.0, %v12903_v16  ;;  %vm13069_vm1 = vcmp.eq.s32.totalorder %v8756_v17, %v8441_v36  ;;  %v1523_v6 = vsel %vm1507_vm11, 1, %v13026_v18 }
 0x180   :  { %230 = vperm.xlu0 %7092, %v185_v9   ;;  %6982 = vset.pattern.permute.xlu1 %v13023_v3  ;;  %vm9071_vm12 = vmand %vm1259_vm9, %vm1355_vm15  ;;  %v1196_v9 = vadd.f32 %v6275_v25, %v972_v43  ;;  %v6291_v63 = vsel %vm8955_vm7, 1.0, %v12903_v16  ;;  %vm1484_vm0 = vcmp.eq.s32.totalorder %v8756_v17, %v8667_v19  ;;  %v6261_v1 = vsel %vm9060_vm10, 1.0, %v12903_v16  ;;  %v13077_v25 = vld [vmem:[#allocation68_spill] sm:$0xff] }
 0x181   :  { %1454 = vperm.xlu1 %6982, %v7867_v54   ;;  %vm9100_vm8 = vmand %vm13069_vm1, %vm1134_vm4  ;;  %v6290_v36 = vsel %vm9071_vm12, 1.0, %v12903_v16  ;;  %vm1358_vm9 = vcmp.eq.s32.totalorder %v8613_v11, 1  ;;  %v750_v37 = vadd.f32 %v6245_v38, %v526_v31  ;;  %vm13074_vm7 = vcmp.eq.s32.totalorder %v8451_v2, 1  ;;  %v13078_v2 = vld [vmem:[#allocation60_spill] sm:$0xff]  ;;  %v13085_v31 = vld [vmem:[#allocation73_spill] sm:$0xff] }
 0x182   :  { %v8997_v33 = vpop.permute.xlu1 %1003  ;;  %vm9122_vm3 = vmand %vm1484_vm0, %vm1580_vm13  ;;  %v1420_v30 = vadd.f32 %v6291_v63, %v1196_v9  ;;  %vm1483_vm15 = vcmp.eq.s32.totalorder %v8756_v17, %v13077_v25  ;;  %v6277_v55 = vsel %vm9100_vm8, 1.0, %v12903_v16  ;;  %vm1262_vm10 = vcmp.eq.s32.totalorder %v8756_v17, %v13078_v2  ;;  %v13084_v9 = vld [vmem:[#allocation74_spill] sm:$0xff]  ;;  %v13086_v63 = vld [vmem:[#allocation72_spill] sm:$0xff] }
 0x183   :  { %v9015_v14 = vpop.permute.xlu0 %1314  ;;  %vm9131_vm6 = vmand %vm1037_vm14, %vm13074_vm7  ;;  %v974_v62 = vadd.f32 %v6261_v1, %v750_v37  ;;  %vm618_vm11 = vcmp.gt.f32.partialorder %v8878_v49, 2.0  ;;  %vm1261_vm12 = vcmp.eq.s32.totalorder %v8756_v17, %v13079_v23  ;;  %v13082_v21 = vmov 3   ;;  %v9199_v25 = vld [vmem:[%s12942_s26 + $0x50] sm:$0xff] }
 0x184   :  { %457 = vperm.xlu0 %7092, %v410_v10   ;;  %v1195_v10 = vadd.f32 %v6274_v28, %v971_v51  ;;  %vm1357_vm5 = vcmp.eq.s32.totalorder %v9015_v14, 1  ;;  %vm9150_vm13 = vmand %vm1262_vm10, %vm1358_vm9  ;;  %vm835_vm14 = vcmp.gt.f32.partialorder %v8579_v8, 3.0  ;;  %v749_v35 = vadd.f32 %v8951_v15, %v8914_v27  ;;  %v13087_v23 = vld [vmem:[#allocation64_spill] sm:$0xff] }
 0x185   :  { %1457 = vperm.xlu1 %6982, %v8284_v60   ;;  %v1198_v34 = vadd.f32 %v6277_v55, %v974_v62  ;;  %vm1373_vm1 = vmand %vm1261_vm12, %vm1357_vm5  ;;  %v13083_v60 = vld [vmem:[#allocation50_spill] sm:$0xff]  ;;  %vm1582_vm8 = vcmp.eq.s32.totalorder %v13084_v9, 1  ;;  %v634_v14 = vsel %vm618_vm11, 1, %v13026_v18  ;;  %v851_v28 = vsel %vm835_vm14, 1, %v13026_v18 }
 0x186   :  { %v1419_v43 = vadd.f32 %v6290_v36, %v1195_v10  ;;  %v973_v27 = vadd.f32 %v6260_v24, %v749_v35  ;;  %vm1486_vm0 = vcmp.eq.s32.totalorder %v8756_v17, %v13085_v31  ;;  %v6292_v51 = vsel %vm1373_vm1, 1.0, %v12903_v16 }
 0x187   :  { %v9075_v56 = vpop.permute.xlu0 %651  ;;  %v9077_v45 = vpop.permute.xlu1 %1096  ;;  %vm1509_vm9 = vcmp.gt.f32.partialorder %v8622_v13, 6.0  ;;  %vm1485_vm7 = vcmp.eq.s32.totalorder %v8756_v17, %v13086_v63  ;;  %vm840_vm5 = vcmp.gt.f32.partialorder %v8742_v20, 3.0  ;;  %vm838_vm10 = vcmp.gt.f32.partialorder %v13087_v23, 3.0  ;;  %v13100_v13 = vld [vmem:[#allocation49_spill] sm:$0xff] }
 0x188   :  { %1338 = vperm.xlu0 %7092, %v1301_v40   ;;  %v6307_v40 = vsel %vm9122_vm3, 1.0, %v12903_v16  ;;  %vm1598_vm3 = vmand %vm1486_vm0, %vm1582_vm8  ;;  %v1525_v54 = vsel %vm1509_vm9, 1, %v13026_v18  ;;  %v856_v62 = vsel %vm840_vm5, 1, %v13026_v18  ;;  %v854_v35 = vsel %vm838_vm10, 1, %v13026_v18 }
 0x189   :  { %6983 = vset.pattern.permute.xlu1 %v13026_v18  ;;  %v1644_v46 = vadd.f32 %v6307_v40, %v1420_v30  ;;  %v6309_v37 = vsel %vm1598_vm3, 1.0, %v12903_v16  ;;  %vm1065_vm11 = vcmp.gt.f32.partialorder %v8812_v52, 4.0  ;;  %v13089_v9 = vmov 4  }
 0x18a   :  { %1553 = vperm.xlu1 %6983, %v1522_v12   ;;  %v6276_v12 = vsel %vm9131_vm6, 1.0, %v12903_v16  ;;  %vm1288_vm12 = vcmp.gt.f32.partialorder %v8742_v20, 5.0  ;;  %vm1289_vm14 = vcmp.gt.f32.partialorder %v8812_v52, 5.0  ;;  %vm1512_vm1 = vcmp.gt.f32.partialorder %v8742_v20, 6.0 }
 0x18b   :  { %v1533_v19 = vpop.permute.xlu0 %1532  ;;  %v1197_v29 = vadd.f32 %v6276_v12, %v973_v27  ;;  %v1081_v12 = vsel %vm1065_vm11, 1, %v13026_v18  ;;  %vm1513_vm8 = vcmp.gt.f32.partialorder %v8812_v52, 6.0  ;;  %vm1062_vm0 = vcmp.gt.f32.partialorder %v13087_v23, 4.0  ;;  %v9334_v23 = vld [vmem:[%s12942_s26 + $0x40] sm:$0xff] }
 0x18c   :  { %vm1579_vm2 = vcmp.eq.s32.totalorder %v1533_v19, 1  ;;  %675 = vperm.xlu0 %7092, %v632_v5   ;;  %v9141_v22 = vpop.permute.xlu1 %1006  ;;  %v6293_v5 = vsel %vm9150_vm13, 1.0, %v12903_v16  ;;  %vm1059_vm13 = vcmp.gt.f32.partialorder %v8579_v8, 4.0  ;;  %vm12915_vm3 = vcmp.gt.f32.partialorder %v8742_v20, 0.0 }
 0x18d   :  { %vm1595_vm4 = vmand %vm1483_vm15, %vm1579_vm2  ;;  %v1422_v24 = vadd.f32 %v6293_v5, %v1198_v34  ;;  %v1421_v1 = vadd.f32 %v6292_v51, %v1197_v29  ;;  %vm841_vm2 = vcmp.gt.f32.partialorder %v8812_v52, 3.0  ;;  %v1305_v51 = vsel %vm1289_vm14, 1, %v13026_v18 }
 0x18e   :  { %6984 = vset.pattern.permute.xlu1 %v13082_v21  ;;  %v6306_v39 = vsel %vm1595_vm4, 1.0, %v12903_v16  ;;  %vm1064_vm4 = vcmp.gt.f32.partialorder %v8742_v20, 4.0  ;;  %vm391_vm5 = vcmp.gt.f32.partialorder %v8728_v59, 1.0  ;;  %vm1284_vm11 = vcmp.gt.f32.partialorder %v13100_v13, 5.0  ;;  %v9359_v13 = vld [vmem:[%s12942_s26 + $0x78] sm:$0xff] }
 0x18f   :  { %v9164_v11 = vpop.permute.xlu0 %657  ;;  %791 = vperm.xlu1 %6984, %v13083_v60   ;;  %v1643_v7 = vadd.f32 %v6306_v39, %v1419_v43  ;;  %v1646_v50 = vadd.f32 %v6309_v37, %v1422_v24  ;;  %v857_v39 = vsel %vm841_vm2, 1, %v13026_v18  ;;  %v1080_v34 = vsel %vm1064_vm4, 1, %v13026_v18 }
 0x190   :  { %1556 = vperm.xlu0 %7092, %v1523_v6   ;;  %v9171_v38 = vpop.permute.xlu1 %1009  ;;  %v1078_v37 = vsel %vm1062_vm0, 1, %v13026_v18  ;;  %v1300_v57 = vsel %vm1284_vm11, 1, %v13026_v18 }
 0x191   :  { %v1659_v15 = vpack.c.bf16 %v1644_v46, %v1643_v7 }
 0x193   :  { %v1539_v6 = vpop.permute.xlu0 %1538  ;;  %6985 = vset.pattern.permute.xlu1 %v13026_v18  ;;  %6813 = vmatprep.mubr.bf16.mxu1 %v1659_v15 }
 0x194   :  { %vm1581_vm6 = vcmp.eq.s32.totalorder %v1539_v6, 1  ;;  %681 = vperm.xlu0 %7092, %v634_v14   ;;  %884 = vperm.xlu1 %6985, %v851_v28   ;;  %v1304_v14 = vsel %vm1288_vm12, 1, %v13026_v18  ;;  %v1075_v28 = vsel %vm1059_vm13, 1, %v13026_v18  ;;  %v1528_v6 = vsel %vm1512_vm1, 1, %v13026_v18 }
 0x195   :  { %vm1597_vm15 = vmand %vm1485_vm7, %vm1581_vm6  ;;  %v9187_v36 = vpop.permute.xlu1 %1105 }
 0x196   :  { %v6308_v10 = vsel %vm1597_vm15, 1.0, %v12903_v16 }
 0x197   :  { %v1645_v19 = vadd.f32 %v6308_v10, %v1421_v1  ;;  %v9193_v30 = vpop.permute.xlu0 %875  ;;  %v1529_v1 = vsel %vm1513_vm8, 1, %v13026_v18  ;;  %v9262_v10 = vld [vmem:[%s12823_s3] sm:$0xff]  ;;  %vm12918_vm8 = vcmp.gt.f32.partialorder %v8878_v49, 0.0  ;;  %v13118_v49 = vld [vmem:[#allocation39_spill] sm:$0xff] }
 0x198   :  { %1562 = vperm.xlu0 %7092, %v1525_v54   ;;  %6986 = vset.pattern.permute.xlu1 %v13082_v21  ;;  %13090 = vst [vmem:[#allocation60_spill] sm:$0xff] %v9262_v10  ;;  %vm12919_vm9 = vcmp.gt.f32.partialorder %v9262_v10, 0.0  ;;  %vm2500_vm2 = vcmp.gt.f32.partialorder %v9262_v10, 2.0  ;;  %vm2724_vm4 = vcmp.gt.f32.partialorder %v9262_v10, 3.0  ;;  %vm2948_vm13 = vcmp.gt.f32.partialorder %v9262_v10, 4.0  ;;  %v13105_v10 = vld [vmem:[#allocation42_spill] sm:$0xff] }
 0x199   :  { %794 = vperm.xlu1 %6986, %v9199_v25   ;;  %v9202_v55 = vpop.permute.xlu1 %119  ;;  %v1660_v2 = vpack.c.bf16 %v1646_v50, %v1645_v19  ;;  %v1973_v50 = vld [vmem:[%s12823_s3 + $0x8] sm:$0xff]  ;;  %v2516_v16 = vsel %vm2500_vm2, 1, %v13026_v18  ;;  %v2740_v8 = vsel %vm2724_vm4, 1, %v13026_v18 }
 0x19a   :  { %vm2277_vm7 = vcmp.gt.f32.partialorder %v1973_v50, 1.0 }
 0x19b   :  { %v9206_v43 = vpop.permute.xlu0 %878  ;;  %6814 = vmatmul.mubr.bf16.vlgmr.msra.gmra.mxu1 %v1660_v2 }
 0x19c   :  { %899 = vperm.xlu0 %7092, %v856_v62   ;;  %v7869_v62 = vld [vmem:[%s12821_s1] sm:$0xff] }
 0x19d   :  { %797 = vperm.xlu1 %6986, %v8638_v32   ;;  %v9210_v44 = vpop.permute.xlu1 %215 }
 0x19f   :  { %v9214_v40 = vpop.permute.xlu0 %1099 }
 0x1a0   :  { %902 = vperm.xlu0 %7092, %v857_v39  }
 0x1a1   :  { %6987 = vset.pattern.permute.xlu1 %v13026_v18 }
 0x1a2   :  { %893 = vperm.xlu1 %6987, %v854_v35   ;;  %v9219_v7 = vpop.permute.xlu1 %343  ;;  %v2068_v35 = vsel %vm12919_vm9, 1, %v13026_v18 }
 0x1a3   :  { %13088 = vst [vmem:[#allocation68_spill] sm:$0xff] %v9219_v7  ;;  %v9222_v46 = vpop.permute.xlu0 %1102 }
 0x1a4   :  { %1123 = vperm.xlu0 %7092, %v1080_v34   ;;  %v184_v34 = vsel %vm12915_vm3, 1, %v13026_v18 }
 0x1a6   :  { %6988 = vset.pattern.permute.xlu1 %v13089_v9 }
 0x1a7   :  { %v9228_v27 = vpop.permute.xlu0 %116  ;;  %1015 = vperm.xlu1 %6988, %v13083_v60   ;;  %v9231_v15 = vpop.permute.xlu1 %436 }
 0x1a8   :  { %1126 = vperm.xlu0 %7092, %v1081_v12   ;;  %v9294_v12 = vld [vmem:[%s12823_s3 + $0x10] sm:$0xff] }
 0x1a9   :  { %vm2054_vm6 = vcmp.gt.f32.partialorder %v9294_v12, 0.0 }
 0x1ab   :  { %v9236_v5 = vpop.permute.xlu0 %212  ;;  %6989 = vset.pattern.permute.xlu1 %v13026_v18 }
 0x1ac   :  { %1347 = vperm.xlu0 %7092, %v1304_v14   ;;  %1108 = vperm.xlu1 %6989, %v1075_v28   ;;  %v9239_v31 = vpop.permute.xlu1 %1224  ;;  %v2293_v14 = vsel %vm2277_vm7, 1, %v13026_v18 }
 0x1af   :  { %v9243_v29 = vpop.permute.xlu0 %439 }
 0x1b0   :  { %1350 = vperm.xlu0 %7092, %v1305_v51   ;;  %6990 = vset.pattern.permute.xlu1 %v13089_v9  ;;  %v9246_v24 = vpop.permute.xlu1 %1227 }
 0x1b1   :  { %1018 = vperm.xlu1 %6990, %v9199_v25  }
 0x1b3   :  { %v9256_v54 = vpop.permute.xlu0 %1320 }
 0x1b4   :  { %1571 = vperm.xlu0 %7092, %v1528_v6   ;;  %v9305_v6 = vld [vmem:[%s12823_s3 + $0x18] sm:$0xff] }
 0x1b5   :  { %1021 = vperm.xlu1 %6990, %v8638_v32   ;;  %v9253_v63 = vpop.permute.xlu1 %1323  ;;  %v9271_v32 = vld [vmem:[%s12942_s26 + $0x68] sm:$0xff]  ;;  %vm2279_vm15 = vcmp.gt.f32.partialorder %v9305_v6, 1.0  ;;  %vm2503_vm10 = vcmp.gt.f32.partialorder %v9305_v6, 2.0  ;;  %vm2727_vm12 = vcmp.gt.f32.partialorder %v9305_v6, 3.0  ;;  %vm2951_vm4 = vcmp.gt.f32.partialorder %v9305_v6, 4.0  ;;  %v13114_v6 = vld [vmem:[#allocation40_spill] sm:$0xff] }
 0x1b6   :  { %v2743_v42 = vsel %vm2727_vm12, 1, %v13026_v18 }
 0x1b7   :  { %v9276_v2 = vpop.permute.xlu0 %122 }
 0x1b8   :  { %1574 = vperm.xlu0 %7092, %v1529_v1   ;;  %13092 = vst [vmem:[#allocation50_spill] sm:$0xff] %v9276_v2  ;;  %v2070_v1 = vsel %vm2054_vm6, 1, %v13026_v18 }
 0x1b9   :  { %6991 = vset.pattern.permute.xlu1 %v13026_v18  ;;  %v9265_v19 = vpop.permute.xlu1 %125 }
 0x1ba   :  { %13091 = vst [vmem:[#allocation58_spill] sm:$0xff] %v9265_v19  ;;  %1117 = vperm.xlu1 %6991, %v1078_v37   ;;  %v13096_v37 = vmov 1   ;;  %v13102_v19 = vld [vmem:[#allocation69_spill] sm:$0xff] }
 0x1bb   :  { %v9297_v28 = vpop.permute.xlu0 %218  ;;  %vm143_vm1 = vcmp.eq.s32.totalorder %v8756_v17, %v13102_v19  ;;  %v13110_v19 = vld [vmem:[#allocation67_spill] sm:$0xff] }
 0x1bc   :  { %1989 = vperm.xlu0 %7092, %v7869_v62   ;;  %13094 = vst [vmem:[#allocation73_spill] sm:$0xff] %v9297_v28  ;;  %vm687_vm12 = vcmp.eq.s32.totalorder %v13110_v19, 1  ;;  %v1977_v19 = vld [vmem:[%s12823_s3 + $0x28] sm:$0xff] }
 0x1bd   :  { %v9282_v39 = vpop.permute.xlu1 %221 }
 0x1be   :  { %13093 = vst [vmem:[#allocation74_spill] sm:$0xff] %v9282_v39  ;;  %131 = vperm.xlu1 %6991, %v9271_v32   ;;  %v9393_v39 = vld [vmem:[%s12823_s3 + $0x20] sm:$0xff] }
 0x1bf   :  { %v9316_v62 = vpop.permute.xlu0 %445 }
 0x1c0   :  { %2085 = vperm.xlu0 %7092, %v2068_v35   ;;  %13098 = vst [vmem:[#allocation81_spill] sm:$0xff] %v9316_v62  ;;  %v2295_v35 = vsel %vm2279_vm15, 1, %v13026_v18  ;;  %vm463_vm15 = vcmp.eq.s32.totalorder %v13105_v10, 1 }
 0x1c2   :  { %227 = vperm.xlu1 %6991, %v184_v34   ;;  %v9299_v51 = vpop.permute.xlu1 %349  ;;  %v407_v34 = vsel %vm391_vm5, 1, %v13026_v18 }
 0x1c3   :  { %13095 = vst [vmem:[#allocation72_spill] sm:$0xff] %v9299_v51  ;;  %v9325_v20 = vpop.permute.xlu0 %1326  ;;  %v13106_v51 = vld [vmem:[#allocation37_spill] sm:$0xff] }
 0x1c4   :  { %2312 = vperm.xlu0 %7092, %v2293_v14   ;;  %vm239_vm5 = vcmp.eq.s32.totalorder %v13106_v51, 1 }
 0x1c5   :  { %vm9381_vm3 = vmand %vm143_vm1, %vm239_vm5  ;;  %vm688_vm1 = vcmp.eq.s32.totalorder %v9075_v56, 1 }
 0x1c6   :  { %6992 = vset.pattern.permute.xlu1 %v13096_v37 }
 0x1c7   :  { %355 = vperm.xlu1 %6992, %v9271_v32   ;;  %v9314_v50 = vpop.permute.xlu1 %442 }
 0x1c8   :  { %13097 = vst [vmem:[#allocation80_spill] sm:$0xff] %v9314_v50  ;;  %2091 = vperm.xlu0 %7092, %v2070_v1   ;;  %v13099_v1 = vmov 5  }
 0x1cb   :  { %6993 = vset.pattern.permute.xlu1 %v13026_v18 }
 0x1cc   :  { %2318 = vperm.xlu0 %7092, %v2295_v35   ;;  %448 = vperm.xlu1 %6993, %v407_v34   ;;  %v9322_v14 = vpop.permute.xlu1 %1230  ;;  %v2519_v35 = vsel %vm2503_vm10, 1, %v13026_v18  ;;  %v9339_v34 = vpop.permute.xlu0 %663  ;;  %vm464_vm10 = vcmp.eq.s32.totalorder %v8758_v26, 1  ;;  %v13124_v26 = vmov 0.0  }
 0x1d0   :  { %2533 = vperm.xlu0 %7092, %v2516_v16   ;;  %6994 = vset.pattern.permute.xlu1 %v13099_v1  ;;  %v9329_v59 = vpop.permute.xlu1 %1233  ;;  %v9350_v50 = vpop.permute.xlu0 %1544 }
 0x1d1   :  { %1236 = vperm.xlu1 %6994, %v9334_v23  }
 0x1d4   :  { %2542 = vperm.xlu0 %7092, %v2519_v35   ;;  %v9405_v2 = vpop.permute.xlu0 %669 }
 0x1d5   :  { %1239 = vperm.xlu1 %6994, %v13083_v60   ;;  %v9343_v16 = vpop.permute.xlu1 %1329  ;;  %v13101_v60 = vld [vmem:[#allocation38_spill] sm:$0xff]  ;;  %13117 = vst [vmem:[#allocation69_spill] sm:$0xff] %v9405_v2  ;;  %v6214_v2 = vsel %vm9381_vm3, 1.0, %v13124_v26  ;;  %vm1135_vm3 = vcmp.eq.s32.totalorder %v9077_v45, 1 }
 0x1d6   :  { %vm240_vm14 = vcmp.eq.s32.totalorder %v13101_v60, 1  ;;  %v2964_v60 = vsel %vm2948_vm13, 1, %v13026_v18  ;;  %vm368_vm13 = vcmp.eq.s32.totalorder %v8756_v17, %v13114_v6  ;;  %v13121_v6 = vld [vmem:[#allocation65_spill] sm:$0xff] }
 0x1d7   :  { %vm9411_vm5 = vmand %vm368_vm13, %vm464_vm10  ;;  %vm912_vm10 = vcmp.eq.s32.totalorder %v9193_v30, 1 }
 0x1d8   :  { %2757 = vperm.xlu0 %7092, %v2740_v8   ;;  %v13103_v8 = vld [vmem:[#allocation10_spill] sm:$0xff]  ;;  %v6231_v62 = vsel %vm9411_vm5, 1.0, %v13124_v26  ;;  %vm1359_vm5 = vcmp.eq.s32.totalorder %v9256_v54, 1 }
 0x1d9   :  { %6995 = vset.pattern.permute.xlu1 %v13026_v18  ;;  %vm144_vm0 = vcmp.eq.s32.totalorder %v8756_v17, %v13103_v8  ;;  %v186_v8 = vsel %vm12918_vm8, 1, %v13026_v18  ;;  %vm911_vm8 = vcmp.eq.s32.totalorder %v8760_v41, 1 }
 0x1da   :  { %1335 = vperm.xlu1 %6995, %v1300_v57   ;;  %v9352_v35 = vpop.permute.xlu1 %567  ;;  %v13104_v57 = vld [vmem:[#allocation11_spill] sm:$0xff]  ;;  %vm9371_vm2 = vmand %vm144_vm0, %vm240_vm14  ;;  %vm815_vm0 = vcmp.eq.s32.totalorder %v8756_v17, %v13118_v49 }
 0x1db   :  { %vm367_vm7 = vcmp.eq.s32.totalorder %v8756_v17, %v13104_v57  ;;  %v2967_v57 = vsel %vm2951_vm4, 1, %v13026_v18  ;;  %vm12921_vm4 = vcmp.gt.f32.partialorder %v9393_v39, 0.0 }
 0x1dc   :  { %2766 = vperm.xlu0 %7092, %v2743_v42   ;;  %v13109_v42 = vld [vmem:[#allocation27_spill] sm:$0xff]  ;;  %vm9400_vm14 = vmand %vm367_vm7, %vm463_vm15  ;;  %vm592_vm7 = vcmp.eq.s32.totalorder %v8756_v17, %v13121_v6  ;;  %v13125_v6 = vld [vmem:[#allocation53_spill] sm:$0xff]  ;;  %v2072_v41 = vsel %vm12921_vm4, 1, %v13026_v18 }
 0x1dd   :  { %vm591_vm11 = vcmp.eq.s32.totalorder %v8756_v17, %v13109_v42  ;;  %v6215_v42 = vsel %vm9371_vm2, 1.0, %v13124_v26  ;;  %v6230_v10 = vsel %vm9400_vm14, 1.0, %v13124_v26  ;;  %vm9457_vm2 = vmand %vm815_vm0, %vm911_vm8  ;;  %vm2281_vm8 = vcmp.gt.f32.partialorder %v1977_v19, 1.0  ;;  %v9540_v19 = vld [vmem:[%s12823_s3 + $0x38] sm:$0xff] }
 0x1de   :  { %137 = vperm.xlu1 %6995, %v9359_v13   ;;  %vm9424_vm15 = vmand %vm591_vm11, %vm687_vm12  ;;  %vm1039_vm11 = vcmp.eq.s32.totalorder %v8756_v17, %v13125_v6  ;;  %v527_v7 = vadd.f32 %v6230_v10, %v6214_v2  ;;  %vm1040_vm0 = vcmp.eq.s32.totalorder %v8756_v17, %v8997_v33  ;;  %v9485_v2 = vpop.permute.xlu0 %1550  ;;  %v528_v45 = vadd.f32 %v6231_v62, %v6215_v42 }
 0x1df   :  { %v9385_v51 = vpop.permute.xlu1 %660  ;;  %vm704_vm12 = vmand %vm592_vm7, %vm688_vm1  ;;  %vm1136_vm1 = vcmp.eq.s32.totalorder %v9214_v40, 1  ;;  %v6246_v33 = vsel %vm9424_vm15, 1.0, %v13124_v26  ;;  %vm1264_vm15 = vcmp.eq.s32.totalorder %v8756_v17, %v9246_v24  ;;  %v2297_v24 = vsel %vm2281_vm8, 1, %v13026_v18 }
 0x1e0   :  { %13113 = vst [vmem:[#allocation38_spill] sm:$0xff] %v9385_v51  ;;  %2981 = vperm.xlu0 %7092, %v2964_v60   ;;  %v6247_v49 = vsel %vm704_vm12, 1.0, %v13124_v26  ;;  %vm9480_vm7 = vmand %vm1039_vm11, %vm1135_vm3  ;;  %v6262_v51 = vsel %vm9457_vm2, 1.0, %v13124_v26  ;;  %vm1263_vm12 = vcmp.eq.s32.totalorder %v8756_v17, %v9239_v31  ;;  %v9507_v60 = vld [vmem:[%s12823_s3 + $0x30] sm:$0xff]  ;;  %vm1583_vm2 = vcmp.eq.s32.totalorder %v9350_v50, 1 }
 0x1e1   :  { %vm9497_vm11 = vmand %vm1040_vm0, %vm1136_vm1  ;;  %v751_v6 = vadd.f32 %v6246_v33, %v527_v7  ;;  %v752_v10 = vadd.f32 %v6247_v49, %v528_v45  ;;  %v6278_v50 = vsel %vm9480_vm7, 1.0, %v13124_v26  ;;  %vm1585_vm4 = vcmp.eq.s32.totalorder %v9485_v2, 1 }
 0x1e2   :  { %233 = vperm.xlu1 %6995, %v186_v8   ;;  %v13126_v8 = vld [vmem:[#allocation76_spill] sm:$0xff]  ;;  %vm9516_vm3 = vmand %vm1263_vm12, %vm1359_vm5  ;;  %v6279_v62 = vsel %vm9497_vm11, 1.0, %v13124_v26  ;;  %vm12920_vm5 = vcmp.gt.f32.partialorder %v9507_v60, 0.0  ;;  %vm2504_vm12 = vcmp.gt.f32.partialorder %v9393_v39, 2.0 }
 0x1e3   :  { %vm816_vm13 = vcmp.eq.s32.totalorder %v8756_v17, %v13126_v8  ;;  %v975_v7 = vadd.f32 %v6262_v51, %v751_v6  ;;  %v6294_v56 = vsel %vm9516_vm3, 1.0, %v13124_v26  ;;  %v9546_v8 = vpop.permute.xlu0 %887  ;;  %v2074_v33 = vsel %vm12920_vm5, 1, %v13026_v18 }
 0x1e4   :  { %2990 = vperm.xlu0 %7092, %v2967_v57   ;;  %v1449_v28 = vpop.permute.xlu1 %1448  ;;  %vm9464_vm14 = vmand %vm816_vm13, %vm912_vm10  ;;  %vm1360_vm10 = vcmp.eq.s32.totalorder %v9253_v63, 1  ;;  %vm393_vm13 = vcmp.gt.f32.partialorder %v8812_v52, 1.0  ;;  %vm241_vm3 = vcmp.eq.s32.totalorder %v8872_v61, 1  ;;  %v13148_v61 = vld [vmem:[#allocation71_spill] sm:$0xff] }
 0x1e5   :  { %v6263_v42 = vsel %vm9464_vm14, 1.0, %v13124_v26  ;;  %vm1487_vm1 = vcmp.eq.s32.totalorder %v8756_v17, %v1449_v28  ;;  %vm1376_vm14 = vmand %vm1264_vm15, %vm1360_vm10  ;;  %v409_v54 = vsel %vm393_vm13, 1, %v13026_v18  ;;  %vm2283_vm10 = vcmp.gt.f32.partialorder %v9540_v19, 1.0 }
 0x1e6   :  { %6996 = vset.pattern.permute.xlu1 %v13096_v37  ;;  %v976_v63 = vadd.f32 %v6263_v42, %v752_v10  ;;  %vm1599_vm0 = vmand %vm1487_vm1, %vm1583_vm2  ;;  %v6295_v28 = vsel %vm1376_vm14, 1.0, %v13124_v26  ;;  %v2299_v10 = vsel %vm2283_vm10, 1, %v13026_v18  ;;  %vm145_vm15 = vcmp.eq.s32.totalorder %v8756_v17, %v8806_v4  ;;  %v13147_v4 = vld [vmem:[#allocation70_spill] sm:$0xff] }
 0x1e7   :  { %361 = vperm.xlu1 %6996, %v9359_v13   ;;  %v6310_v45 = vsel %vm1599_vm0, 1.0, %v13124_v26  ;;  %vm466_vm1 = vcmp.eq.s32.totalorder %v8942_v53, 1  ;;  %vm689_vm5 = vcmp.eq.s32.totalorder %v13148_v61, 1 }
 0x1e8   :  { %2097 = vperm.xlu0 %7092, %v2072_v41   ;;  %v1452_v31 = vpop.permute.xlu1 %1451  ;;  %v1199_v41 = vadd.f32 %v6278_v50, %v975_v7  ;;  %v1200_v49 = vadd.f32 %v6279_v62, %v976_v63  ;;  %v13138_v62 = vld [vmem:[#allocation47_spill] sm:$0xff]  ;;  %v9573_v7 = vld [vmem:[%s12943_s19 + $0x58] sm:$0xff] }
 0x1e9   :  { %vm1488_vm8 = vcmp.eq.s32.totalorder %v8756_v17, %v1452_v31  ;;  %v9559_v31 = vpop.permute.xlu0 %890  ;;  %vm146_vm2 = vcmp.eq.s32.totalorder %v8756_v17, %v13138_v62  ;;  %vm1286_vm14 = vcmp.gt.f32.partialorder %v9573_v7, 5.0  ;;  %v13139_v63 = vld [vmem:[#allocation13_spill] sm:$0xff] }
 0x1ea   :  { %v1423_v51 = vadd.f32 %v6294_v56, %v1199_v41  ;;  %v1424_v57 = vadd.f32 %v6295_v28, %v1200_v49  ;;  %vm369_vm0 = vcmp.eq.s32.totalorder %v8756_v17, %v13139_v63  ;;  %v13142_v28 = vld [vmem:[#allocation56_spill] sm:$0xff]  ;;  %v9586_v41 = vld [vmem:[%s12942_s26 + $0x58] sm:$0xff]  ;;  %v2520_v49 = vsel %vm2504_vm12, 1, %v13026_v18  ;;  %v9729_v63 = vld [vmem:[%s12823_s3 + $0x40] sm:$0xff] }
 0x1eb   :  { %6997 = vset.pattern.permute.xlu1 %v13026_v18 }
 0x1ec   :  { %2324 = vperm.xlu0 %7092, %v2297_v24   ;;  %454 = vperm.xlu1 %6997, %v409_v54   ;;  %v1647_v40 = vadd.f32 %v6310_v45, %v1423_v51  ;;  %v13137_v24 = vld [vmem:[#allocation51_spill] sm:$0xff]  ;;  %v1302_v51 = vsel %vm1286_vm14, 1, %v13026_v18 }
 0x1ed   :  { %v1548_v30 = vpop.permute.xlu1 %1547  ;;  %vm242_vm11 = vcmp.eq.s32.totalorder %v13137_v24, 1  ;;  %v9616_v53 = vpop.permute.xlu0 %1111 }
 0x1ee   :  { %vm1584_vm7 = vcmp.eq.s32.totalorder %v1548_v30, 1  ;;  %v13143_v30 = vld [vmem:[#allocation52_spill] sm:$0xff] }
 0x1ef   :  { %vm1600_vm13 = vmand %vm1488_vm8, %vm1584_vm7  ;;  %vm465_vm7 = vcmp.eq.s32.totalorder %v13142_v28, 1  ;;  %vm370_vm10 = vcmp.eq.s32.totalorder %v8756_v17, %v13143_v30 }
 0x1f0   :  { %v6311_v42 = vsel %vm1600_vm13, 1.0, %v13124_v26  ;;  %2103 = vperm.xlu0 %7092, %v2074_v33   ;;  %6998 = vset.pattern.permute.xlu1 %v13099_v1  ;;  %vm9578_vm8 = vmand %vm146_vm2, %vm242_vm11  ;;  %vm690_vm11 = vcmp.eq.s32.totalorder %v9164_v11, 1  ;;  %vm2507_vm2 = vcmp.gt.f32.partialorder %v9540_v19, 2.0 }
 0x1f1   :  { %v1648_v6 = vadd.f32 %v6311_v42, %v1424_v57  ;;  %1242 = vperm.xlu1 %6998, %v9199_v25   ;;  %vm257_vm13 = vmand %vm145_vm15, %vm241_vm3  ;;  %v13146_v57 = vld [vmem:[#allocation28_spill] sm:$0xff]  ;;  %vm594_vm3 = vcmp.eq.s32.totalorder %v8756_v17, %v13147_v4  ;;  %v9674_v28 = vpop.permute.xlu0 %1114 }
 0x1f2   :  { %v9561_v54 = vpop.permute.xlu1 %573  ;;  %vm9601_vm9 = vmand %vm370_vm10, %vm466_vm1  ;;  %vm593_vm12 = vcmp.eq.s32.totalorder %v8756_v17, %v13146_v57  ;;  %v6216_v11 = vsel %vm257_vm13, 1.0, %v13124_v26  ;;  %vm914_vm1 = vcmp.eq.s32.totalorder %v8909_v0, 1  ;;  %vm817_vm13 = vcmp.eq.s32.totalorder %v8756_v17, %v8781_v58 }
 0x1f3   :  { %v1661_v50 = vpack.c.bf16 %v1648_v6, %v1647_v40  ;;  %vm481_vm15 = vmand %vm369_vm0, %vm465_vm7  ;;  %v2523_v40 = vsel %vm2507_vm2, 1, %v13026_v18  ;;  %vm2728_vm0 = vcmp.gt.f32.partialorder %v9393_v39, 3.0  ;;  %v6217_v6 = vsel %vm9578_vm8, 1.0, %v13124_v26 }
 0x1f4   :  { %2330 = vperm.xlu0 %7092, %v2299_v10   ;;  %vm9620_vm14 = vmand %vm594_vm3, %vm690_vm11  ;;  %v6233_v10 = vsel %vm9601_vm9, 1.0, %v13124_v26  ;;  %vm913_vm7 = vcmp.eq.s32.totalorder %v9206_v43, 1  ;;  %v6232_v24 = vsel %vm481_vm15, 1.0, %v13124_v26  ;;  %vm818_vm8 = vcmp.eq.s32.totalorder %v8756_v17, %v8831_v47 }
 0x1f5   :  { %1245 = vperm.xlu1 %6998, %v9586_v41   ;;  %6817 = vmatprep.mubr.bf16.mxu1 %v1661_v50  ;;  %vm9638_vm10 = vmand %vm593_vm12, %vm689_vm5  ;;  %vm1138_vm9 = vcmp.eq.s32.totalorder %v9187_v36, 1  ;;  %v529_v62 = vadd.f32 %v6232_v24, %v6216_v11  ;;  %v6249_v56 = vsel %vm9620_vm14, 1.0, %v13124_v26  ;;  %vm1137_vm5 = vcmp.eq.s32.totalorder %v9222_v46, 1  ;;  %v9720_v11 = vpop.permute.xlu0 %128 }
 0x1f6   :  { %vm9649_vm11 = vmand %vm818_vm8, %vm914_vm1  ;;  %v2744_v47 = vsel %vm2728_vm0, 1, %v13026_v18  ;;  %v530_v36 = vadd.f32 %v6233_v10, %v6217_v6  ;;  %vm1042_vm2 = vcmp.eq.s32.totalorder %v8756_v17, %v9171_v38  ;;  %vm1361_vm15 = vcmp.eq.s32.totalorder %v9325_v20, 1  ;;  %v9681_v38 = vld [vmem:[%s12943_s19 + $0x60] sm:$0xff] }
 0x1f7   :  { %v9605_v45 = vpop.permute.xlu1 %666  ;;  %vm929_vm12 = vmand %vm817_vm13, %vm913_vm7  ;;  %vm1265_vm3 = vcmp.eq.s32.totalorder %v8756_v17, %v9322_v14  ;;  %vm1041_vm1 = vcmp.eq.s32.totalorder %v8756_v17, %v9141_v22  ;;  %vm1362_vm0 = vcmp.eq.s32.totalorder %v9343_v16, 1  ;;  %vm2731_vm7 = vcmp.gt.f32.partialorder %v9540_v19, 3.0 }
 0x1f8   :  { %2545 = vperm.xlu0 %7092, %v2520_v49   ;;  %vm9669_vm14 = vmand %vm1042_vm2, %vm1138_vm9  ;;  %vm615_vm13 = vcmp.gt.f32.partialorder %v9681_v38, 2.0  ;;  %v6248_v22 = vsel %vm9638_vm10, 1.0, %v13124_v26  ;;  %v754_v43 = vadd.f32 %v6249_v56, %v530_v36  ;;  %v6264_v14 = vsel %vm929_vm12, 1.0, %v13124_v26 }
 0x1f9   :  { %6999 = vset.pattern.permute.xlu1 %v13026_v18  ;;  %vm1153_vm8 = vmand %vm1041_vm1, %vm1137_vm5  ;;  %vm1266_vm2 = vcmp.eq.s32.totalorder %v8756_v17, %v9329_v59  ;;  %v753_v30 = vadd.f32 %v6248_v22, %v529_v62  ;;  %v2747_v20 = vsel %vm2731_vm7, 1, %v13026_v18  ;;  %v631_v33 = vsel %vm615_vm13, 1, %v13026_v18 }
 0x1fa   :  { %1341 = vperm.xlu1 %6999, %v1302_v51   ;;  %vm9693_vm9 = vmand %vm1265_vm3, %vm1361_vm15  ;;  %v6265_v59 = vsel %vm9649_vm11, 1.0, %v13124_v26  ;;  %v6281_v2 = vsel %vm9669_vm14, 1.0, %v13124_v26  ;;  %v6280_v51 = vsel %vm1153_vm8, 1.0, %v13124_v26  ;;  %vm2952_vm12 = vcmp.gt.f32.partialorder %v9393_v39, 4.0 }
 0x1fb   :  { %vm1378_vm5 = vmand %vm1266_vm2, %vm1362_vm0  ;;  %v978_v16 = vadd.f32 %v6265_v59, %v754_v43  ;;  %v977_v57 = vadd.f32 %v6264_v14, %v753_v30  ;;  %v6296_v4 = vsel %vm9693_vm9, 1.0, %v13124_v26  ;;  %v2968_v10 = vsel %vm2952_vm12, 1, %v13026_v18  ;;  %v1981_v43 = vld [vmem:[%s12823_s3 + $0x48] sm:$0xff] }
 0x1fc   :  { %2554 = vperm.xlu0 %7092, %v2523_v40   ;;  %v1455_v58 = vpop.permute.xlu1 %1454  ;;  %v6297_v61 = vsel %vm1378_vm5, 1.0, %v13124_v26  ;;  %vm2955_vm3 = vcmp.gt.f32.partialorder %v9540_v19, 4.0  ;;  %v9735_v19 = vpop.permute.xlu0 %224  ;;  %vm2060_vm14 = vcmp.gt.f32.partialorder %v9729_v63, 0.0  ;;  %v7874_v14 = vld [vmem:[%s12943_s19 + $0x48] sm:$0xff]  ;;  %vm2285_vm7 = vcmp.gt.f32.partialorder %v1981_v43, 1.0 }
 0x1fd   :  { %vm1489_vm10 = vcmp.eq.s32.totalorder %v8756_v17, %v1455_v58  ;;  %v1202_v42 = vadd.f32 %v6281_v2, %v978_v16  ;;  %v1201_v40 = vadd.f32 %v6280_v51, %v977_v57  ;;  %v2971_v36 = vsel %vm2955_vm3, 1, %v13026_v18  ;;  %v1983_v2 = vld [vmem:[%s12823_s3 + $0x58] sm:$0xff] }
 0x1fe   :  { %7000 = vset.pattern.permute.xlu1 %v13019_v48  ;;  %vm1601_vm15 = vmand %vm1489_vm10, %vm1585_vm4  ;;  %vm1508_vm0 = vcmp.gt.f32.partialorder %v7874_v14, 6.0  ;;  %v2076_v49 = vsel %vm2060_vm14, 1, %v13026_v18  ;;  %v2301_v59 = vsel %vm2285_vm7, 1, %v13026_v18  ;;  %vm2287_vm8 = vcmp.gt.f32.partialorder %v1983_v2, 1.0  ;;  %v9821_v14 = vld [vmem:[%s12823_s3 + $0x60] sm:$0xff] }
 0x1ff   :  { %579 = vperm.xlu1 %7000, %v9271_v32   ;;  %v6312_v24 = vsel %vm1601_vm15, 1.0, %v13124_v26  ;;  %v1425_v50 = vadd.f32 %v6296_v4, %v1201_v40  ;;  %v1426_v62 = vadd.f32 %v6297_v61, %v1202_v42  ;;  %v1524_v30 = vsel %vm1508_vm0, 1, %v13026_v18  ;;  %v7876_v4 = vld [vmem:[%s12943_s19 + $0x70] sm:$0xff] }
 0x200   :  { %2769 = vperm.xlu0 %7092, %v2744_v47   ;;  %v1458_v46 = vpop.permute.xlu1 %1457  ;;  %vm617_vm9 = vcmp.gt.f32.partialorder %v7876_v4, 2.0  ;;  %v2303_v42 = vsel %vm2287_vm8, 1, %v13026_v18  ;;  %vm2508_vm2 = vcmp.gt.f32.partialorder %v9729_v63, 2.0  ;;  %vm2511_vm10 = vcmp.gt.f32.partialorder %v1983_v2, 2.0 }
 0x201   :  { %vm1490_vm4 = vcmp.eq.s32.totalorder %v8756_v17, %v1458_v46  ;;  %v1649_v58 = vadd.f32 %v6312_v24, %v1425_v50  ;;  %v633_v40 = vsel %vm617_vm9, 1, %v13026_v18  ;;  %v2524_v24 = vsel %vm2508_vm2, 1, %v13026_v18 }
 0x202   :  { %v2527_v50 = vsel %vm2511_vm10, 1, %v13026_v18  ;;  %vm2732_vm5 = vcmp.gt.f32.partialorder %v9729_v63, 3.0  ;;  %vm1510_vm12 = vcmp.gt.f32.partialorder %v9573_v7, 6.0  ;;  %vm2735_vm15 = vcmp.gt.f32.partialorder %v1983_v2, 3.0 }
 0x203   :  { %7001 = vset.pattern.permute.xlu1 %v13026_v18  ;;  %vm839_vm3 = vcmp.gt.f32.partialorder %v9681_v38, 3.0  ;;  %vm2512_vm2 = vcmp.gt.f32.partialorder %v9821_v14, 2.0 }
 0x204   :  { %2778 = vperm.xlu0 %7092, %v2747_v20   ;;  %672 = vperm.xlu1 %7001, %v631_v33   ;;  %v9758_v20 = vld [vmem:[%s12823_s3 + $0x50] sm:$0xff]  ;;  %v9760_v33 = vpop.permute.xlu0 %451  ;;  %v2528_v52 = vsel %vm2512_vm2, 1, %v13026_v18  ;;  %vm467_vm2 = vcmp.eq.s32.totalorder %v9231_v15, 1 }
 0x205   :  { %v1554_v6 = vpop.permute.xlu1 %1553  ;;  %vm2062_vm13 = vcmp.gt.f32.partialorder %v9758_v20, 0.0  ;;  %v7882_v15 = vld [vmem:[%s12943_s19 + $0x30] sm:$0xff] }
 0x206   :  { %vm1586_vm11 = vcmp.eq.s32.totalorder %v1554_v6, 1  ;;  %v2078_v16 = vsel %vm2062_vm13, 1, %v13026_v18 }
 0x207   :  { %vm1602_vm1 = vmand %vm1490_vm4, %vm1586_vm11  ;;  %vm2956_vm4 = vcmp.gt.f32.partialorder %v9729_v63, 4.0  ;;  %vm2959_vm11 = vcmp.gt.f32.partialorder %v1983_v2, 4.0 }
 0x208   :  { %v6313_v56 = vsel %vm1602_vm1, 1.0, %v13124_v26  ;;  %2993 = vperm.xlu0 %7092, %v2968_v10   ;;  %7002 = vset.pattern.permute.xlu1 %v13023_v3  ;;  %v9773_v57 = vpop.permute.xlu0 %1332  ;;  %vm2064_vm1 = vcmp.gt.f32.partialorder %v9821_v14, 0.0 }
 0x209   :  { %v1650_v47 = vadd.f32 %v6313_v56, %v1426_v62  ;;  %1460 = vperm.xlu1 %7002, %v9334_v23   ;;  %v7875_v23 = vld [vmem:[%s12942_s26 + $0x48] sm:$0xff]  ;;  %v2080_v4 = vsel %vm2064_vm1, 1, %v13026_v18 }
 0x20a   :  { %v9737_v0 = vpop.permute.xlu1 %791 }
 0x20b   :  { %v1662_v22 = vpack.c.bf16 %v1650_v47, %v1649_v58  ;;  %v2748_v58 = vsel %vm2732_vm5, 1, %v13026_v18  ;;  %vm1063_vm5 = vcmp.gt.f32.partialorder %v9681_v38, 4.0 }
 0x20c   :  { %3002 = vperm.xlu0 %7092, %v2971_v36   ;;  %v9786_v6 = vpop.permute.xlu0 %134 }
 0x20d   :  { %1463 = vperm.xlu1 %7002, %v7875_v23   ;;  %6818 = vmatmul.mubr.bf16.gmra.mxu1 %v1662_v22  ;;  %13159 = vst [vmem:[#allocation10_spill] sm:$0xff] %v9786_v6  ;;  %v2751_v22 = vsel %vm2735_vm15, 1, %v13026_v18 }
 0x20f   :  { %v9752_v46 = vpop.permute.xlu1 %884 }
 0x210   :  { %2109 = vperm.xlu0 %7092, %v2076_v49   ;;  %v9794_v62 = vpop.permute.xlu0 %230  ;;  %v2975_v49 = vsel %vm2959_vm11, 1, %v13026_v18 }
 0x211   :  { %7003 = vset.pattern.permute.xlu1 %v13026_v18  ;;  %13160 = vst [vmem:[#allocation11_spill] sm:$0xff] %v9794_v62 }
 0x212   :  { %1559 = vperm.xlu1 %7003, %v1524_v30   ;;  %v855_v30 = vsel %vm839_vm3, 1, %v13026_v18 }
 0x214   :  { %2336 = vperm.xlu0 %7092, %v2301_v59   ;;  %v9768_v51 = vpop.permute.xlu1 %794  ;;  %v9805_v36 = vpop.permute.xlu0 %457  ;;  %v1985_v59 = vld [vmem:[%s12823_s3 + $0x68] sm:$0xff] }
 0x215   :  { %13161 = vst [vmem:[#allocation42_spill] sm:$0xff] %v9805_v36  ;;  %vm2289_vm0 = vcmp.gt.f32.partialorder %v1985_v59, 1.0 }
 0x216   :  { %7004 = vset.pattern.permute.xlu1 %v13019_v48 }
 0x217   :  { %585 = vperm.xlu1 %7004, %v9359_v13  }
 0x218   :  { %2115 = vperm.xlu0 %7092, %v2078_v16   ;;  %v9780_v61 = vpop.permute.xlu1 %797  ;;  %v9813_v43 = vpop.permute.xlu0 %1338 }
 0x21b   :  { %7005 = vset.pattern.permute.xlu1 %v13026_v18 }
 0x21c   :  { %2342 = vperm.xlu0 %7092, %v2303_v42   ;;  %678 = vperm.xlu1 %7005, %v633_v40   ;;  %v9832_v2 = vpop.permute.xlu0 %675  ;;  %v9842_v42 = vld [vmem:[%s12823_s3 + $0x70] sm:$0xff] }
 0x21d   :  { %v9788_v10 = vpop.permute.xlu1 %893  ;;  %13162 = vst [vmem:[#allocation37_spill] sm:$0xff] %v9832_v2  ;;  %v9848_v40 = vld [vmem:[%s12942_s26 + $0x70] sm:$0xff]  ;;  %vm2066_vm7 = vcmp.gt.f32.partialorder %v9842_v42, 0.0 }
 0x220   :  { %2557 = vperm.xlu0 %7092, %v2524_v24   ;;  %7006 = vset.pattern.permute.xlu1 %v13023_v3 }
 0x221   :  { %1466 = vperm.xlu1 %7006, %v9199_v25   ;;  %v1526_v25 = vsel %vm1510_vm12, 1, %v13026_v18  ;;  %vm2736_vm12 = vcmp.gt.f32.partialorder %v9821_v14, 3.0 }
 0x222   :  { %v9796_v56 = vpop.permute.xlu1 %1015  ;;  %v2752_v6 = vsel %vm2736_vm12, 1, %v13026_v18  ;;  %vm243_vm12 = vcmp.eq.s32.totalorder %v9236_v5, 1  ;;  %v13184_v5 = vld [vmem:[#allocation29_spill] sm:$0xff] }
 0x224   :  { %2566 = vperm.xlu0 %7092, %v2527_v50   ;;  %v2305_v50 = vsel %vm2289_vm0, 1, %v13026_v18  ;;  %vm1287_vm0 = vcmp.gt.f32.partialorder %v9681_v38, 5.0 }
 0x225   :  { %1469 = vperm.xlu1 %7006, %v9586_v41   ;;  %v2972_v41 = vsel %vm2956_vm4, 1, %v13026_v18  ;;  %vm2960_vm4 = vcmp.gt.f32.partialorder %v9821_v14, 4.0 }
 0x227   :  { %v9802_v47 = vpop.permute.xlu1 %1108 }
 0x228   :  { %2781 = vperm.xlu0 %7092, %v2748_v58   ;;  %v9854_v58 = vpop.permute.xlu0 %1556 }
 0x229   :  { %7007 = vset.pattern.permute.xlu1 %v13026_v18 }
 0x22a   :  { %1565 = vperm.xlu1 %7007, %v1526_v25   ;;  %v1987_v25 = vld [vmem:[%s12823_s3 + $0x78] sm:$0xff] }
 0x22b   :  { %vm2291_vm9 = vcmp.gt.f32.partialorder %v1987_v25, 1.0  ;;  %vm2515_vm10 = vcmp.gt.f32.partialorder %v1987_v25, 2.0  ;;  %vm2739_vm15 = vcmp.gt.f32.partialorder %v1987_v25, 3.0  ;;  %vm2963_vm3 = vcmp.gt.f32.partialorder %v1987_v25, 4.0 }
 0x22c   :  { %2790 = vperm.xlu0 %7092, %v2751_v22   ;;  %v9810_v7 = vpop.permute.xlu1 %1018  ;;  %v9863_v22 = vld [vmem:[%s12943_s19 + $0x78] sm:$0xff]  ;;  %v9873_v59 = vpop.permute.xlu0 %681  ;;  %v2755_v2 = vsel %vm2739_vm15, 1, %v13026_v18 }
 0x22d   :  { %vm842_vm8 = vcmp.gt.f32.partialorder %v9863_v22, 3.0  ;;  %13164 = vst [vmem:[#allocation67_spill] sm:$0xff] %v9873_v59  ;;  %v1079_v59 = vsel %vm1063_vm5, 1, %v13026_v18  ;;  %vm1066_vm11 = vcmp.gt.f32.partialorder %v9863_v22, 4.0  ;;  %vm147_vm5 = vcmp.eq.s32.totalorder %v8756_v17, %v9228_v27 }
 0x22e   :  { %7008 = vset.pattern.permute.xlu1 %v13082_v21 }
 0x22f   :  { %803 = vperm.xlu1 %7008, %v9271_v32  }
 0x230   :  { %3005 = vperm.xlu0 %7092, %v2972_v41   ;;  %v9823_v23 = vpop.permute.xlu1 %1021  ;;  %v9881_v36 = vpop.permute.xlu0 %1562 }
 0x233   :  { %7009 = vset.pattern.permute.xlu1 %v13026_v18 }
 0x234   :  { %3014 = vperm.xlu0 %7092, %v2975_v49   ;;  %896 = vperm.xlu1 %7009, %v855_v30   ;;  %v2082_v49 = vsel %vm2066_vm7, 1, %v13026_v18  ;;  %v858_v30 = vsel %vm842_vm8, 1, %v13026_v18  ;;  %vm13171_vm8 = vcmp.gt.f32.partialorder %v9393_v39, 0.0 }
 0x235   :  { %v9834_v16 = vpop.permute.xlu1 %1117 }
 0x238   :  { %2121 = vperm.xlu0 %7092, %v2080_v4   ;;  %7010 = vset.pattern.permute.xlu1 %v13082_v21  ;;  %v2307_v4 = vsel %vm2291_vm9, 1, %v13026_v18  ;;  %vm1290_vm9 = vcmp.gt.f32.partialorder %v9863_v22, 5.0 }
 0x239   :  { %806 = vperm.xlu1 %7010, %v9848_v40   ;;  %v9851_v24 = vpop.permute.xlu1 %131 }
 0x23a   :  { %13163 = vst [vmem:[#allocation27_spill] sm:$0xff] %v9851_v24 }
 0x23c   :  { %2348 = vperm.xlu0 %7092, %v2305_v50  }
 0x23d   :  { %809 = vperm.xlu1 %7010, %v9359_v13   ;;  %v9867_v41 = vpop.permute.xlu1 %227 }
 0x240   :  { %2127 = vperm.xlu0 %7092, %v2082_v49  }
 0x241   :  { %7011 = vset.pattern.permute.xlu1 %v13026_v18 }
 0x242   :  { %905 = vperm.xlu1 %7011, %v858_v30   ;;  %v9877_v50 = vpop.permute.xlu1 %355  ;;  %v2531_v30 = vsel %vm2515_vm10, 1, %v13026_v18  ;;  %vm148_vm10 = vcmp.eq.s32.totalorder %v8756_v17, %v9202_v55 }
 0x243   :  { %13165 = vst [vmem:[#allocation40_spill] sm:$0xff] %v9877_v50  ;;  %v3279_v50 = vsel %vm2054_vm6, %v9294_v12, 1.0  ;;  %vm13172_vm6 = vcmp.gt.f32.partialorder %v9507_v60, 0.0 }
 0x244   :  { %2354 = vperm.xlu0 %7092, %v2307_v4   ;;  %v9892_v4 = vpop.permute.xlu0 %899 }
 0x245   :  { %13167 = vst [vmem:[#allocation65_spill] sm:$0xff] %v9892_v4 }
 0x246   :  { %7012 = vset.pattern.permute.xlu1 %v13089_v9 }
 0x247   :  { %1027 = vperm.xlu1 %7012, %v9271_v32   ;;  %v9886_v49 = vpop.permute.xlu1 %448 }
 0x248   :  { %13166 = vst [vmem:[#allocation39_spill] sm:$0xff] %v9886_v49  ;;  %2569 = vperm.xlu0 %7092, %v2528_v52   ;;  %v9902_v49 = vpop.permute.xlu0 %902 }
 0x249   :  { %13168 = vst [vmem:[#allocation53_spill] sm:$0xff] %v9902_v49 }
 0x24b   :  { %7013 = vset.pattern.permute.xlu1 %v13026_v18 }
 0x24c   :  { %2578 = vperm.xlu0 %7092, %v2531_v30   ;;  %1120 = vperm.xlu1 %7013, %v1079_v59   ;;  %v9894_v62 = vpop.permute.xlu1 %1236  ;;  %v1082_v30 = vsel %vm1066_vm11, 1, %v13026_v18  ;;  %v9911_v4 = vpop.permute.xlu0 %1123  ;;  %vm468_vm11 = vcmp.eq.s32.totalorder %v9243_v29, 1  ;;  %v13188_v29 = vld [vmem:[#allocation38_spill] sm:$0xff] }
 0x250   :  { %2793 = vperm.xlu0 %7092, %v2752_v6   ;;  %7014 = vset.pattern.permute.xlu1 %v13089_v9  ;;  %v9898_v52 = vpop.permute.xlu1 %1239  ;;  %v2976_v6 = vsel %vm2960_vm4, 1, %v13026_v18  ;;  %v9922_v25 = vpop.permute.xlu0 %1126 }
 0x251   :  { %1030 = vperm.xlu1 %7014, %v9848_v40   ;;  %13170 = vst [vmem:[#allocation51_spill] sm:$0xff] %v9922_v25  ;;  %v3283_v25 = vsel %vm13172_vm6, %v9507_v60, 1.0  ;;  %v3287_v60 = vsel %vm2062_vm13, %v9758_v20, 1.0  ;;  %v3291_v20 = vsel %vm2066_vm7, %v9842_v42, 1.0  ;;  %v13177_v42 = vld [vmem:[#allocation14_spill] sm:$0xff]  ;;  %vm595_vm6 = vcmp.eq.s32.totalorder %v8756_v17, %v13184_v5 }
 0x252   :  { %vm371_vm7 = vcmp.eq.s32.totalorder %v8756_v17, %v13177_v42 }
 0x254   :  { %2802 = vperm.xlu0 %7092, %v2755_v2   ;;  %v2979_v2 = vsel %vm2963_vm3, 1, %v13026_v18  ;;  %v9934_v12 = vpop.permute.xlu0 %1347  ;;  %vm10004_vm3 = vmand %vm371_vm7, %vm467_vm2  ;;  %vm916_vm7 = vcmp.eq.s32.totalorder %v9546_v8, 1  ;;  %vm820_vm2 = vcmp.eq.s32.totalorder %v8756_v17, %v9737_v0 }
 0x255   :  { %1033 = vperm.xlu1 %7014, %v9359_v13   ;;  %v9907_v59 = vpop.permute.xlu1 %1335 }
 0x258   :  { %3017 = vperm.xlu0 %7092, %v2976_v6   ;;  %v3281_v6 = vsel %vm13171_vm8, %v9393_v39, 1.0  ;;  %v3285_v39 = vsel %vm2060_vm14, %v9729_v63, 1.0  ;;  %v3289_v63 = vsel %vm2064_vm1, %v9821_v14, 1.0  ;;  %vm1511_vm14 = vcmp.gt.f32.partialorder %v9681_v38, 6.0  ;;  %v7879_v14 = vld [vmem:[%s12943_s19] sm:$0xff]  ;;  %v13178_v38 = vld [vmem:[#allocation4_spill] sm:$0xff] }
 0x259   :  { %7015 = vset.pattern.permute.xlu1 %v13026_v18  ;;  %v9914_v49 = vpop.permute.xlu1 %137  ;;  %vm244_vm1 = vcmp.eq.s32.totalorder %v9210_v44, 1  ;;  %v7880_v44 = vld [vmem:[%s12943_s19 + $0x10] sm:$0xff]  ;;  %vm13179_vm15 = vcmp.gt.f32.partialorder %v13178_v38, 0.0  ;;  %vm596_vm8 = vcmp.eq.s32.totalorder %v8756_v17, %v9352_v35 }
 0x25a   :  { %13169 = vst [vmem:[#allocation76_spill] sm:$0xff] %v9914_v49  ;;  %1129 = vperm.xlu1 %7015, %v1082_v30   ;;  %v1303_v30 = vsel %vm1287_vm0, 1, %v13026_v18  ;;  %vm9999_vm4 = vmand %vm148_vm10, %vm244_vm1  ;;  %vm692_vm0 = vcmp.eq.s32.totalorder %v9339_v34, 1 }
 0x25c   :  { %3026 = vperm.xlu0 %7092, %v2979_v2  }
 0x25d   :  { %v9917_v24 = vpop.permute.xlu1 %233 }
 0x25e   :  { %7017 = vset.pattern.permute.xlu1 %v13099_v1 }
 0x25f   :  { %1251 = vperm.xlu1 %7017, %v9271_v32  }
 0x260   :  { %3305 = vperm.xlu0 %7092, %v3279_v50   ;;  %v9946_v50 = vpop.permute.xlu0 %1350 }
 0x261   :  { %13174 = vst [vmem:[#allocation13_spill] sm:$0xff] %v9946_v50 }
 0x262   :  { %v9931_v2 = vpop.permute.xlu1 %361 }
 0x263   :  { %7018 = vset.pattern.permute.xlu1 %v13026_v18 }
 0x264   :  { %3315 = vperm.xlu0 %7092, %v3281_v6   ;;  %1344 = vperm.xlu1 %7018, %v1303_v30  }
 0x267   :  { %v9939_v49 = vpop.permute.xlu1 %454 }
 0x268   :  { %13173 = vst [vmem:[#allocation47_spill] sm:$0xff] %v9939_v49  ;;  %3325 = vperm.xlu0 %7092, %v3283_v25   ;;  %7019 = vset.pattern.permute.xlu1 %v13099_v1  ;;  %v1306_v1 = vsel %vm1290_vm9, 1, %v13026_v18  ;;  %v9956_v25 = vpop.permute.xlu0 %1571 }
 0x269   :  { %1254 = vperm.xlu1 %7019, %v9848_v40  }
 0x26c   :  { %3335 = vperm.xlu0 %7092, %v3285_v39   ;;  %v9948_v6 = vpop.permute.xlu1 %1242  ;;  %v9969_v50 = vpop.permute.xlu0 %1574 }
 0x26d   :  { %1257 = vperm.xlu1 %7019, %v9359_v13  }
 0x270   :  { %3345 = vperm.xlu0 %7092, %v3287_v60   ;;  %v9958_v30 = vpop.permute.xlu1 %1245  ;;  %v13175_v60 = vld [vmem:[#allocation3_spill] sm:$0xff] }
 0x271   :  { %7020 = vset.pattern.permute.xlu1 %v13026_v18  ;;  %vm13176_vm13 = vcmp.gt.f32.partialorder %v13175_v60, 0.0  ;;  %v13201_v60 = vld [vmem:[#allocation16_spill] sm:$0xff] }
 0x272   :  { %1353 = vperm.xlu1 %7020, %v1306_v1   ;;  %v1828_v1 = vsel %vm13176_vm13, %v7879_v14, 1.0  ;;  %v13185_v14 = vld [vmem:[#allocation68_spill] sm:$0xff]  ;;  %vm691_vm13 = vcmp.eq.s32.totalorder %v13188_v29, 1 }
 0x273   :  { %vm372_vm9 = vcmp.eq.s32.totalorder %v8756_v17, %v13185_v14  ;;  %v6219_v14 = vsel %vm9999_vm4, 1.0, %v13124_v26  ;;  %vm13202_vm4 = vcmp.gt.f32.partialorder %v13201_v60, 0.0 }
 0x274   :  { %3355 = vperm.xlu0 %7092, %v3289_v63   ;;  %v1527_v63 = vsel %vm1511_vm14, 1, %v13026_v18  ;;  %vm10017_vm14 = vmand %vm147_vm5, %vm243_vm12  ;;  %v1834_v29 = vsel %vm13202_vm4, %v7882_v15, 1.0 }
 0x275   :  { %v9964_v39 = vpop.permute.xlu1 %1341  ;;  %vm484_vm1 = vmand %vm372_vm9, %vm468_vm11  ;;  %vm1140_vm9 = vcmp.eq.s32.totalorder %v9616_v53, 1  ;;  %v6218_v35 = vsel %vm10017_vm14, 1.0, %v13124_v26  ;;  %vm1363_vm14 = vcmp.eq.s32.totalorder %v9773_v57, 1 }
 0x276   :  { %7023 = vset.pattern.permute.xlu1 %v13023_v3  ;;  %vm10039_vm12 = vmand %vm596_vm8, %vm692_vm0  ;;  %vm1044_vm0 = vcmp.eq.s32.totalorder %v8756_v17, %v9796_v56  ;;  %v6235_v38 = vsel %vm484_vm1, 1.0, %v13124_v26 }
 0x277   :  { %1475 = vperm.xlu1 %7023, %v9271_v32   ;;  %v9987_v32 = vpop.permute.xlu0 %1989  ;;  %vm10066_vm8 = vmand %vm820_vm2, %vm916_vm7  ;;  %vm1267_vm7 = vcmp.eq.s32.totalorder %v8756_v17, %v9894_v62 }
 0x278   :  { %3365 = vperm.xlu0 %7092, %v3291_v20   ;;  %v1830_v20 = vsel %vm13179_vm15, %v7880_v44, 1.0  ;;  %v13191_v44 = vld [vmem:[#allocation41_spill] sm:$0xff]  ;;  %vm915_vm15 = vcmp.eq.s32.totalorder %v9752_v46, 1  ;;  %v6234_v46 = vsel %vm10004_vm3, 1.0, %v13124_v26  ;;  %vm10107_vm2 = vmand %vm1044_vm0, %vm1140_vm9  ;;  %vm1587_vm3 = vcmp.eq.s32.totalorder %v9854_v58, 1 }
 0x279   :  { %vm819_vm5 = vcmp.eq.s32.totalorder %v8756_v17, %v13191_v44  ;;  %v531_v55 = vadd.f32 %v6234_v46, %v6218_v35  ;;  %v6267_v56 = vsel %vm10066_vm8, 1.0, %v13124_v26  ;;  %v6283_v57 = vsel %vm10107_vm2, 1.0, %v13124_v26 }
 0x27a   :  { %v9980_v49 = vpop.permute.xlu1 %579  ;;  %vm10081_vm1 = vmand %vm819_vm5, %vm915_vm15  ;;  %vm1364_vm5 = vcmp.eq.s32.totalorder %v9907_v59, 1 }
 0x27b   :  { %7024 = vset.pattern.permute.xlu1 %v13026_v18  ;;  %v10044_v0 = vpop.permute.xlu0 %2085  ;;  %v6266_v44 = vsel %vm10081_vm1, 1.0, %v13124_v26  ;;  %vm10134_vm15 = vmand %vm1267_vm7, %vm1363_vm14 }
 0x27c   :  { %1846 = vperm.xlu0 %7092, %v1828_v1   ;;  %1568 = vperm.xlu1 %7024, %v1527_v63   ;;  %v7881_v1 = vld [vmem:[%s12943_s19 + $0x20] sm:$0xff]  ;;  %v6298_v59 = vsel %vm10134_vm15, 1.0, %v13124_v26 }
 0x27d   :  { %v13189_v63 = vld [vmem:[#allocation6_spill] sm:$0xff] }
 0x27e   :  { %vm13190_vm10 = vcmp.gt.f32.partialorder %v13189_v63, 0.0 }
 0x27f   :  { %v10011_v27 = vpop.permute.xlu1 %672  ;;  %v1832_v42 = vsel %vm13190_vm10, %v7881_v1, 1.0  ;;  %vm10054_vm10 = vmand %vm595_vm6, %vm691_vm13  ;;  %vm1139_vm6 = vcmp.eq.s32.totalorder %v9802_v47, 1  ;;  %vm1514_vm13 = vcmp.gt.f32.partialorder %v9863_v22, 6.0  ;;  %v6251_v1 = vsel %vm10039_vm12, 1.0, %v13124_v26  ;;  %v13210_v47 = vld [vmem:[#allocation81_spill] sm:$0xff] }
 0x280   :  { %1856 = vperm.xlu0 %7092, %v1830_v20   ;;  %7025 = vset.pattern.permute.xlu1 %v13023_v3  ;;  %v6250_v63 = vsel %vm10054_vm10, 1.0, %v13124_v26  ;;  %v1530_v53 = vsel %vm1514_vm13, 1, %v13026_v18  ;;  %v10127_v3 = vpop.permute.xlu0 %2312  ;;  %vm470_vm2 = vcmp.eq.s32.totalorder %v13210_v47, 1 }
 0x281   :  { %1478 = vperm.xlu1 %7025, %v9848_v40   ;;  %v13194_v40 = vld [vmem:[#allocation55_spill] sm:$0xff]  ;;  %v755_v34 = vadd.f32 %v6250_v63, %v531_v55 }
 0x282   :  { %vm1043_vm11 = vcmp.eq.s32.totalorder %v8756_v17, %v13194_v40 }
 0x283   :  { %vm1155_vm12 = vmand %vm1043_vm11, %vm1139_vm6  ;;  %vm1268_vm11 = vcmp.eq.s32.totalorder %v8756_v17, %v9898_v52  ;;  %v979_v52 = vadd.f32 %v6266_v44, %v755_v34  ;;  %v13209_v44 = vld [vmem:[#allocation74_spill] sm:$0xff] }
 0x284   :  { %1866 = vperm.xlu0 %7092, %v1832_v42   ;;  %v1461_v5 = vpop.permute.xlu1 %1460  ;;  %v532_v42 = vadd.f32 %v6235_v38, %v6219_v14  ;;  %vm1380_vm10 = vmand %vm1268_vm11, %vm1364_vm5  ;;  %v6282_v62 = vsel %vm1155_vm12, 1.0, %v13124_v26  ;;  %v10153_v38 = vld [vmem:[%s12821_s1 + $0x8] sm:$0xff]  ;;  %vm246_vm4 = vcmp.eq.s32.totalorder %v13209_v44, 1  ;;  %v13213_v34 = vld [vmem:[#allocation58_spill] sm:$0xff] }
 0x285   :  { %1481 = vperm.xlu1 %7025, %v9359_v13   ;;  %vm1491_vm9 = vcmp.eq.s32.totalorder %v8756_v17, %v1461_v5  ;;  %v6299_v20 = vsel %vm1380_vm10, 1.0, %v13124_v26  ;;  %v10162_v5 = vld [vmem:[%s12823_s3 + $0x8] sm:$0xff]  ;;  %v1203_v14 = vadd.f32 %v6282_v62, %v979_v52  ;;  %vm150_vm12 = vcmp.eq.s32.totalorder %v8756_v17, %v13213_v34  ;;  %v13216_v62 = vld [vmem:[#allocation80_spill] sm:$0xff] }
 0x286   :  { %v756_v40 = vadd.f32 %v6251_v1, %v532_v42  ;;  %vm1603_vm0 = vmand %vm1491_vm9, %vm1587_vm3  ;;  %vm12932_vm8 = vcmp.gt.f32.partialorder %v10162_v5, 0.0  ;;  %v13207_v42 = vld [vmem:[#allocation50_spill] sm:$0xff]  ;;  %vm469_vm11 = vcmp.eq.s32.totalorder %v13216_v62, 1  ;;  %v13217_v52 = vmov 0 }
 0x287   :  { %v6314_v15 = vsel %vm1603_vm0, 1.0, %v13124_v26  ;;  %v1427_v60 = vadd.f32 %v6298_v59, %v1203_v14  ;;  %v2069_v46 = vsel %vm12932_vm8, 1, %v13026_v18  ;;  %vm149_vm1 = vcmp.eq.s32.totalorder %v8756_v17, %v13207_v42  ;;  %vm10194_vm10 = vmand %vm150_vm12, %vm246_vm4  ;;  %v13219_v59 = vld [vmem:[#allocation69_spill] sm:$0xff] }
 0x288   :  { %1876 = vperm.xlu0 %7092, %v1834_v29   ;;  %v1464_v22 = vpop.permute.xlu1 %1463  ;;  %v980_v35 = vadd.f32 %v6267_v56, %v756_v40  ;;  %v13212_v40 = vld [vmem:[#allocation15_spill] sm:$0xff]  ;;  %v13218_v52 = vsel %vm10194_vm10, 4294967295, %v13217_v52  ;;  %vm694_vm0 = vcmp.eq.s32.totalorder %v13219_v59, 1  ;;  %vm917_vm4 = vcmp.eq.s32.totalorder %v9559_v31, 1 }
 0x289   :  { %7026 = vset.pattern.permute.xlu1 %v13026_v18  ;;  %vm1492_vm6 = vcmp.eq.s32.totalorder %v8756_v17, %v1464_v22  ;;  %v1651_v63 = vadd.f32 %v6314_v15, %v1427_v60  ;;  %v13211_v22 = vld [vmem:[#allocation72_spill] sm:$0xff]  ;;  %vm373_vm3 = vcmp.eq.s32.totalorder %v8756_v17, %v13212_v40  ;;  %vm821_vm12 = vcmp.eq.s32.totalorder %v8756_v17, %v9768_v51 }
 0x28a   :  { %1577 = vperm.xlu1 %7026, %v1530_v53   ;;  %v1204_v58 = vadd.f32 %v6283_v57, %v980_v35  ;;  %v13208_v53 = vld [vmem:[#allocation73_spill] sm:$0xff]  ;;  %vm374_vm5 = vcmp.eq.s32.totalorder %v8756_v17, %v13211_v22  ;;  %v7884_v35 = vld [vmem:[%s12823_s3] sm:$0xff]  ;;  %vm918_vm10 = vcmp.eq.s32.totalorder %v9788_v10, 1 }
 0x28b   :  { %vm245_vm7 = vcmp.eq.s32.totalorder %v13208_v53, 1  ;;  %vm2276_vm9 = vcmp.gt.f32.partialorder %v7884_v35, 1.0  ;;  %v10295_v53 = vld [vmem:[%s12823_s3 + $0x18] sm:$0xff] }
 0x28c   :  { %v1428_v29 = vadd.f32 %v6299_v20, %v1204_v58  ;;  %vm10185_vm15 = vmand %vm149_vm1, %vm245_vm7  ;;  %v13220_v58 = vld [vmem:[#allocation30_spill] sm:$0xff]  ;;  %vm693_vm1 = vcmp.eq.s32.totalorder %v9605_v45, 1 }
 0x28d   :  { %v1560_v8 = vpop.permute.xlu1 %1559  ;;  %vm485_vm7 = vmand %vm373_vm3, %vm469_vm11  ;;  %v6220_v45 = vsel %vm10185_vm15, 1.0, %v13124_v26  ;;  %vm1045_vm3 = vcmp.eq.s32.totalorder %v8756_v17, %v9810_v7  ;;  %vm1142_vm15 = vcmp.eq.s32.totalorder %v9834_v16, 1 }
 0x28e   :  { %vm1588_vm13 = vcmp.eq.s32.totalorder %v1560_v8, 1  ;;  %1992 = vperm.xlu1 %7026, %v10153_v38   ;;  %v6236_v51 = vsel %vm485_vm7, 1.0, %v13124_v26  ;;  %vm10233_vm11 = vmand %vm821_vm12, %vm917_vm4  ;;  %vm1366_vm7 = vcmp.eq.s32.totalorder %v9964_v39, 1 }
 0x28f   :  { %vm1604_vm14 = vmand %vm1492_vm6, %vm1588_vm13  ;;  %vm598_vm6 = vcmp.eq.s32.totalorder %v8756_v17, %v9561_v54  ;;  %vm597_vm13 = vcmp.eq.s32.totalorder %v8756_v17, %v13220_v58  ;;  %v2292_v54 = vsel %vm2276_vm9, 1, %v13026_v18  ;;  %vm822_vm9 = vcmp.eq.s32.totalorder %v8756_v17, %v9780_v61 }
 0x290   :  { %v6315_v1 = vsel %vm1604_vm14, 1.0, %v13124_v26  ;;  %vm486_vm14 = vmand %vm374_vm5, %vm470_vm2  ;;  %vm1141_vm2 = vcmp.eq.s32.totalorder %v9674_v28, 1  ;;  %v6268_v28 = vsel %vm10233_vm11, 1.0, %v13124_v26  ;;  %vm12933_vm11 = vcmp.gt.f32.partialorder %v10295_v53, 0.0 }
 0x291   :  { %v1652_v13 = vadd.f32 %v6315_v1, %v1428_v29  ;;  %vm10219_vm8 = vmand %vm598_vm6, %vm694_vm0  ;;  %v6237_v31 = vsel %vm486_vm14, 1.0, %v13124_v26  ;;  %vm13225_vm0 = vnez %v13218_v52  ;;  %vm1365_vm6 = vcmp.eq.s32.totalorder %v9813_v43, 1 }
 0x292   :  { %2088 = vperm.xlu1 %7026, %v2069_v46   ;;  %v10172_v55 = vpop.permute.xlu1 %585  ;;  %vm709_vm5 = vmand %vm597_vm13, %vm693_vm1  ;;  %v6221_v60 = vsel %vm13225_vm0, 1.0, %v13124_v26  ;;  %vm1269_vm14 = vcmp.eq.s32.totalorder %v8756_v17, %v9948_v6  ;;  %v6253_v61 = vsel %vm10219_vm8, 1.0, %v13124_v26  ;;  %v533_v43 = vadd.f32 %v6236_v51, %v6220_v45  ;;  %v10317_v45 = vld [vmem:[%s12823_s3 + $0x10] sm:$0xff] }
 0x293   :  { %v1663_v56 = vpack.c.bf16 %v1652_v13, %v1651_v63  ;;  %vm934_vm13 = vmand %vm822_vm9, %vm918_vm10  ;;  %v6252_v29 = vsel %vm709_vm5, 1.0, %v13124_v26  ;;  %vm1046_vm10 = vcmp.eq.s32.totalorder %v8756_v17, %v9823_v23  ;;  %v534_v10 = vadd.f32 %v6237_v31, %v6221_v60  ;;  %v7885_v23 = vld [vmem:[%s12821_s1 + $0x10] sm:$0xff]  ;;  %v10286_v13 = vld [vmem:[%s12821_s1 + $0x18] sm:$0xff] }
 0x294   :  { %vm10257_vm1 = vmand %vm1045_vm3, %vm1141_vm2  ;;  %vm1589_vm8 = vcmp.eq.s32.totalorder %v9881_v36, 1  ;;  %v6269_v7 = vsel %vm934_vm13, 1.0, %v13124_v26  ;;  %vm1270_vm2 = vcmp.eq.s32.totalorder %v8756_v17, %v9958_v30  ;;  %v757_v63 = vadd.f32 %v6252_v29, %v533_v43 }
 0x295   :  { %6821 = vmatprep.mubr.bf16.mxu1 %v1663_v56  ;;  %vm1158_vm4 = vmand %vm1046_vm10, %vm1142_vm15  ;;  %v758_v1 = vadd.f32 %v6253_v61, %v534_v10  ;;  %v6284_v30 = vsel %vm10257_vm1, 1.0, %v13124_v26  ;;  %v2071_v57 = vsel %vm12933_vm11, 1, %v13026_v18  ;;  %vm2278_vm13 = vcmp.gt.f32.partialorder %v10317_v45, 1.0 }
 0x296   :  { %7027 = vset.pattern.permute.xlu1 %v13096_v37  ;;  %vm10271_vm12 = vmand %vm1269_vm14, %vm1365_vm6  ;;  %v6285_v42 = vsel %vm1158_vm4, 1.0, %v13124_v26  ;;  %v981_v39 = vadd.f32 %v6268_v28, %v757_v63  ;;  %v2294_v51 = vsel %vm2278_vm13, 1, %v13026_v18  ;;  %vm2501_vm14 = vcmp.gt.f32.partialorder %v10162_v5, 2.0  ;;  %v7143_v63 = vld [vmem:[%s12824_s5 + $0x38] sm:$0xff]  }
 0x297   :  { %2216 = vperm.xlu1 %7027, %v10153_v38   ;;  %v10202_v20 = vpop.permute.xlu1 %678  ;;  %vm1382_vm3 = vmand %vm1270_vm2, %vm1366_vm7  ;;  %v982_v56 = vadd.f32 %v6269_v7, %v758_v1  ;;  %v6300_v44 = vsel %vm10271_vm12, 1.0, %v13124_v26  ;;  %v2517_v29 = vsel %vm2501_vm14, 1, %v13026_v18  ;;  %vm2502_vm1 = vcmp.gt.f32.partialorder %v10317_v45, 2.0  ;;  %6829 = vmatprep.subr.bf16.mxu1 %v7143_v63 }
 0x298   :  { %v6301_v47 = vsel %vm1382_vm3, 1.0, %v13124_v26  ;;  %v1205_v22 = vadd.f32 %v6284_v30, %v981_v39  ;;  %v2518_v43 = vsel %vm2502_vm1, 1, %v13026_v18  ;;  %vm2725_vm10 = vcmp.gt.f32.partialorder %v10162_v5, 3.0  ;;  %6830 = vmatpush3.bf16.msra.mxu1 %v7143_v63 }
 0x299   :  { %v1206_v40 = vadd.f32 %v6285_v42, %v982_v56  ;;  %vm2726_vm7 = vcmp.gt.f32.partialorder %v10317_v45, 3.0  ;;  %v7144_v42 = vld [vmem:[%s12824_s5 + $0x30] sm:$0xff]   ;;  %v7145_v56 = vld [vmem:[%s12824_s5 + $0x28] sm:$0xff]   ;;  %vm247_vm4 = vcmp.eq.s32.totalorder %v9735_v19, 1  ;;  %vm248_vm12 = vcmp.eq.s32.totalorder %v9867_v41, 1 }
 0x29a   :  { %v1429_v36 = vadd.f32 %v6300_v44, %v1205_v22  ;;  %v2742_v1 = vsel %vm2726_vm7, 1, %v13026_v18  ;;  %6831 = vmatprep.subr.bf16.mxu1 %v7144_v42  ;;  %vm472_vm2 = vcmp.eq.s32.totalorder %v9760_v33, 1  ;;  %v13230_v44 = vld [vmem:[#allocation40_spill] sm:$0xff]  ;;  %v13235_v19 = vld [vmem:[#allocation39_spill] sm:$0xff]  ;;  %v7146_v33 = vld [vmem:[%s12824_s5 + $0x20] sm:$0xff]   ;;  %vm600_vm14 = vcmp.eq.s32.totalorder %v8756_v17, %v9980_v49 }
 0x29b   :  { %7028 = vset.pattern.permute.xlu1 %v13026_v18  ;;  %v1430_v35 = vadd.f32 %v6301_v47, %v1206_v40  ;;  %v13231_v47 = vld [vmem:[#allocation17_spill] sm:$0xff]  ;;  %vm695_vm7 = vcmp.eq.s32.totalorder %v10011_v27, 1  ;;  %v13245_v49 = vld [vmem:[#allocation43_spill] sm:$0xff] }
 0x29c   :  { %2309 = vperm.xlu1 %7028, %v2292_v54   ;;  %v1467_v15 = vpop.permute.xlu1 %1466  ;;  %6832 = vmatpush3.bf16.msra.mxu1 %v7144_v42  ;;  %vm375_vm3 = vcmp.eq.s32.totalorder %v8756_v17, %v13231_v47  ;;  %v13236_v40 = vld [vmem:[#allocation37_spill] sm:$0xff]  ;;  %v13260_v47 = vld [vmem:[#allocation10_spill] sm:$0xff]  ;;  %v13261_v22 = vld [vmem:[#allocation11_spill] sm:$0xff] }
 0x29d   :  { %vm1493_vm5 = vcmp.eq.s32.totalorder %v8756_v17, %v1467_v15  ;;  %v7888_v15 = vld [vmem:[%s12821_s1] sm:$0xff]  ;;  %6833 = vmatprep.subr.bf16.mxu1 %v7145_v56  ;;  %v13272_v27 = vld [vmem:[#allocation47_spill] sm:$0xff] }
 0x29e   :  { %vm1605_vm9 = vmand %vm1493_vm5, %vm1589_vm8  ;;  %vm151_vm8 = vcmp.eq.s32.totalorder %v8756_v17, %v9720_v11  ;;  %vm376_vm5 = vcmp.eq.s32.totalorder %v8756_v17, %v13230_v44  ;;  %v13234_v11 = vld [vmem:[#allocation27_spill] sm:$0xff]  ;;  %v7148_v44 = vld [vmem:[%s12824_s5 + $0x10] sm:$0xff]  }
 0x29f   :  { %v6316_v62 = vsel %vm1605_vm9, 1.0, %v13124_v26  ;;  %vm10389_vm9 = vmand %vm151_vm8, %vm247_vm4  ;;  %vm2949_vm8 = vcmp.gt.f32.partialorder %v10162_v5, 4.0 }
 0x2a0   :  { %1995 = vperm.xlu1 %7028, %v7885_v23   ;;  %v1470_v16 = vpop.permute.xlu1 %1469  ;;  %v1653_v59 = vadd.f32 %v6316_v62, %v1429_v36  ;;  %v2741_v23 = vsel %vm2725_vm10, 1, %v13026_v18  ;;  %6834 = vmatpush3.bf16.msra.mxu1 %v7145_v56  ;;  %vm10410_vm10 = vmand %vm376_vm5, %vm472_vm2  ;;  %v13242_v36 = vld [vmem:[#allocation65_spill] sm:$0xff] }
 0x2a1   :  { %vm1494_vm15 = vcmp.eq.s32.totalorder %v8756_v17, %v1470_v16  ;;  %6835 = vmatprep.subr.bf16.mxu1 %v7146_v33  ;;  %vm920_vm4 = vcmp.eq.s32.totalorder %v13242_v36, 1 }
 0x2a4   :  { %1998 = vperm.xlu1 %7028, %v10286_v13   ;;  %6836 = vmatpush3.bf16.msra.mxu1 %v7146_v33 }
 0x2a5   :  { %v1566_v34 = vpop.permute.xlu1 %1565 }
 0x2a6   :  { %vm1590_vm0 = vcmp.eq.s32.totalorder %v1566_v34, 1 }
 0x2a7   :  { %vm1606_vm6 = vmand %vm1494_vm15, %vm1590_vm0  ;;  %vm152_vm15 = vcmp.eq.s32.totalorder %v8756_v17, %v13234_v11  ;;  %vm471_vm0 = vcmp.eq.s32.totalorder %v13235_v19, 1  ;;  %v13264_v19 = vld [vmem:[#allocation42_spill] sm:$0xff] }
 0x2a8   :  { %v6317_v52 = vsel %vm1606_vm6, 1.0, %v13124_v26  ;;  %2094 = vperm.xlu1 %7028, %v2071_v57   ;;  %vm696_vm6 = vcmp.eq.s32.totalorder %v13236_v40, 1  ;;  %vm10402_vm13 = vmand %vm152_vm15, %vm248_vm12  ;;  %v13239_v57 = vld [vmem:[#allocation31_spill] sm:$0xff] }
 0x2a9   :  { %v1654_v58 = vadd.f32 %v6317_v52, %v1430_v35  ;;  %vm599_vm1 = vcmp.eq.s32.totalorder %v8756_v17, %v13239_v57  ;;  %vm10420_vm12 = vmand %vm375_vm3, %vm471_vm0  ;;  %v7147_v52 = vld [vmem:[%s12824_s5 + $0x18] sm:$0xff]   ;;  %vm1144_vm0 = vcmp.eq.s32.totalorder %v9911_v4, 1  ;;  %v6223_v63 = vsel %vm10402_vm13, 1.0, %v13124_v26  ;;  %v7149_v35 = vld [vmem:[%s12824_s5 + $0x8] sm:$0xff]  }
 0x2aa   :  { %v10311_v54 = vpop.permute.xlu1 %803  ;;  %vm10429_vm15 = vmand %vm600_vm14, %vm696_vm6  ;;  %6837 = vmatprep.subr.bf16.mxu1 %v7147_v52  ;;  %vm153_vm13 = vcmp.eq.s32.totalorder %v8756_v17, %v13260_v47 }
 0x2ab   :  { %v1664_v14 = vpack.c.bf16 %v1654_v58, %v1653_v59  ;;  %vm824_vm2 = vcmp.eq.s32.totalorder %v8756_v17, %v10311_v54  ;;  %v13248_v59 = vld [vmem:[#allocation57_spill] sm:$0xff]  ;;  %vm10443_vm5 = vmand %vm599_vm1, %vm695_vm7  ;;  %vm1368_vm7 = vcmp.eq.s32.totalorder %v9934_v12, 1  ;;  %6838 = vmatpush3.bf16.msra.mxu1 %v7147_v52  ;;  %v10715_v12 = vld [vmem:[%s12821_s1 + $0x20] sm:$0xff] }
 0x2ac   :  { %7029 = vset.pattern.permute.xlu1 %v13096_v37  ;;  %vm1047_vm3 = vcmp.eq.s32.totalorder %v8756_v17, %v13248_v59  ;;  %vm10468_vm14 = vmand %vm824_vm2, %vm920_vm4  ;;  %v6254_v42 = vsel %vm10443_vm5, 1.0, %v13124_v26  ;;  %vm249_vm5 = vcmp.eq.s32.totalorder %v13261_v22, 1  ;;  %6839 = vmatprep.subr.bf16.mxu1 %v7148_v44 }
 0x2ad   :  { %2222 = vperm.xlu1 %7029, %v10286_v13   ;;  %6822 = vmatmul.mubr.bf16.gmra.mxu1 %v1664_v14  ;;  %v2965_v14 = vsel %vm2949_vm8, 1, %v13026_v18  ;;  %vm13255_vm8 = vcmp.eq.s32.totalorder %v8756_v17, %v13245_v49  ;;  %v6271_v33 = vsel %vm10468_vm14, 1.0, %v13124_v26  ;;  %v13271_v49 = vld [vmem:[#allocation76_spill] sm:$0xff] }
 0x2af   :  { %v10321_v31 = vpop.permute.xlu1 %896  ;;  %6840 = vmatpush3.bf16.msra.mxu1 %v7148_v44 }
 0x2b0   :  { %vm919_vm11 = vcmp.eq.s32.totalorder %v10321_v31, 1  ;;  %v6255_v31 = vsel %vm10429_vm15, 1.0, %v13124_v26  ;;  %6841 = vmatprep.subr.bf16.mxu1 %v7149_v35 }
 0x2b1   :  { %7030 = vset.pattern.permute.xlu1 %v13026_v18  ;;  %vm10483_vm4 = vmand %vm13255_vm8, %vm919_vm11 }
 0x2b2   :  { %2315 = vperm.xlu1 %7030, %v2294_v51   ;;  %v6222_v51 = vsel %vm10389_vm9, 1.0, %v13124_v26  ;;  %v6270_v40 = vsel %vm10483_vm4, 1.0, %v13124_v26  ;;  %vm10557_vm8 = vmand %vm153_vm13, %vm249_vm5  ;;  %vm378_vm4 = vcmp.eq.s32.totalorder %v8756_v17, %v9931_v2 }
 0x2b3   :  { %6842 = vmatpush3.bf16.msra.mxu1 %v7149_v35  ;;  %v6224_v44 = vsel %vm10557_vm8, 1.0, %v13124_v26 }
 0x2b4   :  { %v10325_v8 = vpop.permute.xlu1 %806 }
 0x2b6   :  { %7031 = vset.pattern.permute.xlu1 %v13019_v48 }
 0x2b7   :  { %2437 = vperm.xlu1 %7031, %v7888_v15  }
 0x2b8   :  { %v10331_v60 = vpop.permute.xlu1 %809 }
 0x2bb   :  { %2440 = vperm.xlu1 %7031, %v10153_v38  }
 0x2bd   :  { %v10335_v61 = vpop.permute.xlu1 %905 }
 0x2bf   :  { %7032 = vset.pattern.permute.xlu1 %v13026_v18 }
 0x2c0   :  { %2536 = vperm.xlu1 %7032, %v2517_v29   ;;  %v6238_v29 = vsel %vm10420_vm12, 1.0, %v13124_v26 }
 0x2c1   :  { %v535_v11 = vadd.f32 %v6238_v29, %v6222_v51  ;;  %v13276_v51 = vld [vmem:[#allocation67_spill] sm:$0xff] }
 0x2c2   :  { %v10339_v46 = vpop.permute.xlu1 %1027  ;;  %vm698_vm5 = vcmp.eq.s32.totalorder %v13276_v51, 1 }
 0x2c3   :  { %vm1048_vm6 = vcmp.eq.s32.totalorder %v8756_v17, %v10339_v46  ;;  %v759_v62 = vadd.f32 %v6254_v42, %v535_v11  ;;  %v13284_v42 = vld [vmem:[#allocation53_spill] sm:$0xff] }
 0x2c4   :  { %7033 = vset.pattern.permute.xlu1 %v13019_v48  ;;  %vm10504_vm11 = vmand %vm1048_vm6, %vm1144_vm0  ;;  %vm474_vm0 = vcmp.eq.s32.totalorder %v13264_v19, 1  ;;  %vm1592_vm6 = vcmp.eq.s32.totalorder %v9956_v25, 1 }
 0x2c5   :  { %2446 = vperm.xlu1 %7033, %v10286_v13   ;;  %v983_v59 = vadd.f32 %v6270_v40, %v759_v62 }
 0x2c7   :  { %v10344_v10 = vpop.permute.xlu1 %1120 }
 0x2c8   :  { %vm1143_vm1 = vcmp.eq.s32.totalorder %v10344_v10, 1  ;;  %v13292_v10 = vld [vmem:[#allocation13_spill] sm:$0xff] }
 0x2c9   :  { %7034 = vset.pattern.permute.xlu1 %v13026_v18  ;;  %vm10520_vm15 = vmand %vm1047_vm3, %vm1143_vm1  ;;  %vm250_vm1 = vcmp.eq.s32.totalorder %v9917_v24, 1 }
 0x2ca   :  { %2539 = vperm.xlu1 %7034, %v2518_v43   ;;  %v6286_v36 = vsel %vm10520_vm15, 1.0, %v13124_v26 }
 0x2cb   :  { %v1207_v43 = vadd.f32 %v6286_v36, %v983_v59 }
 0x2cc   :  { %v10348_v28 = vpop.permute.xlu1 %1030 }
 0x2ce   :  { %7035 = vset.pattern.permute.xlu1 %v13082_v21 }
 0x2cf   :  { %2661 = vperm.xlu1 %7035, %v7888_v15  }
 0x2d0   :  { %v10351_v7 = vpop.permute.xlu1 %1033 }
 0x2d3   :  { %2664 = vperm.xlu1 %7035, %v10153_v38  }
 0x2d5   :  { %v10355_v6 = vpop.permute.xlu1 %1129 }
 0x2d7   :  { %7036 = vset.pattern.permute.xlu1 %v13026_v18 }
 0x2d8   :  { %2760 = vperm.xlu1 %7036, %v2741_v23   ;;  %v13253_v23 = vld [vmem:[#allocation8_spill] sm:$0xff] }
 0x2d9   :  { %vm1271_vm9 = vcmp.eq.s32.totalorder %v8756_v17, %v13253_v23 }
 0x2da   :  { %v10359_v16 = vpop.permute.xlu1 %1251 }
 0x2db   :  { %vm1272_vm12 = vcmp.eq.s32.totalorder %v8756_v17, %v10359_v16 }
 0x2dc   :  { %7037 = vset.pattern.permute.xlu1 %v13082_v21  ;;  %vm10537_vm3 = vmand %vm1272_vm12, %vm1368_vm7  ;;  %vm154_vm12 = vcmp.eq.s32.totalorder %v8756_v17, %v13271_v49 }
 0x2dd   :  { %2670 = vperm.xlu1 %7037, %v10286_v13   ;;  %vm10589_vm15 = vmand %vm154_vm12, %vm250_vm1  ;;  %v6303_v25 = vsel %vm10537_vm3, 1.0, %v13124_v26  ;;  %vm602_vm1 = vcmp.eq.s32.totalorder %v8756_v17, %v10172_v55 }
 0x2de   :  { %vm10646_vm12 = vmand %vm602_vm1, %vm698_vm5  ;;  %vm826_vm1 = vcmp.eq.s32.totalorder %v8756_v17, %v10331_v60 }
 0x2df   :  { %v10368_v30 = vpop.permute.xlu1 %1344 }
 0x2e0   :  { %vm1367_vm2 = vcmp.eq.s32.totalorder %v10368_v30, 1  ;;  %v6287_v30 = vsel %vm10504_vm11, 1.0, %v13124_v26 }
 0x2e1   :  { %7038 = vset.pattern.permute.xlu1 %v13026_v18  ;;  %vm10547_vm14 = vmand %vm1271_vm9, %vm1367_vm2  ;;  %vm2950_vm9 = vcmp.gt.f32.partialorder %v10317_v45, 4.0  ;;  %vm473_vm2 = vcmp.eq.s32.totalorder %v13272_v27, 1  ;;  %v7150_v45 = vld [vmem:[%s12824_s5] sm:$0xff]  }
 0x2e2   :  { %2763 = vperm.xlu1 %7038, %v2742_v1   ;;  %v13254_v1 = vld [vmem:[#allocation18_spill] sm:$0xff]  ;;  %v6302_v29 = vsel %vm10547_vm14, 1.0, %v13124_v26  ;;  %v2966_v54 = vsel %vm2950_vm9, 1, %v13026_v18  ;;  %vm697_vm14 = vcmp.eq.s32.totalorder %v10202_v20, 1  ;;  %6843 = vmatprep.subr.bf16.mxu1 %v7150_v45 }
 0x2e3   :  { %v1431_v56 = vadd.f32 %v6302_v29, %v1207_v43  ;;  %6844 = vmatpush3.bf16.msra.mxu1 %v7150_v45 }
 0x2e4   :  { %v10374_v39 = vpop.permute.xlu1 %1254 }
 0x2e6   :  { %7039 = vset.pattern.permute.xlu1 %v13089_v9 }
 0x2e7   :  { %2885 = vperm.xlu1 %7039, %v7888_v15   ;;  %v6239_v15 = vsel %vm10410_vm10, 1.0, %v13124_v26  ;;  %vm377_vm10 = vcmp.eq.s32.totalorder %v8756_v17, %v13254_v1 }
 0x2e8   :  { %v10396_v41 = vpop.permute.xlu1 %1257  ;;  %v536_v4 = vadd.f32 %v6239_v15, %v6223_v63  ;;  %v13281_v63 = vld [vmem:[#allocation32_spill] sm:$0xff] }
 0x2e9   :  { %vm601_vm3 = vcmp.eq.s32.totalorder %v8756_v17, %v13281_v63  ;;  %v7891_v63 = vld [vmem:[%s12823_s3 + $0x20] sm:$0xff] }
 0x2ea   :  { %v760_v57 = vadd.f32 %v6255_v31, %v536_v4  ;;  %v13287_v4 = vld [vmem:[#allocation51_spill] sm:$0xff]  ;;  %vm10658_vm8 = vmand %vm601_vm3, %vm697_vm14  ;;  %vm1146_vm3 = vcmp.eq.s32.totalorder %v10355_v6, 1  ;;  %vm1273_vm14 = vcmp.eq.s32.totalorder %v8756_v17, %v10374_v39 }
 0x2eb   :  { %2888 = vperm.xlu1 %7039, %v10153_v38   ;;  %v6256_v62 = vsel %vm10658_vm8, 1.0, %v13124_v26 }
 0x2ec   :  { %v984_v52 = vadd.f32 %v6271_v33, %v760_v57  ;;  %v6257_v57 = vsel %vm10646_vm12, 1.0, %v13124_v26 }
 0x2ed   :  { %v10449_v58 = vpop.permute.xlu1 %1353 }
 0x2ef   :  { %7040 = vset.pattern.permute.xlu1 %v13026_v18 }
 0x2f0   :  { %2984 = vperm.xlu1 %7040, %v2965_v14   ;;  %v13275_v14 = vld [vmem:[#allocation9_spill] sm:$0xff] }
 0x2f1   :  { %vm1495_vm13 = vcmp.eq.s32.totalorder %v8756_v17, %v13275_v14 }
 0x2f2   :  { %v1476_v34 = vpop.permute.xlu1 %1475 }
 0x2f3   :  { %vm1496_vm7 = vcmp.eq.s32.totalorder %v8756_v17, %v1476_v34  ;;  %v6225_v34 = vsel %vm10589_vm15, 1.0, %v13124_v26 }
 0x2f4   :  { %7041 = vset.pattern.permute.xlu1 %v13089_v9  ;;  %vm10579_vm11 = vmand %vm1496_vm7, %vm1592_vm6 }
 0x2f5   :  { %2894 = vperm.xlu1 %7041, %v10286_v13   ;;  %vm10604_vm6 = vmand %vm378_vm4, %vm474_vm0  ;;  %v1208_v13 = vadd.f32 %v6287_v30, %v984_v52  ;;  %v6319_v31 = vsel %vm10579_vm11, 1.0, %v13124_v26  ;;  %vm921_vm4 = vcmp.eq.s32.totalorder %v13284_v42, 1  ;;  %vm1145_vm11 = vcmp.eq.s32.totalorder %v13287_v4, 1  ;;  %v10729_v30 = vld [vmem:[%s12823_s3 + $0x28] sm:$0xff] }
 0x2f6   :  { %vm10620_vm0 = vmand %vm377_vm10, %vm473_vm2  ;;  %vm825_vm10 = vcmp.eq.s32.totalorder %v8756_v17, %v10325_v8  ;;  %vm922_vm2 = vcmp.eq.s32.totalorder %v10335_v61, 1  ;;  %v6241_v19 = vsel %vm10604_vm6, 1.0, %v13124_v26  ;;  %vm1369_vm6 = vcmp.eq.s32.totalorder %v13292_v10, 1 }
 0x2f7   :  { %v1569_v23 = vpop.permute.xlu1 %1568  ;;  %v1432_v1 = vadd.f32 %v6303_v25, %v1208_v13  ;;  %v6240_v20 = vsel %vm10620_vm0, 1.0, %v13124_v26  ;;  %vm10675_vm5 = vmand %vm825_vm10, %vm921_vm4  ;;  %vm1370_vm4 = vcmp.eq.s32.totalorder %v10449_v58, 1  ;;  %vm1593_vm10 = vcmp.eq.s32.totalorder %v9969_v50, 1 }
 0x2f8   :  { %vm1591_vm7 = vcmp.eq.s32.totalorder %v1569_v23, 1  ;;  %vm10688_vm0 = vmand %vm826_vm1, %vm922_vm2  ;;  %v538_v16 = vadd.f32 %v6241_v19, %v6225_v34  ;;  %vm12935_vm12 = vcmp.gt.f32.partialorder %v10729_v30, 0.0  ;;  %v6272_v36 = vsel %vm10675_vm5, 1.0, %v13124_v26 }
 0x2f9   :  { %vm1607_vm9 = vmand %vm1495_vm13, %vm1591_vm7  ;;  %7042 = vset.pattern.permute.xlu1 %v13026_v18  ;;  %vm1049_vm13 = vcmp.eq.s32.totalorder %v8756_v17, %v10348_v28  ;;  %v1656_v55 = vadd.f32 %v6319_v31, %v1432_v1  ;;  %vm1050_vm7 = vcmp.eq.s32.totalorder %v8756_v17, %v10351_v7  ;;  %v537_v28 = vadd.f32 %v6240_v20, %v6224_v44  ;;  %v10724_v7 = vld [vmem:[%s12821_s1 + $0x28] sm:$0xff]  ;;  %v7892_v1 = vld [vmem:[%s12821_s1 + $0x30] sm:$0xff] }
 0x2fa   :  { %v6318_v22 = vsel %vm1607_vm9, 1.0, %v13124_v26  ;;  %2987 = vperm.xlu1 %7042, %v2966_v54   ;;  %vm10705_vm15 = vmand %vm1049_vm13, %vm1145_vm11  ;;  %v6273_v6 = vsel %vm10688_vm0, 1.0, %v13124_v26  ;;  %vm1274_vm11 = vcmp.eq.s32.totalorder %v8756_v17, %v10396_v41  ;;  %v762_v49 = vadd.f32 %v6257_v57, %v538_v16  ;;  %v10787_v44 = vld [vmem:[%s12823_s3 + $0x38] sm:$0xff] }
 0x2fb   :  { %v1655_v46 = vadd.f32 %v6318_v22, %v1431_v56  ;;  %vm1162_vm9 = vmand %vm1050_vm7, %vm1146_vm3  ;;  %v761_v27 = vadd.f32 %v6256_v62, %v537_v28  ;;  %v6288_v52 = vsel %vm10705_vm15, 1.0, %v13124_v26  ;;  %v2073_v41 = vsel %vm12935_vm12, 1, %v13026_v18  ;;  %v10782_v56 = vld [vmem:[%s12821_s1 + $0x38] sm:$0xff]  ;;  %v10831_v62 = vpop.permute.xlu0 %2091 }
 0x2fc   :  { %v1479_v40 = vpop.permute.xlu1 %1478  ;;  %vm1385_vm2 = vmand %vm1273_vm14, %vm1369_vm6  ;;  %v6289_v59 = vsel %vm1162_vm9, 1.0, %v13124_v26  ;;  %v986_v38 = vadd.f32 %v6273_v6, %v762_v49  ;;  %vm2280_vm0 = vcmp.gt.f32.partialorder %v7891_v63, 1.0  ;;  %vm12934_vm14 = vcmp.gt.f32.partialorder %v10787_v44, 0.0 }
 0x2fd   :  { %v1665_v60 = vpack.c.bf16 %v1656_v55, %v1655_v46  ;;  %vm1497_vm8 = vcmp.eq.s32.totalorder %v8756_v17, %v1479_v40  ;;  %vm1386_vm13 = vmand %vm1274_vm11, %vm1370_vm4  ;;  %v985_v39 = vadd.f32 %v6272_v36, %v761_v27  ;;  %v6304_v58 = vsel %vm1385_vm2, 1.0, %v13124_v26  ;;  %v10804_v55 = vld [vmem:[%s12823_s3 + $0x30] sm:$0xff] }
 0x2fe   :  { %2001 = vperm.xlu1 %7042, %v10715_v12   ;;  %vm1609_vm5 = vmand %vm1497_vm8, %vm1593_vm10  ;;  %v6305_v14 = vsel %vm1386_vm13, 1.0, %v13124_v26  ;;  %v1210_v15 = vadd.f32 %v6289_v59, %v986_v38  ;;  %v2296_v45 = vsel %vm2280_vm0, 1, %v13026_v18  ;;  %v2075_v22 = vsel %vm12934_vm14, 1, %v13026_v18 }
 0x2ff   :  { %6825 = vmatprep.mubr.bf16.mxu1 %v1665_v60  ;;  %v1209_v51 = vadd.f32 %v6288_v52, %v985_v39  ;;  %v6320_v29 = vsel %vm1609_vm5, 1.0, %v13124_v26  ;;  %vm2282_vm15 = vcmp.gt.f32.partialorder %v10804_v55, 1.0  ;;  %vm2505_vm7 = vcmp.gt.f32.partialorder %v10729_v30, 2.0  ;;  %v10839_v16 = vpop.permute.xlu0 %2318 }
 0x300   :  { %v1482_v35 = vpop.permute.xlu1 %1481  ;;  %v1434_v50 = vadd.f32 %v6305_v14, %v1210_v15  ;;  %v2298_v19 = vsel %vm2282_vm15, 1, %v13026_v18  ;;  %v2521_v40 = vsel %vm2505_vm7, 1, %v13026_v18  ;;  %vm2506_vm4 = vcmp.gt.f32.partialorder %v10804_v55, 2.0  ;;  %v13330_v15 = vld [vmem:[#allocation59_spill] sm:$0xff] }
 0x301   :  { %vm1498_vm1 = vcmp.eq.s32.totalorder %v8756_v17, %v1482_v35  ;;  %v1433_v24 = vadd.f32 %v6304_v58, %v1209_v51  ;;  %v2522_v60 = vsel %vm2506_vm4, 1, %v13026_v18  ;;  %vm2729_vm10 = vcmp.gt.f32.partialorder %v10729_v30, 3.0 }
 0x302   :  { %2004 = vperm.xlu1 %7042, %v10724_v7   ;;  %v2745_v28 = vsel %vm2729_vm10, 1, %v13026_v18  ;;  %vm2730_vm9 = vcmp.gt.f32.partialorder %v10804_v55, 3.0  ;;  %vm2036_vm2 = vcmp.eq.s32.totalorder %v8756_v17, %v9987_v32  ;;  %vm2132_vm11 = vcmp.eq.s32.totalorder %v10044_v0, 1  ;;  %v11040_v0 = vld [vmem:[%s12821_s1 + $0x48] sm:$0xff] }
 0x303   :  { %v1657_v43 = vadd.f32 %v6320_v29, %v1433_v24  ;;  %v2534_v6 = vpop.permute.xlu0 %2533  ;;  %v2746_v27 = vsel %vm2730_vm9, 1, %v13026_v18  ;;  %vm2953_vm13 = vcmp.gt.f32.partialorder %v10729_v30, 4.0  ;;  %vm2357_vm5 = vcmp.eq.s32.totalorder %v10127_v3, 1 }
 0x304   :  { %vm2580_vm15 = vcmp.eq.s32.totalorder %v2534_v6, 1  ;;  %v2969_v3 = vsel %vm2953_vm13, 1, %v13026_v18 }
 0x305   :  { %v1578_v25 = vpop.permute.xlu1 %1577 }
 0x306   :  { %vm1594_vm3 = vcmp.eq.s32.totalorder %v1578_v25, 1  ;;  %2100 = vperm.xlu1 %7042, %v2073_v41   ;;  %v11049_v41 = vld [vmem:[%s12823_s3 + $0x48] sm:$0xff] }
 0x307   :  { %vm1610_vm6 = vmand %vm1498_vm1, %vm1594_vm3  ;;  %v10847_v52 = vpop.permute.xlu0 %2542 }
 0x308   :  { %v6321_v13 = vsel %vm1610_vm6, 1.0, %v13124_v26  ;;  %vm10865_vm3 = vmand %vm2036_vm2, %vm2132_vm11 }
 0x309   :  { %v1658_v23 = vadd.f32 %v6321_v13, %v1434_v50  ;;  %v10763_v54 = vpop.permute.xlu1 %1992  ;;  %v6330_v51 = vsel %vm10865_vm3, 1.0, %v13124_v26 }
 0x30a   :  { %7043 = vset.pattern.permute.xlu1 %v13096_v37  ;;  %vm2037_vm6 = vcmp.eq.s32.totalorder %v8756_v17, %v10763_v54 }
 0x30b   :  { %2228 = vperm.xlu1 %7043, %v10724_v7   ;;  %v1666_v2 = vpack.c.bf16 %v1658_v23, %v1657_v43  ;;  %v2758_v39 = vpop.permute.xlu0 %2757 }
 0x30d   :  { %6826 = vmatmul.mubr.bf16.gmra.mxu1 %v1666_v2  ;;  %v10770_v31 = vpop.permute.xlu1 %2088 }
 0x30e   :  { %vm2133_vm8 = vcmp.eq.s32.totalorder %v10770_v31, 1 }
 0x30f   :  { %7044 = vset.pattern.permute.xlu1 %v13026_v18  ;;  %v10869_v32 = vpop.permute.xlu0 %2766  ;;  %vm10874_vm7 = vmand %vm2037_vm6, %vm2133_vm8 }
 0x310   :  { %2321 = vperm.xlu1 %7044, %v2296_v45   ;;  %v6331_v23 = vsel %vm10874_vm7, 1.0, %v13124_v26 }
 0x312   :  { %v10774_v42 = vpop.permute.xlu1 %2216 }
 0x313   :  { %vm2261_vm1 = vcmp.eq.s32.totalorder %v8756_v17, %v10774_v42  ;;  %v2982_v25 = vpop.permute.xlu0 %2981  ;;  %v13315_v42 = vld [vmem:[#allocation20_spill] sm:$0xff] }
 0x314   :  { %2007 = vperm.xlu1 %7044, %v7892_v1   ;;  %vm10882_vm9 = vmand %vm2261_vm1, %vm2357_vm5  ;;  %vm2134_vm5 = vcmp.eq.s32.totalorder %v10831_v62, 1  ;;  %vm2804_vm1 = vcmp.eq.s32.totalorder %v2758_v39, 1 }
 0x315   :  { %v6347_v29 = vsel %vm10882_vm9, 1.0, %v13124_v26 }
 0x316   :  { %v2421_v31 = vadd.f32 %v6347_v29, %v6331_v23 }
 0x317   :  { %v10790_v47 = vpop.permute.xlu1 %2309 }
 0x318   :  { %2010 = vperm.xlu1 %7044, %v10782_v56   ;;  %vm2356_vm0 = vcmp.eq.s32.totalorder %v10790_v47, 1 }
 0x31b   :  { %v10796_v4 = vpop.permute.xlu1 %1995 }
 0x31c   :  { %2106 = vperm.xlu1 %7044, %v2075_v22   ;;  %vm13312_vm9 = vcmp.eq.s32.totalorder %v8756_v17, %v10796_v4 }
 0x31f   :  { %v10798_v11 = vpop.permute.xlu1 %1998 }
 0x320   :  { %7045 = vset.pattern.permute.xlu1 %v13096_v37  ;;  %vm2039_vm7 = vcmp.eq.s32.totalorder %v8756_v17, %v10798_v11 }
 0x321   :  { %2234 = vperm.xlu1 %7045, %v10782_v56  }
 0x323   :  { %v10808_v46 = vpop.permute.xlu1 %2094 }
 0x324   :  { %vm2135_vm12 = vcmp.eq.s32.totalorder %v10808_v46, 1 }
 0x325   :  { %7046 = vset.pattern.permute.xlu1 %v13026_v18 }
 0x326   :  { %2327 = vperm.xlu1 %7046, %v2298_v19  }
 0x328   :  { %v10812_v20 = vpop.permute.xlu1 %2222 }
 0x32a   :  { %7047 = vset.pattern.permute.xlu1 %v13019_v48 }
 0x32b   :  { %2449 = vperm.xlu1 %7047, %v10715_v12  }
 0x32d   :  { %v10816_v33 = vpop.permute.xlu1 %2315 }
 0x32f   :  { %2452 = vperm.xlu1 %7047, %v10724_v7  }
 0x332   :  { %v2438_v10 = vpop.permute.xlu1 %2437 }
 0x333   :  { %7048 = vset.pattern.permute.xlu1 %v13026_v18  ;;  %vm2484_vm4 = vcmp.eq.s32.totalorder %v8756_v17, %v2438_v10 }
 0x334   :  { %2548 = vperm.xlu1 %7048, %v2521_v40   ;;  %vm10888_vm8 = vmand %vm2484_vm4, %vm2580_vm15 }
 0x335   :  { %v6362_v63 = vsel %vm10888_vm8, 1.0, %v13124_v26  ;;  %vm2262_vm8 = vcmp.eq.s32.totalorder %v8756_v17, %v13315_v42 }
 0x336   :  { %v10822_v34 = vpop.permute.xlu1 %2440 }
 0x337   :  { %vm2485_vm13 = vcmp.eq.s32.totalorder %v8756_v17, %v10822_v34 }
 0x338   :  { %7049 = vset.pattern.permute.xlu1 %v13019_v48 }
 0x339   :  { %2458 = vperm.xlu1 %7049, %v10782_v56  }
 0x33b   :  { %v2537_v8 = vpop.permute.xlu1 %2536 }
 0x33c   :  { %vm2581_vm2 = vcmp.eq.s32.totalorder %v2537_v8, 1 }
 0x33d   :  { %7050 = vset.pattern.permute.xlu1 %v13026_v18 }
 0x33e   :  { %2551 = vperm.xlu1 %7050, %v2522_v60  }
 0x340   :  { %v10829_v57 = vpop.permute.xlu1 %2446 }
 0x342   :  { %7051 = vset.pattern.permute.xlu1 %v13082_v21 }
 0x343   :  { %2673 = vperm.xlu1 %7051, %v10715_v12  }
 0x345   :  { %v10835_v61 = vpop.permute.xlu1 %2539 }
 0x347   :  { %2676 = vperm.xlu1 %7051, %v10724_v7  }
 0x34a   :  { %v2662_v36 = vpop.permute.xlu1 %2661 }
 0x34b   :  { %7052 = vset.pattern.permute.xlu1 %v13026_v18  ;;  %vm2708_vm14 = vcmp.eq.s32.totalorder %v8756_v17, %v2662_v36 }
 0x34c   :  { %2772 = vperm.xlu1 %7052, %v2745_v28   ;;  %vm10908_vm15 = vmand %vm2708_vm14, %vm2804_vm1  ;;  %vm2954_vm14 = vcmp.gt.f32.partialorder %v10804_v55, 4.0  ;;  %v13322_v55 = vld [vmem:[#allocation33_spill] sm:$0xff]  ;;  %v2991_v28 = vpop.permute.xlu0 %2990 }
 0x34d   :  { %v6378_v47 = vsel %vm10908_vm15, 1.0, %v13124_v26  ;;  %v2970_v19 = vsel %vm2954_vm14, 1, %v13026_v18  ;;  %vm2486_vm14 = vcmp.eq.s32.totalorder %v8756_v17, %v13322_v55 }
 0x34e   :  { %v2665_v35 = vpop.permute.xlu1 %2664 }
 0x34f   :  { %vm2709_vm3 = vcmp.eq.s32.totalorder %v8756_v17, %v2665_v35 }
 0x350   :  { %7053 = vset.pattern.permute.xlu1 %v13082_v21  ;;  %v2098_v60 = vpop.permute.xlu0 %2097 }
 0x351   :  { %2682 = vperm.xlu1 %7053, %v10782_v56  }
 0x353   :  { %v2761_v49 = vpop.permute.xlu1 %2760 }
 0x354   :  { %vm2805_vm6 = vcmp.eq.s32.totalorder %v2761_v49, 1 }
 0x355   :  { %7054 = vset.pattern.permute.xlu1 %v13026_v18 }
 0x356   :  { %2775 = vperm.xlu1 %7054, %v2746_v27  }
 0x358   :  { %v10850_v59 = vpop.permute.xlu1 %2670 }
 0x35a   :  { %7055 = vset.pattern.permute.xlu1 %v13089_v9 }
 0x35b   :  { %2897 = vperm.xlu1 %7055, %v10715_v12  }
 0x35d   :  { %v10857_v38 = vpop.permute.xlu1 %2763 }
 0x35f   :  { %2900 = vperm.xlu1 %7055, %v10724_v7   ;;  %v13301_v7 = vld [vmem:[#allocation19_spill] sm:$0xff] }
 0x360   :  { %vm2260_vm10 = vcmp.eq.s32.totalorder %v8756_v17, %v13301_v7 }
 0x361   :  { %vm2372_vm11 = vmand %vm2260_vm10, %vm2356_vm0 }
 0x362   :  { %v2886_v58 = vpop.permute.xlu1 %2885  ;;  %vm10900_vm10 = vmand %vm2485_vm13, %vm2581_vm2  ;;  %v6346_v24 = vsel %vm2372_vm11, 1.0, %v13124_v26  ;;  %vm2359_vm2 = vcmp.eq.s32.totalorder %v10839_v16, 1  ;;  %vm3028_vm13 = vcmp.eq.s32.totalorder %v2982_v25, 1 }
 0x363   :  { %7056 = vset.pattern.permute.xlu1 %v13026_v18  ;;  %vm2932_vm4 = vcmp.eq.s32.totalorder %v8756_v17, %v2886_v58  ;;  %vm10917_vm0 = vmand %vm2709_vm3, %vm2805_vm6  ;;  %vm2263_vm6 = vcmp.eq.s32.totalorder %v8756_v17, %v10812_v20  ;;  %v6363_v2 = vsel %vm10900_vm10, 1.0, %v13124_v26  ;;  %v2420_v45 = vadd.f32 %v6346_v24, %v6330_v51  ;;  %v11103_v20 = vld [vmem:[%s12823_s3 + $0x50] sm:$0xff] }
 0x364   :  { %2996 = vperm.xlu1 %7056, %v2969_v3   ;;  %vm10930_vm11 = vmand %vm13312_vm9, %vm2134_vm5  ;;  %vm2358_vm5 = vcmp.eq.s32.totalorder %v10816_v33, 1  ;;  %v6379_v22 = vsel %vm10917_vm0, 1.0, %v13124_v26  ;;  %v2645_v11 = vadd.f32 %v6363_v2, %v2421_v31  ;;  %vm2582_vm0 = vcmp.eq.s32.totalorder %v10835_v61, 1  ;;  %v7897_v31 = vld [vmem:[%s12823_s3 + $0x40] sm:$0xff] }
 0x365   :  { %vm3044_vm1 = vmand %vm2932_vm4, %vm3028_vm13  ;;  %v2644_v4 = vadd.f32 %v6362_v63, %v2420_v45  ;;  %vm2583_vm13 = vcmp.eq.s32.totalorder %v10847_v52, 1  ;;  %vm2711_vm9 = vcmp.eq.s32.totalorder %v8756_v17, %v10850_v59  ;;  %v6332_v27 = vsel %vm10930_vm11, 1.0, %v13124_v26 }
 0x366   :  { %v2889_v13 = vpop.permute.xlu1 %2888  ;;  %vm10953_vm10 = vmand %vm2039_vm7, %vm2135_vm12  ;;  %vm2487_vm12 = vcmp.eq.s32.totalorder %v8756_v17, %v10829_v57  ;;  %v6394_v33 = vsel %vm3044_vm1, 1.0, %v13124_v26  ;;  %v2869_v10 = vadd.f32 %v6379_v22, %v2645_v11  ;;  %vm2807_vm1 = vcmp.eq.s32.totalorder %v10869_v32, 1  ;;  %v13327_v57 = vld [vmem:[#allocation44_spill] sm:$0xff]  ;;  %v11081_v22 = vld [vmem:[%s12821_s1 + $0x58] sm:$0xff] }
 0x367   :  { %vm10965_vm3 = vmand %vm2263_vm6, %vm2359_vm2  ;;  %vm2933_vm4 = vcmp.eq.s32.totalorder %v8756_v17, %v2889_v13  ;;  %v2868_v40 = vadd.f32 %v6378_v47, %v2644_v4  ;;  %v6333_v52 = vsel %vm10953_vm10, 1.0, %v13124_v26  ;;  %vm12937_vm10 = vcmp.gt.f32.partialorder %v11049_v41, 0.0  ;;  %v7898_v47 = vld [vmem:[%s12821_s1 + $0x50] sm:$0xff] }
 0x368   :  { %7057 = vset.pattern.permute.xlu1 %v13089_v9  ;;  %vm10974_vm15 = vmand %vm2262_vm8, %vm2358_vm5  ;;  %vm2806_vm5 = vcmp.eq.s32.totalorder %v10857_v38, 1  ;;  %v6349_v36 = vsel %vm10965_vm3, 1.0, %v13124_v26  ;;  %v11034_v38 = vld [vmem:[%s12821_s1 + $0x40] sm:$0xff]  ;;  %vm2934_vm3 = vcmp.eq.s32.totalorder %v8756_v17, %v13330_v15  ;;  %v2077_v50 = vsel %vm12937_vm10, 1, %v13026_v18  ;;  %v13335_v15 = vld [vmem:[#allocation21_spill] sm:$0xff] }
 0x369   :  { %2906 = vperm.xlu1 %7057, %v10782_v56   ;;  %vm10990_vm7 = vmand %vm2487_vm12, %vm2583_vm13  ;;  %v3092_v62 = vadd.f32 %v6394_v33, %v2868_v40  ;;  %vm2710_vm12 = vcmp.eq.s32.totalorder %v8756_v17, %v13327_v57  ;;  %v6348_v6 = vsel %vm10974_vm15, 1.0, %v13124_v26  ;;  %v2423_v12 = vadd.f32 %v6349_v36, %v6333_v52  ;;  %v11086_v56 = vld [vmem:[%s12823_s3 + $0x58] sm:$0xff] }
 0x36a   :  { %vm10999_vm8 = vmand %vm2486_vm14, %vm2582_vm0  ;;  %v6365_v59 = vsel %vm10990_vm7, 1.0, %v13124_v26  ;;  %v2422_v32 = vadd.f32 %v6348_v6, %v6332_v27  ;;  %vm12936_vm14 = vcmp.gt.f32.partialorder %v11086_v56, 0.0  ;;  %vm2286_vm7 = vcmp.gt.f32.partialorder %v11103_v20, 1.0 }
 0x36b   :  { %v2985_v46 = vpop.permute.xlu1 %2984  ;;  %vm11014_vm0 = vmand %vm2711_vm9, %vm2807_vm1  ;;  %v6364_v39 = vsel %vm10999_vm8, 1.0, %v13124_v26  ;;  %v2647_v58 = vadd.f32 %v6365_v59, %v2423_v12  ;;  %v2079_v11 = vsel %vm12936_vm14, 1, %v13026_v18  ;;  %v2302_v40 = vsel %vm2286_vm7, 1, %v13026_v18 }
 0x36c   :  { %vm3029_vm2 = vcmp.eq.s32.totalorder %v2985_v46, 1  ;;  %v6381_v3 = vsel %vm11014_vm0, 1.0, %v13124_v26  ;;  %v2646_v14 = vadd.f32 %v6364_v39, %v2422_v32  ;;  %vm2510_vm1 = vcmp.gt.f32.partialorder %v11103_v20, 2.0 }
 0x36d   :  { %vm3045_vm6 = vmand %vm2933_vm4, %vm3029_vm2  ;;  %7058 = vset.pattern.permute.xlu1 %v13026_v18  ;;  %vm3031_vm4 = vcmp.eq.s32.totalorder %v2991_v28, 1  ;;  %v2871_v29 = vadd.f32 %v6381_v3, %v2647_v58  ;;  %v2526_v57 = vsel %vm2510_vm1, 1, %v13026_v18  ;;  %v2325_v28 = vpop.permute.xlu0 %2324  ;;  %vm2733_vm8 = vcmp.gt.f32.partialorder %v11049_v41, 3.0 }
 0x36e   :  { %v6395_v8 = vsel %vm3045_vm6, 1.0, %v13124_v26  ;;  %2999 = vperm.xlu1 %7058, %v2970_v19   ;;  %vm2822_vm2 = vmand %vm2710_vm12, %vm2806_vm5  ;;  %vm2284_vm6 = vcmp.gt.f32.partialorder %v7897_v31, 1.0  ;;  %vm2509_vm5 = vcmp.gt.f32.partialorder %v11049_v41, 2.0  ;;  %vm2734_vm12 = vcmp.gt.f32.partialorder %v11103_v20, 3.0 }
 0x36f   :  { %v3093_v16 = vadd.f32 %v6395_v8, %v2869_v10  ;;  %v6380_v7 = vsel %vm2822_vm2, 1.0, %v13124_v26  ;;  %v2300_v42 = vsel %vm2284_vm6, 1, %v13026_v18  ;;  %v2525_v34 = vsel %vm2509_vm5, 1, %v13026_v18 }
 0x370   :  { %v2895_v35 = vpop.permute.xlu1 %2894  ;;  %v2870_v24 = vadd.f32 %v6380_v7, %v2646_v14  ;;  %v2750_v12 = vsel %vm2734_vm12, 1, %v13026_v18  ;;  %vm2957_vm2 = vcmp.gt.f32.partialorder %v11049_v41, 4.0  ;;  %vm2361_vm6 = vcmp.eq.s32.totalorder %v2325_v28, 1 }
 0x371   :  { %vm2935_vm13 = vcmp.eq.s32.totalorder %v8756_v17, %v2895_v35  ;;  %v3108_v49 = vpack.c.bf16 %v3093_v16, %v3092_v62  ;;  %v11130_v6 = vpop.permute.xlu0 %2103  ;;  %vm2264_vm1 = vcmp.eq.s32.totalorder %v8756_v17, %v13335_v15  ;;  %v11339_v15 = vld [vmem:[%s12821_s1 + $0x68] sm:$0xff] }
 0x372   :  { %2013 = vperm.xlu1 %7058, %v11034_v38   ;;  %vm3047_vm11 = vmand %vm2935_vm13, %vm3031_vm4  ;;  %vm2136_vm13 = vcmp.eq.s32.totalorder %v2098_v60, 1 }
 0x373   :  { %6845 = vmatprep.mubr.bf16.mxu1 %v3108_v49  ;;  %v6397_v25 = vsel %vm3047_vm11, 1.0, %v13124_v26  ;;  %v2749_v49 = vsel %vm2733_vm8, 1, %v13026_v18 }
 0x374   :  { %v3095_v43 = vadd.f32 %v6397_v25, %v2871_v29 }
 0x375   :  { %v2988_v51 = vpop.permute.xlu1 %2987  ;;  %v11138_v35 = vpop.permute.xlu0 %2330 }
 0x376   :  { %vm3030_vm15 = vcmp.eq.s32.totalorder %v2988_v51, 1  ;;  %2016 = vperm.xlu1 %7058, %v11040_v0   ;;  %v11333_v51 = vld [vmem:[%s12821_s1 + $0x60] sm:$0xff] }
 0x377   :  { %vm3046_vm9 = vmand %vm2934_vm3, %vm3030_vm15 }
 0x378   :  { %v6396_v13 = vsel %vm3046_vm9, 1.0, %v13124_v26 }
 0x379   :  { %v3094_v23 = vadd.f32 %v6396_v13, %v2870_v24  ;;  %v11060_v54 = vpop.permute.xlu1 %2001  ;;  %v2546_v52 = vpop.permute.xlu0 %2545  ;;  %v11348_v24 = vld [vmem:[%s12823_s3 + $0x68] sm:$0xff] }
 0x37a   :  { %2112 = vperm.xlu1 %7058, %v2077_v50   ;;  %vm2040_vm0 = vcmp.eq.s32.totalorder %v8756_v17, %v11060_v54 }
 0x37b   :  { %v3109_v63 = vpack.c.bf16 %v3095_v43, %v3094_v23  ;;  %vm11164_vm3 = vmand %vm2040_vm0, %vm2136_vm13  ;;  %vm2584_vm0 = vcmp.eq.s32.totalorder %v2546_v52, 1 }
 0x37d   :  { %6846 = vmatmul.mubr.bf16.vlgmr.msra.gmra.mxu1 %v3109_v63  ;;  %v11062_v2 = vpop.permute.xlu1 %2004  ;;  %v11146_v32 = vpop.permute.xlu0 %2554 }
 0x37e   :  { %7059 = vset.pattern.permute.xlu1 %v13096_v37  ;;  %vm2041_vm15 = vcmp.eq.s32.totalorder %v8756_v17, %v11062_v2  ;;  %v6334_v2 = vsel %vm11164_vm3, 1.0, %v13124_v26 }
 0x37f   :  { %2240 = vperm.xlu1 %7059, %v11040_v0  }
 0x381   :  { %v11069_v45 = vpop.permute.xlu1 %2100  ;;  %v2770_v7 = vpop.permute.xlu0 %2769 }
 0x382   :  { %vm2137_vm4 = vcmp.eq.s32.totalorder %v11069_v45, 1 }
 0x383   :  { %7060 = vset.pattern.permute.xlu1 %v13026_v18  ;;  %vm11171_vm7 = vmand %vm2041_vm15, %vm2137_vm4 }
 0x384   :  { %2333 = vperm.xlu1 %7060, %v2300_v42   ;;  %v6335_v45 = vsel %vm11171_vm7, 1.0, %v13124_v26 }
 0x385   :  { %v11162_v14 = vpop.permute.xlu0 %2778 }
 0x386   :  { %v11073_v1 = vpop.permute.xlu1 %2228 }
 0x387   :  { %vm2265_vm11 = vcmp.eq.s32.totalorder %v8756_v17, %v11073_v1 }
 0x388   :  { %2019 = vperm.xlu1 %7060, %v7898_v47   ;;  %vm11179_vm8 = vmand %vm2265_vm11, %vm2361_vm6  ;;  %vm2138_vm11 = vcmp.eq.s32.totalorder %v11130_v6, 1  ;;  %vm2808_vm6 = vcmp.eq.s32.totalorder %v2770_v7, 1 }
 0x389   :  { %v2994_v13 = vpop.permute.xlu0 %2993  ;;  %v6351_v43 = vsel %vm11179_vm8, 1.0, %v13124_v26 }
 0x38b   :  { %v11089_v4 = vpop.permute.xlu1 %2321 }
 0x38c   :  { %2022 = vperm.xlu1 %7060, %v11081_v22   ;;  %vm2360_vm9 = vcmp.eq.s32.totalorder %v11089_v4, 1  ;;  %v2425_v4 = vadd.f32 %v6351_v43, %v6335_v45 }
 0x38d   :  { %vm2376_vm13 = vmand %vm2264_vm1, %vm2360_vm9  ;;  %v3003_v52 = vpop.permute.xlu0 %3002 }
 0x38e   :  { %v6350_v23 = vsel %vm2376_vm13, 1.0, %v13124_v26  ;;  %vm2958_vm13 = vcmp.gt.f32.partialorder %v11103_v20, 4.0  ;;  %v13355_v20 = vld [vmem:[#allocation34_spill] sm:$0xff] }
 0x38f   :  { %v11095_v46 = vpop.permute.xlu1 %2007  ;;  %v2974_v60 = vsel %vm2958_vm13, 1, %v13026_v18  ;;  %vm2490_vm13 = vcmp.eq.s32.totalorder %v8756_v17, %v13355_v20 }
 0x390   :  { %2118 = vperm.xlu1 %7060, %v2079_v11   ;;  %vm2042_vm10 = vcmp.eq.s32.totalorder %v8756_v17, %v11095_v46  ;;  %v2424_v11 = vadd.f32 %v6350_v23, %v6334_v2  ;;  %v13348_v46 = vld [vmem:[#allocation22_spill] sm:$0xff]  ;;  %v13363_v23 = vld [vmem:[#allocation61_spill] sm:$0xff] }
 0x393   :  { %v11097_v19 = vpop.permute.xlu1 %2010 }
 0x394   :  { %7061 = vset.pattern.permute.xlu1 %v13096_v37 }
 0x395   :  { %2246 = vperm.xlu1 %7061, %v11081_v22  }
 0x397   :  { %v11107_v33 = vpop.permute.xlu1 %2106 }
 0x399   :  { %7062 = vset.pattern.permute.xlu1 %v13026_v18 }
 0x39a   :  { %2339 = vperm.xlu1 %7062, %v2302_v40  }
 0x39c   :  { %v11111_v10 = vpop.permute.xlu1 %2234 }
 0x39e   :  { %7063 = vset.pattern.permute.xlu1 %v13019_v48 }
 0x39f   :  { %2461 = vperm.xlu1 %7063, %v11034_v38  }
 0x3a1   :  { %v11115_v55 = vpop.permute.xlu1 %2327 }
 0x3a2   :  { %vm2362_vm3 = vcmp.eq.s32.totalorder %v11115_v55, 1 }
 0x3a3   :  { %2464 = vperm.xlu1 %7063, %v11040_v0  }
 0x3a6   :  { %v2450_v8 = vpop.permute.xlu1 %2449 }
 0x3a7   :  { %7064 = vset.pattern.permute.xlu1 %v13026_v18  ;;  %vm2488_vm5 = vcmp.eq.s32.totalorder %v8756_v17, %v2450_v8 }
 0x3a8   :  { %2560 = vperm.xlu1 %7064, %v2525_v34   ;;  %vm11185_vm15 = vmand %vm2488_vm5, %vm2584_vm0 }
 0x3a9   :  { %v6366_v1 = vsel %vm11185_vm15, 1.0, %v13124_v26  ;;  %vm2266_vm15 = vcmp.eq.s32.totalorder %v8756_v17, %v13348_v46  ;;  %v7903_v46 = vld [vmem:[%s12823_s3 + $0x60] sm:$0xff] }
 0x3aa   :  { %v11121_v62 = vpop.permute.xlu1 %2452 }
 0x3ac   :  { %7065 = vset.pattern.permute.xlu1 %v13019_v48 }
 0x3ad   :  { %2470 = vperm.xlu1 %7065, %v11081_v22  }
 0x3af   :  { %v2549_v16 = vpop.permute.xlu1 %2548 }
 0x3b0   :  { %vm2585_vm12 = vcmp.eq.s32.totalorder %v2549_v16, 1 }
 0x3b1   :  { %7066 = vset.pattern.permute.xlu1 %v13026_v18 }
 0x3b2   :  { %2563 = vperm.xlu1 %7066, %v2526_v57  }
 0x3b4   :  { %v11128_v36 = vpop.permute.xlu1 %2458 }
 0x3b6   :  { %7067 = vset.pattern.permute.xlu1 %v13082_v21 }
 0x3b7   :  { %2685 = vperm.xlu1 %7067, %v11034_v38  }
 0x3b9   :  { %v11134_v61 = vpop.permute.xlu1 %2551 }
 0x3bb   :  { %2688 = vperm.xlu1 %7067, %v11040_v0  }
 0x3be   :  { %v2674_v27 = vpop.permute.xlu1 %2673 }
 0x3bf   :  { %7068 = vset.pattern.permute.xlu1 %v13026_v18  ;;  %vm2712_vm4 = vcmp.eq.s32.totalorder %v8756_v17, %v2674_v27 }
 0x3c0   :  { %2784 = vperm.xlu1 %7068, %v2749_v49   ;;  %vm11202_vm5 = vmand %vm2712_vm4, %vm2808_vm6 }
 0x3c1   :  { %vm11226_vm4 = vmand %vm2042_vm10, %vm2138_vm11  ;;  %vm2043_vm10 = vcmp.eq.s32.totalorder %v8756_v17, %v11097_v19  ;;  %vm2363_vm11 = vcmp.eq.s32.totalorder %v11138_v35, 1  ;;  %v6382_v19 = vsel %vm11202_vm5, 1.0, %v13124_v26 }
 0x3c2   :  { %v2677_v59 = vpop.permute.xlu1 %2676  ;;  %vm11273_vm5 = vmand %vm2266_vm15, %vm2362_vm3  ;;  %vm2811_vm15 = vcmp.eq.s32.totalorder %v11162_v14, 1  ;;  %v6336_v7 = vsel %vm11226_vm4, 1.0, %v13124_v26 }
 0x3c3   :  { %vm2713_vm1 = vcmp.eq.s32.totalorder %v8756_v17, %v2677_v59 }
 0x3c4   :  { %7069 = vset.pattern.permute.xlu1 %v13082_v21 }
 0x3c5   :  { %2694 = vperm.xlu1 %7069, %v11081_v22  }
 0x3c7   :  { %v2773_v39 = vpop.permute.xlu1 %2772 }
 0x3c8   :  { %vm2809_vm14 = vcmp.eq.s32.totalorder %v2773_v39, 1  ;;  %v6352_v39 = vsel %vm11273_vm5, 1.0, %v13124_v26 }
 0x3c9   :  { %7070 = vset.pattern.permute.xlu1 %v13026_v18  ;;  %vm11213_vm8 = vmand %vm2713_vm1, %vm2809_vm14  ;;  %vm2267_vm14 = vcmp.eq.s32.totalorder %v8756_v17, %v11111_v10  ;;  %vm2491_vm1 = vcmp.eq.s32.totalorder %v8756_v17, %v11128_v36  ;;  %v13360_v36 = vld [vmem:[#allocation45_spill] sm:$0xff] }
 0x3ca   :  { %2787 = vperm.xlu1 %7070, %v2750_v12   ;;  %v6383_v55 = vsel %vm11213_vm8, 1.0, %v13124_v26  ;;  %vm2587_vm8 = vcmp.eq.s32.totalorder %v11146_v32, 1 }
 0x3cb   :  { %vm11289_vm3 = vmand %vm2491_vm1, %vm2587_vm8  ;;  %vm2714_vm1 = vcmp.eq.s32.totalorder %v8756_v17, %v13360_v36 }
 0x3cc   :  { %v11149_v3 = vpop.permute.xlu1 %2682 }
 0x3ce   :  { %7071 = vset.pattern.permute.xlu1 %v13089_v9 }
 0x3cf   :  { %2909 = vperm.xlu1 %7071, %v11034_v38  }
 0x3d1   :  { %v11155_v58 = vpop.permute.xlu1 %2775 }
 0x3d3   :  { %2912 = vperm.xlu1 %7071, %v11040_v0   ;;  %v2973_v0 = vsel %vm2957_vm2, 1, %v13026_v18  ;;  %vm2489_vm2 = vcmp.eq.s32.totalorder %v8756_v17, %v11121_v62 }
 0x3d4   :  { %vm11194_vm9 = vmand %vm2489_vm2, %vm2585_vm12  ;;  %vm3032_vm12 = vcmp.eq.s32.totalorder %v2994_v13, 1  ;;  %vm2139_vm2 = vcmp.eq.s32.totalorder %v11107_v33, 1  ;;  %v2648_v33 = vadd.f32 %v6366_v1, %v2424_v11 }
 0x3d5   :  { %v6367_v47 = vsel %vm11194_vm9, 1.0, %v13124_v26  ;;  %vm11251_vm6 = vmand %vm2043_vm10, %vm2139_vm2 }
 0x3d6   :  { %v2898_v29 = vpop.permute.xlu1 %2897  ;;  %vm11264_vm9 = vmand %vm2267_vm14, %vm2363_vm11  ;;  %v2649_v34 = vadd.f32 %v6367_v47, %v2425_v4  ;;  %v2872_v16 = vadd.f32 %v6382_v19, %v2648_v33  ;;  %vm2715_vm14 = vcmp.eq.s32.totalorder %v8756_v17, %v11149_v3  ;;  %v6369_v3 = vsel %vm11289_vm3, 1.0, %v13124_v26  ;;  %v11380_v33 = vld [vmem:[%s12821_s1 + $0x78] sm:$0xff] }
 0x3d7   :  { %7072 = vset.pattern.permute.xlu1 %v13026_v18  ;;  %vm2936_vm0 = vcmp.eq.s32.totalorder %v8756_v17, %v2898_v29  ;;  %v6353_v59 = vsel %vm11264_vm9, 1.0, %v13124_v26  ;;  %vm2938_vm9 = vcmp.eq.s32.totalorder %v8756_v17, %v13363_v23 }
 0x3d8   :  { %3008 = vperm.xlu1 %7072, %v2973_v0   ;;  %vm3048_vm7 = vmand %vm2936_vm0, %vm3032_vm12  ;;  %vm2586_vm0 = vcmp.eq.s32.totalorder %v11134_v61, 1  ;;  %v2873_v57 = vadd.f32 %v6383_v55, %v2649_v34  ;;  %v2426_v0 = vadd.f32 %v6352_v39, %v6336_v7  ;;  %v11385_v34 = vld [vmem:[%s12823_s3 + $0x78] sm:$0xff] }
 0x3d9   :  { %v6398_v10 = vsel %vm3048_vm7, 1.0, %v13124_v26  ;;  %vm2810_vm7 = vcmp.eq.s32.totalorder %v11155_v58, 1  ;;  %vm11298_vm11 = vmand %vm2490_vm13, %vm2586_vm0  ;;  %v6337_v58 = vsel %vm11251_vm6, 1.0, %v13124_v26  ;;  %vm12939_vm6 = vcmp.gt.f32.partialorder %v11348_v24, 0.0 }
 0x3da   :  { %v2901_v63 = vpop.permute.xlu1 %2900  ;;  %v3096_v49 = vadd.f32 %v6398_v10, %v2872_v16  ;;  %vm11313_vm0 = vmand %vm2715_vm14, %vm2811_vm15  ;;  %v6368_v14 = vsel %vm11298_vm11, 1.0, %v13124_v26  ;;  %v2427_v38 = vadd.f32 %v6353_v59, %v6337_v58  ;;  %v2081_v31 = vsel %vm12939_vm6, 1, %v13026_v18  ;;  %v11402_v16 = vld [vmem:[%s12823_s3 + $0x70] sm:$0xff] }
 0x3db   :  { %vm2937_vm12 = vcmp.eq.s32.totalorder %v8756_v17, %v2901_v63  ;;  %v6385_v25 = vsel %vm11313_vm0, 1.0, %v13124_v26  ;;  %v2650_v13 = vadd.f32 %v6368_v14, %v2426_v0  ;;  %vm12938_vm13 = vcmp.gt.f32.partialorder %v11385_v34, 0.0 }
 0x3dc   :  { %7073 = vset.pattern.permute.xlu1 %v13089_v9  ;;  %v2651_v50 = vadd.f32 %v6369_v3, %v2427_v38  ;;  %vm2290_vm3 = vcmp.gt.f32.partialorder %v11402_v16, 1.0  ;;  %vm2514_vm15 = vcmp.gt.f32.partialorder %v11402_v16, 2.0  ;;  %vm2737_vm11 = vcmp.gt.f32.partialorder %v11348_v24, 3.0 }
 0x3dd   :  { %2918 = vperm.xlu1 %7073, %v11081_v22   ;;  %v7904_v22 = vld [vmem:[%s12821_s1 + $0x70] sm:$0xff]  ;;  %v2306_v20 = vsel %vm2290_vm3, 1, %v13026_v18  ;;  %s7932_s1 = smov 64  }
 0x3de   :  { %v2875_v63 = vadd.f32 %v6385_v25, %v2651_v50 }
 0x3df   :  { %v2997_v8 = vpop.permute.xlu1 %2996 }
 0x3e0   :  { %vm3033_vm2 = vcmp.eq.s32.totalorder %v2997_v8, 1 }
 0x3e1   :  { %vm3049_vm10 = vmand %vm2937_vm12, %vm3033_vm2  ;;  %7074 = vset.pattern.permute.xlu1 %v13026_v18  ;;  %vm3035_vm12 = vcmp.eq.s32.totalorder %v3003_v52, 1  ;;  %v2530_v52 = vsel %vm2514_vm15, 1, %v13026_v18 }
 0x3e2   :  { %v6399_v6 = vsel %vm3049_vm10, 1.0, %v13124_v26  ;;  %3011 = vperm.xlu1 %7074, %v2974_v60   ;;  %vm2826_vm2 = vmand %vm2714_vm1, %vm2810_vm7  ;;  %vm2288_vm10 = vcmp.gt.f32.partialorder %v7903_v46, 1.0  ;;  %v2083_v60 = vsel %vm12938_vm13, 1, %v13026_v18  ;;  %vm2513_vm7 = vcmp.gt.f32.partialorder %v11348_v24, 2.0 }
 0x3e3   :  { %v3097_v27 = vadd.f32 %v6399_v6, %v2873_v57  ;;  %v6384_v29 = vsel %vm2826_vm2, 1.0, %v13124_v26  ;;  %v2304_v19 = vsel %vm2288_vm10, 1, %v13026_v18  ;;  %v2529_v6 = vsel %vm2513_vm7, 1, %v13026_v18 }
 0x3e4   :  { %v2907_v12 = vpop.permute.xlu1 %2906  ;;  %v2874_v2 = vadd.f32 %v6384_v29, %v2650_v13  ;;  %vm2738_vm1 = vcmp.gt.f32.partialorder %v11402_v16, 3.0  ;;  %vm2961_vm2 = vcmp.gt.f32.partialorder %v11348_v24, 4.0 }
 0x3e5   :  { %vm2939_vm8 = vcmp.eq.s32.totalorder %v8756_v17, %v2907_v12  ;;  %v3110_v32 = vpack.c.bf16 %v3097_v27, %v3096_v49  ;;  %v2110_v49 = vpop.permute.xlu0 %2109  ;;  %v2754_v38 = vsel %vm2738_vm1, 1, %v13026_v18 }
 0x3e6   :  { %2025 = vperm.xlu1 %7074, %v11333_v51   ;;  %vm3051_vm4 = vmand %vm2939_vm8, %vm3035_vm12  ;;  %vm2140_vm8 = vcmp.eq.s32.totalorder %v2110_v49, 1 }
 0x3e7   :  { %6849 = vmatprep.mubr.bf16.mxu1 %v3110_v32  ;;  %v6401_v54 = vsel %vm3051_vm4, 1.0, %v13124_v26  ;;  %v2753_v32 = vsel %vm2737_vm11, 1, %v13026_v18 }
 0x3e8   :  { %v3099_v42 = vadd.f32 %v6401_v54, %v2875_v63 }
 0x3e9   :  { %v3000_v43 = vpop.permute.xlu1 %2999  ;;  %v2337_v59 = vpop.permute.xlu0 %2336 }
 0x3ea   :  { %vm3034_vm5 = vcmp.eq.s32.totalorder %v3000_v43, 1  ;;  %2028 = vperm.xlu1 %7074, %v11339_v15   ;;  %vm2365_vm10 = vcmp.eq.s32.totalorder %v2337_v59, 1  ;;  %v13368_v43 = vld [vmem:[#allocation23_spill] sm:$0xff] }
 0x3eb   :  { %vm3050_vm14 = vmand %vm2938_vm9, %vm3034_vm5  ;;  %vm2268_vm15 = vcmp.eq.s32.totalorder %v8756_v17, %v13368_v43  ;;  %v7908_v43 = vld [vmem:[%s12823_s3 + $0x8] sm:$0xff] }
 0x3ec   :  { %v6400_v45 = vsel %vm3050_vm14, 1.0, %v13124_v26 }
 0x3ed   :  { %v3098_v1 = vadd.f32 %v6400_v45, %v2874_v2  ;;  %v11359_v47 = vpop.permute.xlu1 %2013  ;;  %v11429_v61 = vpop.permute.xlu0 %2115 }
 0x3ee   :  { %2124 = vperm.xlu1 %7074, %v2081_v31   ;;  %vm2044_vm0 = vcmp.eq.s32.totalorder %v8756_v17, %v11359_v47 }
 0x3ef   :  { %v3111_v4 = vpack.c.bf16 %v3099_v42, %v3098_v1  ;;  %vm11463_vm9 = vmand %vm2044_vm0, %vm2140_vm8 }
 0x3f1   :  { %6850 = vmatmul.mubr.bf16.gmra.mxu1 %v3111_v4  ;;  %v11361_v11 = vpop.permute.xlu1 %2016  ;;  %v11437_v12 = vpop.permute.xlu0 %2342  ;;  %v6338_v4 = vsel %vm11463_vm9, 1.0, %v13124_v26 }
 0x3f2   :  { %7075 = vset.pattern.permute.xlu1 %v13096_v37  ;;  %vm2045_vm5 = vcmp.eq.s32.totalorder %v8756_v17, %v11361_v11 }
 0x3f3   :  { %2252 = vperm.xlu1 %7075, %v11339_v15  }
 0x3f5   :  { %v11368_v40 = vpop.permute.xlu1 %2112  ;;  %v2558_v58 = vpop.permute.xlu0 %2557 }
 0x3f6   :  { %vm2141_vm12 = vcmp.eq.s32.totalorder %v11368_v40, 1  ;;  %vm2588_vm0 = vcmp.eq.s32.totalorder %v2558_v58, 1  ;;  %v13395_v58 = vld [vmem:[#allocation46_spill] sm:$0xff] }
 0x3f7   :  { %7076 = vset.pattern.permute.xlu1 %v13026_v18  ;;  %vm11470_vm3 = vmand %vm2045_vm5, %vm2141_vm12 }
 0x3f8   :  { %2345 = vperm.xlu1 %7076, %v2304_v19   ;;  %v6339_v46 = vsel %vm11470_vm3, 1.0, %v13124_v26 }
 0x3f9   :  { %v11445_v0 = vpop.permute.xlu0 %2566 }
 0x3fa   :  { %v11372_v55 = vpop.permute.xlu1 %2240 }
 0x3fb   :  { %vm2269_vm4 = vcmp.eq.s32.totalorder %v8756_v17, %v11372_v55 }
 0x3fc   :  { %2031 = vperm.xlu1 %7076, %v7904_v22   ;;  %vm11478_vm11 = vmand %vm2269_vm4, %vm2365_vm10  ;;  %vm2142_vm4 = vcmp.eq.s32.totalorder %v11429_v61, 1 }
 0x3fd   :  { %v2782_v29 = vpop.permute.xlu0 %2781  ;;  %v6355_v45 = vsel %vm11478_vm11, 1.0, %v13124_v26 }
 0x3fe   :  { %vm2812_vm10 = vcmp.eq.s32.totalorder %v2782_v29, 1  ;;  %v2429_v22 = vadd.f32 %v6355_v45, %v6339_v46 }
 0x3ff   :  { %v11388_v8 = vpop.permute.xlu1 %2333 }
 0x400   :  { %2034 = vperm.xlu1 %7076, %v11380_v33   ;;  %vm2364_vm14 = vcmp.eq.s32.totalorder %v11388_v8, 1 }
 0x401   :  { %v11461_v50 = vpop.permute.xlu0 %2790  ;;  %vm2380_vm8 = vmand %vm2268_vm15, %vm2364_vm14 }
 0x402   :  { %v6354_v42 = vsel %vm2380_vm8, 1.0, %v13124_v26  ;;  %vm2962_vm8 = vcmp.gt.f32.partialorder %v11402_v16, 4.0  ;;  %v13388_v16 = vld [vmem:[#allocation35_spill] sm:$0xff] }
 0x403   :  { %v11394_v62 = vpop.permute.xlu1 %2019  ;;  %v2428_v8 = vadd.f32 %v6354_v42, %v6338_v4  ;;  %v13399_v42 = vld [vmem:[#allocation62_spill] sm:$0xff] }
 0x404   :  { %2130 = vperm.xlu1 %7076, %v2083_v60   ;;  %vm2046_vm6 = vcmp.eq.s32.totalorder %v8756_v17, %v11394_v62  ;;  %v13381_v60 = vld [vmem:[#allocation24_spill] sm:$0xff] }
 0x405   :  { %v3006_v31 = vpop.permute.xlu0 %3005 }
 0x407   :  { %v11396_v10 = vpop.permute.xlu1 %2022 }
 0x408   :  { %7078 = vset.pattern.permute.xlu1 %v13096_v37 }
 0x409   :  { %2258 = vperm.xlu1 %7078, %v11380_v33  }
 0x40b   :  { %v11406_v57 = vpop.permute.xlu1 %2118 }
 0x40d   :  { %7079 = vset.pattern.permute.xlu1 %v13026_v18 }
 0x40e   :  { %2351 = vperm.xlu1 %7079, %v2306_v20  }
 0x410   :  { %v11410_v28 = vpop.permute.xlu1 %2246 }
 0x412   :  { %7080 = vset.pattern.permute.xlu1 %v13019_v48 }
 0x413   :  { %2473 = vperm.xlu1 %7080, %v11333_v51  }
 0x415   :  { %v11414_v37 = vpop.permute.xlu1 %2339 }
 0x416   :  { %vm2366_vm9 = vcmp.eq.s32.totalorder %v11414_v37, 1 }
 0x417   :  { %2476 = vperm.xlu1 %7080, %v11339_v15  }
 0x41a   :  { %v2462_v35 = vpop.permute.xlu1 %2461 }
 0x41b   :  { %7081 = vset.pattern.permute.xlu1 %v13026_v18  ;;  %vm2492_vm7 = vcmp.eq.s32.totalorder %v8756_v17, %v2462_v35  ;;  %v13407_v35 = vld [vmem:[#allocation2_spill] sm:$0xff] }
 0x41c   :  { %2572 = vperm.xlu1 %7081, %v2529_v6   ;;  %vm11484_vm5 = vmand %vm2492_vm7, %vm2588_vm0  ;;  %v2978_v6 = vsel %vm2962_vm8, 1, %v13026_v18  ;;  %vm2494_vm8 = vcmp.eq.s32.totalorder %v8756_v17, %v13388_v16  ;;  %v7914_v16 = vld [vmem:[%s12943_s19 + $0x28] sm:$0xff] }
 0x41d   :  { %v6370_v19 = vsel %vm11484_vm5, 1.0, %v13124_v26  ;;  %vm2270_vm5 = vcmp.eq.s32.totalorder %v8756_v17, %v13381_v60 }
 0x41e   :  { %v11420_v27 = vpop.permute.xlu1 %2464 }
 0x420   :  { %7083 = vset.pattern.permute.xlu1 %v13019_v48 }
 0x421   :  { %2482 = vperm.xlu1 %7083, %v11380_v33  }
 0x423   :  { %v2561_v36 = vpop.permute.xlu1 %2560 }
 0x424   :  { %vm2589_vm1 = vcmp.eq.s32.totalorder %v2561_v36, 1  ;;  %v13411_v36 = vld [vmem:[#allocation7_spill] sm:$0xff] }
 0x425   :  { %7084 = vset.pattern.permute.xlu1 %v13026_v18 }
 0x426   :  { %2575 = vperm.xlu1 %7084, %v2530_v52  }
 0x428   :  { %v11427_v39 = vpop.permute.xlu1 %2470 }
 0x42a   :  { %7085 = vset.pattern.permute.xlu1 %v13082_v21 }
 0x42b   :  { %2697 = vperm.xlu1 %7085, %v11333_v51  }
 0x42d   :  { %v11433_v48 = vpop.permute.xlu1 %2563 }
 0x42f   :  { %2700 = vperm.xlu1 %7085, %v11339_v15  }
 0x432   :  { %v2686_v7 = vpop.permute.xlu1 %2685 }
 0x433   :  { %7086 = vset.pattern.permute.xlu1 %v13026_v18  ;;  %vm2716_vm12 = vcmp.eq.s32.totalorder %v8756_v17, %v2686_v7 }
 0x434   :  { %2796 = vperm.xlu1 %7086, %v2753_v32   ;;  %vm11501_vm7 = vmand %vm2716_vm12, %vm2812_vm10  ;;  %v13393_v32 = vld [vmem:[#allocation60_spill] sm:$0xff] }
 0x435   :  { %vm11525_vm12 = vmand %vm2046_vm6, %vm2142_vm4  ;;  %vm2047_vm6 = vcmp.eq.s32.totalorder %v8756_v17, %v11396_v10  ;;  %vm2367_vm4 = vcmp.eq.s32.totalorder %v11437_v12, 1  ;;  %v6386_v62 = vsel %vm11501_vm7, 1.0, %v13124_v26 }
 0x436   :  { %v2689_v3 = vpop.permute.xlu1 %2688  ;;  %vm11572_vm7 = vmand %vm2270_vm5, %vm2366_vm9  ;;  %vm2815_vm5 = vcmp.eq.s32.totalorder %v11461_v50, 1  ;;  %v6340_v50 = vsel %vm11525_vm12, 1.0, %v13124_v26  ;;  %vm13398_vm12 = vcmp.gt.f32.partialorder %v10162_v5, 0.0  ;;  %v7909_v5 = vld [vmem:[%s12823_s3 + $0x18] sm:$0xff] }
 0x437   :  { %vm2717_vm15 = vcmp.eq.s32.totalorder %v8756_v17, %v2689_v3  ;;  %v3015_v3 = vpop.permute.xlu0 %3014  ;;  %v3278_v23 = vsel %vm13398_vm12, %v7908_v43, 1.0 }
 0x438   :  { %7088 = vset.pattern.permute.xlu1 %v13082_v21 }
 0x439   :  { %2706 = vperm.xlu1 %7088, %v11380_v33  }
 0x43b   :  { %v2785_v14 = vpop.permute.xlu1 %2784 }
 0x43c   :  { %vm2813_vm13 = vcmp.eq.s32.totalorder %v2785_v14, 1  ;;  %v6356_v14 = vsel %vm11572_vm7, 1.0, %v13124_v26 }
 0x43d   :  { %7089 = vset.pattern.permute.xlu1 %v13026_v18  ;;  %vm11512_vm11 = vmand %vm2717_vm15, %vm2813_vm13  ;;  %vm2271_vm13 = vcmp.eq.s32.totalorder %v8756_v17, %v11410_v28  ;;  %vm2495_vm15 = vcmp.eq.s32.totalorder %v8756_v17, %v11427_v39  ;;  %v7907_v39 = vld [vmem:[%s12823_s3] sm:$0xff] }
 0x43e   :  { %2799 = vperm.xlu1 %7089, %v2754_v38   ;;  %v6387_v10 = vsel %vm11512_vm11, 1.0, %v13124_v26  ;;  %vm2591_vm11 = vcmp.eq.s32.totalorder %v11445_v0, 1 }
 0x43f   :  { %vm11588_vm9 = vmand %vm2495_vm15, %vm2591_vm11  ;;  %vm13394_vm15 = vcmp.gt.f32.partialorder %v13393_v32, 0.0 }
 0x440   :  { %v11448_v25 = vpop.permute.xlu1 %2694  ;;  %v3277_v7 = vsel %vm13394_vm15, %v7907_v39, 1.0  ;;  %v6373_v13 = vsel %vm11588_vm9, 1.0, %v13124_v26  ;;  %vm13401_vm9 = vcmp.gt.f32.partialorder %v10729_v30, 0.0  ;;  %vm13405_vm15 = vcmp.gt.f32.partialorder %v11348_v24, 0.0 }
 0x442   :  { %7090 = vset.pattern.permute.xlu1 %v13089_v9 }
 0x443   :  { %2921 = vperm.xlu1 %7090, %v11333_v51  }
 0x445   :  { %v11454_v21 = vpop.permute.xlu1 %2787 }
 0x447   :  { %2924 = vperm.xlu1 %7090, %v11339_v15   ;;  %v2977_v15 = vsel %vm2961_vm2, 1, %v13026_v18  ;;  %vm2493_vm2 = vcmp.eq.s32.totalorder %v8756_v17, %v11420_v27 }
 0x448   :  { %vm11493_vm14 = vmand %vm2493_vm2, %vm2589_vm1  ;;  %vm3036_vm1 = vcmp.eq.s32.totalorder %v3006_v31, 1  ;;  %vm2143_vm2 = vcmp.eq.s32.totalorder %v11406_v57, 1  ;;  %v2652_v57 = vadd.f32 %v6370_v19, %v2428_v8  ;;  %v7910_v8 = vld [vmem:[%s12823_s3 + $0x28] sm:$0xff] }
 0x449   :  { %v6371_v55 = vsel %vm11493_vm14, 1.0, %v13124_v26  ;;  %vm11550_vm10 = vmand %vm2047_vm6, %vm2143_vm2  ;;  %v3282_v60 = vsel %vm13401_vm9, %v7910_v8, 1.0 }
 0x44a   :  { %v2910_v54 = vpop.permute.xlu1 %2909  ;;  %vm11563_vm14 = vmand %vm2271_vm13, %vm2367_vm4  ;;  %v2653_v20 = vadd.f32 %v6371_v55, %v2429_v22  ;;  %v2876_v49 = vadd.f32 %v6386_v62, %v2652_v57  ;;  %vm2719_vm13 = vcmp.eq.s32.totalorder %v8756_v17, %v11448_v25  ;;  %v6341_v25 = vsel %vm11550_vm10, 1.0, %v13124_v26 }
 0x44b   :  { %7091 = vset.pattern.permute.xlu1 %v13026_v18  ;;  %vm2940_vm0 = vcmp.eq.s32.totalorder %v8756_v17, %v2910_v54  ;;  %vm2942_vm10 = vcmp.eq.s32.totalorder %v8756_v17, %v13399_v42  ;;  %v7152_v42 = vld [vmem:[%s12825_s7 + $0x30] sm:$0xff]  }
 0x44c   :  { %3020 = vperm.xlu1 %7091, %v2977_v15   ;;  %vm3052_vm3 = vmand %vm2940_vm0, %vm3036_vm1  ;;  %vm2590_vm0 = vcmp.eq.s32.totalorder %v11433_v48, 1  ;;  %v2877_v27 = vadd.f32 %v6387_v10, %v2653_v20  ;;  %v6357_v48 = vsel %vm11563_vm14, 1.0, %v13124_v26  ;;  %v2430_v15 = vadd.f32 %v6356_v14, %v6340_v50 }
 0x44d   :  { %v6402_v28 = vsel %vm3052_vm3, 1.0, %v13124_v26  ;;  %vm2814_vm3 = vcmp.eq.s32.totalorder %v11454_v21, 1  ;;  %vm11597_vm4 = vmand %vm2494_vm8, %vm2590_vm0  ;;  %v2431_v51 = vadd.f32 %v6357_v48, %v6341_v25  ;;  %vm13400_vm8 = vcmp.gt.f32.partialorder %v10295_v53, 0.0  ;;  %v7911_v53 = vld [vmem:[%s12823_s3 + $0x38] sm:$0xff] }
 0x44e   :  { %v2913_v47 = vpop.permute.xlu1 %2912  ;;  %v3100_v61 = vadd.f32 %v6402_v28, %v2876_v49  ;;  %vm11617_vm0 = vmand %vm2719_vm13, %vm2815_vm5  ;;  %v6372_v21 = vsel %vm11597_vm4, 1.0, %v13124_v26  ;;  %v3280_v11 = vsel %vm13400_vm8, %v7909_v5, 1.0  ;;  %vm13403_vm5 = vcmp.gt.f32.partialorder %v11049_v41, 0.0  ;;  %v7153_v5 = vld [vmem:[%s12825_s7 + $0x28] sm:$0xff]  }
 0x44f   :  { %vm2941_vm1 = vcmp.eq.s32.totalorder %v8756_v17, %v2913_v47  ;;  %v6389_v54 = vsel %vm11617_vm0, 1.0, %v13124_v26  ;;  %v2655_v2 = vadd.f32 %v6373_v13, %v2431_v51  ;;  %v2654_v31 = vadd.f32 %v6372_v21, %v2430_v15 }
 0x450   :  { %7093 = vset.pattern.permute.xlu1 %v13089_v9  ;;  %vm13404_vm4 = vcmp.gt.f32.partialorder %v11086_v56, 0.0  ;;  %vm13408_vm0 = vcmp.gt.f32.partialorder %v13407_v35, 0.0  ;;  %v7156_v35 = vld [vmem:[%s12825_s7 + $0x10] sm:$0xff]  }
 0x451   :  { %2930 = vperm.xlu1 %7093, %v11380_v33   ;;  %v2879_v47 = vadd.f32 %v6389_v54, %v2655_v2  ;;  %v3286_v33 = vsel %vm13403_vm5, %v11049_v41, 1.0  ;;  %v3288_v57 = vsel %vm13404_vm4, %v11086_v56, 1.0  ;;  %v7912_v56 = vld [vmem:[%s12943_s19 + $0x8] sm:$0xff] }
 0x452   :  { %v1829_v28 = vsel %vm13408_vm0, %v7912_v56, 1.0 }
 0x453   :  { %v3009_v37 = vpop.permute.xlu1 %3008 }
 0x454   :  { %vm3037_vm2 = vcmp.eq.s32.totalorder %v3009_v37, 1 }
 0x455   :  { %vm3053_vm6 = vmand %vm2941_vm1, %vm3037_vm2  ;;  %7094 = vset.pattern.permute.xlu1 %v13026_v18  ;;  %vm2718_vm1 = vcmp.eq.s32.totalorder %v8756_v17, %v13395_v58  ;;  %vm3039_vm2 = vcmp.eq.s32.totalorder %v3015_v3, 1  ;;  %v2122_v58 = vpop.permute.xlu0 %2121 }
 0x456   :  { %v6403_v52 = vsel %vm3053_vm6, 1.0, %v13124_v26  ;;  %3023 = vperm.xlu1 %7094, %v2978_v6   ;;  %vm2830_vm11 = vmand %vm2718_vm1, %vm2814_vm3  ;;  %vm13402_vm3 = vcmp.gt.f32.partialorder %v10787_v44, 0.0  ;;  %v3290_v44 = vsel %vm13405_vm15, %v11348_v24, 1.0  ;;  %vm13406_vm1 = vcmp.gt.f32.partialorder %v11385_v34, 0.0  ;;  %v7913_v24 = vld [vmem:[%s12943_s19 + $0x18] sm:$0xff] }
 0x457   :  { %v3101_v12 = vadd.f32 %v6403_v52, %v2877_v27  ;;  %v6388_v63 = vsel %vm2830_vm11, 1.0, %v13124_v26  ;;  %v3284_v62 = vsel %vm13402_vm3, %v7911_v53, 1.0  ;;  %v3292_v41 = vsel %vm13406_vm1, %v11385_v34, 1.0  ;;  %v13409_v27 = vld [vmem:[#allocation5_spill] sm:$0xff] }
 0x458   :  { %v2919_v0 = vpop.permute.xlu1 %2918  ;;  %v2878_v4 = vadd.f32 %v6388_v63, %v2654_v31  ;;  %vm13412_vm11 = vcmp.gt.f32.partialorder %v13411_v36, 0.0 }
 0x459   :  { %vm2943_vm6 = vcmp.eq.s32.totalorder %v8756_v17, %v2919_v0  ;;  %v3112_v29 = vpack.c.bf16 %v3101_v12, %v3100_v61  ;;  %v1833_v52 = vsel %vm13412_vm11, %v7914_v16, 1.0  ;;  %v7915_v61 = vld [vmem:[%s12943_s19 + $0x38] sm:$0xff]  ;;  %v13413_v12 = vld [vmem:[#allocation12_spill] sm:$0xff]  ;;  %v2349_v14 = vpop.permute.xlu0 %2348 }
 0x45a   :  { %3295 = vperm.xlu1 %7094, %v3277_v7   ;;  %vm3055_vm14 = vmand %vm2943_vm6, %vm3039_vm2  ;;  %vm13410_vm2 = vcmp.gt.f32.partialorder %v13409_v27, 0.0  ;;  %vm13414_vm6 = vcmp.gt.f32.partialorder %v13413_v12, 0.0  ;;  %vm2369_vm3 = vcmp.eq.s32.totalorder %v2349_v14, 1 }
 0x45b   :  { %6853 = vmatprep.mubr.bf16.mxu1 %v3112_v29  ;;  %v6405_v1 = vsel %vm3055_vm14, 1.0, %v13124_v26  ;;  %v1831_v34 = vsel %vm13410_vm2, %v7913_v24, 1.0  ;;  %v1835_v39 = vsel %vm13414_vm6, %v7915_v61, 1.0  ;;  %v11720_v29 = vpop.f32.mrf.mxu1 }
 0x45c   :  { %v3103_v40 = vadd.f32 %v6405_v1, %v2879_v47 }
 0x45d   :  { %v3012_v45 = vpop.permute.xlu1 %3011  ;;  %v11718_v0 = vpop.permute.xlu0 %2127 }
 0x45e   :  { %vm3038_vm7 = vcmp.eq.s32.totalorder %v3012_v45, 1  ;;  %3300 = vperm.xlu1 %7094, %v3278_v23   ;;  %v11724_v25 = vpop.f32.mrf.mxu1  ;;  %v7151_v45 = vld [vmem:[%s12825_s7 + $0x38] sm:$0xff]  }
 0x45f   :  { %vm3054_vm13 = vmand %vm2942_vm10, %vm3038_vm7  ;;  %6861 = vmatprep.subr.bf16.mxu0 %v7151_v45  ;;  %vm2144_vm10 = vcmp.eq.s32.totalorder %v2122_v58, 1 }
 0x460   :  { %v6404_v46 = vsel %vm3054_vm13, 1.0, %v13124_v26  ;;  %v11728_v51 = vpop.f32.mrf.mxu1  ;;  %6862 = vmatpush3.bf16.msra.mxu0 %v7151_v45 }
 0x461   :  { %v3102_v19 = vadd.f32 %v6404_v46, %v2878_v4  ;;  %v11654_v55 = vpop.permute.xlu1 %2025  ;;  %v11726_v13 = vpop.permute.xlu0 %2354  ;;  %6863 = vmatprep.subr.bf16.mxu0 %v7152_v42 }
 0x462   :  { %3310 = vperm.xlu1 %7094, %v3280_v11   ;;  %v11732_v23 = vpop.f32.mrf.mxu1  ;;  %vm2048_vm14 = vcmp.eq.s32.totalorder %v8756_v17, %v11654_v55 }
 0x463   :  { %v3113_v22 = vpack.c.bf16 %v3103_v40, %v3102_v19  ;;  %v7154_v40 = vld [vmem:[%s12825_s7 + $0x20] sm:$0xff]   ;;  %vm11769_vm13 = vmand %vm2048_vm14, %vm2144_vm10 }
 0x464   :  { %v11734_v54 = vpop.f32.mrf.mxu1  ;;  %6864 = vmatpush3.bf16.msra.mxu0 %v7152_v42  ;;  %v6342_v24 = vsel %vm11769_vm13, 1.0, %v13124_v26 }
 0x465   :  { %6854 = vmatmul.mubr.bf16.gmra.mxu1 %v3113_v22  ;;  %v11661_v9 = vpop.permute.xlu1 %2028  ;;  %v2570_v15 = vpop.permute.xlu0 %2569  ;;  %6865 = vmatprep.subr.bf16.mxu0 %v7153_v5 }
 0x466   :  { %3320 = vperm.xlu1 %7094, %v3282_v60   ;;  %v11738_v31 = vpop.f32.mrf.mxu1  ;;  %vm2049_vm8 = vcmp.eq.s32.totalorder %v8756_v17, %v11661_v9  ;;  %v13419_v60 = vld [vmem:[#allocation25_spill] sm:$0xff]  ;;  %vm2592_vm2 = vcmp.eq.s32.totalorder %v2570_v15, 1 }
 0x467   :  { %vm2272_vm15 = vcmp.eq.s32.totalorder %v8756_v17, %v13419_v60  ;;  %v7155_v9 = vld [vmem:[%s12825_s7 + $0x18] sm:$0xff]  }
 0x468   :  { %v11748_v47 = vpop.f32.mrf.mxu1  ;;  %6866 = vmatpush3.bf16.msra.mxu0 %v7153_v5 }
 0x469   :  { %v11668_v10 = vpop.permute.xlu1 %2124  ;;  %v11736_v2 = vpop.permute.xlu0 %2578  ;;  %6867 = vmatprep.subr.bf16.mxu0 %v7154_v40 }
 0x46a   :  { %3330 = vperm.xlu1 %7094, %v3284_v62   ;;  %v11753_v11 = vpop.f32.mrf.mxu1  ;;  %vm2145_vm12 = vcmp.eq.s32.totalorder %v11668_v10, 1 }
 0x46b   :  { %vm11776_vm5 = vmand %vm2049_vm8, %vm2145_vm12 }
 0x46c   :  { %v11763_v19 = vpop.f32.mrf.mxu1  ;;  %6868 = vmatpush3.bf16.msra.mxu0 %v7154_v40  ;;  %v6343_v27 = vsel %vm11776_vm5, 1.0, %v13124_v26 }
 0x46d   :  { %v2794_v4 = vpop.permute.xlu0 %2793  ;;  %6869 = vmatprep.subr.bf16.mxu0 %v7155_v9 }
 0x46e   :  { %3340 = vperm.xlu1 %7094, %v3286_v33   ;;  %v11673_v30 = vpop.permute.xlu1 %2252  ;;  %v11790_v10 = vpop.f32.mrf.mxu1 }
 0x46f   :  { %vm2273_vm7 = vcmp.eq.s32.totalorder %v8756_v17, %v11673_v30 }
 0x470   :  { %vm11783_vm1 = vmand %vm2273_vm7, %vm2369_vm3  ;;  %vm2816_vm7 = vcmp.eq.s32.totalorder %v2794_v4, 1  ;;  %6870 = vmatpush3.bf16.msra.mxu0 %v7155_v9  ;;  %v13444_v4 = vld [vmem:[#allocation48_spill] sm:$0xff] }
 0x471   :  { %v11767_v22 = vpop.permute.xlu0 %2802  ;;  %6871 = vmatprep.subr.bf16.mxu0 %v7156_v35 }
 0x472   :  { %3350 = vperm.xlu1 %7094, %v3288_v57  }
 0x473   :  { %v11678_v20 = vpop.permute.xlu1 %2345 }
 0x474   :  { %vm2368_vm9 = vcmp.eq.s32.totalorder %v11678_v20, 1  ;;  %v6359_v20 = vsel %vm11783_vm1, 1.0, %v13124_v26  ;;  %6872 = vmatpush3.bf16.msra.mxu0 %v7156_v35 }
 0x475   :  { %vm2384_vm11 = vmand %vm2272_vm15, %vm2368_vm9  ;;  %v3018_v57 = vpop.permute.xlu0 %3017  ;;  %v2433_v36 = vadd.f32 %v6359_v20, %v6343_v27 }
 0x476   :  { %3360 = vperm.xlu1 %7094, %v3290_v44   ;;  %v6358_v44 = vsel %vm2384_vm11, 1.0, %v13124_v26  ;;  %vm3040_vm1 = vcmp.eq.s32.totalorder %v3018_v57, 1 }
 0x477   :  { %v11683_v37 = vpop.permute.xlu1 %2031 }
 0x478   :  { %vm2050_vm8 = vcmp.eq.s32.totalorder %v8756_v17, %v11683_v37 }
 0x47a   :  { %3370 = vperm.xlu1 %7094, %v3292_v41   ;;  %v13445_v41 = vld [vmem:[#allocation66_spill] sm:$0xff] }
 0x47b   :  { %v11688_v6 = vpop.permute.xlu1 %2034 }
 0x47c   :  { %vm2051_vm13 = vcmp.eq.s32.totalorder %v8756_v17, %v11688_v6 }
 0x47e   :  { %1851 = vperm.xlu1 %7094, %v1829_v28   ;;  %v11819_v28 = vpop.f32.mrf.mxu1 }
 0x47f   :  { %v11695_v49 = vpop.permute.xlu1 %2130 }
 0x482   :  { %1861 = vperm.xlu1 %7094, %v1831_v34  }
 0x484   :  { %v11707_v59 = vpop.permute.xlu1 %2258 }
 0x486   :  { %1871 = vperm.xlu1 %7094, %v1833_v52   ;;  %v2432_v52 = vadd.f32 %v6358_v44, %v6342_v24 }
 0x489   :  { %v11714_v32 = vpop.permute.xlu1 %2351 }
 0x48a   :  { %1881 = vperm.xlu1 %7094, %v1835_v39   ;;  %vm2370_vm5 = vcmp.eq.s32.totalorder %v11714_v32, 1  ;;  %v13434_v39 = vld [vmem:[#allocation26_spill] sm:$0xff]  ;;  %v13439_v32 = vld [vmem:[#allocation36_spill] sm:$0xff] }
 0x48e   :  { %v2474_v7 = vpop.permute.xlu1 %2473 }
 0x48f   :  { %vm2496_vm4 = vcmp.eq.s32.totalorder %v8756_v17, %v2474_v7  ;;  %v11864_v7 = vpop.f32.mrf.mxu1 }
 0x490   :  { %vm11793_vm14 = vmand %vm2496_vm4, %vm2592_vm2  ;;  %vm2147_vm2 = vcmp.eq.s32.totalorder %v11695_v49, 1 }
 0x491   :  { %v6374_v49 = vsel %vm11793_vm14, 1.0, %v13124_v26  ;;  %vm2371_vm14 = vcmp.eq.s32.totalorder %v11726_v13, 1  ;;  %v11887_v13 = vpop.f32.mrf.mxu1 }
 0x492   :  { %v2477_v3 = vpop.permute.xlu1 %2476 }
 0x493   :  { %vm2497_vm12 = vcmp.eq.s32.totalorder %v8756_v17, %v2477_v3  ;;  %v2656_v3 = vadd.f32 %v6374_v49, %v2432_v52  ;;  %v11920_v40 = vpop.f32.mrf.mxu1 }
 0x495   :  { %v11937_v30 = vpop.f32.mrf.mxu1 }
 0x497   :  { %v2573_v48 = vpop.permute.xlu1 %2572  ;;  %v11943_v34 = vpop.f32.mrf.mxu1 }
 0x498   :  { %vm2593_vm0 = vcmp.eq.s32.totalorder %v2573_v48, 1 }
 0x499   :  { %vm11800_vm3 = vmand %vm2497_vm12, %vm2593_vm0  ;;  %vm2146_vm0 = vcmp.eq.s32.totalorder %v11718_v0, 1  ;;  %vm2275_vm12 = vcmp.eq.s32.totalorder %v8756_v17, %v11707_v59  ;;  %v6847_v52 = vpop.f32.mrf.mxu1 }
 0x49a   :  { %v6375_v16 = vsel %vm11800_vm3, 1.0, %v13124_v26  ;;  %vm11869_vm3 = vmand %vm2275_vm12, %vm2371_vm14  ;;  %vm2819_vm14 = vcmp.eq.s32.totalorder %v11767_v22, 1 }
 0x49b   :  { %v2657_v48 = vadd.f32 %v6375_v16, %v2433_v36  ;;  %v6361_v5 = vsel %vm11869_vm3, 1.0, %v13124_v26 }
 0x49c   :  { %v11716_v38 = vpop.permute.xlu1 %2482 }
 0x4a1   :  { %v11722_v50 = vpop.permute.xlu1 %2575 }
 0x4a6   :  { %v2698_v21 = vpop.permute.xlu1 %2697 }
 0x4a7   :  { %vm2720_vm6 = vcmp.eq.s32.totalorder %v8756_v17, %v2698_v21 }
 0x4a8   :  { %vm11808_vm9 = vmand %vm2720_vm6, %vm2816_vm7 }
 0x4a9   :  { %vm11832_vm6 = vmand %vm2050_vm8, %vm2146_vm0  ;;  %v6390_v12 = vsel %vm11808_vm9, 1.0, %v13124_v26  ;;  %vm2274_vm8 = vcmp.eq.s32.totalorder %v8756_v17, %v13434_v39  ;;  %vm2499_vm9 = vcmp.eq.s32.totalorder %v8756_v17, %v11716_v38  ;;  %v3027_v38 = vpop.permute.xlu0 %3026 }
 0x4aa   :  { %v11730_v43 = vpop.permute.xlu1 %2700  ;;  %vm11854_vm7 = vmand %vm2051_vm13, %vm2147_vm2  ;;  %vm2595_vm2 = vcmp.eq.s32.totalorder %v11736_v2, 1  ;;  %v2880_v21 = vadd.f32 %v6390_v12, %v2656_v3  ;;  %vm2498_vm13 = vcmp.eq.s32.totalorder %v8756_v17, %v13439_v32  ;;  %v6344_v55 = vsel %vm11832_vm6, 1.0, %v13124_v26 }
 0x4ab   :  { %vm2721_vm4 = vcmp.eq.s32.totalorder %v8756_v17, %v11730_v43  ;;  %v6345_v8 = vsel %vm11854_vm7, 1.0, %v13124_v26  ;;  %vm2946_vm6 = vcmp.eq.s32.totalorder %v8756_v17, %v13445_v41 }
 0x4ac   :  { %v2435_v53 = vadd.f32 %v6361_v5, %v6345_v8 }
 0x4ad   :  { %v3306_v12 = vpop.permute.xlu0 %3305 }
 0x4af   :  { %v2797_v63 = vpop.permute.xlu1 %2796 }
 0x4b0   :  { %vm2817_vm10 = vcmp.eq.s32.totalorder %v2797_v63, 1 }
 0x4b1   :  { %vm2833_vm11 = vmand %vm2721_vm4, %vm2817_vm10  ;;  %v3316_v3 = vpop.permute.xlu0 %3315 }
 0x4b2   :  { %v6391_v6 = vsel %vm2833_vm11, 1.0, %v13124_v26  ;;  %vm11877_vm4 = vmand %vm2274_vm8, %vm2370_vm5 }
 0x4b3   :  { %v2881_v15 = vadd.f32 %v6391_v6, %v2657_v48  ;;  %vm11896_vm5 = vmand %vm2499_vm9, %vm2595_vm2  ;;  %vm2722_vm9 = vcmp.eq.s32.totalorder %v8756_v17, %v13444_v4 }
 0x4b4   :  { %v11746_v1 = vpop.permute.xlu1 %2706 }
 0x4b5   :  { %vm2723_vm11 = vcmp.eq.s32.totalorder %v8756_v17, %v11746_v1  ;;  %v6377_v1 = vsel %vm11896_vm5, 1.0, %v13124_v26 }
 0x4b6   :  { %v2659_v57 = vadd.f32 %v6377_v1, %v2435_v53  ;;  %v7917_v53 = vld [vmem:[%s12943_s19 + $0x50] sm:$0xff] }
 0x4b9   :  { %v11757_v46 = vpop.permute.xlu1 %2799 }
 0x4be   :  { %v2922_v62 = vpop.permute.xlu1 %2921 }
 0x4bf   :  { %vm2944_vm15 = vcmp.eq.s32.totalorder %v8756_v17, %v2922_v62 }
 0x4c0   :  { %vm11849_vm10 = vmand %vm2944_vm15, %vm3040_vm1  ;;  %vm2594_vm15 = vcmp.eq.s32.totalorder %v11722_v50, 1 }
 0x4c1   :  { %v6406_v59 = vsel %vm11849_vm10, 1.0, %v13124_v26  ;;  %vm2818_vm10 = vcmp.eq.s32.totalorder %v11757_v46, 1  ;;  %vm11905_vm8 = vmand %vm2498_vm13, %vm2594_vm15  ;;  %v6360_v46 = vsel %vm11877_vm4, 1.0, %v13124_v26 }
 0x4c2   :  { %v2925_v56 = vpop.permute.xlu1 %2924  ;;  %v3104_v45 = vadd.f32 %v6406_v59, %v2880_v21  ;;  %vm2835_vm15 = vmand %vm2723_vm11, %vm2819_vm14  ;;  %v6376_v60 = vsel %vm11905_vm8, 1.0, %v13124_v26  ;;  %v2434_v62 = vadd.f32 %v6360_v46, %v6344_v55 }
 0x4c3   :  { %vm2945_vm0 = vcmp.eq.s32.totalorder %v8756_v17, %v2925_v56  ;;  %v6393_v9 = vsel %vm2835_vm15, 1.0, %v13124_v26  ;;  %vm3469_vm15 = vcmask 523264  }
 0x4c4   :  { %v2658_v20 = vadd.f32 %v6376_v60, %v2434_v62  ;;  %v2883_v35 = vadd.f32 %v6393_v9, %v2659_v57  ;;  %v13448_v62 = vld [vmem:[#allocation63_spill] sm:$0xff]  ;;  %v13450_v57 = vld [vmem:[#allocation49_spill] sm:$0xff] }
 0x4c5   :  { %vm13451_vm13 = vcmp.gt.f32.partialorder %v13450_v57, 0.0 }
 0x4c7   :  { %v3021_v14 = vpop.permute.xlu1 %3020 }
 0x4c8   :  { %vm3041_vm1 = vcmp.eq.s32.totalorder %v3021_v14, 1  ;;  %v7158_v14 = vld [vmem:[%s12825_s7] sm:$0xff]  }
 0x4c9   :  { %vm3057_vm12 = vmand %vm2945_vm0, %vm3041_vm1  ;;  %vm3043_vm0 = vcmp.eq.s32.totalorder %v3027_v38, 1 }
 0x4ca   :  { %v6407_v63 = vsel %vm3057_vm12, 1.0, %v13124_v26  ;;  %vm2834_vm1 = vmand %vm2722_vm9, %vm2818_vm10  ;;  %vm13449_vm12 = vcmp.gt.f32.partialorder %v13448_v62, 0.0 }
 0x4cb   :  { %v3105_v42 = vadd.f32 %v6407_v63, %v2881_v15  ;;  %v6392_v33 = vsel %vm2834_vm1, 1.0, %v13124_v26  ;;  %v3326_v63 = vpop.permute.xlu0 %3325  ;;  %v1838_v9 = vsel %vm13449_vm12, %v7917_v53, 1.0  ;;  %vm6173_vm1 = vcmask 785408  }
 0x4cc   :  { %v2931_v50 = vpop.permute.xlu1 %2930  ;;  %v2882_v24 = vadd.f32 %v6392_v33, %v2658_v20  ;;  %v7918_v33 = vld [vmem:[%s12943_s19 + $0x48] sm:$0xff] }
 0x4cd   :  { %vm2947_vm2 = vcmp.eq.s32.totalorder %v8756_v17, %v2931_v50  ;;  %v3114_v22 = vpack.c.bf16 %v3105_v42, %v3104_v45  ;;  %v3214_v17 = vpop.f32.mrf.mxu1  ;;  %v7916_v50 = vld [vmem:[%s12943_s19 + $0x40] sm:$0xff]  ;;  %v1837_v20 = vsel %vm13451_vm13, %v7918_v33, 1.0 }
 0x4ce   :  { %vm3059_vm3 = vmand %vm2947_vm2, %vm3043_vm0  ;;  %vm4284_vm0 = vcmask 261120  }
 0x4cf   :  { %6857 = vmatprep.mubr.bf16.mxu1 %v3114_v22  ;;  %v6409_v56 = vsel %vm3059_vm3, 1.0, %v13124_v26  ;;  %v6848_v39 = vpop.f32.mrf.mxu1  ;;  %v13446_v22 = vld [vmem:[#allocation54_spill] sm:$0xff] }
 0x4d0   :  { %v3107_v49 = vadd.f32 %v6409_v56, %v2883_v35  ;;  %vm13447_vm11 = vcmp.gt.f32.partialorder %v13446_v22, 0.0 }
 0x4d1   :  { %v3024_v44 = vpop.permute.xlu1 %3023  ;;  %v3217_v48 = vpop.f32.mrf.mxu1  ;;  %v1836_v55 = vsel %vm13447_vm11, %v7916_v50, 1.0 }
 0x4d2   :  { %vm3042_vm7 = vcmp.eq.s32.totalorder %v3024_v44, 1 }
 0x4d3   :  { %vm3058_vm4 = vmand %vm2946_vm6, %vm3042_vm7  ;;  %v6851_v59 = vpop.f32.mrf.mxu1 }
 0x4d4   :  { %v6408_v27 = vsel %vm3058_vm4, 1.0, %v13124_v26  ;;  %v7157_v26 = vld [vmem:[%s12825_s7 + $0x8] sm:$0xff]  }
 0x4d5   :  { %v3106_v16 = vadd.f32 %v6408_v27, %v2882_v24  ;;  %v3296_v36 = vpop.permute.xlu1 %3295  ;;  %6873 = vmatprep.subr.bf16.mxu0 %v7157_v26  ;;  %v3230_v2 = vpop.f32.mrf.mxu1  ;;  %v7919_v24 = vld [vmem:[%s12943_s19 + $0x58] sm:$0xff]  ;;  %v13452_v27 = vld [vmem:[#allocation64_spill] sm:$0xff] }
 0x4d6   :  { %7287 = vrcp.f32 %v3296_v36  ;;  %6874 = vmatpush3.bf16.msra.mxu0 %v7157_v26  ;;  %vm13453_vm5 = vcmp.gt.f32.partialorder %v13452_v27, 0.0  ;;  %v13456_v26 = vld [vmem:[#allocation78_spill] sm:$0xff] }
 0x4d7   :  { %v3115_v37 = vpack.c.bf16 %v3107_v49, %v3106_v16  ;;  %6875 = vmatprep.subr.bf16.mxu0 %v7158_v14  ;;  %v6852_v46 = vpop.f32.mrf.mxu1  ;;  %v1839_v49 = vsel %vm13453_vm5, %v7919_v24, 1.0  ;;  %vm13457_vm14 = vcmp.gt.f32.partialorder %v13456_v26, 0.0 }
 0x4d9   :  { %6858 = vmatmul.mubr.bf16.gmra.mxu1 %v3115_v37  ;;  %v3301_v61 = vpop.permute.xlu1 %3300  ;;  %v3233_v60 = vpop.f32.mrf.mxu1 }
 0x4da   :  { %7289 = vrcp.f32 %v3301_v61  ;;  %6876 = vmatpush3.bf16.msra.mxu0 %v7158_v14  ;;  %v7920_v61 = vld [vmem:[%s12943_s19 + $0x60] sm:$0xff] }
 0x4db   :  { %7291 = vrcp.f32 %v3306_v12 }
 0x4dd   :  { %v3311_v6 = vpop.permute.xlu1 %3310 }
 0x4de   :  { %7293 = vrcp.f32 %v3311_v6 }
 0x4e1   :  { %v3321_v58 = vpop.permute.xlu1 %3320 }
 0x4e2   :  { %7295 = vrcp.f32 %v3321_v58 }
 0x4e3   :  { %v7288_v0 = vpop.eup %7287  ;;  %7297 = vrcp.f32 %v3316_v3  ;;  %v7922_v3 = vld [vmem:[%s12943_s19 + $0x68] sm:$0xff] }
 0x4e4   :  { %v3374_v32 = vmul.f32 %v7288_v0, %v3214_v17  ;;  %v13454_v17 = vld [vmem:[#allocation75_spill] sm:$0xff]  ;;  %v7923_v0 = vld [vmem:[%s12943_s19 + $0x78] sm:$0xff] }
 0x4e5   :  { %v3331_v21 = vpop.permute.xlu1 %3330  ;;  %vm13455_vm10 = vcmp.gt.f32.partialorder %v13454_v17, 0.0 }
 0x4e6   :  { %7299 = vrcp.f32 %v3331_v21  ;;  %v1840_v12 = vsel %vm13455_vm10, %v7920_v61, 1.0 }
 0x4e7   :  { %v7290_v15 = vpop.eup %7289  ;;  %7301 = vrcp.f32 %v3326_v63 }
 0x4e8   :  { %v3376_v43 = vmul.f32 %v7290_v15, %v3217_v48  ;;  %v7292_v45 = vpop.eup %7291  ;;  %v13458_v48 = vld [vmem:[#allocation77_spill] sm:$0xff] }
 0x4e9   :  { %v3378_v38 = vmul.f32 %v7292_v45, %v6847_v52  ;;  %vm13459_vm8 = vcmp.gt.f32.partialorder %v13458_v48, 0.0  ;;  %v3341_v15 = vpop.permute.xlu1 %3340 }
 0x4ea   :  { %v7095_v42 = vpack.i.bf16 %v3376_v43, %v3374_v32  ;;  %v1841_v14 = vsel %vm13459_vm8, %v7922_v3, 1.0  ;;  %v3336_v32 = vpop.permute.xlu0 %3335 }
 0x4eb   :  { %v7294_v4 = vpop.eup %7293 }
 0x4ec   :  { %7096 = vrot.lane.b32.xlu0 %v7095_v42, %s7932_s1  ;;  %v3380_v5 = vmul.f32 %v7294_v4, %v6848_v39  ;;  %v7921_v39 = vld [vmem:[%s12943_s19 + $0x70] sm:$0xff] }
 0x4ed   :  { %v1842_v58 = vsel %vm13457_vm14, %v7921_v39, 1.0  ;;  %v3351_v43 = vpop.permute.xlu1 %3350 }
 0x4ee   :  { %v7100_v8 = vpack.i.bf16 %v3380_v5, %v3378_v38  ;;  %v3346_v63 = vpop.permute.xlu0 %3345 }
 0x4ef   :  { %v7296_v1 = vpop.eup %7295  ;;  %7303 = vrcp.f32 %v3346_v63 }
 0x4f0   :  { %1886 = vperm.xlu0 %7092, %v1836_v55   ;;  %7101 = vrot.lane.b32.xlu1 %v7100_v8, %s7932_s1  ;;  %v7298_v44 = vpop.eup %7297  ;;  %v3384_v41 = vmul.f32 %v7296_v1, %v3233_v60  ;;  %7305 = vrcp.f32 %v3351_v43 }
 0x4f1   :  { %v3382_v35 = vmul.f32 %v7298_v44, %v3230_v2  ;;  %7307 = vrcp.f32 %v3336_v32 }
 0x4f2   :  { %7309 = vrcp.f32 %v3341_v15  ;;  %v11997_v62 = vpop.permute.xlu0 %3355 }
 0x4f3   :  { %v7300_v56 = vpop.eup %7299  ;;  %v7105_v16 = vpack.i.bf16 %v3384_v41, %v3382_v35 }
 0x4f4   :  { %1896 = vperm.xlu0 %7092, %v1838_v9   ;;  %1891 = vperm.xlu1 %7094, %v1837_v20   ;;  %v3388_v36 = vmul.f32 %v7300_v56, %v6852_v46  ;;  %v7302_v52 = vpop.eup %7301  ;;  %v11999_v9 = vpop.permute.xlu1 %3360 }
 0x4f5   :  { %v3386_v37 = vmul.f32 %v7302_v52, %v6851_v59  ;;  %v13460_v59 = vld [vmem:[#allocation79_spill] sm:$0xff] }
 0x4f6   :  { %vm13461_vm9 = vcmp.gt.f32.partialorder %v13460_v59, 0.0  ;;  %v12001_v33 = vpop.permute.xlu0 %3365 }
 0x4f7   :  { %v7110_v6 = vpack.i.bf16 %v3388_v36, %v3386_v37  ;;  %v1843_v21 = vsel %vm13461_vm9, %v7923_v0, 1.0 }
 0x4f8   :  { %1901 = vperm.xlu1 %7094, %v1839_v49   ;;  %7106 = vrot.lane.b32.xlu0 %v7105_v16, %s7932_s1  ;;  %v12003_v57 = vpop.permute.xlu1 %3370 }
 0x4fa   :  { %v1847_v20 = vpop.permute.xlu0 %1846 }
 0x4fb   :  { %7311 = vrcp.f32 %v1847_v20 }
 0x4fc   :  { %1906 = vperm.xlu0 %7092, %v1840_v12   ;;  %7111 = vrot.lane.b32.xlu1 %v7110_v6, %s7932_s1  ;;  %v7304_v42 = vpop.eup %7303  ;;  %v1852_v44 = vpop.permute.xlu1 %1851 }
 0x4fd   :  { %v7306_v4 = vpop.eup %7305  ;;  %7313 = vrcp.f32 %v1852_v44 }
 0x4fe   :  { %v7308_v5 = vpop.eup %7307  ;;  %v1857_v41 = vpop.permute.xlu0 %1856 }
 0x4ff   :  { %v7310_v22 = vpop.eup %7309  ;;  %7315 = vrcp.f32 %v1857_v41 }
 0x500   :  { %1916 = vperm.xlu0 %7092, %v1842_v58   ;;  %1911 = vperm.xlu1 %7094, %v1841_v14   ;;  %v1862_v56 = vpop.permute.xlu1 %1861 }
 0x501   :  { %7317 = vrcp.f32 %v1862_v56 }
 0x502   :  { %v1867_v35 = vpop.permute.xlu0 %1866 }
 0x503   :  { %7319 = vrcp.f32 %v1867_v35 }
 0x504   :  { %1921 = vperm.xlu1 %7094, %v1843_v21   ;;  %v1872_v24 = vpop.permute.xlu1 %1871 }
 0x505   :  { %7321 = vrcp.f32 %v1872_v24 }
 0x506   :  { %v1877_v27 = vpop.permute.xlu0 %1876 }
 0x507   :  { %7323 = vrcp.f32 %v1877_v27 }
 0x508   :  { %v7312_v49 = vpop.eup %7311  ;;  %v1882_v36 = vpop.permute.xlu1 %1881 }
 0x509   :  { %v1925_v12 = vmul.f32 %v7312_v49, %v11724_v25  ;;  %7325 = vrcp.f32 %v1882_v36 }
 0x50a   :  { %v7314_v16 = vpop.eup %7313  ;;  %7327 = vrcp.f32 %v11997_v62 }
 0x50b   :  { %v1927_v6 = vmul.f32 %v7314_v16, %v11732_v23  ;;  %7329 = vrcp.f32 %v12001_v33 }
 0x50c   :  { %v7316_v37 = vpop.eup %7315  ;;  %7331 = vrcp.f32 %v11999_v9 }
 0x50d   :  { %v1929_v59 = vmul.f32 %v7316_v37, %v11720_v29  ;;  %7333 = vrcp.f32 %v12003_v57  ;;  %v7159_v57 = vld [vmem:[%s12826_s9 + $0x18] sm:$0xff]  }
 0x50e   :  { %v7318_v39 = vpop.eup %7317  ;;  %6893 = vmatprep.subr.bf16.mxu1 %v7159_v57 }
 0x50f   :  { %v1931_v21 = vmul.f32 %v7318_v39, %v11728_v51  ;;  %6894 = vmatpush3.bf16.msra.mxu1 %v7159_v57 }
 0x510   :  { %v7320_v43 = vpop.eup %7319 }
 0x525   :  { %v6855_v2 = vpop.f32.mrf.mxu1 }
 0x526   :  { %v3394_v46 = vmul.f32 %v7304_v42, %v6855_v2 }
 0x527   :  { %v3246_v45 = vpop.f32.mrf.mxu1 }
 0x528   :  { %v3390_v8 = vmul.f32 %v7308_v5, %v3246_v45  ;;  %v7322_v45 = vpop.eup %7321  ;;  %v1933_v5 = vmul.f32 %v7320_v43, %v11738_v31 }
 0x529   :  { %v6856_v38 = vpop.f32.mrf.mxu1  ;;  %v7324_v29 = vpop.eup %7323 }
 0x52a   :  { %v3396_v50 = vmul.f32 %v7306_v4, %v6856_v38  ;;  %v1937_v20 = vmul.f32 %v7324_v29, %v11734_v54 }
 0x52b   :  { %v3249_v55 = vpop.f32.mrf.mxu1 }
 0x52c   :  { %v7120_v1 = vpack.i.bf16 %v3396_v50, %v3394_v46  ;;  %v3392_v60 = vmul.f32 %v7310_v22, %v3249_v55  ;;  %v1935_v46 = vmul.f32 %v7322_v45, %v11753_v11  ;;  %v7326_v50 = vpop.eup %7325 }
 0x52d   :  { %v1939_v44 = vmul.f32 %v7326_v50, %v11748_v47  ;;  %v7328_v11 = vpop.eup %7327 }
 0x52e   :  { %v7115_v53 = vpack.i.bf16 %v3392_v60, %v3390_v8  ;;  %7121 = vrot.lane.b32.xlu1 %v7120_v1, %s7932_s1  ;;  %v7330_v24 = vpop.eup %7329 }
 0x52f   :  { %v7332_v27 = vpop.eup %7331 }
 0x530   :  { %7116 = vrot.lane.b32.xlu0 %v7115_v53, %s7932_s1  ;;  %v7334_v16 = vpop.eup %7333 }
 0x55e   :  { %v7097_v52 = vpop.permute.xlu0 %7096 }
 0x55f   :  { %v7099_v61 = vunpack.i.h.bf16 %v7097_v52  ;;  %v7098_v17 = vunpack.i.l.bf16 %v7097_v52 }
 0x561   :  { %v3470_v26 = vsel %vm3469_vm15, %v1925_v12, %v7098_v17  ;;  %v3471_v58 = vsel %vm3469_vm15, %v1927_v6, %v7099_v61 }
 0x562   :  { %v7102_v3 = vpop.permute.xlu1 %7101  ;;  %v3486_v48 = vpack.c.bf16 %v3471_v58, %v3470_v26 }
 0x563   :  { %v7104_v14 = vunpack.i.h.bf16 %v7102_v3  ;;  %v7103_v0 = vunpack.i.l.bf16 %v7102_v3 }
 0x564   :  { %6877 = vmatprep.mubr.bf16.mxu0 %v3486_v48 }
 0x565   :  { %v3472_v25 = vsel %vm3469_vm15, %v1929_v59, %v7103_v0  ;;  %v3473_v23 = vsel %vm3469_vm15, %v1931_v21, %v7104_v14 }
 0x566   :  { %v3487_v15 = vpack.c.bf16 %v3473_v23, %v3472_v25 }
 0x568   :  { %6878 = vmatmul.mubr.bf16.vlgmr.msra.gmra.mxu0 %v3487_v15 }
 0x56b   :  { %v1887_v32 = vpop.permute.xlu0 %1886 }
 0x56c   :  { %7335 = vrcp.f32 %v1887_v32 }
 0x56f   :  { %v1897_v63 = vpop.permute.xlu0 %1896  ;;  %v1892_v2 = vpop.permute.xlu1 %1891 }
 0x570   :  { %7337 = vrcp.f32 %v1897_v63 }
 0x573   :  { %v7107_v42 = vpop.permute.xlu0 %7106  ;;  %v1902_v4 = vpop.permute.xlu1 %1901 }
 0x574   :  { %v7109_v38 = vunpack.i.h.bf16 %v7107_v42  ;;  %v7108_v51 = vunpack.i.l.bf16 %v7107_v42  ;;  %7339 = vrcp.f32 %v1902_v4 }
 0x575   :  { %7341 = vrcp.f32 %v1892_v2 }
 0x576   :  { %v3474_v22 = vsel %vm3469_vm15, %v1933_v5, %v7108_v51  ;;  %v3475_v55 = vsel %vm3469_vm15, %v1935_v46, %v7109_v38 }
 0x577   :  { %v7112_v8 = vpop.permute.xlu1 %7111  ;;  %v3488_v1 = vpack.c.bf16 %v3475_v55, %v3474_v22  ;;  %v1907_v47 = vpop.permute.xlu0 %1906 }
 0x578   :  { %v7114_v60 = vunpack.i.h.bf16 %v7112_v8  ;;  %v7113_v53 = vunpack.i.l.bf16 %v7112_v8  ;;  %7343 = vrcp.f32 %v1907_v47 }
 0x579   :  { %6881 = vmatprep.mubr.bf16.mxu0 %v3488_v1  ;;  %v7336_v62 = vpop.eup %7335 }
 0x57a   :  { %v3476_v41 = vsel %vm3469_vm15, %v1937_v20, %v7113_v53  ;;  %v3477_v31 = vsel %vm3469_vm15, %v1939_v44, %v7114_v60  ;;  %v1941_v32 = vmul.f32 %v7336_v62, %v11790_v10  ;;  %v7161_v10 = vld [vmem:[%s12826_s9 + $0x8] sm:$0xff]  }
 0x57b   :  { %v3489_v56 = vpack.c.bf16 %v3477_v31, %v3476_v41  ;;  %v1912_v54 = vpop.permute.xlu1 %1911  ;;  %v1917_v37 = vpop.permute.xlu0 %1916 }
 0x57c   :  { %7345 = vrcp.f32 %v1917_v37 }
 0x57d   :  { %6882 = vmatmul.mubr.bf16.gmra.mxu0 %v3489_v56  ;;  %v7338_v33 = vpop.eup %7337 }
 0x57e   :  { %v1945_v21 = vmul.f32 %v7338_v33, %v11763_v19 }
 0x57f   :  { %v1922_v36 = vpop.permute.xlu1 %1921 }
 0x580   :  { %7347 = vrcp.f32 %v1922_v36 }
 0x581   :  { %v7340_v17 = vpop.eup %7339  ;;  %7349 = vrcp.f32 %v1912_v54 }
 0x582   :  { %v7342_v6 = vpop.eup %7341  ;;  %v1947_v25 = vmul.f32 %v7340_v17, %v11819_v28  ;;  %v7160_v28 = vld [vmem:[%s12826_s9 + $0x10] sm:$0xff]  }
 0x583   :  { %v1943_v43 = vmul.f32 %v7342_v6, %v11864_v7  ;;  %6895 = vmatprep.subr.bf16.mxu1 %v7160_v28  ;;  %v7162_v7 = vld [vmem:[%s12826_s9] sm:$0xff]  }
 0x584   :  { %6896 = vmatpush3.bf16.msra.mxu1 %v7160_v28 }
 0x585   :  { %6897 = vmatprep.subr.bf16.mxu1 %v7161_v10  ;;  %v7344_v29 = vpop.eup %7343 }
 0x586   :  { %v1949_v60 = vmul.f32 %v7344_v29, %v11920_v40 }
 0x588   :  { %6898 = vmatpush3.bf16.msra.mxu1 %v7161_v10  ;;  %v12071_v10 = vld [vmem:[%s12828_s10] ss:$0 sm:$0xff]  ;;  %s7933_s10 = smov 96  }
 0x589   :  { %6899 = vmatprep.subr.bf16.mxu1 %v7162_v7  ;;  %v7346_v38 = vpop.eup %7345 }
 0x58a   :  { %v1953_v55 = vmul.f32 %v7346_v38, %v11887_v13 }
 0x58c   :  { %6900 = vmatpush3.bf16.msra.mxu1 %v7162_v7 }
 0x58d   :  { %v7348_v51 = vpop.eup %7347 }
 0x58e   :  { %v7350_v5 = vpop.eup %7349  ;;  %v1955_v8 = vmul.f32 %v7348_v51, %v11937_v30 }
 0x58f   :  { %v1951_v53 = vmul.f32 %v7350_v5, %v11943_v34  ;;  %v6418_v34 = vld [vmem:[%s12827_s8] ss:$0 sm:$0xff] }
 0x599   :  { %v6859_v35 = vpop.f32.mrf.mxu1 }
 0x59a   :  { %v3402_v9 = vmul.f32 %v7330_v24, %v6859_v35 }
 0x59b   :  { %v3262_v49 = vpop.f32.mrf.mxu1 }
 0x59c   :  { %v3398_v39 = vmul.f32 %v7328_v11, %v3262_v49 }
 0x59d   :  { %v6860_v52 = vpop.f32.mrf.mxu1 }
 0x59e   :  { %v3404_v61 = vmul.f32 %v7334_v16, %v6860_v52 }
 0x59f   :  { %v3265_v12 = vpop.f32.mrf.mxu1 }
 0x5a0   :  { %v7130_v26 = vpack.i.bf16 %v3404_v61, %v3402_v9  ;;  %v3400_v58 = vmul.f32 %v7332_v27, %v3265_v12  ;;  %v7122_v3 = vpop.permute.xlu1 %7121 }
 0x5a1   :  { %v7124_v48 = vunpack.i.h.bf16 %v7122_v3  ;;  %v7123_v14 = vunpack.i.l.bf16 %v7122_v3 }
 0x5a2   :  { %v7125_v0 = vpack.i.bf16 %v3400_v58, %v3398_v39  ;;  %v7117_v59 = vpop.permute.xlu0 %7116  ;;  %7131 = vrot.lane.b32.xlu1 %v7130_v26, %s7932_s1 }
 0x5a3   :  { %v7119_v23 = vunpack.i.h.bf16 %v7117_v59  ;;  %v7118_v15 = vunpack.i.l.bf16 %v7117_v59  ;;  %v3480_v63 = vsel %vm3469_vm15, %v1945_v21, %v7123_v14  ;;  %v3481_v2 = vsel %vm3469_vm15, %v1947_v25, %v7124_v48 }
 0x5a4   :  { %7126 = vrot.lane.b32.xlu0 %v7125_v0, %s7932_s1  ;;  %v3491_v19 = vpack.c.bf16 %v3481_v2, %v3480_v63 }
 0x5a5   :  { %v3478_v45 = vsel %vm3469_vm15, %v1941_v32, %v7118_v15  ;;  %v3479_v42 = vsel %vm3469_vm15, %v1943_v43, %v7119_v23 }
 0x5a6   :  { %v3490_v4 = vpack.c.bf16 %v3479_v42, %v3478_v45 }
 0x5a8   :  { %6885 = vmatprep.mubr.bf16.mxu0 %v3490_v4 }
 0x5a9   :  { %6886 = vmatmul.mubr.bf16.gmra.mxu0 %v3491_v19 }
 0x614   :  { %v7132_v46 = vpop.permute.xlu1 %7131 }
 0x615   :  { %v7134_v50 = vunpack.i.h.bf16 %v7132_v46  ;;  %v7133_v22 = vunpack.i.l.bf16 %v7132_v46 }
 0x616   :  { %v7127_v1 = vpop.permute.xlu0 %7126 }
 0x617   :  { %v7129_v20 = vunpack.i.h.bf16 %v7127_v1  ;;  %v7128_v44 = vunpack.i.l.bf16 %v7127_v1  ;;  %v3484_v41 = vsel %vm3469_vm15, %v1953_v55, %v7133_v22  ;;  %v3485_v31 = vsel %vm3469_vm15, %v1955_v8, %v7134_v50 }
 0x618   :  { %v3493_v56 = vpack.c.bf16 %v3485_v31, %v3484_v41 }
 0x619   :  { %v3482_v54 = vsel %vm3469_vm15, %v1949_v60, %v7128_v44  ;;  %v3483_v47 = vsel %vm3469_vm15, %v1951_v53, %v7129_v20 }
 0x61a   :  { %v3492_v11 = vpack.c.bf16 %v3483_v47, %v3482_v54 }
 0x61c   :  { %6889 = vmatprep.mubr.bf16.mxu0 %v3492_v11 }
 0x61d   :  { %6890 = vmatmul.mubr.bf16.gmra.mxu0 %v3493_v56 }
 0x61e   :  { %4341 = vmatprep.mubr.bf16.mxu0 %v13026_v18 }
 0x628   :  { %v6879_v13 = vpop.f32.mrf.mxu0 }
 0x629   :  { %v3608_v16 = vadd.f32 %v6879_v13, %v6418_v34 }
 0x62a   :  { %v3599_v40 = vpop.f32.mrf.mxu0 }
 0x62b   :  { %v3600_v27 = vadd.f32 %v6418_v34, %v3599_v40 }
 0x62c   :  { %v6880_v30 = vpop.f32.mrf.mxu0 }
 0x62d   :  { %v3611_v35 = vadd.f32 %v6880_v30, %v6418_v34 }
 0x62e   :  { %v3602_v24 = vpop.f32.mrf.mxu0 }
 0x62f   :  { %v3603_v49 = vadd.f32 %v6418_v34, %v3602_v24  ;;  %v3663_v62 = vpack.c.bf16 %v3611_v35, %v3608_v16 }
 0x631   :  { %v3662_v36 = vpack.c.bf16 %v3603_v49, %v3600_v27 }
 0x633   :  { %6901 = vmatprep.mubr.msk.bf16.mxu1 %vm3469_vm15, %v3662_v36 }
 0x634   :  { %6902 = vmatmul.mubr.msk.bf16.vlgmr.msra.gmra.mxu1 %vm3469_vm15, %v3663_v62 }
 0x63d   :  { %v6883_v52 = vpop.f32.mrf.mxu0 }
 0x63e   :  { %v3624_v12 = vadd.f32 %v6883_v52, %v6418_v34 }
 0x63f   :  { %v3615_v33 = vpop.f32.mrf.mxu0 }
 0x640   :  { %v3616_v57 = vadd.f32 %v6418_v34, %v3615_v33 }
 0x641   :  { %v6884_v37 = vpop.f32.mrf.mxu0 }
 0x642   :  { %v3627_v9 = vadd.f32 %v6884_v37, %v6418_v34 }
 0x643   :  { %v3618_v61 = vpop.f32.mrf.mxu0 }
 0x644   :  { %v3619_v17 = vadd.f32 %v6418_v34, %v3618_v61  ;;  %v3665_v39 = vpack.c.bf16 %v3627_v9, %v3624_v12 }
 0x646   :  { %v3664_v6 = vpack.c.bf16 %v3619_v17, %v3616_v57 }
 0x648   :  { %6905 = vmatprep.mubr.msk.bf16.mxu1 %vm3469_vm15, %v3664_v6 }
 0x649   :  { %6906 = vmatmul.mubr.msk.bf16.gmra.mxu1 %vm3469_vm15, %v3665_v39 }
 0x669   :  { %v6887_v26 = vpop.f32.mrf.mxu0 }
 0x66a   :  { %v3640_v21 = vadd.f32 %v6887_v26, %v6418_v34 }
 0x66b   :  { %v3631_v58 = vpop.f32.mrf.mxu0 }
 0x66c   :  { %v3632_v0 = vadd.f32 %v6418_v34, %v3631_v58 }
 0x66d   :  { %v6888_v3 = vpop.f32.mrf.mxu0 }
 0x66e   :  { %v3643_v48 = vadd.f32 %v6888_v3, %v6418_v34 }
 0x66f   :  { %v3634_v14 = vpop.f32.mrf.mxu0 }
 0x670   :  { %v3635_v59 = vadd.f32 %v6418_v34, %v3634_v14  ;;  %v3667_v23 = vpack.c.bf16 %v3643_v48, %v3640_v21 }
 0x672   :  { %v3666_v25 = vpack.c.bf16 %v3635_v59, %v3632_v0 }
 0x674   :  { %6909 = vmatprep.mubr.msk.bf16.mxu1 %vm3469_vm15, %v3666_v25 }
 0x675   :  { %6910 = vmatmul.mubr.msk.bf16.gmra.mxu1 %vm3469_vm15, %v3667_v23 }
 0x6dd   :  { %v6891_v15 = vpop.f32.mrf.mxu0 }
 0x6de   :  { %v3656_v4 = vadd.f32 %v6891_v15, %v6418_v34 }
 0x6df   :  { %v3647_v32 = vpop.f32.mrf.mxu0 }
 0x6e0   :  { %v3648_v45 = vadd.f32 %v6418_v34, %v3647_v32 }
 0x6e1   :  { %v6892_v43 = vpop.f32.mrf.mxu0 }
 0x6e2   :  { %v3659_v63 = vadd.f32 %v6892_v43, %v6418_v34 }
 0x6e3   :  { %v3650_v2 = vpop.f32.mrf.mxu0 }
 0x6e4   :  { %v3651_v42 = vadd.f32 %v6418_v34, %v3650_v2  ;;  %v3669_v28 = vpack.c.bf16 %v3659_v63, %v3656_v4 }
 0x6e6   :  { %v3668_v19 = vpack.c.bf16 %v3651_v42, %v3648_v45 }
 0x6e8   :  { %6913 = vmatprep.mubr.msk.bf16.mxu1 %vm3469_vm15, %v3668_v19 }
 0x6e9   :  { %6914 = vmatmul.mubr.msk.bf16.gmra.mxu1 %vm3469_vm15, %v3669_v28 }
 0x6ea   :  { %4454 = vmatprep.mubr.bf16.mxu1 %v13026_v18 }
 0x6f4   :  { %v6903_v7 = vpop.f32.mrf.mxu1 }
 0x6f5   :  { %v3776_v29 = vadd.f32 %v6903_v7, %v12071_v10 }
 0x6f6   :  { %v3767_v38 = vpop.f32.mrf.mxu1 }
 0x6f7   :  { %v6442_v51 = vmul.f32 -1.442695, %v3776_v29  ;;  %v3768_v5 = vadd.f32 %v12071_v10, %v3767_v38 }
 0x6f8   :  { %v6904_v46 = vpop.f32.mrf.mxu1 }
 0x6f9   :  { %7351 = vpow2.f32 %v6442_v51  ;;  %v6440_v50 = vmul.f32 -1.442695, %v3768_v5  ;;  %v3779_v22 = vadd.f32 %v6904_v46, %v12071_v10 }
 0x6fa   :  { %v3770_v55 = vpop.f32.mrf.mxu1 }
 0x6fb   :  { %7353 = vpow2.f32 %v6440_v50  ;;  %v6443_v8 = vmul.f32 -1.442695, %v3779_v22  ;;  %v3771_v1 = vadd.f32 %v12071_v10, %v3770_v55 }
 0x6fd   :  { %v6441_v60 = vmul.f32 -1.442695, %v3771_v1  ;;  %7355 = vpow2.f32 %v6443_v8 }
 0x6ff   :  { %7357 = vpow2.f32 %v6441_v60 }
 0x706   :  { %v7352_v53 = vpop.eup %7351 }
 0x707   :  { %v3880_v44 = vadd.f32 1.0, %v7352_v53 }
 0x708   :  { %v7354_v20 = vpop.eup %7353 }
 0x709   :  { %v3878_v41 = vadd.f32 1.0, %v7354_v20  ;;  %v6907_v31 = vpop.f32.mrf.mxu1 }
 0x70a   :  { %v3792_v56 = vadd.f32 %v6907_v31, %v12071_v10  ;;  %v7356_v54 = vpop.eup %7355 }
 0x70b   :  { %7359 = vrcp.f32 %v3878_v41  ;;  %v3783_v47 = vpop.f32.mrf.mxu1  ;;  %v3881_v35 = vadd.f32 1.0, %v7356_v54 }
 0x70c   :  { %v7358_v11 = vpop.eup %7357  ;;  %v6446_v13 = vmul.f32 -1.442695, %v3792_v56  ;;  %v3784_v40 = vadd.f32 %v12071_v10, %v3783_v47  ;;  %7361 = vrcp.f32 %v3880_v44 }
 0x70d   :  { %v3879_v30 = vadd.f32 1.0, %v7358_v11  ;;  %v6908_v34 = vpop.f32.mrf.mxu1 }
 0x70e   :  { %7363 = vpow2.f32 %v6446_v13  ;;  %v6444_v24 = vmul.f32 -1.442695, %v3784_v40  ;;  %v3795_v27 = vadd.f32 %v6908_v34, %v12071_v10 }
 0x70f   :  { %7365 = vrcp.f32 %v3879_v30  ;;  %v3786_v49 = vpop.f32.mrf.mxu1 }
 0x710   :  { %7367 = vpow2.f32 %v6444_v24  ;;  %v6447_v16 = vmul.f32 -1.442695, %v3795_v27  ;;  %v3787_v36 = vadd.f32 %v12071_v10, %v3786_v49 }
 0x711   :  { %7369 = vrcp.f32 %v3881_v35 }
 0x712   :  { %v6445_v62 = vmul.f32 -1.442695, %v3787_v36  ;;  %7371 = vpow2.f32 %v6447_v16 }
 0x714   :  { %7373 = vpow2.f32 %v6445_v62 }
 0x718   :  { %v12081_v52 = vpop.eup %7359 }
 0x719   :  { %3942 = vrot.lane.b32.xlu0 %v12081_v52, %s7933_s10  ;;  %v12085_v33 = vpop.eup %7361 }
 0x71b   :  { %v7364_v37 = vpop.eup %7363 }
 0x71c   :  { %v12087_v9 = vpop.eup %7365  ;;  %v3884_v12 = vadd.f32 1.0, %v7364_v37 }
 0x71d   :  { %v7368_v61 = vpop.eup %7367  ;;  %3944 = vrot.lane.b32.xlu1 %v12087_v9, %s7933_s10  ;;  %3946 = vrot.lane.b32.xlu0 %v12085_v33, %s7933_s10 }
 0x71e   :  { %v3882_v57 = vadd.f32 1.0, %v7368_v61  ;;  %v12093_v17 = vpop.eup %7369 }
 0x71f   :  { %v7372_v6 = vpop.eup %7371 }
 0x720   :  { %7375 = vrcp.f32 %v3882_v57  ;;  %v3885_v58 = vadd.f32 1.0, %v7372_v6  ;;  %v4086_v6 = vld [vmem:[%s12829_s6] sm:$0xff] }
 0x721   :  { %v7374_v39 = vpop.eup %7373  ;;  %3948 = vrot.lane.b32.xlu1 %v12093_v17, %s7933_s10  ;;  %7377 = vrcp.f32 %v3884_v12 }
 0x722   :  { %v3883_v26 = vadd.f32 1.0, %v7374_v39 }
 0x724   :  { %7379 = vrcp.f32 %v3883_v26 }
 0x725   :  { %7381 = vrcp.f32 %v3885_v58  ;;  %v4087_v58 = vld [vmem:[%s12829_s6 + $0x8] sm:$0xff] }
 0x72d   :  { %v12097_v3 = vpop.eup %7375 }
 0x72e   :  { %3950 = vrot.lane.b32.xlu0 %v12097_v3, %s7933_s10  ;;  %v12101_v48 = vpop.eup %7377 }
 0x731   :  { %v12103_v14 = vpop.eup %7379 }
 0x732   :  { %3952 = vrot.lane.b32.xlu1 %v12103_v14, %s7933_s10  ;;  %3954 = vrot.lane.b32.xlu0 %v12101_v48, %s7933_s10  ;;  %v12109_v0 = vpop.eup %7381 }
 0x735   :  { %v6911_v59 = vpop.f32.mrf.mxu1 }
 0x736   :  { %v3808_v21 = vadd.f32 %v6911_v59, %v12071_v10  ;;  %3956 = vrot.lane.b32.xlu1 %v12109_v0, %s7933_s10 }
 0x737   :  { %v3799_v25 = vpop.f32.mrf.mxu1 }
 0x738   :  { %v6450_v23 = vmul.f32 -1.442695, %v3808_v21  ;;  %v3800_v15 = vadd.f32 %v12071_v10, %v3799_v25  ;;  %v4088_v25 = vld [vmem:[%s12829_s6 + $0x10] sm:$0xff] }
 0x739   :  { %v6912_v32 = vpop.f32.mrf.mxu1 }
 0x73a   :  { %v6448_v43 = vmul.f32 -1.442695, %v3800_v15  ;;  %v3811_v63 = vadd.f32 %v6912_v32, %v12071_v10  ;;  %7383 = vpow2.f32 %v6450_v23  ;;  %v4089_v32 = vld [vmem:[%s12829_s6 + $0x18] sm:$0xff] }
 0x73b   :  { %v3802_v2 = vpop.f32.mrf.mxu1 }
 0x73c   :  { %7385 = vpow2.f32 %v6448_v43  ;;  %v6451_v45 = vmul.f32 -1.442695, %v3811_v63  ;;  %v3803_v42 = vadd.f32 %v12071_v10, %v3802_v2  ;;  %v4090_v2 = vld [vmem:[%s12829_s6 + $0x20] sm:$0xff] }
 0x73e   :  { %v6449_v4 = vmul.f32 -1.442695, %v3803_v42  ;;  %7387 = vpow2.f32 %v6451_v45 }
 0x740   :  { %7389 = vpow2.f32 %v6449_v4  ;;  %v4091_v4 = vld [vmem:[%s12829_s6 + $0x28] sm:$0xff] }
 0x747   :  { %v7384_v19 = vpop.eup %7383 }
 0x748   :  { %v3888_v29 = vadd.f32 1.0, %v7384_v19 }
 0x749   :  { %v7386_v28 = vpop.eup %7385 }
 0x74a   :  { %v3886_v7 = vadd.f32 1.0, %v7386_v28 }
 0x74b   :  { %v7388_v38 = vpop.eup %7387 }
 0x74c   :  { %7391 = vrcp.f32 %v3886_v7  ;;  %v3889_v46 = vadd.f32 1.0, %v7388_v38  ;;  %v4092_v7 = vld [vmem:[%s12829_s6 + $0x30] sm:$0xff] }
 0x74d   :  { %v7390_v51 = vpop.eup %7389  ;;  %7393 = vrcp.f32 %v3888_v29 }
 0x74e   :  { %v3887_v5 = vadd.f32 1.0, %v7390_v51  ;;  %v4093_v51 = vld [vmem:[%s12829_s6 + $0x38] sm:$0xff] }
 0x750   :  { %7395 = vrcp.f32 %v3887_v5 }
 0x751   :  { %7397 = vrcp.f32 %v3889_v46 }
 0x759   :  { %v12117_v50 = vpop.eup %7391 }
 0x75a   :  { %3958 = vrot.lane.b32.xlu0 %v12117_v50, %s7933_s10  ;;  %v12121_v22 = vpop.eup %7393 }
 0x75d   :  { %v12123_v55 = vpop.eup %7395 }
 0x75e   :  { %3960 = vrot.lane.b32.xlu1 %v12123_v55, %s7933_s10  ;;  %3962 = vrot.lane.b32.xlu0 %v12121_v22, %s7933_s10  ;;  %v12129_v8 = vpop.eup %7397 }
 0x762   :  { %3964 = vrot.lane.b32.xlu1 %v12129_v8, %s7933_s10 }
 0x78b   :  { %v3943_v37 = vpop.permute.xlu0 %3942 }
 0x78c   :  { %v3990_v61 = vsub.f32 %v12081_v52, %v3943_v37  ;;  %v7172_v37 = vld [vmem:[%s12830_s11 + $0x8] ss:$16 sps:$4 sm:$0xff]  }
 0x78f   :  { %v3945_v12 = vpop.permute.xlu1 %3944  ;;  %v3947_v26 = vpop.permute.xlu0 %3946 }
 0x790   :  { %v3991_v39 = vsub.f32 %v12087_v9, %v3945_v12  ;;  %v3992_v59 = vsub.f32 %v12085_v33, %v3947_v26  ;;  %v4099_v26 = vld [vmem:[%s12829_s6 + $0x68] sm:$0xff] }
 0x793   :  { %v3949_v21 = vpop.permute.xlu1 %3948 }
 0x794   :  { %v3993_v23 = vsub.f32 %v12093_v17, %v3949_v21 }
 0x7a0   :  { %v3951_v15 = vpop.permute.xlu0 %3950 }
 0x7a1   :  { %v3994_v43 = vsub.f32 %v12097_v3, %v3951_v15 }
 0x7a4   :  { %v3953_v63 = vpop.permute.xlu1 %3952  ;;  %v3955_v42 = vpop.permute.xlu0 %3954 }
 0x7a5   :  { %v3995_v45 = vsub.f32 %v12103_v14, %v3953_v63  ;;  %v3996_v19 = vsub.f32 %v12101_v48, %v3955_v42 }
 0x7a8   :  { %v3957_v28 = vpop.permute.xlu1 %3956 }
 0x7a9   :  { %v6915_v1 = vpop.f32.mrf.mxu1  ;;  %v3997_v29 = vsub.f32 %v12109_v0, %v3957_v28 }
 0x7aa   :  { %v3824_v60 = vadd.f32 %v6915_v1, %v12071_v10  ;;  %v4094_v1 = vld [vmem:[%s12829_s6 + $0x40] sm:$0xff] }
 0x7ab   :  { %v3815_v53 = vpop.f32.mrf.mxu1 }
 0x7ac   :  { %v6454_v20 = vmul.f32 -1.442695, %v3824_v60  ;;  %v3816_v44 = vadd.f32 %v12071_v10, %v3815_v53 }
 0x7ad   :  { %v6916_v41 = vpop.f32.mrf.mxu1 }
 0x7ae   :  { %v6452_v31 = vmul.f32 -1.442695, %v3816_v44  ;;  %v3827_v56 = vadd.f32 %v6916_v41, %v12071_v10  ;;  %7399 = vpow2.f32 %v6454_v20  ;;  %v4095_v20 = vld [vmem:[%s12829_s6 + $0x48] sm:$0xff] }
 0x7af   :  { %v3818_v54 = vpop.f32.mrf.mxu1 }
 0x7b0   :  { %7401 = vpow2.f32 %v6452_v31  ;;  %v6455_v47 = vmul.f32 -1.442695, %v3827_v56  ;;  %v3819_v11 = vadd.f32 %v12071_v10, %v3818_v54  ;;  %v4096_v31 = vld [vmem:[%s12829_s6 + $0x50] sm:$0xff]  ;;  %v4097_v54 = vld [vmem:[%s12829_s6 + $0x58] sm:$0xff] }
 0x7b2   :  { %v6453_v13 = vmul.f32 -1.442695, %v3819_v11  ;;  %7403 = vpow2.f32 %v6455_v47  ;;  %v7165_v47 = vld [vmem:[%s12830_s11 + $0x24] ss:$16 sps:$4 sm:$0xff]  }
 0x7b3   :  { %4321 = vmatprep.subr.bf16.mxu0 %v7165_v47 }
 0x7b4   :  { %7405 = vpow2.f32 %v6453_v13  ;;  %v7163_v13 = vld [vmem:[%s12830_s11 + $0x20] ss:$16 sps:$4 sm:$0xff]  }
 0x7b5   :  { %4322 = vmatpush1.bf16.msra.mxu0 %v7163_v13 }
 0x7bb   :  { %v7400_v40 = vpop.eup %7399 }
 0x7bc   :  { %v3892_v35 = vadd.f32 1.0, %v7400_v40 }
 0x7bd   :  { %v7402_v30 = vpop.eup %7401 }
 0x7be   :  { %v3890_v34 = vadd.f32 1.0, %v7402_v30  ;;  %v7166_v30 = vld [vmem:[%s12830_s11 + $0x28] ss:$16 sps:$4 sm:$0xff]  }
 0x7bf   :  { %v7404_v24 = vpop.eup %7403 }
 0x7c0   :  { %7407 = vrcp.f32 %v3890_v34  ;;  %v3893_v16 = vadd.f32 1.0, %v7404_v24  ;;  %v7168_v34 = vld [vmem:[%s12830_s11 + $0x2c] ss:$16 sps:$4 sm:$0xff]   ;;  %v7171_v24 = vld [vmem:[%s12830_s11 + $0x4] ss:$16 sps:$4 sm:$0xff]  }
 0x7c1   :  { %v7406_v27 = vpop.eup %7405  ;;  %7409 = vrcp.f32 %v3892_v35  ;;  %v7169_v35 = vld [vmem:[%s12830_s11] ss:$16 sps:$4 sm:$0xff]   ;;  %4434 = vmatprep.subr.bf16.mxu1 %v7168_v34  ;;  %4323 = vmatprep.subr.bf16.mxu0 %v7171_v24 }
 0x7c2   :  { %v3891_v49 = vadd.f32 1.0, %v7406_v27  ;;  %4435 = vmatpush1.bf16.msra.mxu1 %v7166_v30  ;;  %4324 = vmatpush1.bf16.msra.mxu0 %v7169_v35 }
 0x7c4   :  { %7411 = vrcp.f32 %v3891_v49 }
 0x7c5   :  { %7413 = vrcp.f32 %v3893_v16  ;;  %v4098_v16 = vld [vmem:[%s12829_s6 + $0x60] sm:$0xff] }
 0x7cc   :  { %v3959_v38 = vpop.permute.xlu0 %3958 }
 0x7cd   :  { %v12137_v36 = vpop.eup %7407  ;;  %v3998_v5 = vsub.f32 %v12117_v50, %v3959_v38 }
 0x7ce   :  { %3966 = vrot.lane.b32.xlu0 %v12137_v36, %s7933_s10  ;;  %v12141_v10 = vpop.eup %7409 }
 0x7d0   :  { %v3961_v46 = vpop.permute.xlu1 %3960  ;;  %v3963_v53 = vpop.permute.xlu0 %3962 }
 0x7d1   :  { %v12143_v62 = vpop.eup %7411  ;;  %v3999_v60 = vsub.f32 %v12123_v55, %v3961_v46  ;;  %v4000_v44 = vsub.f32 %v12121_v22, %v3963_v53 }
 0x7d2   :  { %3968 = vrot.lane.b32.xlu1 %v12143_v62, %s7933_s10  ;;  %3970 = vrot.lane.b32.xlu0 %v12141_v10, %s7933_s10  ;;  %v12150_v57 = vpop.eup %7413 }
 0x7d4   :  { %v3965_v41 = vpop.permute.xlu1 %3964 }
 0x7d5   :  { %v4001_v56 = vsub.f32 %v12129_v8, %v3965_v41 }
 0x7d6   :  { %3972 = vrot.lane.b32.xlu1 %v12150_v57, %s7933_s10  ;;  %4022 = vrot.lane.b32.xlu0 %v3990_v61, %s7932_s1  ;;  %v7174_v61 = vld [vmem:[%s12830_s11 + $0xc] ss:$16 sps:$4 sm:$0xff]  }
 0x7d7   :  { %4436 = vmatprep.subr.bf16.mxu1 %v7174_v61 }
 0x7d8   :  { %4437 = vmatpush1.bf16.msra.mxu1 %v7172_v37 }
 0x7da   :  { %4024 = vrot.lane.b32.xlu1 %v3991_v39, %s7932_s1  ;;  %4118 = vrot.lane.b32.xlu0 %v4086_v6, %s7932_s1 }
 0x7de   :  { %4120 = vrot.lane.b32.xlu1 %v4087_v58, %s7932_s1  ;;  %4026 = vrot.lane.b32.xlu0 %v3992_v59, %s7932_s1 }
 0x7e2   :  { %4028 = vrot.lane.b32.xlu1 %v3993_v23, %s7932_s1  ;;  %4122 = vrot.lane.b32.xlu0 %v4088_v25, %s7932_s1  ;;  %v4100_v25 = vld [vmem:[%s12829_s6 + $0x70] sm:$0xff] }
 0x7e6   :  { %4124 = vrot.lane.b32.xlu1 %v4089_v32, %s7932_s1  ;;  %4030 = vrot.lane.b32.xlu0 %v3994_v43, %s7932_s1 }
 0x7ea   :  { %4032 = vrot.lane.b32.xlu1 %v3995_v45, %s7932_s1  ;;  %4126 = vrot.lane.b32.xlu0 %v4090_v2, %s7932_s1  ;;  %v4101_v2 = vld [vmem:[%s12829_s6 + $0x78] sm:$0xff] }
 0x7ee   :  { %4128 = vrot.lane.b32.xlu1 %v4091_v4, %s7932_s1  ;;  %4034 = vrot.lane.b32.xlu0 %v3996_v19, %s7932_s1 }
 0x7f2   :  { %4036 = vrot.lane.b32.xlu1 %v3997_v29, %s7932_s1  ;;  %4130 = vrot.lane.b32.xlu0 %v4092_v7, %s7932_s1 }
 0x7f6   :  { %4132 = vrot.lane.b32.xlu1 %v4093_v51, %s7932_s1  ;;  %4038 = vrot.lane.b32.xlu0 %v3998_v5, %s7932_s1 }
 0x7fa   :  { %4040 = vrot.lane.b32.xlu1 %v3999_v60, %s7932_s1  ;;  %4134 = vrot.lane.b32.xlu0 %v4094_v1, %s7932_s1 }
 0x7fe   :  { %4136 = vrot.lane.b32.xlu1 %v4095_v20, %s7932_s1  ;;  %4042 = vrot.lane.b32.xlu0 %v4000_v44, %s7932_s1 }
 0x802   :  { %4044 = vrot.lane.b32.xlu1 %v4001_v56, %s7932_s1  ;;  %4138 = vrot.lane.b32.xlu0 %v4096_v31, %s7932_s1 }
 0x806   :  { %4140 = vrot.lane.b32.xlu1 %v4097_v54, %s7932_s1 }
 0x840   :  { %v3967_v11 = vpop.permute.xlu0 %3966 }
 0x841   :  { %v4002_v40 = vsub.f32 %v12137_v36, %v3967_v11 }
 0x843   :  { %4046 = vrot.lane.b32.xlu0 %v4002_v40, %s7932_s1 }
 0x844   :  { %v3969_v27 = vpop.permute.xlu1 %3968  ;;  %v3971_v49 = vpop.permute.xlu0 %3970 }
 0x845   :  { %v4003_v12 = vsub.f32 %v12143_v62, %v3969_v27  ;;  %v4004_v58 = vsub.f32 %v12141_v10, %v3971_v49 }
 0x847   :  { %4048 = vrot.lane.b32.xlu1 %v4003_v12, %s7932_s1  ;;  %4142 = vrot.lane.b32.xlu0 %v4098_v16, %s7932_s1 }
 0x848   :  { %v3973_v6 = vpop.permute.xlu1 %3972  ;;  %v4023_v39 = vpop.permute.xlu0 %4022 }
 0x849   :  { %v4005_v23 = vsub.f32 %v12150_v57, %v3973_v6  ;;  %v4070_v15 = vmul.f32 %v12081_v52, %v4023_v39 }
 0x84b   :  { %4144 = vrot.lane.b32.xlu1 %v4099_v26, %s7932_s1  ;;  %4050 = vrot.lane.b32.xlu0 %v4004_v58, %s7932_s1 }
 0x84c   :  { %v4025_v59 = vpop.permute.xlu1 %4024  ;;  %v4119_v21 = vpop.permute.xlu0 %4118 }
 0x84d   :  { %v4071_v32 = vmul.f32 %v12087_v9, %v4025_v59  ;;  %v4166_v45 = vmul.f32 %v4119_v21, %v4070_v15 }
 0x84f   :  { %4052 = vrot.lane.b32.xlu1 %v4005_v23, %s7932_s1  ;;  %4146 = vrot.lane.b32.xlu0 %v4100_v25, %s7932_s1 }
 0x850   :  { %v4121_v43 = vpop.permute.xlu1 %4120  ;;  %v4027_v63 = vpop.permute.xlu0 %4026 }
 0x851   :  { %v4167_v42 = vmul.f32 %v4121_v43, %v4071_v32  ;;  %v4072_v7 = vmul.f32 %v12085_v33, %v4027_v63 }
 0x853   :  { %v4182_v4 = vpack.c.bf16 %v4167_v42, %v4166_v45  ;;  %4148 = vrot.lane.b32.xlu1 %v4101_v2, %s7932_s1 }
 0x854   :  { %v4029_v19 = vpop.permute.xlu1 %4028  ;;  %v4123_v28 = vpop.permute.xlu0 %4122 }
 0x855   :  { %4228 = vrot.lane.b32.xlu0 %v4182_v4, %s7932_s1  ;;  %v4073_v29 = vmul.f32 %v12093_v17, %v4029_v19  ;;  %v4168_v5 = vmul.f32 %v4123_v28, %v4072_v7 }
 0x858   :  { %v4125_v38 = vpop.permute.xlu1 %4124  ;;  %v4031_v51 = vpop.permute.xlu0 %4030 }
 0x859   :  { %v4169_v46 = vmul.f32 %v4125_v38, %v4073_v29  ;;  %v4074_v20 = vmul.f32 %v12097_v3, %v4031_v51 }
 0x85b   :  { %v4183_v1 = vpack.c.bf16 %v4169_v46, %v4168_v5  ;;  %v7177_v5 = vld [vmem:[%s12831_s13 + $0x74] ss:$8 sps:$4 sm:$0xff]  }
 0x85c   :  { %v4033_v60 = vpop.permute.xlu1 %4032  ;;  %v4127_v53 = vpop.permute.xlu0 %4126  ;;  %5347 = vmatprep.subr.bf16.mxu0 %v7177_v5  ;;  %v7225_v5 = vld [vmem:[%s12831_s13 + $0xf4] ss:$8 sps:$4 sm:$0xff]  }
 0x85d   :  { %4230 = vrot.lane.b32.xlu1 %v4183_v1, %s7932_s1  ;;  %v4075_v44 = vmul.f32 %v12103_v14, %v4033_v60  ;;  %v4170_v56 = vmul.f32 %v4127_v53, %v4074_v20  ;;  %v7180_v1 = vld [vmem:[%s12831_s13 + $0x174] ss:$8 sps:$4 sm:$0xff]  }
 0x85e   :  { %5460 = vmatprep.subr.bf16.mxu1 %v7180_v1  ;;  %v7223_v1 = vld [vmem:[%s12831_s13 + $0xf0] ss:$8 sps:$4 sm:$0xff]  }
 0x860   :  { %v4129_v41 = vpop.permute.xlu1 %4128  ;;  %v4035_v31 = vpop.permute.xlu0 %4034 }
 0x861   :  { %v4171_v54 = vmul.f32 %v4129_v41, %v4075_v44  ;;  %v4076_v40 = vmul.f32 %v12101_v48, %v4035_v31  ;;  %v7175_v31 = vld [vmem:[%s12831_s13 + $0x70] ss:$8 sps:$4 sm:$0xff]  }
 0x863   :  { %v4184_v47 = vpack.c.bf16 %v4171_v54, %v4170_v56 }
 0x864   :  { %v4037_v11 = vpop.permute.xlu1 %4036  ;;  %v4131_v13 = vpop.permute.xlu0 %4130 }
 0x865   :  { %4232 = vrot.lane.b32.xlu0 %v4184_v47, %s7932_s1  ;;  %v4077_v30 = vmul.f32 %v12109_v0, %v4037_v11  ;;  %v4172_v24 = vmul.f32 %v4131_v13, %v4076_v40  ;;  %v7178_v47 = vld [vmem:[%s12831_s13 + $0x170] ss:$8 sps:$4 sm:$0xff]   ;;  %v7183_v13 = vld [vmem:[%s12831_s13 + $0x64] ss:$8 sps:$4 sm:$0xff]  }
 0x868   :  { %v4133_v34 = vpop.permute.xlu1 %4132  ;;  %v4039_v35 = vpop.permute.xlu0 %4038 }
 0x869   :  { %v4173_v27 = vmul.f32 %v4133_v34, %v4077_v30  ;;  %v4078_v61 = vmul.f32 %v12117_v50, %v4039_v35  ;;  %v7186_v30 = vld [vmem:[%s12831_s13 + $0x164] ss:$8 sps:$4 sm:$0xff]   ;;  %v7181_v34 = vld [vmem:[%s12831_s13 + $0x60] ss:$8 sps:$4 sm:$0xff]  }
 0x86a   :  { %v7184_v35 = vld [vmem:[%s12831_s13 + $0x160] ss:$8 sps:$4 sm:$0xff]  }
 0x86b   :  { %v4185_v49 = vpack.c.bf16 %v4173_v27, %v4172_v24  ;;  %v7189_v24 = vld [vmem:[%s12831_s13 + $0x54] ss:$8 sps:$4 sm:$0xff]   ;;  %v7187_v27 = vld [vmem:[%s12831_s13 + $0x50] ss:$8 sps:$4 sm:$0xff]  }
 0x86c   :  { %v4041_v16 = vpop.permute.xlu1 %4040  ;;  %v4135_v37 = vpop.permute.xlu0 %4134 }
 0x86d   :  { %4234 = vrot.lane.b32.xlu1 %v4185_v49, %s7932_s1  ;;  %v4079_v12 = vmul.f32 %v12123_v55, %v4041_v16  ;;  %v4174_v26 = vmul.f32 %v4135_v37, %v4078_v61  ;;  %v7192_v49 = vld [vmem:[%s12831_s13 + $0x154] ss:$8 sps:$4 sm:$0xff]   ;;  %v7190_v16 = vld [vmem:[%s12831_s13 + $0x150] ss:$8 sps:$4 sm:$0xff]   ;;  %v7195_v37 = vld [vmem:[%s12831_s13 + $0x44] ss:$8 sps:$4 sm:$0xff]  }
 0x86e   :  { %v7198_v61 = vld [vmem:[%s12831_s13 + $0x144] ss:$8 sps:$4 sm:$0xff]  }
 0x870   :  { %v4137_v6 = vpop.permute.xlu1 %4136  ;;  %v4043_v39 = vpop.permute.xlu0 %4042 }
 0x871   :  { %v4175_v58 = vmul.f32 %v4137_v6, %v4079_v12  ;;  %v4080_v23 = vmul.f32 %v12121_v22, %v4043_v39  ;;  %v7193_v6 = vld [vmem:[%s12831_s13 + $0x40] ss:$8 sps:$4 sm:$0xff]  }
 0x872   :  { %v7196_v39 = vld [vmem:[%s12831_s13 + $0x140] ss:$8 sps:$4 sm:$0xff]  }
 0x873   :  { %v4186_v59 = vpack.c.bf16 %v4175_v58, %v4174_v26  ;;  %v7201_v26 = vld [vmem:[%s12831_s13 + $0x34] ss:$8 sps:$4 sm:$0xff]   ;;  %v7199_v58 = vld [vmem:[%s12831_s13 + $0x30] ss:$8 sps:$4 sm:$0xff]  }
 0x874   :  { %v4045_v21 = vpop.permute.xlu1 %4044  ;;  %v4139_v25 = vpop.permute.xlu0 %4138 }
 0x875   :  { %4236 = vrot.lane.b32.xlu0 %v4186_v59, %s7932_s1  ;;  %v4081_v15 = vmul.f32 %v12129_v8, %v4045_v21  ;;  %v4176_v43 = vmul.f32 %v4139_v25, %v4080_v23  ;;  %v7204_v59 = vld [vmem:[%s12831_s13 + $0x134] ss:$8 sps:$4 sm:$0xff]   ;;  %v7202_v21 = vld [vmem:[%s12831_s13 + $0x130] ss:$8 sps:$4 sm:$0xff]  }
 0x878   :  { %v4141_v32 = vpop.permute.xlu1 %4140 }
 0x879   :  { %v4177_v63 = vmul.f32 %v4141_v32, %v4081_v15 }
 0x87b   :  { %v4187_v2 = vpack.c.bf16 %v4177_v63, %v4176_v43  ;;  %v7207_v43 = vld [vmem:[%s12831_s13 + $0x24] ss:$8 sps:$4 sm:$0xff]  }
 0x87c   :  { %v7210_v63 = vld [vmem:[%s12831_s13 + $0x124] ss:$8 sps:$4 sm:$0xff]  }
 0x87d   :  { %4238 = vrot.lane.b32.xlu1 %v4187_v2, %s7932_s1  ;;  %v7205_v2 = vld [vmem:[%s12831_s13 + $0x20] ss:$8 sps:$4 sm:$0xff]  }
 0x8b5   :  { %v4047_v45 = vpop.permute.xlu0 %4046 }
 0x8b6   :  { %v4082_v19 = vmul.f32 %v12137_v36, %v4047_v45  ;;  %v7208_v45 = vld [vmem:[%s12831_s13 + $0x120] ss:$8 sps:$4 sm:$0xff]  }
 0x8b9   :  { %v4049_v42 = vpop.permute.xlu1 %4048  ;;  %v4143_v4 = vpop.permute.xlu0 %4142 }
 0x8ba   :  { %v4083_v28 = vmul.f32 %v12143_v62, %v4049_v42  ;;  %v4178_v38 = vmul.f32 %v4143_v4, %v4082_v19  ;;  %v7213_v42 = vld [vmem:[%s12831_s13 + $0x14] ss:$8 sps:$4 sm:$0xff]   ;;  %v7211_v19 = vld [vmem:[%s12831_s13 + $0x10] ss:$8 sps:$4 sm:$0xff]  }
 0x8bb   :  { %v7216_v4 = vld [vmem:[%s12831_s13 + $0x114] ss:$8 sps:$4 sm:$0xff]  }
 0x8bd   :  { %v4145_v7 = vpop.permute.xlu1 %4144  ;;  %v4051_v29 = vpop.permute.xlu0 %4050 }
 0x8be   :  { %v4179_v51 = vmul.f32 %v4145_v7, %v4083_v28  ;;  %v4084_v20 = vmul.f32 %v12141_v10, %v4051_v29  ;;  %v7214_v28 = vld [vmem:[%s12831_s13 + $0x110] ss:$8 sps:$4 sm:$0xff]   ;;  %v7219_v7 = vld [vmem:[%s12831_s13 + $0x4] ss:$8 sps:$4 sm:$0xff]  }
 0x8bf   :  { %v7222_v29 = vld [vmem:[%s12831_s13 + $0x104] ss:$8 sps:$4 sm:$0xff]  }
 0x8c0   :  { %v4188_v46 = vpack.c.bf16 %v4179_v51, %v4178_v38  ;;  %v7217_v38 = vld [vmem:[%s12831_s13] ss:$8 sps:$4 sm:$0xff]  }
 0x8c1   :  { %v4053_v60 = vpop.permute.xlu1 %4052  ;;  %v4147_v53 = vpop.permute.xlu0 %4146  ;;  %v7220_v51 = vld [vmem:[%s12831_s13 + $0x100] ss:$8 sps:$4 sm:$0xff]  }
 0x8c2   :  { %4240 = vrot.lane.b32.xlu0 %v4188_v46, %s7932_s1  ;;  %v4085_v44 = vmul.f32 %v12150_v57, %v4053_v60  ;;  %v4180_v56 = vmul.f32 %v4147_v53, %v4084_v20  ;;  %v7228_v46 = vld [vmem:[%s12831_s13 + $0x1f4] ss:$8 sps:$4 sm:$0xff]   ;;  %v7226_v60 = vld [vmem:[%s12831_s13 + $0x1f0] ss:$8 sps:$4 sm:$0xff]   ;;  %v7231_v53 = vld [vmem:[%s12831_s13 + $0xe4] ss:$8 sps:$4 sm:$0xff]  }
 0x8c3   :  { %v7234_v20 = vld [vmem:[%s12831_s13 + $0x1e4] ss:$8 sps:$4 sm:$0xff]  }
 0x8c5   :  { %v4149_v41 = vpop.permute.xlu1 %4148 }
 0x8c6   :  { %v4181_v54 = vmul.f32 %v4149_v41, %v4085_v44  ;;  %v7229_v44 = vld [vmem:[%s12831_s13 + $0xe0] ss:$8 sps:$4 sm:$0xff]  }
 0x8c7   :  { %v4229_v11 = vpop.permute.xlu0 %4228  ;;  %v7232_v41 = vld [vmem:[%s12831_s13 + $0x1e0] ss:$8 sps:$4 sm:$0xff]  }
 0x8c8   :  { %v4189_v40 = vpack.c.bf16 %v4181_v54, %v4180_v56  ;;  %6464 = vmatmul.mubr.msk.bf16.vlgmr.msra.gmra.mxu0 %vm4284_vm0, %v4229_v11  ;;  %6472 = vmatmul.mubr.msk.bf16.vlgmr.msra.gmra.mxu1 %vm4284_vm0, %v4229_v11  ;;  %v7240_v56 = vld [vmem:[%s12831_s13 + $0x1d4] ss:$8 sps:$4 sm:$0xff]   ;;  %v7235_v54 = vld [vmem:[%s12831_s13 + $0xd0] ss:$8 sps:$4 sm:$0xff]   ;;  %v7243_v11 = vld [vmem:[%s12831_s13 + $0xc4] ss:$8 sps:$4 sm:$0xff]  }
 0x8c9   :  { %4351 = vmatprep.mubr.bf16.mxu0 %v13026_v18  ;;  %4464 = vmatprep.mubr.bf16.mxu1 %v13026_v18 }
 0x8ca   :  { %4242 = vrot.lane.b32.xlu1 %v4189_v40, %s7932_s1  ;;  %5348 = vmatpush1.bf16.msra.mxu0 %v7175_v31  ;;  %v7237_v31 = vld [vmem:[%s12831_s13 + $0xd4] ss:$8 sps:$4 sm:$0xff]   ;;  %v7241_v40 = vld [vmem:[%s12831_s13 + $0xc0] ss:$8 sps:$4 sm:$0xff]  }
 0x8cb   :  { %5461 = vmatpush1.bf16.msra.mxu1 %v7178_v47  ;;  %5349 = vmatprep.subr.bf16.mxu0 %v7183_v13  ;;  %v7238_v47 = vld [vmem:[%s12831_s13 + $0x1d0] ss:$8 sps:$4 sm:$0xff]   ;;  %v7246_v13 = vld [vmem:[%s12831_s13 + $0x1c4] ss:$8 sps:$4 sm:$0xff]  }
 0x8cc   :  { %5462 = vmatprep.subr.bf16.mxu1 %v7186_v30  ;;  %v7244_v30 = vld [vmem:[%s12831_s13 + $0x1c0] ss:$8 sps:$4 sm:$0xff]  }
 0x8ce   :  { %5350 = vmatpush1.bf16.msra.mxu0 %v7181_v34  ;;  %v7249_v34 = vld [vmem:[%s12831_s13 + $0xb4] ss:$8 sps:$4 sm:$0xff]  }
 0x8cf   :  { %v4231_v12 = vpop.permute.xlu1 %4230  ;;  %5463 = vmatpush1.bf16.msra.mxu1 %v7184_v35  ;;  %5351 = vmatprep.subr.bf16.mxu0 %v7189_v24  ;;  %v7252_v35 = vld [vmem:[%s12831_s13 + $0x1b4] ss:$8 sps:$4 sm:$0xff]  }
 0x8d0   :  { %6465 = vmatmul.mubr.msk.bf16.gmra.mxu0 %vm4284_vm0, %v4231_v12  ;;  %6473 = vmatmul.mubr.msk.bf16.gmra.mxu1 %vm4284_vm0, %v4231_v12  ;;  %v7256_v12 = vld [vmem:[%s12831_s13 + $0x1a0] ss:$8 sps:$4 sm:$0xff]  }
 0x8d1   :  { %4361 = vmatprep.mubr.bf16.mxu0 %v13026_v18  ;;  %4474 = vmatprep.mubr.bf16.mxu1 %v13026_v18 }
 0x8d2   :  { %5464 = vmatprep.subr.bf16.mxu1 %v7192_v49  ;;  %5352 = vmatpush1.bf16.msra.mxu0 %v7187_v27  ;;  %v7247_v27 = vld [vmem:[%s12831_s13 + $0xb0] ss:$8 sps:$4 sm:$0xff]  }
 0x8d3   :  { %5465 = vmatpush1.bf16.msra.mxu1 %v7190_v16  ;;  %5353 = vmatprep.subr.bf16.mxu0 %v7195_v37  ;;  %v7250_v49 = vld [vmem:[%s12831_s13 + $0x1b0] ss:$8 sps:$4 sm:$0xff]   ;;  %v7255_v37 = vld [vmem:[%s12831_s13 + $0xa4] ss:$8 sps:$4 sm:$0xff]  }
 0x8d4   :  { %5466 = vmatprep.subr.bf16.mxu1 %v7198_v61  ;;  %v7258_v61 = vld [vmem:[%s12831_s13 + $0x1a4] ss:$8 sps:$4 sm:$0xff]  }
 0x8d6   :  { %5354 = vmatpush1.bf16.msra.mxu0 %v7193_v6  ;;  %v7261_v6 = vld [vmem:[%s12831_s13 + $0x94] ss:$8 sps:$4 sm:$0xff]  }
 0x8d7   :  { %v4233_v25 = vpop.permute.xlu0 %4232  ;;  %5467 = vmatpush1.bf16.msra.mxu1 %v7196_v39  ;;  %5355 = vmatprep.subr.bf16.mxu0 %v7201_v26  ;;  %v7264_v39 = vld [vmem:[%s12831_s13 + $0x194] ss:$8 sps:$4 sm:$0xff]   ;;  %v7259_v26 = vld [vmem:[%s12831_s13 + $0x90] ss:$8 sps:$4 sm:$0xff]  }
 0x8d8   :  { %6466 = vmatmul.mubr.msk.bf16.gmra.mxu0 %vm4284_vm0, %v4233_v25  ;;  %6474 = vmatmul.mubr.msk.bf16.gmra.mxu1 %vm4284_vm0, %v4233_v25  ;;  %v7265_v25 = vld [vmem:[%s12831_s13 + $0x80] ss:$8 sps:$4 sm:$0xff]  }
 0x8d9   :  { %4371 = vmatprep.mubr.bf16.mxu0 %v13026_v18  ;;  %4484 = vmatprep.mubr.bf16.mxu1 %v13026_v18 }
 0x8da   :  { %5468 = vmatprep.subr.bf16.mxu1 %v7204_v59  ;;  %5356 = vmatpush1.bf16.msra.mxu0 %v7199_v58  ;;  %v7262_v58 = vld [vmem:[%s12831_s13 + $0x190] ss:$8 sps:$4 sm:$0xff]   ;;  %v7267_v59 = vld [vmem:[%s12831_s13 + $0x84] ss:$8 sps:$4 sm:$0xff]  }
 0x8db   :  { %5469 = vmatpush1.bf16.msra.mxu1 %v7202_v21  ;;  %5357 = vmatprep.subr.bf16.mxu0 %v7207_v43  ;;  %v7270_v21 = vld [vmem:[%s12831_s13 + $0x184] ss:$8 sps:$4 sm:$0xff]  }
 0x8dc   :  { %5470 = vmatprep.subr.bf16.mxu1 %v7210_v63 }
 0x8de   :  { %5358 = vmatpush1.bf16.msra.mxu0 %v7205_v2  ;;  %v4198_v2 = vld [vmem:[%s12832_s12] sm:$0xf] }
 0x8df   :  { %v4235_v23 = vpop.permute.xlu1 %4234  ;;  %5471 = vmatpush1.bf16.msra.mxu1 %v7208_v45  ;;  %5359 = vmatprep.subr.bf16.mxu0 %v7213_v42 }
 0x8e0   :  { %6467 = vmatmul.mubr.msk.bf16.gmra.mxu0 %vm4284_vm0, %v4235_v23  ;;  %6475 = vmatmul.mubr.msk.bf16.gmra.mxu1 %vm4284_vm0, %v4235_v23  ;;  %v7268_v23 = vld [vmem:[%s12831_s13 + $0x180] ss:$8 sps:$4 sm:$0xff]  }
 0x8e1   :  { %4381 = vmatprep.mubr.bf16.mxu0 %v13026_v18  ;;  %4494 = vmatprep.mubr.bf16.mxu1 %v13026_v18 }
 0x8e2   :  { %5472 = vmatprep.subr.bf16.mxu1 %v7216_v4  ;;  %5360 = vmatpush1.bf16.msra.mxu0 %v7211_v19 }
 0x8e3   :  { %5473 = vmatpush1.bf16.msra.mxu1 %v7214_v28  ;;  %5361 = vmatprep.subr.bf16.mxu0 %v7219_v7 }
 0x8e4   :  { %5474 = vmatprep.subr.bf16.mxu1 %v7222_v29 }
 0x8e6   :  { %5362 = vmatpush1.bf16.msra.mxu0 %v7217_v38 }
 0x8e7   :  { %v4237_v15 = vpop.permute.xlu0 %4236  ;;  %5475 = vmatpush1.bf16.msra.mxu1 %v7220_v51  ;;  %5363 = vmatprep.subr.bf16.mxu0 %v7225_v5 }
 0x8e8   :  { %6468 = vmatmul.mubr.msk.bf16.gmra.mxu0 %vm4284_vm0, %v4237_v15  ;;  %6476 = vmatmul.mubr.msk.bf16.gmra.mxu1 %vm4284_vm0, %v4237_v15  ;;  %v13462_v15 = vlaneseq }
 0x8e9   :  { %4391 = vmatprep.mubr.bf16.mxu0 %v13026_v18  ;;  %4504 = vmatprep.mubr.bf16.mxu1 %v13026_v18 }
 0x8ea   :  { %5476 = vmatprep.subr.bf16.mxu1 %v7228_v46  ;;  %5364 = vmatpush2.bf16.msra.mxu0 %v7223_v1 }
 0x8eb   :  { %5477 = vmatpush2.bf16.msra.mxu1 %v7226_v60  ;;  %5365 = vmatprep.subr.bf16.mxu0 %v7231_v53 }
 0x8ec   :  { %5478 = vmatprep.subr.bf16.mxu1 %v7234_v20 }
 0x8ee   :  { %5366 = vmatpush2.bf16.msra.mxu0 %v7229_v44 }
 0x8ef   :  { %v4239_v32 = vpop.permute.xlu1 %4238  ;;  %5479 = vmatpush2.bf16.msra.mxu1 %v7232_v41  ;;  %5367 = vmatprep.subr.bf16.mxu0 %v7237_v31 }
 0x8f0   :  { %6469 = vmatmul.mubr.msk.bf16.gmra.mxu0 %vm4284_vm0, %v4239_v32  ;;  %6477 = vmatmul.mubr.msk.bf16.gmra.mxu1 %vm4284_vm0, %v4239_v32  ;;  %v12520_v32 = vshrl.u32 %v13462_v15, 7 }
 0x8f1   :  { %4401 = vmatprep.mubr.bf16.mxu0 %v13026_v18  ;;  %4514 = vmatprep.mubr.bf16.mxu1 %v13026_v18 }
 0x8f2   :  { %5480 = vmatprep.subr.bf16.mxu1 %v7240_v56  ;;  %5368 = vmatpush2.bf16.msra.mxu0 %v7235_v54  ;;  %v4202_v43 = vsub.s32 0, %v12520_v32  ;;  %v4210_v63 = vsub.s32 2, %v12520_v32  ;;  %v4206_v45 = vsub.s32 1, %v12520_v32  ;;  %v4214_v42 = vsub.s32 3, %v12520_v32 }
 0x8f3   :  { %5481 = vmatpush2.bf16.msra.mxu1 %v7238_v47  ;;  %5369 = vmatprep.subr.bf16.mxu0 %v7243_v11 }
 0x8f4   :  { %5482 = vmatprep.subr.bf16.mxu1 %v7246_v13  ;;  %v12531_v4 = vrot.slane %v4198_v2, %v4202_v43  ;;  %v12533_v19 = vrot.slane %v4198_v2, %v4210_v63  ;;  %v12537_v28 = vrot.slane %v4198_v2, %v4206_v45  ;;  %v12539_v7 = vrot.slane %v4198_v2, %v4214_v42 }
 0x8f6   :  { %5370 = vmatpush2.bf16.msra.mxu0 %v7241_v40 }
 0x8f7   :  { %5483 = vmatpush2.bf16.msra.mxu1 %v7244_v30  ;;  %5371 = vmatprep.subr.bf16.mxu0 %v7249_v34 }
 0x8f8   :  { %5484 = vmatprep.subr.bf16.mxu1 %v7252_v35 }
 0x8fa   :  { %5372 = vmatpush2.bf16.msra.mxu0 %v7247_v27 }
 0x8fb   :  { %5485 = vmatpush2.bf16.msra.mxu1 %v7250_v49  ;;  %5373 = vmatprep.subr.bf16.mxu0 %v7255_v37 }
 0x8fc   :  { %5486 = vmatprep.subr.bf16.mxu1 %v7258_v61 }
 0x8ff   :  { %5487 = vmatpush2.bf16.msra.mxu1 %v7256_v12 }
 0x900   :  { %5488 = vmatprep.subr.bf16.mxu1 %v7264_v39 }
 0x903   :  { %5489 = vmatpush2.bf16.msra.mxu1 %v7262_v58 }
 0x904   :  { %5490 = vmatprep.subr.bf16.mxu1 %v7270_v21 }
 0x907   :  { %5491 = vmatpush2.bf16.msra.mxu1 %v7268_v23 }
 0x934   :  { %v4241_v24 = vpop.permute.xlu0 %4240 }
 0x935   :  { %6470 = vmatmul.mubr.msk.bf16.gmra.mxu0 %vm4284_vm0, %v4241_v24  ;;  %6478 = vmatmul.mubr.msk.bf16.gmra.mxu1 %vm4284_vm0, %v4241_v24 }
 0x936   :  { %4411 = vmatprep.mubr.bf16.mxu0 %v13026_v18  ;;  %4524 = vmatprep.mubr.bf16.mxu1 %v13026_v18  ;;  %v7253_v18 = vld [vmem:[%s12831_s13 + $0xa0] ss:$8 sps:$4 sm:$0xff]  }
 0x937   :  { %5374 = vmatpush2.bf16.msra.mxu0 %v7253_v18 }
 0x938   :  { %5375 = vmatprep.subr.bf16.mxu0 %v7261_v6 }
 0x93b   :  { %5376 = vmatpush2.bf16.msra.mxu0 %v7259_v26 }
 0x93c   :  { %v4243_v16 = vpop.permute.xlu1 %4242  ;;  %5377 = vmatprep.subr.bf16.mxu0 %v7267_v59 }
 0x93d   :  { %6471 = vmatmul.mubr.msk.bf16.gmra.mxu0 %vm4284_vm0, %v4243_v16  ;;  %6479 = vmatmul.mubr.msk.bf16.gmra.mxu1 %vm4284_vm0, %v4243_v16 }
 0x93f   :  { %5378 = vmatpush2.bf16.msra.mxu0 %v7265_v25 }
 0x988   :  { %v4343_v29 = vpop.f32.mrf.mxu0  ;;  %v4456_v38 = vpop.f32.mrf.mxu1 }
 0x989   :  { %v4344_v51 = vadd.f32 %v4343_v29, %v12531_v4  ;;  %v4457_v5 = vadd.f32 %v4456_v38, %v12533_v19 }
 0x98a   :  { %v4345_v46 = vpop.f32.mrf.mxu0  ;;  %v4458_v1 = vpop.f32.mrf.mxu1 }
 0x98b   :  { %v6480_v60 = vmul.f32 -1.442695, %v4344_v51  ;;  %v6482_v53 = vmul.f32 -1.442695, %v4457_v5  ;;  %v4346_v20 = vadd.f32 %v4345_v46, %v12537_v28  ;;  %v4459_v44 = vadd.f32 %v4458_v1, %v12539_v7 }
 0x98c   :  { %v4347_v41 = vpop.f32.mrf.mxu0  ;;  %v4460_v31 = vpop.f32.mrf.mxu1 }
 0x98d   :  { %7415 = vpow2.f32 %v6480_v60  ;;  %v6481_v56 = vmul.f32 -1.442695, %v4346_v20  ;;  %v6483_v54 = vmul.f32 -1.442695, %v4459_v44  ;;  %v4348_v47 = vadd.f32 %v4347_v41, %v12531_v4 }
 0x98e   :  { %7417 = vpow2.f32 %v6482_v53  ;;  %v4461_v11 = vadd.f32 %v4460_v31, %v12533_v19  ;;  %v4349_v13 = vpop.f32.mrf.mxu0  ;;  %v4462_v40 = vpop.f32.mrf.mxu1 }
 0x98f   :  { %7419 = vpow2.f32 %v6481_v56  ;;  %v6484_v30 = vmul.f32 -1.442695, %v4348_v47  ;;  %v4350_v34 = vadd.f32 %v4349_v13, %v12537_v28  ;;  %v4463_v35 = vadd.f32 %v4462_v40, %v12539_v7 }
 0x990   :  { %7421 = vpow2.f32 %v6483_v54  ;;  %v6486_v24 = vmul.f32 -1.442695, %v4461_v11  ;;  %v4353_v27 = vpop.f32.mrf.mxu0  ;;  %v4466_v49 = vpop.f32.mrf.mxu1 }
 0x991   :  { %7423 = vpow2.f32 %v6484_v30  ;;  %v6485_v16 = vmul.f32 -1.442695, %v4350_v34  ;;  %v6487_v37 = vmul.f32 -1.442695, %v4463_v35  ;;  %v4354_v61 = vadd.f32 %v4353_v27, %v12531_v4 }
 0x992   :  { %7425 = vpow2.f32 %v6486_v24  ;;  %v4467_v18 = vadd.f32 %v4466_v49, %v12533_v19  ;;  %v4355_v12 = vpop.f32.mrf.mxu0  ;;  %v4468_v6 = vpop.f32.mrf.mxu1 }
 0x993   :  { %7427 = vpow2.f32 %v6485_v16  ;;  %v6488_v39 = vmul.f32 -1.442695, %v4354_v61  ;;  %v4356_v26 = vadd.f32 %v4355_v12, %v12537_v28  ;;  %v4469_v58 = vadd.f32 %v4468_v6, %v12539_v7 }
 0x994   :  { %7429 = vpow2.f32 %v6487_v37  ;;  %v6490_v59 = vmul.f32 -1.442695, %v4467_v18  ;;  %v4357_v21 = vpop.f32.mrf.mxu0  ;;  %v4470_v25 = vpop.f32.mrf.mxu1 }
 0x995   :  { %7431 = vpow2.f32 %v6488_v39  ;;  %v6489_v23 = vmul.f32 -1.442695, %v4356_v26  ;;  %v6491_v15 = vmul.f32 -1.442695, %v4469_v58  ;;  %v4358_v63 = vadd.f32 %v4357_v21, %v12531_v4 }
 0x996   :  { %7433 = vpow2.f32 %v6490_v59  ;;  %v4471_v2 = vadd.f32 %v4470_v25, %v12533_v19  ;;  %v4359_v42 = vpop.f32.mrf.mxu0  ;;  %v4472_v29 = vpop.f32.mrf.mxu1 }
 0x997   :  { %7435 = vpow2.f32 %v6489_v23  ;;  %v6492_v38 = vmul.f32 -1.442695, %v4358_v63  ;;  %v4360_v51 = vadd.f32 %v4359_v42, %v12537_v28  ;;  %v4473_v5 = vadd.f32 %v4472_v29, %v12539_v7 }
 0x998   :  { %7437 = vpow2.f32 %v6491_v15  ;;  %v6494_v46 = vmul.f32 -1.442695, %v4471_v2  ;;  %v4363_v1 = vpop.f32.mrf.mxu0  ;;  %v4476_v60 = vpop.f32.mrf.mxu1 }
 0x999   :  { %7439 = vpow2.f32 %v6492_v38  ;;  %v6493_v53 = vmul.f32 -1.442695, %v4360_v51  ;;  %v6495_v20 = vmul.f32 -1.442695, %v4473_v5  ;;  %v4364_v2 = vadd.f32 %v4363_v1, %v12531_v4 }
 0x99a   :  { %v7416_v44 = vpop.eup %7415  ;;  %7441 = vpow2.f32 %v6494_v46  ;;  %v4365_v41 = vpop.f32.mrf.mxu0  ;;  %v4477_v51 = vadd.f32 %v4476_v60, %v12533_v19 }
 0x99b   :  { %v4478_v31 = vpop.f32.mrf.mxu1  ;;  %v7418_v56 = vpop.eup %7417  ;;  %v4727_v54 = vadd.f32 1.0, %v7416_v44  ;;  %7443 = vpow2.f32 %v6493_v53  ;;  %v4366_v53 = vadd.f32 %v4365_v41, %v12537_v28 }
 0x99c   :  { %v7420_v47 = vpop.eup %7419  ;;  %v4729_v11 = vadd.f32 1.0, %v7418_v56  ;;  %7445 = vpow2.f32 %v6495_v20  ;;  %v4367_v13 = vpop.f32.mrf.mxu0  ;;  %v4479_v56 = vadd.f32 %v4478_v31, %v12539_v7 }
 0x99d   :  { %v7422_v40 = vpop.eup %7421  ;;  %7447 = vrcp.f32 %v4727_v54  ;;  %v4728_v30 = vadd.f32 1.0, %v7420_v47  ;;  %v4480_v34 = vpop.f32.mrf.mxu1 }
 0x99e   :  { %v7424_v35 = vpop.eup %7423  ;;  %7449 = vrcp.f32 %v4729_v11  ;;  %v4730_v24 = vadd.f32 1.0, %v7422_v40  ;;  %v4369_v61 = vpop.f32.mrf.mxu0  ;;  %v6496_v11 = vmul.f32 -1.442695, %v4364_v2  ;;  %v4368_v40 = vadd.f32 %v4367_v13, %v12531_v4 }
 0x99f   :  { %v7426_v27 = vpop.eup %7425  ;;  %7451 = vrcp.f32 %v4728_v30  ;;  %v4731_v49 = vadd.f32 1.0, %v7424_v35  ;;  %v4482_v6 = vpop.f32.mrf.mxu1 }
 0x9a0   :  { %v7428_v16 = vpop.eup %7427  ;;  %7453 = vrcp.f32 %v4730_v24  ;;  %v4733_v37 = vadd.f32 1.0, %v7426_v27  ;;  %v4373_v23 = vpop.f32.mrf.mxu0  ;;  %v6498_v24 = vmul.f32 -1.442695, %v4477_v51  ;;  %v4481_v27 = vadd.f32 %v4480_v34, %v12533_v19 }
 0x9a1   :  { %v7430_v18 = vpop.eup %7429  ;;  %7455 = vrcp.f32 %v4731_v49  ;;  %v4732_v12 = vadd.f32 1.0, %v7428_v16  ;;  %v4486_v42 = vpop.f32.mrf.mxu1  ;;  %v6497_v49 = vmul.f32 -1.442695, %v4366_v53  ;;  %v4370_v16 = vadd.f32 %v4369_v61, %v12537_v28 }
 0x9a2   :  { %v7432_v39 = vpop.eup %7431  ;;  %7457 = vrcp.f32 %v4733_v37  ;;  %v4734_v26 = vadd.f32 1.0, %v7430_v18  ;;  %v4375_v54 = vpop.f32.mrf.mxu0  ;;  %v6499_v37 = vmul.f32 -1.442695, %v4479_v56  ;;  %v4483_v18 = vadd.f32 %v4482_v6, %v12539_v7 }
 0x9a3   :  { %v7434_v58 = vpop.eup %7433  ;;  %7459 = vrcp.f32 %v4732_v12  ;;  %v4735_v59 = vadd.f32 1.0, %v7432_v39  ;;  %v4488_v30 = vpop.f32.mrf.mxu1  ;;  %v4374_v12 = vadd.f32 %v4373_v23, %v12531_v4  ;;  %v4376_v34 = vadd.f32 %v4375_v54, %v12537_v28 }
 0x9a4   :  { %v7436_v21 = vpop.eup %7435  ;;  %7461 = vrcp.f32 %v4734_v26  ;;  %v4737_v25 = vadd.f32 1.0, %v7434_v58  ;;  %v4377_v13 = vpop.f32.mrf.mxu0  ;;  %v6500_v26 = vmul.f32 -1.442695, %v4368_v40  ;;  %v4487_v58 = vadd.f32 %v4486_v42, %v12533_v19 }
 0x9a5   :  { %v7438_v15 = vpop.eup %7437  ;;  %7463 = vrcp.f32 %v4735_v59  ;;  %v4736_v63 = vadd.f32 1.0, %v7436_v21  ;;  %v4490_v59 = vpop.f32.mrf.mxu1  ;;  %v6503_v6 = vmul.f32 -1.442695, %v4483_v18  ;;  %v6504_v2 = vmul.f32 -1.442695, %v4374_v12 }
 0x9a6   :  { %v7440_v29 = vpop.eup %7439  ;;  %7465 = vrcp.f32 %v4737_v25  ;;  %v4738_v38 = vadd.f32 1.0, %v7438_v15  ;;  %v6502_v25 = vmul.f32 -1.442695, %v4481_v27  ;;  %v6501_v15 = vmul.f32 -1.442695, %v4370_v16 }
 0x9a7   :  { %v7442_v5 = vpop.eup %7441  ;;  %7467 = vrcp.f32 %v4736_v63  ;;  %v4739_v46 = vadd.f32 1.0, %v7440_v29  ;;  %v4489_v23 = vadd.f32 %v4488_v30, %v12539_v7  ;;  %v4379_v29 = vpop.f32.mrf.mxu0  ;;  %v6506_v51 = vmul.f32 -1.442695, %v4487_v58 }
 0x9a8   :  { %v7444_v20 = vpop.eup %7443  ;;  %7469 = vrcp.f32 %v4738_v38  ;;  %v4741_v44 = vadd.f32 1.0, %v7442_v5  ;;  %v6505_v42 = vmul.f32 -1.442695, %v4376_v34  ;;  %v4378_v5 = vadd.f32 %v4377_v13, %v12531_v4 }
 0x9a9   :  { %v7446_v47 = vpop.eup %7445  ;;  %7471 = vrcp.f32 %v4739_v46  ;;  %v4740_v1 = vadd.f32 1.0, %v7444_v20  ;;  %v4492_v46 = vpop.f32.mrf.mxu1  ;;  %v4491_v20 = vadd.f32 %v4490_v59, %v12533_v19  ;;  %v6507_v30 = vmul.f32 -1.442695, %v4489_v23 }
 0x9aa   :  { %v7448_v35 = vpop.eup %7447  ;;  %7473 = vrcp.f32 %v4741_v44  ;;  %v4742_v60 = vadd.f32 1.0, %v7446_v47  ;;  %v4380_v47 = vadd.f32 %v4379_v29, %v12537_v28 }
 0x9ab   :  { %v7450_v41 = vpop.eup %7449  ;;  %7475 = vrcp.f32 %v4740_v1  ;;  %v12575_v16 = vpop.f32.mrf.mxu1 }
 0x9ac   :  { %v7452_v31 = vpop.eup %7451  ;;  %7477 = vrcp.f32 %v4742_v60  ;;  %v4493_v60 = vadd.f32 %v4492_v46, %v12539_v7 }
 0x9ad   :  { %v7454_v39 = vpop.eup %7453  ;;  %7479 = vpow2.f32 %v6496_v11 }
 0x9ae   :  { %v7456_v21 = vpop.eup %7455  ;;  %7481 = vpow2.f32 %v6498_v24  ;;  %v12573_v24 = vpop.f32.mrf.mxu0  ;;  %v6511_v12 = vmul.f32 -1.442695, %v4493_v60 }
 0x9af   :  { %v7458_v61 = vpop.eup %7457  ;;  %7483 = vpow2.f32 %v6497_v49  ;;  %v4919_v1 = vpack.c.bf16 %v7456_v21, %v7448_v35  ;;  %v6508_v49 = vmul.f32 -1.442695, %v4378_v5  ;;  %v6510_v35 = vmul.f32 -1.442695, %v4491_v20 }
 0x9b0   :  { %v7460_v63 = vpop.eup %7459  ;;  %7485 = vpow2.f32 %v6499_v37  ;;  %v4921_v11 = vpack.c.bf16 %v7458_v61, %v7450_v41  ;;  %v6509_v37 = vmul.f32 -1.442695, %v4380_v47  ;;  %v4385_v13 = vpop.f32.mrf.mxu0 }
 0x9b1   :  { %v7462_v38 = vpop.eup %7461  ;;  %7487 = vpow2.f32 %v6500_v26  ;;  %v4920_v44 = vpack.c.bf16 %v7460_v63, %v7452_v31  ;;  %v4498_v26 = vpop.f32.mrf.mxu1 }
 0x9b2   :  { %v7464_v53 = vpop.eup %7463  ;;  %7489 = vpow2.f32 %v6502_v25  ;;  %v4922_v56 = vpack.c.bf16 %v7462_v38, %v7454_v39 }
 0x9b3   :  { %v7466_v54 = vpop.eup %7465  ;;  %7491 = vpow2.f32 %v6501_v15  ;;  %5379 = vmatprep.mubr.bf16.mxu0 %v4920_v44  ;;  %v4500_v38 = vpop.f32.mrf.mxu1 }
 0x9b4   :  { %v7468_v40 = vpop.eup %7467  ;;  %7493 = vpow2.f32 %v6503_v6  ;;  %5492 = vmatprep.mubr.bf16.mxu1 %v4922_v56  ;;  %5380 = vmatmul.mubr.bf16.vlgmr.msra.gmra.mxu0 %v4919_v1 }
 0x9b5   :  { %v7470_v27 = vpop.eup %7469  ;;  %7495 = vpow2.f32 %v6504_v2  ;;  %5493 = vmatmul.mubr.bf16.vlgmr.msra.gmra.mxu1 %v4921_v11  ;;  %v4387_v2 = vpop.f32.mrf.mxu0 }
 0x9b6   :  { %v7472_v31 = vpop.eup %7471  ;;  %7497 = vpow2.f32 %v6506_v51  ;;  %v4502_v47 = vpop.f32.mrf.mxu1 }
 0x9b7   :  { %v7474_v41 = vpop.eup %7473  ;;  %7499 = vpow2.f32 %v6505_v42  ;;  %v4923_v61 = vpack.c.bf16 %v7472_v31, %v7464_v53  ;;  %v4389_v44 = vpop.f32.mrf.mxu0 }
 0x9b8   :  { %v7476_v18 = vpop.eup %7475  ;;  %7501 = vpow2.f32 %v6507_v30  ;;  %v4925_v15 = vpack.c.bf16 %v7474_v41, %v7466_v54  ;;  %v4384_v41 = vadd.f32 %v12573_v24, %v12531_v4 }
 0x9b9   :  { %v7478_v39 = vpop.eup %7477  ;;  %7503 = vpow2.f32 %v6508_v49  ;;  %v4924_v58 = vpack.c.bf16 %v7476_v18, %v7468_v40  ;;  %v4393_v49 = vpop.f32.mrf.mxu0 }
 0x9ba   :  { %v7480_v34 = vpop.eup %7479  ;;  %7505 = vpow2.f32 %v6510_v35  ;;  %v4926_v59 = vpack.c.bf16 %v7478_v39, %v7470_v27  ;;  %v4497_v39 = vadd.f32 %v12575_v16, %v12533_v19 }
 0x9bb   :  { %v7482_v21 = vpop.eup %7481  ;;  %v4743_v25 = vadd.f32 1.0, %v7480_v34  ;;  %7507 = vpow2.f32 %v6509_v37  ;;  %5389 = vmatprep.mubr.bf16.mxu0 %v4924_v58  ;;  %v4506_v37 = vpop.f32.mrf.mxu1 }
 0x9bc   :  { %v7484_v63 = vpop.eup %7483  ;;  %v4745_v6 = vadd.f32 1.0, %v7482_v21  ;;  %7509 = vpow2.f32 %v6511_v12  ;;  %5502 = vmatprep.mubr.bf16.mxu1 %v4926_v59  ;;  %5390 = vmatmul.mubr.bf16.gmra.mxu0 %v4923_v61  ;;  %v4386_v59 = vadd.f32 %v4385_v13, %v12537_v28  ;;  %v4499_v61 = vadd.f32 %v4498_v26, %v12539_v7 }
 0x9bd   :  { %v7486_v23 = vpop.eup %7485  ;;  %7511 = vrcp.f32 %v4743_v25  ;;  %v4744_v29 = vadd.f32 1.0, %v7484_v63  ;;  %5503 = vmatmul.mubr.bf16.gmra.mxu1 %v4925_v15  ;;  %v4395_v15 = vpop.f32.mrf.mxu0 }
 0x9be   :  { %v7488_v51 = vpop.eup %7487  ;;  %7513 = vrcp.f32 %v4745_v6  ;;  %v4746_v42 = vadd.f32 1.0, %v7486_v23  ;;  %v6512_v6 = vmul.f32 -1.442695, %v4384_v41  ;;  %v4388_v23 = vadd.f32 %v4387_v2, %v12531_v4 }
 0x9bf   :  { %v7490_v5 = vpop.eup %7489  ;;  %7515 = vrcp.f32 %v4744_v29  ;;  %v4747_v46 = vadd.f32 1.0, %v7488_v51  ;;  %v4508_v29 = vpop.f32.mrf.mxu1 }
 0x9c0   :  { %v7492_v20 = vpop.eup %7491  ;;  %7517 = vrcp.f32 %v4746_v42  ;;  %v4749_v53 = vadd.f32 1.0, %v7490_v5  ;;  %v6514_v42 = vmul.f32 -1.442695, %v4497_v39  ;;  %v4501_v5 = vadd.f32 %v4500_v38, %v12533_v19  ;;  %v4397_v2 = vpop.f32.mrf.mxu0 }
 0x9c1   :  { %v7494_v56 = vpop.eup %7493  ;;  %7519 = vrcp.f32 %v4747_v46  ;;  %v4748_v54 = vadd.f32 1.0, %v7492_v20  ;;  %v6513_v46 = vmul.f32 -1.442695, %v4386_v59  ;;  %v4390_v20 = vadd.f32 %v4389_v44, %v12537_v28 }
 0x9c2   :  { %v7496_v1 = vpop.eup %7495  ;;  %7521 = vrcp.f32 %v4749_v53  ;;  %v4750_v11 = vadd.f32 1.0, %v7494_v56  ;;  %v6515_v53 = vmul.f32 -1.442695, %v4499_v61  ;;  %v4503_v56 = vadd.f32 %v4502_v47, %v12539_v7 }
 0x9c3   :  { %v7498_v40 = vpop.eup %7497  ;;  %7523 = vrcp.f32 %v4748_v54  ;;  %v4751_v30 = vadd.f32 1.0, %v7496_v1  ;;  %v4394_v54 = vadd.f32 %v4393_v49, %v12531_v4  ;;  %v6517_v44 = vmul.f32 -1.442695, %v4390_v20 }
 0x9c4   :  { %v7500_v60 = vpop.eup %7499  ;;  %7525 = vrcp.f32 %v4750_v11  ;;  %v4753_v27 = vadd.f32 1.0, %v7498_v40  ;;  %v6516_v11 = vmul.f32 -1.442695, %v4388_v23  ;;  %v4507_v40 = vadd.f32 %v4506_v37, %v12533_v19 }
 0x9c5   :  { %v7502_v31 = vpop.eup %7501  ;;  %7527 = vrcp.f32 %v4751_v30  ;;  %v4752_v35 = vadd.f32 1.0, %v7500_v60  ;;  %v4510_v30 = vpop.f32.mrf.mxu1  ;;  %v6518_v60 = vmul.f32 -1.442695, %v4501_v5  ;;  %v6519_v47 = vmul.f32 -1.442695, %v4503_v56 }
 0x9c6   :  { %v7504_v18 = vpop.eup %7503  ;;  %7529 = vrcp.f32 %v4753_v27  ;;  %v4754_v12 = vadd.f32 1.0, %v7502_v31  ;;  %v4396_v31 = vadd.f32 %v4395_v15, %v12537_v28  ;;  %v6520_v41 = vmul.f32 -1.442695, %v4394_v54 }
 0x9c7   :  { %v7506_v58 = vpop.eup %7505  ;;  %7531 = vrcp.f32 %v4752_v35  ;;  %v4755_v34 = vadd.f32 1.0, %v7504_v18  ;;  %v4509_v49 = vadd.f32 %v4508_v29, %v12539_v7  ;;  %v4399_v18 = vpop.f32.mrf.mxu0  ;;  %v6522_v39 = vmul.f32 -1.442695, %v4507_v40 }
 0x9c8   :  { %v7508_v21 = vpop.eup %7507  ;;  %7533 = vrcp.f32 %v4754_v12  ;;  %v4757_v25 = vadd.f32 1.0, %v7506_v58  ;;  %v4398_v37 = vadd.f32 %v4397_v2, %v12531_v4  ;;  %v4512_v58 = vpop.f32.mrf.mxu1 }
 0x9c9   :  { %v7510_v63 = vpop.eup %7509  ;;  %7535 = vrcp.f32 %v4755_v34  ;;  %v4756_v24 = vadd.f32 1.0, %v7508_v21  ;;  %v4511_v21 = vadd.f32 %v4510_v30, %v12533_v19  ;;  %v6523_v29 = vmul.f32 -1.442695, %v4509_v49 }
 0x9ca   :  { %v7512_v51 = vpop.eup %7511  ;;  %7537 = vrcp.f32 %v4757_v25  ;;  %v4758_v16 = vadd.f32 1.0, %v7510_v63  ;;  %v6521_v63 = vmul.f32 -1.442695, %v4396_v31  ;;  %v6524_v5 = vmul.f32 -1.442695, %v4398_v37 }
 0x9cb   :  { %v7514_v13 = vpop.eup %7513  ;;  %7539 = vrcp.f32 %v4756_v24  ;;  %v4400_v24 = vadd.f32 %v4399_v18, %v12537_v28 }
 0x9cc   :  { %v7516_v26 = vpop.eup %7515  ;;  %7541 = vrcp.f32 %v4758_v16  ;;  %v4513_v16 = vadd.f32 %v4512_v58, %v12539_v7 }
 0x9cd   :  { %v7518_v1 = vpop.eup %7517  ;;  %7543 = vpow2.f32 %v6512_v6 }
 0x9ce   :  { %v7520_v38 = vpop.eup %7519  ;;  %7545 = vpow2.f32 %v6514_v42 }
 0x9cf   :  { %v7522_v27 = vpop.eup %7521  ;;  %7547 = vpow2.f32 %v6513_v46  ;;  %v4927_v61 = vpack.c.bf16 %v7520_v38, %v7512_v51  ;;  %v6526_v51 = vmul.f32 -1.442695, %v4511_v21 }
 0x9d0   :  { %v7524_v35 = vpop.eup %7523  ;;  %7549 = vpow2.f32 %v6515_v53  ;;  %v4929_v6 = vpack.c.bf16 %v7522_v27, %v7514_v13  ;;  %v6527_v13 = vmul.f32 -1.442695, %v4513_v16 }
 0x9d1   :  { %v7526_v12 = vpop.eup %7525  ;;  %7551 = vpow2.f32 %v6516_v11  ;;  %v4928_v34 = vpack.c.bf16 %v7524_v35, %v7516_v26  ;;  %v6525_v26 = vmul.f32 -1.442695, %v4400_v24 }
 0x9d2   :  { %v7528_v59 = vpop.eup %7527  ;;  %7553 = vpow2.f32 %v6518_v60  ;;  %v4930_v25 = vpack.c.bf16 %v7526_v12, %v7518_v1 }
 0x9d3   :  { %v7530_v15 = vpop.eup %7529  ;;  %7555 = vpow2.f32 %v6517_v44  ;;  %5399 = vmatprep.mubr.bf16.mxu0 %v4928_v34 }
 0x9d4   :  { %v7532_v23 = vpop.eup %7531  ;;  %7557 = vpow2.f32 %v6519_v47  ;;  %5512 = vmatprep.mubr.bf16.mxu1 %v4930_v25  ;;  %5400 = vmatmul.mubr.bf16.gmra.mxu0 %v4927_v61 }
 0x9d5   :  { %v7534_v42 = vpop.eup %7533  ;;  %7559 = vpow2.f32 %v6520_v41  ;;  %5513 = vmatmul.mubr.bf16.gmra.mxu1 %v4929_v6 }
 0x9d6   :  { %v7536_v46 = vpop.eup %7535  ;;  %7561 = vpow2.f32 %v6522_v39 }
 0x9d7   :  { %v7538_v20 = vpop.eup %7537  ;;  %7563 = vpow2.f32 %v6521_v63  ;;  %v4931_v11 = vpack.c.bf16 %v7536_v46, %v7528_v59 }
 0x9d8   :  { %v7540_v53 = vpop.eup %7539  ;;  %7565 = vpow2.f32 %v6523_v29  ;;  %v4933_v38 = vpack.c.bf16 %v7538_v20, %v7530_v15 }
 0x9d9   :  { %v7542_v56 = vpop.eup %7541  ;;  %7567 = vpow2.f32 %v6524_v5  ;;  %v4932_v54 = vpack.c.bf16 %v7540_v53, %v7532_v23 }
 0x9da   :  { %v7544_v2 = vpop.eup %7543  ;;  %7569 = vpow2.f32 %v6526_v51  ;;  %v4934_v1 = vpack.c.bf16 %v7542_v56, %v7534_v42 }
 0x9db   :  { %v7546_v40 = vpop.eup %7545  ;;  %v4759_v30 = vadd.f32 1.0, %v7544_v2  ;;  %7571 = vpow2.f32 %v6525_v26  ;;  %5409 = vmatprep.mubr.bf16.mxu0 %v4932_v54 }
 0x9dc   :  { %v7548_v60 = vpop.eup %7547  ;;  %7573 = vpow2.f32 %v6527_v13  ;;  %5522 = vmatprep.mubr.bf16.mxu1 %v4934_v1  ;;  %5410 = vmatmul.mubr.bf16.gmra.mxu0 %v4931_v11  ;;  %v4761_v39 = vadd.f32 1.0, %v7546_v40 }
 0x9dd   :  { %v7550_v27 = vpop.eup %7549  ;;  %v4760_v44 = vadd.f32 1.0, %v7548_v60  ;;  %5523 = vmatmul.mubr.bf16.gmra.mxu1 %v4933_v38  ;;  %7575 = vrcp.f32 %v4759_v30 }
 0x9de   :  { %v7552_v31 = vpop.eup %7551  ;;  %v4762_v35 = vadd.f32 1.0, %v7550_v27 }
 0x9df   :  { %v7554_v47 = vpop.eup %7553  ;;  %7577 = vrcp.f32 %v4760_v44  ;;  %v4763_v41 = vadd.f32 1.0, %v7552_v31 }
 0x9e0   :  { %v7556_v49 = vpop.eup %7555  ;;  %7579 = vrcp.f32 %v4762_v35  ;;  %v4765_v18 = vadd.f32 1.0, %v7554_v47 }
 0x9e1   :  { %v7558_v12 = vpop.eup %7557  ;;  %7581 = vrcp.f32 %v4763_v41  ;;  %v4764_v37 = vadd.f32 1.0, %v7556_v49 }
 0x9e2   :  { %v7560_v58 = vpop.eup %7559  ;;  %7583 = vrcp.f32 %v4765_v18  ;;  %v4766_v34 = vadd.f32 1.0, %v7558_v12 }
 0x9e3   :  { %v7562_v59 = vpop.eup %7561  ;;  %7585 = vrcp.f32 %v4764_v37  ;;  %v4767_v21 = vadd.f32 1.0, %v7560_v58 }
 0x9e4   :  { %v7564_v25 = vpop.eup %7563  ;;  %7587 = vrcp.f32 %v4766_v34  ;;  %v4769_v5 = vadd.f32 1.0, %v7562_v59 }
 0x9e5   :  { %v7566_v61 = vpop.eup %7565  ;;  %7589 = vrcp.f32 %v4761_v39  ;;  %v4768_v15 = vadd.f32 1.0, %v7564_v25 }
 0x9e6   :  { %v7568_v63 = vpop.eup %7567  ;;  %7591 = vrcp.f32 %v4767_v21  ;;  %v4770_v24 = vadd.f32 1.0, %v7566_v61 }
 0x9e7   :  { %v7570_v6 = vpop.eup %7569  ;;  %7593 = vrcp.f32 %v4768_v15  ;;  %v4771_v23 = vadd.f32 1.0, %v7568_v63 }
 0x9e8   :  { %v7572_v29 = vpop.eup %7571  ;;  %7595 = vrcp.f32 %v4770_v24  ;;  %v4773_v16 = vadd.f32 1.0, %v7570_v6 }
 0x9e9   :  { %v7574_v42 = vpop.eup %7573  ;;  %7597 = vrcp.f32 %v4771_v23  ;;  %v4772_v46 = vadd.f32 1.0, %v7572_v29 }
 0x9ea   :  { %7599 = vrcp.f32 %v4773_v16  ;;  %v4774_v51 = vadd.f32 1.0, %v7574_v42  ;;  %v7576_v20 = vpop.eup %7575 }
 0x9eb   :  { %7601 = vrcp.f32 %v4772_v46 }
 0x9ec   :  { %v7578_v26 = vpop.eup %7577  ;;  %7603 = vrcp.f32 %v4774_v51 }
 0x9ed   :  { %v7580_v53 = vpop.eup %7579  ;;  %7605 = vrcp.f32 %v4769_v5 }
 0x9ee   :  { %v7582_v13 = vpop.eup %7581 }
 0x9ef   :  { %v7584_v56 = vpop.eup %7583  ;;  %v4935_v30 = vpack.c.bf16 %v7582_v13, %v7576_v20 }
 0x9f0   :  { %v7586_v54 = vpop.eup %7585 }
 0x9f1   :  { %v7588_v2 = vpop.eup %7587  ;;  %v4936_v1 = vpack.c.bf16 %v7586_v54, %v7578_v26 }
 0x9f2   :  { %v7590_v11 = vpop.eup %7589  ;;  %v4938_v40 = vpack.c.bf16 %v7588_v2, %v7580_v53 }
 0x9f3   :  { %v7592_v38 = vpop.eup %7591  ;;  %5419 = vmatprep.mubr.bf16.mxu0 %v4936_v1  ;;  %v4937_v60 = vpack.c.bf16 %v7584_v56, %v7590_v11 }
 0x9f4   :  { %v7594_v27 = vpop.eup %7593  ;;  %5532 = vmatprep.mubr.bf16.mxu1 %v4938_v40  ;;  %5420 = vmatmul.mubr.bf16.gmra.mxu0 %v4935_v30 }
 0x9f5   :  { %v7596_v44 = vpop.eup %7595  ;;  %5533 = vmatmul.mubr.bf16.gmra.mxu1 %v4937_v60  ;;  %v4403_v31 = vpop.f32.mrf.mxu0 }
 0x9f6   :  { %v4516_v35 = vpop.f32.mrf.mxu1  ;;  %v7598_v47 = vpop.eup %7597  ;;  %v4404_v41 = vadd.f32 %v4403_v31, %v12531_v4 }
 0x9f7   :  { %v4517_v49 = vadd.f32 %v4516_v35, %v12533_v19  ;;  %v7600_v18 = vpop.eup %7599  ;;  %v4405_v12 = vpop.f32.mrf.mxu0  ;;  %v4939_v61 = vpack.c.bf16 %v7598_v47, %v7592_v38 }
 0x9f8   :  { %v4518_v39 = vpop.f32.mrf.mxu1  ;;  %v7602_v37 = vpop.eup %7601  ;;  %v6528_v58 = vmul.f32 -1.442695, %v4404_v41  ;;  %v4406_v59 = vadd.f32 %v4405_v12, %v12537_v28 }
 0x9f9   :  { %v6530_v34 = vmul.f32 -1.442695, %v4517_v49  ;;  %v7604_v21 = vpop.eup %7603  ;;  %v4940_v25 = vpack.c.bf16 %v7602_v37, %v7594_v27  ;;  %v4519_v15 = vadd.f32 %v4518_v39, %v12539_v7  ;;  %v4407_v63 = vpop.f32.mrf.mxu0 }
 0x9fa   :  { %v4520_v24 = vpop.f32.mrf.mxu1  ;;  %v7606_v6 = vpop.eup %7605  ;;  %v4942_v23 = vpack.c.bf16 %v7604_v21, %v7596_v44  ;;  %7607 = vpow2.f32 %v6528_v58  ;;  %v6529_v29 = vmul.f32 -1.442695, %v4406_v59  ;;  %v4408_v16 = vadd.f32 %v4407_v63, %v12531_v4 }
 0x9fb   :  { %5429 = vmatprep.mubr.bf16.mxu0 %v4940_v25  ;;  %v4941_v42 = vpack.c.bf16 %v7600_v18, %v7606_v6  ;;  %7609 = vpow2.f32 %v6530_v34  ;;  %v6531_v5 = vmul.f32 -1.442695, %v4519_v15  ;;  %v4521_v46 = vadd.f32 %v4520_v24, %v12533_v19  ;;  %v4409_v51 = vpop.f32.mrf.mxu0 }
 0x9fc   :  { %v4522_v20 = vpop.f32.mrf.mxu1  ;;  %5542 = vmatprep.mubr.bf16.mxu1 %v4942_v23  ;;  %5430 = vmatmul.mubr.bf16.gmra.mxu0 %v4939_v61  ;;  %7611 = vpow2.f32 %v6529_v29  ;;  %v6532_v26 = vmul.f32 -1.442695, %v4408_v16  ;;  %v4410_v53 = vadd.f32 %v4409_v51, %v12537_v28 }
 0x9fd   :  { %v4523_v13 = vadd.f32 %v4522_v20, %v12539_v7  ;;  %5543 = vmatmul.mubr.bf16.gmra.mxu1 %v4941_v42  ;;  %7613 = vpow2.f32 %v6531_v5  ;;  %v6534_v56 = vmul.f32 -1.442695, %v4521_v46  ;;  %v4413_v54 = vpop.f32.mrf.mxu0 }
 0x9fe   :  { %v4526_v2 = vpop.f32.mrf.mxu1  ;;  %7615 = vpow2.f32 %v6532_v26  ;;  %v6533_v1 = vmul.f32 -1.442695, %v4410_v53  ;;  %v4414_v40 = vadd.f32 %v4413_v54, %v12531_v4 }
 0x9ff   :  { %v6535_v11 = vmul.f32 -1.442695, %v4523_v13  ;;  %7617 = vpow2.f32 %v6534_v56  ;;  %v4527_v30 = vadd.f32 %v4526_v2, %v12533_v19  ;;  %v4415_v38 = vpop.f32.mrf.mxu0 }
 0xa00   :  { %v4528_v60 = vpop.f32.mrf.mxu1  ;;  %7619 = vpow2.f32 %v6533_v1  ;;  %v6536_v27 = vmul.f32 -1.442695, %v4414_v40  ;;  %v4416_v44 = vadd.f32 %v4415_v38, %v12537_v28 }
 0xa01   :  { %v4529_v31 = vadd.f32 %v4528_v60, %v12539_v7  ;;  %7621 = vpow2.f32 %v6535_v11  ;;  %v6538_v35 = vmul.f32 -1.442695, %v4527_v30  ;;  %v4417_v47 = vpop.f32.mrf.mxu0 }
 0xa02   :  { %v4530_v41 = vpop.f32.mrf.mxu1  ;;  %7623 = vpow2.f32 %v6536_v27  ;;  %v6537_v49 = vmul.f32 -1.442695, %v4416_v44  ;;  %v4418_v12 = vadd.f32 %v4417_v47, %v12531_v4 }
 0xa03   :  { %v6539_v18 = vmul.f32 -1.442695, %v4529_v31  ;;  %7625 = vpow2.f32 %v6538_v35  ;;  %v4531_v39 = vadd.f32 %v4530_v41, %v12533_v19  ;;  %v4419_v37 = vpop.f32.mrf.mxu0 }
 0xa04   :  { %v4532_v58 = vpop.f32.mrf.mxu1  ;;  %7627 = vpow2.f32 %v6537_v49  ;;  %v6540_v34 = vmul.f32 -1.442695, %v4418_v12  ;;  %v4420_v59 = vadd.f32 %v4419_v37, %v12537_v28 }
 0xa05   :  { %v4533_v21 = vadd.f32 %v4532_v58, %v12539_v7  ;;  %7629 = vpow2.f32 %v6539_v18  ;;  %v6542_v25 = vmul.f32 -1.442695, %v4531_v39  ;;  %v7271_v39 = vld [vmem:[%s12833_s15 + $0x78] sm:$0xff]  }
 0xa06   :  { %7631 = vpow2.f32 %v6540_v34  ;;  %v6541_v61 = vmul.f32 -1.442695, %v4420_v59  ;;  %v7272_v58 = vld [vmem:[%s12833_s15 + $0x38] sm:$0xff]   ;;  %6733 = vmatprep.subr.bf16.mxu0 %v7271_v39 }
 0xa07   :  { %v6543_v15 = vmul.f32 -1.442695, %v4533_v21  ;;  %v7608_v63 = vpop.eup %7607  ;;  %7633 = vpow2.f32 %v6542_v25  ;;  %6734 = vmatpush3.bf16.msra.mxu0 %v7272_v58 }
 0xa08   :  { %v7610_v24 = vpop.eup %7609  ;;  %v4775_v4 = vadd.f32 1.0, %v7608_v63  ;;  %7635 = vpow2.f32 %v6541_v61 }
 0xa09   :  { %v7612_v6 = vpop.eup %7611  ;;  %7637 = vpow2.f32 %v6543_v15  ;;  %v4777_v51 = vadd.f32 1.0, %v7610_v24 }
 0xa0a   :  { %v7614_v19 = vpop.eup %7613  ;;  %v4776_v23 = vadd.f32 1.0, %v7612_v6  ;;  %7639 = vrcp.f32 %v4775_v4 }
 0xa0b   :  { %v7616_v29 = vpop.eup %7615  ;;  %v4778_v16 = vadd.f32 1.0, %v7614_v19 }
 0xa0c   :  { %v7618_v28 = vpop.eup %7617  ;;  %7641 = vrcp.f32 %v4776_v23  ;;  %v4779_v7 = vadd.f32 1.0, %v7616_v29 }
 0xa0d   :  { %v7620_v42 = vpop.eup %7619  ;;  %7643 = vrcp.f32 %v4778_v16  ;;  %v4781_v5 = vadd.f32 1.0, %v7618_v28  ;;  %v7273_v16 = vld [vmem:[%s12833_s15 + $0x70] sm:$0xff]  }
 0xa0e   :  { %v7622_v46 = vpop.eup %7621  ;;  %7645 = vrcp.f32 %v4779_v7  ;;  %v4780_v20 = vadd.f32 1.0, %v7620_v42  ;;  %v7274_v42 = vld [vmem:[%s12833_s15 + $0x30] sm:$0xff]   ;;  %6735 = vmatprep.subr.bf16.mxu0 %v7273_v16 }
 0xa0f   :  { %v7624_v26 = vpop.eup %7623  ;;  %7647 = vrcp.f32 %v4781_v5  ;;  %v4782_v53 = vadd.f32 1.0, %v7622_v46  ;;  %6736 = vmatpush3.bf16.msra.mxu0 %v7274_v42 }
 0xa10   :  { %v7626_v13 = vpop.eup %7625  ;;  %7649 = vrcp.f32 %v4780_v20  ;;  %v4783_v56 = vadd.f32 1.0, %v7624_v26  ;;  %v7275_v26 = vld [vmem:[%s12833_s15 + $0x68] sm:$0xff]  }
 0xa11   :  { %v7628_v54 = vpop.eup %7627  ;;  %7651 = vrcp.f32 %v4782_v53  ;;  %v4785_v31 = vadd.f32 1.0, %v7626_v13  ;;  %v7276_v53 = vld [vmem:[%s12833_s15 + $0x28] sm:$0xff]   ;;  %6737 = vmatprep.subr.bf16.mxu0 %v7275_v26  ;;  %v7277_v13 = vld [vmem:[%s12833_s15 + $0x60] sm:$0xff]  }
 0xa12   :  { %v7630_v2 = vpop.eup %7629  ;;  %7653 = vrcp.f32 %v4777_v51  ;;  %v4784_v1 = vadd.f32 1.0, %v7628_v54  ;;  %v7279_v54 = vld [vmem:[%s12833_s15 + $0x58] sm:$0xff]  }
 0xa13   :  { %v7632_v11 = vpop.eup %7631  ;;  %7655 = vrcp.f32 %v4783_v56  ;;  %v4786_v40 = vadd.f32 1.0, %v7630_v2  ;;  %6738 = vmatpush3.bf16.msra.mxu0 %v7276_v53  ;;  %v7278_v56 = vld [vmem:[%s12833_s15 + $0x20] sm:$0xff]   ;;  %v7280_v2 = vld [vmem:[%s12833_s15 + $0x18] sm:$0xff]  }
 0xa14   :  { %v7634_v30 = vpop.eup %7633  ;;  %7657 = vrcp.f32 %v4784_v1  ;;  %v4787_v38 = vadd.f32 1.0, %v7632_v11  ;;  %6739 = vmatprep.subr.bf16.mxu0 %v7277_v13  ;;  %v7281_v1 = vld [vmem:[%s12833_s15 + $0x50] sm:$0xff]  }
 0xa15   :  { %v7636_v60 = vpop.eup %7635  ;;  %7659 = vrcp.f32 %v4786_v40  ;;  %v4789_v27 = vadd.f32 1.0, %v7634_v30  ;;  %v7282_v11 = vld [vmem:[%s12833_s15 + $0x10] sm:$0xff]   ;;  %v7283_v40 = vld [vmem:[%s12833_s15 + $0x48] sm:$0xff]  }
 0xa16   :  { %v7638_v44 = vpop.eup %7637  ;;  %7661 = vrcp.f32 %v4787_v38  ;;  %v4788_v35 = vadd.f32 1.0, %v7636_v60  ;;  %v7284_v30 = vld [vmem:[%s12833_s15 + $0x8] sm:$0xff]   ;;  %v7285_v38 = vld [vmem:[%s12833_s15 + $0x40] sm:$0xff]  }
 0xa17   :  { %7663 = vrcp.f32 %v4789_v27  ;;  %v4790_v47 = vadd.f32 1.0, %v7638_v44  ;;  %v7640_v41 = vpop.eup %7639  ;;  %6740 = vmatpush3.bf16.msra.mxu0 %v7278_v56  ;;  %v7286_v60 = vld [vmem:[%s12833_s15] sm:$0xff]  }
 0xa18   :  { %7665 = vrcp.f32 %v4788_v35  ;;  %6741 = vmatprep.subr.bf16.mxu0 %v7279_v54  ;;  %v5015_v27 = vld [vmem:[%s12834_s14] sm:$0x3] }
 0xa19   :  { %v7642_v49 = vpop.eup %7641  ;;  %7667 = vrcp.f32 %v4790_v47  ;;  %v12664_v44 = vrot.slane %v5015_v27, %v4202_v43 }
 0xa1a   :  { %v7644_v18 = vpop.eup %7643  ;;  %7669 = vrcp.f32 %v4785_v31  ;;  %v12668_v31 = vrot.slane %v5015_v27, %v4206_v45 }
 0xa1b   :  { %v7646_v12 = vpop.eup %7645  ;;  %6742 = vmatpush3.bf16.msra.mxu0 %v7280_v2 }
 0xa1c   :  { %v7648_v37 = vpop.eup %7647  ;;  %v4943_v15 = vpack.c.bf16 %v7646_v12, %v7640_v41  ;;  %6743 = vmatprep.subr.bf16.mxu0 %v7281_v1 }
 0xa1d   :  { %v7650_v34 = vpop.eup %7649 }
 0xa1e   :  { %v7652_v59 = vpop.eup %7651  ;;  %v4944_v21 = vpack.c.bf16 %v7650_v34, %v7642_v49 }
 0xa1f   :  { %v7654_v25 = vpop.eup %7653  ;;  %v4946_v61 = vpack.c.bf16 %v7652_v59, %v7644_v18  ;;  %6744 = vmatpush3.bf16.msra.mxu0 %v7282_v11 }
 0xa20   :  { %v7656_v63 = vpop.eup %7655  ;;  %5439 = vmatprep.mubr.bf16.mxu0 %v4944_v21  ;;  %v4945_v24 = vpack.c.bf16 %v7648_v37, %v7654_v25  ;;  %6745 = vmatprep.subr.bf16.mxu0 %v7283_v40 }
 0xa21   :  { %v7658_v4 = vpop.eup %7657  ;;  %5552 = vmatprep.mubr.bf16.mxu1 %v4946_v61  ;;  %5440 = vmatmul.mubr.bf16.gmra.mxu0 %v4943_v15 }
 0xa22   :  { %v7660_v6 = vpop.eup %7659  ;;  %5553 = vmatmul.mubr.bf16.gmra.mxu1 %v4945_v24 }
 0xa23   :  { %v7662_v19 = vpop.eup %7661  ;;  %6746 = vmatpush3.bf16.msra.mxu0 %v7284_v30 }
 0xa24   :  { %v7664_v23 = vpop.eup %7663  ;;  %v4947_v51 = vpack.c.bf16 %v7662_v19, %v7656_v63  ;;  %6747 = vmatprep.subr.bf16.mxu0 %v7285_v38 }
 0xa25   :  { %v7666_v29 = vpop.eup %7665 }
 0xa26   :  { %v7668_v28 = vpop.eup %7667  ;;  %v4948_v7 = vpack.c.bf16 %v7666_v29, %v7658_v4 }
 0xa27   :  { %v7670_v5 = vpop.eup %7669  ;;  %v4950_v46 = vpack.c.bf16 %v7668_v28, %v7660_v6  ;;  %6748 = vmatpush3.bf16.msra.mxu0 %v7286_v60 }
 0xa28   :  { %5449 = vmatprep.mubr.bf16.mxu0 %v4948_v7  ;;  %v4949_v20 = vpack.c.bf16 %v7664_v23, %v7670_v5 }
 0xa29   :  { %5562 = vmatprep.mubr.bf16.mxu1 %v4950_v46  ;;  %5450 = vmatmul.mubr.bf16.gmra.mxu0 %v4947_v51 }
 0xa2a   :  { %5563 = vmatmul.mubr.bf16.gmra.mxu1 %v4949_v20 }
 0xa74   :  { %v5381_v35 = vpop.f32.mrf.mxu0 }
 0xa75   :  { %v5494_v47 = vpop.f32.mrf.mxu1  ;;  %v5382_v41 = vadd.f32 %v5381_v35, %v12664_v44 }
 0xa76   :  { %v5383_v49 = vpop.f32.mrf.mxu0 }
 0xa77   :  { %v5496_v18 = vpop.f32.mrf.mxu1  ;;  %v5495_v12 = vadd.f32 %v5494_v47, %v5382_v41  ;;  %v5384_v39 = vadd.f32 %v5383_v49, %v12668_v31 }
 0xa78   :  { %v5385_v37 = vpop.f32.mrf.mxu0 }
 0xa79   :  { %v5498_v58 = vpop.f32.mrf.mxu1  ;;  %v5497_v34 = vadd.f32 %v5496_v18, %v5384_v39  ;;  %v5386_v59 = vadd.f32 %v5385_v37, %v12664_v44  ;;  %v6608_v43 = vmul.f32 -1.442695, %v5495_v12 }
 0xa7a   :  { %v5387_v21 = vpop.f32.mrf.mxu0 }
 0xa7b   :  { %v5500_v25 = vpop.f32.mrf.mxu1  ;;  %v6609_v32 = vmul.f32 -1.442695, %v5497_v34  ;;  %v5499_v45 = vadd.f32 %v5498_v58, %v5386_v59  ;;  %v5388_v61 = vadd.f32 %v5387_v21, %v12668_v31 }
 0xa7c   :  { %v5391_v15 = vpop.f32.mrf.mxu0 }
 0xa7d   :  { %v5504_v63 = vpop.f32.mrf.mxu1  ;;  %7671 = vpow2.f32 %v6609_v32  ;;  %v6610_v24 = vmul.f32 -1.442695, %v5499_v45  ;;  %v5501_v4 = vadd.f32 %v5500_v25, %v5388_v61  ;;  %v5392_v6 = vadd.f32 %v5391_v15, %v12664_v44 }
 0xa7e   :  { %7673 = vpow2.f32 %v6608_v43  ;;  %v5393_v19 = vpop.f32.mrf.mxu0 }
 0xa7f   :  { %v5506_v23 = vpop.f32.mrf.mxu1  ;;  %7675 = vpow2.f32 %v6610_v24  ;;  %v6611_v29 = vmul.f32 -1.442695, %v5501_v4  ;;  %v5505_v16 = vadd.f32 %v5504_v63, %v5392_v6  ;;  %v5394_v28 = vadd.f32 %v5393_v19, %v12668_v31 }
 0xa80   :  { %v5395_v7 = vpop.f32.mrf.mxu0 }
 0xa81   :  { %v5508_v42 = vpop.f32.mrf.mxu1  ;;  %7677 = vpow2.f32 %v6611_v29  ;;  %v5507_v5 = vadd.f32 %v5506_v23, %v5394_v28  ;;  %v5396_v46 = vadd.f32 %v5395_v7, %v12664_v44  ;;  %v6612_v51 = vmul.f32 -1.442695, %v5505_v16 }
 0xa82   :  { %v5397_v20 = vpop.f32.mrf.mxu0 }
 0xa83   :  { %v6613_v26 = vmul.f32 -1.442695, %v5507_v5  ;;  %v5509_v53 = vadd.f32 %v5508_v42, %v5396_v46  ;;  %v5398_v13 = vadd.f32 %v5397_v20, %v12668_v31  ;;  %v5510_v56 = vpop.f32.mrf.mxu1 }
 0xa85   :  { %7679 = vpow2.f32 %v6613_v26  ;;  %v6614_v54 = vmul.f32 -1.442695, %v5509_v53  ;;  %v5511_v2 = vadd.f32 %v5510_v56, %v5398_v13 }
 0xa86   :  { %7681 = vpow2.f32 %v6612_v51 }
 0xa87   :  { %7683 = vpow2.f32 %v6614_v54  ;;  %v6615_v1 = vmul.f32 -1.442695, %v5511_v2 }
 0xa89   :  { %7685 = vpow2.f32 %v6615_v1 }
 0xa8a   :  { %v7672_v11 = vpop.eup %7671 }
 0xa8b   :  { %v7674_v40 = vpop.eup %7673  ;;  %v5670_v30 = vadd.f32 1.0, %v7672_v11 }
 0xa8c   :  { %v7676_v38 = vpop.eup %7675  ;;  %v5669_v35 = vadd.f32 1.0, %v7674_v40 }
 0xa8d   :  { %v5671_v60 = vadd.f32 1.0, %v7676_v38  ;;  %7687 = vrcp.f32 %v5670_v30 }
 0xa8e   :  { %v7678_v27 = vpop.eup %7677 }
 0xa8f   :  { %v5672_v47 = vadd.f32 1.0, %v7678_v27  ;;  %7689 = vrcp.f32 %v5671_v60 }
 0xa91   :  { %7691 = vrcp.f32 %v5672_v47 }
 0xa92   :  { %v7680_v41 = vpop.eup %7679  ;;  %7693 = vrcp.f32 %v5669_v35 }
 0xa93   :  { %v7682_v49 = vpop.eup %7681  ;;  %v5674_v18 = vadd.f32 1.0, %v7680_v41 }
 0xa94   :  { %v5401_v12 = vpop.f32.mrf.mxu0  ;;  %v7684_v39 = vpop.eup %7683  ;;  %v5673_v21 = vadd.f32 1.0, %v7682_v49 }
 0xa95   :  { %v5402_v37 = vadd.f32 %v5401_v12, %v12664_v44  ;;  %v5514_v58 = vpop.f32.mrf.mxu1  ;;  %v5675_v34 = vadd.f32 1.0, %v7684_v39  ;;  %7695 = vrcp.f32 %v5674_v18 }
 0xa96   :  { %v5403_v59 = vpop.f32.mrf.mxu0  ;;  %v7686_v43 = vpop.eup %7685 }
 0xa97   :  { %v5515_v25 = vadd.f32 %v5514_v58, %v5402_v37  ;;  %v5404_v32 = vadd.f32 %v5403_v59, %v12668_v31  ;;  %v5516_v45 = vpop.f32.mrf.mxu1  ;;  %v5676_v61 = vadd.f32 1.0, %v7686_v43  ;;  %7697 = vrcp.f32 %v5675_v34 }
 0xa98   :  { %v5405_v15 = vpop.f32.mrf.mxu0 }
 0xa99   :  { %v6616_v63 = vmul.f32 -1.442695, %v5515_v25  ;;  %v5517_v24 = vadd.f32 %v5516_v45, %v5404_v32  ;;  %v5406_v4 = vadd.f32 %v5405_v15, %v12664_v44  ;;  %v5518_v6 = vpop.f32.mrf.mxu1  ;;  %7699 = vrcp.f32 %v5676_v61 }
 0xa9a   :  { %v5407_v19 = vpop.f32.mrf.mxu0  ;;  %7701 = vrcp.f32 %v5673_v21  ;;  %v7688_v42 = vpop.eup %7687 }
 0xa9b   :  { %v6617_v23 = vmul.f32 -1.442695, %v5517_v24  ;;  %v5519_v29 = vadd.f32 %v5518_v6, %v5406_v4  ;;  %v5408_v16 = vadd.f32 %v5407_v19, %v12668_v31  ;;  %v5520_v28 = vpop.f32.mrf.mxu1  ;;  %7703 = vpow2.f32 %v6616_v63 }
 0xa9c   :  { %v5411_v7 = vpop.f32.mrf.mxu0  ;;  %v7690_v26 = vpop.eup %7689 }
 0xa9d   :  { %v6618_v5 = vmul.f32 -1.442695, %v5519_v29  ;;  %v5521_v46 = vadd.f32 %v5520_v28, %v5408_v16  ;;  %v5412_v51 = vadd.f32 %v5411_v7, %v12664_v44  ;;  %v5524_v20 = vpop.f32.mrf.mxu1  ;;  %7705 = vpow2.f32 %v6617_v23 }
 0xa9e   :  { %v5413_v53 = vpop.f32.mrf.mxu0  ;;  %v7692_v13 = vpop.eup %7691 }
 0xa9f   :  { %7707 = vpow2.f32 %v6618_v5  ;;  %v6619_v56 = vmul.f32 -1.442695, %v5521_v46  ;;  %v5525_v54 = vadd.f32 %v5524_v20, %v5412_v51  ;;  %v5414_v2 = vadd.f32 %v5413_v53, %v12668_v31  ;;  %v5526_v1 = vpop.f32.mrf.mxu1  ;;  %v7694_v11 = vpop.eup %7693 }
 0xaa0   :  { %v5415_v40 = vpop.f32.mrf.mxu0  ;;  %v5766_v30 = vpack.c.bf16 %v7692_v13, %v7688_v42  ;;  %v5765_v35 = vpack.c.bf16 %v7690_v26, %v7694_v11 }
 0xaa1   :  { %7709 = vpow2.f32 %v6619_v56  ;;  %v5527_v38 = vadd.f32 %v5526_v1, %v5414_v2  ;;  %v5416_v60 = vadd.f32 %v5415_v40, %v12664_v44  ;;  %v5528_v27 = vpop.f32.mrf.mxu1  ;;  %v6620_v47 = vmul.f32 -1.442695, %v5525_v54 }
 0xaa2   :  { %v5417_v41 = vpop.f32.mrf.mxu0  ;;  %5948 = vmatprep.mubr.bf16.mxu0 %v5766_v30  ;;  %v7696_v37 = vpop.eup %7695 }
 0xaa3   :  { %v6621_v49 = vmul.f32 -1.442695, %v5527_v38  ;;  %v5529_v18 = vadd.f32 %v5528_v27, %v5416_v60  ;;  %v5418_v12 = vadd.f32 %v5417_v41, %v12668_v31  ;;  %5949 = vmatmul.mubr.bf16.vlgmr.msra.gmra.mxu0 %v5765_v35  ;;  %v5530_v39 = vpop.f32.mrf.mxu1 }
 0xaa4   :  { %v7698_v59 = vpop.eup %7697 }
 0xaa5   :  { %7711 = vpow2.f32 %v6621_v49  ;;  %v6622_v58 = vmul.f32 -1.442695, %v5529_v18  ;;  %v5531_v34 = vadd.f32 %v5530_v39, %v5418_v12 }
 0xaa6   :  { %7713 = vpow2.f32 %v6620_v47  ;;  %v7700_v43 = vpop.eup %7699 }
 0xaa7   :  { %7715 = vpow2.f32 %v6622_v58  ;;  %v6623_v21 = vmul.f32 -1.442695, %v5531_v34  ;;  %v7702_v25 = vpop.eup %7701  ;;  %v5768_v32 = vpack.c.bf16 %v7700_v43, %v7696_v37 }
 0xaa8   :  { %v5767_v45 = vpack.c.bf16 %v7698_v59, %v7702_v25  ;;  %v7704_v61 = vpop.eup %7703 }
 0xaa9   :  { %7717 = vpow2.f32 %v6623_v21  ;;  %5956 = vmatprep.mubr.bf16.mxu0 %v5768_v32  ;;  %v5677_v19 = vadd.f32 1.0, %v7704_v61 }
 0xaaa   :  { %v7706_v15 = vpop.eup %7705 }
 0xaab   :  { %5957 = vmatmul.mubr.bf16.gmra.mxu0 %v5767_v45  ;;  %v5678_v6 = vadd.f32 1.0, %v7706_v15 }
 0xaac   :  { %v7708_v63 = vpop.eup %7707 }
 0xaad   :  { %v5679_v24 = vadd.f32 1.0, %v7708_v63 }
 0xaae   :  { %v7710_v4 = vpop.eup %7709 }
 0xaaf   :  { %v5680_v23 = vadd.f32 1.0, %v7710_v4  ;;  %7719 = vrcp.f32 %v5679_v24 }
 0xab1   :  { %7721 = vrcp.f32 %v5680_v23 }
 0xab2   :  { %v7712_v29 = vpop.eup %7711  ;;  %7723 = vrcp.f32 %v5678_v6 }
 0xab3   :  { %v7714_v16 = vpop.eup %7713  ;;  %7725 = vrcp.f32 %v5677_v19  ;;  %v5682_v28 = vadd.f32 1.0, %v7712_v29 }
 0xab4   :  { %v7716_v7 = vpop.eup %7715  ;;  %v5421_v42 = vpop.f32.mrf.mxu0  ;;  %v5681_v26 = vadd.f32 1.0, %v7714_v16 }
 0xab5   :  { %v5683_v5 = vadd.f32 1.0, %v7716_v7  ;;  %v5422_v46 = vadd.f32 %v5421_v42, %v12664_v44  ;;  %v5534_v51 = vpop.f32.mrf.mxu1  ;;  %7727 = vrcp.f32 %v5682_v28 }
 0xab6   :  { %v7718_v20 = vpop.eup %7717  ;;  %v5423_v53 = vpop.f32.mrf.mxu0 }
 0xab7   :  { %v5684_v13 = vadd.f32 1.0, %v7718_v20  ;;  %v5535_v56 = vadd.f32 %v5534_v51, %v5422_v46  ;;  %v5424_v54 = vadd.f32 %v5423_v53, %v12668_v31  ;;  %v5536_v2 = vpop.f32.mrf.mxu1  ;;  %7729 = vrcp.f32 %v5683_v5 }
 0xab8   :  { %v5425_v1 = vpop.f32.mrf.mxu0 }
 0xab9   :  { %7731 = vrcp.f32 %v5684_v13  ;;  %v5537_v11 = vadd.f32 %v5536_v2, %v5424_v54  ;;  %v5426_v40 = vadd.f32 %v5425_v1, %v12664_v44  ;;  %v5538_v30 = vpop.f32.mrf.mxu1  ;;  %v6624_v38 = vmul.f32 -1.442695, %v5535_v56 }
 0xaba   :  { %v5427_v60 = vpop.f32.mrf.mxu0  ;;  %7733 = vrcp.f32 %v5681_v26 }
 0xabb   :  { %v6625_v27 = vmul.f32 -1.442695, %v5537_v11  ;;  %v5539_v35 = vadd.f32 %v5538_v30, %v5426_v40  ;;  %v5428_v47 = vadd.f32 %v5427_v60, %v12668_v31  ;;  %v5540_v41 = vpop.f32.mrf.mxu1 }
 0xabc   :  { %v5431_v49 = vpop.f32.mrf.mxu0  ;;  %v7720_v18 = vpop.eup %7719 }
 0xabd   :  { %7735 = vpow2.f32 %v6625_v27  ;;  %v6626_v12 = vmul.f32 -1.442695, %v5539_v35  ;;  %v5541_v39 = vadd.f32 %v5540_v41, %v5428_v47  ;;  %v5432_v37 = vadd.f32 %v5431_v49, %v12664_v44  ;;  %v5544_v58 = vpop.f32.mrf.mxu1 }
 0xabe   :  { %v7722_v34 = vpop.eup %7721  ;;  %7737 = vpow2.f32 %v6624_v38  ;;  %v5433_v59 = vpop.f32.mrf.mxu0 }
 0xabf   :  { %v7724_v43 = vpop.eup %7723  ;;  %7739 = vpow2.f32 %v6626_v12  ;;  %v6627_v21 = vmul.f32 -1.442695, %v5541_v39  ;;  %v5545_v25 = vadd.f32 %v5544_v58, %v5432_v37  ;;  %v5434_v32 = vadd.f32 %v5433_v59, %v12668_v31  ;;  %v5546_v45 = vpop.f32.mrf.mxu1 }
 0xac0   :  { %v7726_v61 = vpop.eup %7725  ;;  %v5435_v15 = vpop.f32.mrf.mxu0  ;;  %v5770_v63 = vpack.c.bf16 %v7722_v34, %v7724_v43 }
 0xac1   :  { %7741 = vpow2.f32 %v6627_v21  ;;  %v5547_v24 = vadd.f32 %v5546_v45, %v5434_v32  ;;  %v5436_v4 = vadd.f32 %v5435_v15, %v12664_v44  ;;  %v5548_v6 = vpop.f32.mrf.mxu1  ;;  %v5769_v19 = vpack.c.bf16 %v7720_v18, %v7726_v61 }
 0xac2   :  { %v6628_v23 = vmul.f32 -1.442695, %v5545_v25  ;;  %v5437_v29 = vpop.f32.mrf.mxu0  ;;  %5964 = vmatprep.mubr.bf16.mxu0 %v5770_v63  ;;  %v7728_v42 = vpop.eup %7727 }
 0xac3   :  { %v6629_v16 = vmul.f32 -1.442695, %v5547_v24  ;;  %v5549_v28 = vadd.f32 %v5548_v6, %v5436_v4  ;;  %v5438_v7 = vadd.f32 %v5437_v29, %v12668_v31  ;;  %5965 = vmatmul.mubr.bf16.gmra.mxu0 %v5769_v19  ;;  %v5550_v5 = vpop.f32.mrf.mxu1 }
 0xac4   :  { %v7730_v46 = vpop.eup %7729 }
 0xac5   :  { %7743 = vpow2.f32 %v6629_v16  ;;  %v6630_v51 = vmul.f32 -1.442695, %v5549_v28  ;;  %v5551_v20 = vadd.f32 %v5550_v5, %v5438_v7 }
 0xac6   :  { %v7732_v26 = vpop.eup %7731  ;;  %7745 = vpow2.f32 %v6628_v23 }
 0xac7   :  { %7747 = vpow2.f32 %v6630_v51  ;;  %v6631_v53 = vmul.f32 -1.442695, %v5551_v20  ;;  %v5772_v13 = vpack.c.bf16 %v7732_v26, %v7728_v42  ;;  %v7734_v56 = vpop.eup %7733 }
 0xac8   :  { %v5771_v54 = vpack.c.bf16 %v7730_v46, %v7734_v56 }
 0xac9   :  { %7749 = vpow2.f32 %v6631_v53  ;;  %5972 = vmatprep.mubr.bf16.mxu0 %v5772_v13 }
 0xaca   :  { %v7736_v2 = vpop.eup %7735 }
 0xacb   :  { %v7738_v1 = vpop.eup %7737  ;;  %v5686_v11 = vadd.f32 1.0, %v7736_v2  ;;  %5973 = vmatmul.mubr.bf16.gmra.mxu0 %v5771_v54 }
 0xacc   :  { %v7740_v40 = vpop.eup %7739  ;;  %v5685_v60 = vadd.f32 1.0, %v7738_v1 }
 0xacd   :  { %v5687_v30 = vadd.f32 1.0, %v7740_v40  ;;  %7751 = vrcp.f32 %v5686_v11 }
 0xace   :  { %v7742_v38 = vpop.eup %7741 }
 0xacf   :  { %v5688_v27 = vadd.f32 1.0, %v7742_v38  ;;  %7753 = vrcp.f32 %v5687_v30 }
 0xad1   :  { %7755 = vrcp.f32 %v5688_v27 }
 0xad2   :  { %v7744_v35 = vpop.eup %7743  ;;  %7757 = vrcp.f32 %v5685_v60 }
 0xad3   :  { %v7746_v47 = vpop.eup %7745  ;;  %v5690_v41 = vadd.f32 1.0, %v7744_v35 }
 0xad4   :  { %v7748_v49 = vpop.eup %7747  ;;  %v5689_v39 = vadd.f32 1.0, %v7746_v47 }
 0xad5   :  { %v5691_v18 = vadd.f32 1.0, %v7748_v49  ;;  %7759 = vrcp.f32 %v5690_v41 }
 0xad6   :  { %v7750_v12 = vpop.eup %7749 }
 0xad7   :  { %v5692_v37 = vadd.f32 1.0, %v7750_v12  ;;  %7761 = vrcp.f32 %v5691_v18 }
 0xad9   :  { %7763 = vrcp.f32 %v5692_v37 }
 0xada   :  { %7765 = vrcp.f32 %v5689_v39  ;;  %v7752_v58 = vpop.eup %7751 }
 0xadc   :  { %v7754_v34 = vpop.eup %7753 }
 0xade   :  { %v7756_v59 = vpop.eup %7755 }
 0xadf   :  { %v7758_v43 = vpop.eup %7757  ;;  %v5774_v21 = vpack.c.bf16 %v7756_v59, %v7752_v58 }
 0xae0   :  { %v5773_v25 = vpack.c.bf16 %v7754_v34, %v7758_v43 }
 0xae1   :  { %5980 = vmatprep.mubr.bf16.mxu0 %v5774_v21  ;;  %v5441_v32 = vpop.f32.mrf.mxu0 }
 0xae2   :  { %5981 = vmatmul.mubr.bf16.gmra.mxu0 %v5773_v25  ;;  %v5442_v45 = vadd.f32 %v5441_v32, %v12664_v44  ;;  %v5554_v61 = vpop.f32.mrf.mxu1  ;;  %v7760_v63 = vpop.eup %7759 }
 0xae3   :  { %v5443_v15 = vpop.f32.mrf.mxu0 }
 0xae4   :  { %v5555_v24 = vadd.f32 %v5554_v61, %v5442_v45  ;;  %v5444_v4 = vadd.f32 %v5443_v15, %v12668_v31  ;;  %v5556_v6 = vpop.f32.mrf.mxu1  ;;  %v7762_v19 = vpop.eup %7761 }
 0xae5   :  { %v5445_v23 = vpop.f32.mrf.mxu0 }
 0xae6   :  { %v7764_v29 = vpop.eup %7763  ;;  %v5557_v16 = vadd.f32 %v5556_v6, %v5444_v4  ;;  %v5446_v28 = vadd.f32 %v5445_v23, %v12664_v44  ;;  %v5558_v7 = vpop.f32.mrf.mxu1  ;;  %v6632_v46 = vmul.f32 -1.442695, %v5555_v24 }
 0xae7   :  { %v7766_v42 = vpop.eup %7765  ;;  %v5776_v5 = vpack.c.bf16 %v7764_v29, %v7760_v63  ;;  %v5447_v51 = vpop.f32.mrf.mxu0 }
 0xae8   :  { %v5775_v20 = vpack.c.bf16 %v7762_v19, %v7766_v42  ;;  %v6633_v26 = vmul.f32 -1.442695, %v5557_v16  ;;  %v5559_v53 = vadd.f32 %v5558_v7, %v5446_v28  ;;  %v5448_v13 = vadd.f32 %v5447_v51, %v12668_v31  ;;  %v5560_v56 = vpop.f32.mrf.mxu1 }
 0xae9   :  { %5988 = vmatprep.mubr.bf16.mxu0 %v5776_v5  ;;  %v5451_v54 = vpop.f32.mrf.mxu0 }
 0xaea   :  { %5989 = vmatmul.mubr.bf16.gmra.mxu0 %v5775_v20  ;;  %7767 = vpow2.f32 %v6633_v26  ;;  %v6634_v2 = vmul.f32 -1.442695, %v5559_v53  ;;  %v5561_v1 = vadd.f32 %v5560_v56, %v5448_v13  ;;  %v5452_v11 = vadd.f32 %v5451_v54, %v12664_v44  ;;  %v5564_v40 = vpop.f32.mrf.mxu1 }
 0xaeb   :  { %7769 = vpow2.f32 %v6632_v46  ;;  %v5453_v30 = vpop.f32.mrf.mxu0 }
 0xaec   :  { %7771 = vpow2.f32 %v6634_v2  ;;  %v6635_v38 = vmul.f32 -1.442695, %v5561_v1  ;;  %v5565_v60 = vadd.f32 %v5564_v40, %v5452_v11  ;;  %v5454_v27 = vadd.f32 %v5453_v30, %v12668_v31  ;;  %v5566_v35 = vpop.f32.mrf.mxu1  ;;  %v12705_v40 = vld [vmem:[%s12835_s16] ss:$0 sm:$0xff] }
 0xaed   :  { %v5455_v47 = vpop.f32.mrf.mxu0 }
 0xaee   :  { %7773 = vpow2.f32 %v6635_v38  ;;  %v5567_v41 = vadd.f32 %v5566_v35, %v5454_v27  ;;  %v5456_v49 = vadd.f32 %v5455_v47, %v12664_v44  ;;  %v5568_v18 = vpop.f32.mrf.mxu1  ;;  %v6636_v12 = vmul.f32 -1.442695, %v5565_v60 }
 0xaef   :  { %v5457_v39 = vpop.f32.mrf.mxu0 }
 0xaf0   :  { %v6637_v37 = vmul.f32 -1.442695, %v5567_v41  ;;  %v5569_v58 = vadd.f32 %v5568_v18, %v5456_v49  ;;  %v5458_v34 = vadd.f32 %v5457_v39, %v12668_v31  ;;  %v5570_v59 = vpop.f32.mrf.mxu1 }
 0xaf2   :  { %7775 = vpow2.f32 %v6637_v37  ;;  %v6638_v43 = vmul.f32 -1.442695, %v5569_v58  ;;  %v5571_v21 = vadd.f32 %v5570_v59, %v5458_v34 }
 0xaf3   :  { %7777 = vpow2.f32 %v6636_v12 }
 0xaf4   :  { %7779 = vpow2.f32 %v6638_v43  ;;  %v6639_v25 = vmul.f32 -1.442695, %v5571_v21 }
 0xaf6   :  { %7781 = vpow2.f32 %v6639_v25 }
 0xaf7   :  { %v7768_v32 = vpop.eup %7767 }
 0xaf8   :  { %v7770_v45 = vpop.eup %7769  ;;  %v5694_v61 = vadd.f32 1.0, %v7768_v32 }
 0xaf9   :  { %v7772_v15 = vpop.eup %7771  ;;  %v5693_v24 = vadd.f32 1.0, %v7770_v45 }
 0xafa   :  { %v5695_v44 = vadd.f32 1.0, %v7772_v15  ;;  %7783 = vrcp.f32 %v5694_v61 }
 0xafb   :  { %v7774_v63 = vpop.eup %7773 }
 0xafc   :  { %v5696_v4 = vadd.f32 1.0, %v7774_v63  ;;  %7785 = vrcp.f32 %v5695_v44 }
 0xafe   :  { %7787 = vrcp.f32 %v5696_v4 }
 0xaff   :  { %v7776_v31 = vpop.eup %7775  ;;  %7789 = vrcp.f32 %v5693_v24 }
 0xb00   :  { %v7778_v6 = vpop.eup %7777  ;;  %v5698_v19 = vadd.f32 1.0, %v7776_v31 }
 0xb01   :  { %v7780_v23 = vpop.eup %7779  ;;  %v5697_v28 = vadd.f32 1.0, %v7778_v6 }
 0xb02   :  { %v5699_v29 = vadd.f32 1.0, %v7780_v23  ;;  %7791 = vrcp.f32 %v5698_v19 }
 0xb03   :  { %v7782_v16 = vpop.eup %7781 }
 0xb04   :  { %v5700_v7 = vadd.f32 1.0, %v7782_v16  ;;  %7793 = vrcp.f32 %v5699_v29 }
 0xb06   :  { %7795 = vrcp.f32 %v5700_v7 }
 0xb07   :  { %7797 = vrcp.f32 %v5697_v28  ;;  %v7784_v42 = vpop.eup %7783 }
 0xb09   :  { %v7786_v5 = vpop.eup %7785 }
 0xb0b   :  { %v7788_v46 = vpop.eup %7787 }
 0xb0c   :  { %v7790_v51 = vpop.eup %7789  ;;  %v5778_v20 = vpack.c.bf16 %v7788_v46, %v7784_v42 }
 0xb0d   :  { %v5777_v26 = vpack.c.bf16 %v7786_v5, %v7790_v51 }
 0xb0e   :  { %5996 = vmatprep.mubr.bf16.mxu0 %v5778_v20 }
 0xb0f   :  { %5997 = vmatmul.mubr.bf16.gmra.mxu0 %v5777_v26  ;;  %v7792_v53 = vpop.eup %7791 }
 0xb11   :  { %v7794_v13 = vpop.eup %7793 }
 0xb13   :  { %v7796_v56 = vpop.eup %7795 }
 0xb14   :  { %v7798_v54 = vpop.eup %7797  ;;  %v5780_v2 = vpack.c.bf16 %v7796_v56, %v7792_v53 }
 0xb15   :  { %v5779_v1 = vpack.c.bf16 %v7794_v13, %v7798_v54 }
 0xb16   :  { %6004 = vmatprep.mubr.bf16.mxu0 %v5780_v2 }
 0xb17   :  { %6005 = vmatmul.mubr.bf16.gmra.mxu0 %v5779_v1 }
 0xb63   :  { %v6749_v11 = vpop.f32.mrf.mxu0 }
 0xb65   :  { %v6750_v30 = vpop.f32.mrf.mxu0 }
 0xb66   :  { %v6751_v38 = vadd.f32 %v6750_v30, %v6749_v11 }
 0xb67   :  { %v6752_v60 = vpop.f32.mrf.mxu0 }
 0xb68   :  { %v5951_v27 = vadd.f32 %v6751_v38, %v12705_v40 }
 0xb69   :  { %v6753_v35 = vpop.f32.mrf.mxu0 }
 0xb6a   :  { %v6657_v47 = vmul.f32 -1.442695, %v5951_v27  ;;  %v6754_v41 = vadd.f32 %v6753_v35, %v6752_v60 }
 0xb6b   :  { %v6755_v49 = vpop.f32.mrf.mxu0 }
 0xb6c   :  { %7799 = vpow2.f32 %v6657_v47  ;;  %v5954_v18 = vadd.f32 %v6754_v41, %v12705_v40 }
 0xb6d   :  { %v6756_v12 = vpop.f32.mrf.mxu0 }
 0xb6e   :  { %v6658_v39 = vmul.f32 -1.442695, %v5954_v18  ;;  %v6757_v37 = vadd.f32 %v6756_v12, %v6755_v49 }
 0xb6f   :  { %v6758_v58 = vpop.f32.mrf.mxu0 }
 0xb70   :  { %7801 = vpow2.f32 %v6658_v39  ;;  %v5959_v34 = vadd.f32 %v6757_v37, %v12705_v40 }
 0xb71   :  { %v6759_v59 = vpop.f32.mrf.mxu0 }
 0xb72   :  { %v6659_v43 = vmul.f32 -1.442695, %v5959_v34  ;;  %v6760_v21 = vadd.f32 %v6759_v59, %v6758_v58 }
 0xb74   :  { %7803 = vpow2.f32 %v6659_v43  ;;  %v5962_v25 = vadd.f32 %v6760_v21, %v12705_v40 }
 0xb76   :  { %v6660_v32 = vmul.f32 -1.442695, %v5962_v25 }
 0xb78   :  { %7805 = vpow2.f32 %v6660_v32 }
 0xb79   :  { %v7800_v45 = vpop.eup %7799 }
 0xb7a   :  { %v6061_v61 = vadd.f32 1.0, %v7800_v45 }
 0xb7c   :  { %7807 = vrcp.f32 %v6061_v61 }
 0xb7d   :  { %v7802_v15 = vpop.eup %7801 }
 0xb7e   :  { %v6062_v44 = vadd.f32 1.0, %v7802_v15 }
 0xb80   :  { %7809 = vrcp.f32 %v6062_v44 }
 0xb81   :  { %v7804_v63 = vpop.eup %7803 }
 0xb82   :  { %v6063_v24 = vadd.f32 1.0, %v7804_v63 }
 0xb83   :  { %v6761_v4 = vpop.f32.mrf.mxu0 }
 0xb84   :  { %7811 = vrcp.f32 %v6063_v24 }
 0xb85   :  { %v7806_v31 = vpop.eup %7805  ;;  %v6762_v6 = vpop.f32.mrf.mxu0 }
 0xb86   :  { %v6064_v19 = vadd.f32 1.0, %v7806_v31  ;;  %v6763_v23 = vadd.f32 %v6762_v6, %v6761_v4 }
 0xb87   :  { %v6764_v29 = vpop.f32.mrf.mxu0 }
 0xb88   :  { %7813 = vrcp.f32 %v6064_v19  ;;  %v5967_v16 = vadd.f32 %v6763_v23, %v12705_v40 }
 0xb89   :  { %v7808_v28 = vpop.eup %7807  ;;  %v6765_v7 = vpop.f32.mrf.mxu0 }
 0xb8a   :  { %v6661_v42 = vmul.f32 -1.442695, %v5967_v16  ;;  %v6766_v5 = vadd.f32 %v6765_v7, %v6764_v29  ;;  %6125 = vrot.lane.b32.xlu0 %v7808_v28, %s7933_s10 }
 0xb8b   :  { %v6767_v46 = vpop.f32.mrf.mxu0 }
 0xb8c   :  { %7815 = vpow2.f32 %v6661_v42  ;;  %v5970_v51 = vadd.f32 %v6766_v5, %v12705_v40 }
 0xb8d   :  { %v7810_v20 = vpop.eup %7809  ;;  %v6768_v26 = vpop.f32.mrf.mxu0 }
 0xb8e   :  { %v6662_v53 = vmul.f32 -1.442695, %v5970_v51  ;;  %v6769_v13 = vadd.f32 %v6768_v26, %v6767_v46  ;;  %6127 = vrot.lane.b32.xlu1 %v7810_v20, %s7933_s10 }
 0xb8f   :  { %v6770_v56 = vpop.f32.mrf.mxu0 }
 0xb90   :  { %7817 = vpow2.f32 %v6662_v53  ;;  %v5975_v54 = vadd.f32 %v6769_v13, %v12705_v40 }
 0xb91   :  { %v7812_v2 = vpop.eup %7811  ;;  %v6771_v1 = vpop.f32.mrf.mxu0 }
 0xb92   :  { %v6663_v11 = vmul.f32 -1.442695, %v5975_v54  ;;  %v6772_v30 = vadd.f32 %v6771_v1, %v6770_v56  ;;  %6129 = vrot.lane.b32.xlu0 %v7812_v2, %s7933_s10 }
 0xb94   :  { %7819 = vpow2.f32 %v6663_v11  ;;  %v5978_v38 = vadd.f32 %v6772_v30, %v12705_v40 }
 0xb95   :  { %v7814_v60 = vpop.eup %7813 }
 0xb96   :  { %v6664_v27 = vmul.f32 -1.442695, %v5978_v38  ;;  %6131 = vrot.lane.b32.xlu1 %v7814_v60, %s7933_s10 }
 0xb98   :  { %7821 = vpow2.f32 %v6664_v27 }
 0xb99   :  { %v7816_v35 = vpop.eup %7815 }
 0xb9a   :  { %v6065_v47 = vadd.f32 1.0, %v7816_v35 }
 0xb9c   :  { %7823 = vrcp.f32 %v6065_v47 }
 0xb9d   :  { %v7818_v41 = vpop.eup %7817 }
 0xb9e   :  { %v6066_v49 = vadd.f32 1.0, %v7818_v41 }
 0xba0   :  { %7825 = vrcp.f32 %v6066_v49 }
 0xba1   :  { %v7820_v18 = vpop.eup %7819 }
 0xba2   :  { %v6067_v12 = vadd.f32 1.0, %v7820_v18  ;;  %v6773_v39 = vpop.f32.mrf.mxu0 }
 0xba4   :  { %7827 = vrcp.f32 %v6067_v12  ;;  %v6774_v37 = vpop.f32.mrf.mxu0 }
 0xba5   :  { %v7822_v58 = vpop.eup %7821  ;;  %v6775_v34 = vadd.f32 %v6774_v37, %v6773_v39 }
 0xba6   :  { %v6068_v59 = vadd.f32 1.0, %v7822_v58  ;;  %v6776_v43 = vpop.f32.mrf.mxu0 }
 0xba7   :  { %v5983_v21 = vadd.f32 %v6775_v34, %v12705_v40 }
 0xba8   :  { %7829 = vrcp.f32 %v6068_v59  ;;  %v6777_v25 = vpop.f32.mrf.mxu0 }
 0xba9   :  { %v7824_v32 = vpop.eup %7823  ;;  %v6665_v45 = vmul.f32 -1.442695, %v5983_v21  ;;  %v6778_v61 = vadd.f32 %v6777_v25, %v6776_v43 }
 0xbaa   :  { %v6779_v15 = vpop.f32.mrf.mxu0  ;;  %6133 = vrot.lane.b32.xlu0 %v7824_v32, %s7933_s10 }
 0xbab   :  { %7831 = vpow2.f32 %v6665_v45  ;;  %v5986_v44 = vadd.f32 %v6778_v61, %v12705_v40 }
 0xbac   :  { %v6780_v63 = vpop.f32.mrf.mxu0 }
 0xbad   :  { %v7826_v24 = vpop.eup %7825  ;;  %v6666_v4 = vmul.f32 -1.442695, %v5986_v44  ;;  %v6781_v31 = vadd.f32 %v6780_v63, %v6779_v15 }
 0xbae   :  { %v6782_v6 = vpop.f32.mrf.mxu0  ;;  %6135 = vrot.lane.b32.xlu1 %v7826_v24, %s7933_s10 }
 0xbaf   :  { %7833 = vpow2.f32 %v6666_v4  ;;  %v5991_v19 = vadd.f32 %v6781_v31, %v12705_v40 }
 0xbb0   :  { %v6783_v23 = vpop.f32.mrf.mxu0 }
 0xbb1   :  { %v7828_v29 = vpop.eup %7827  ;;  %v6667_v16 = vmul.f32 -1.442695, %v5991_v19  ;;  %v6784_v28 = vadd.f32 %v6783_v23, %v6782_v6 }
 0xbb2   :  { %6137 = vrot.lane.b32.xlu0 %v7828_v29, %s7933_s10 }
 0xbb3   :  { %7835 = vpow2.f32 %v6667_v16  ;;  %v5994_v7 = vadd.f32 %v6784_v28, %v12705_v40 }
 0xbb5   :  { %v7830_v42 = vpop.eup %7829  ;;  %v6668_v5 = vmul.f32 -1.442695, %v5994_v7 }
 0xbb6   :  { %6139 = vrot.lane.b32.xlu1 %v7830_v42, %s7933_s10 }
 0xbb7   :  { %7837 = vpow2.f32 %v6668_v5 }
 0xbb8   :  { %v7832_v46 = vpop.eup %7831 }
 0xbb9   :  { %v6069_v51 = vadd.f32 1.0, %v7832_v46 }
 0xbbb   :  { %7839 = vrcp.f32 %v6069_v51 }
 0xbbc   :  { %v7834_v20 = vpop.eup %7833 }
 0xbbd   :  { %v6070_v26 = vadd.f32 1.0, %v7834_v20 }
 0xbbf   :  { %7841 = vrcp.f32 %v6070_v26 }
 0xbc0   :  { %v7836_v53 = vpop.eup %7835 }
 0xbc1   :  { %v6071_v13 = vadd.f32 1.0, %v7836_v53 }
 0xbc3   :  { %7843 = vrcp.f32 %v6071_v13 }
 0xbc4   :  { %v7838_v56 = vpop.eup %7837 }
 0xbc5   :  { %v6072_v54 = vadd.f32 1.0, %v7838_v56 }
 0xbc7   :  { %7845 = vrcp.f32 %v6072_v54 }
 0xbc8   :  { %v7840_v2 = vpop.eup %7839 }
 0xbc9   :  { %6141 = vrot.lane.b32.xlu0 %v7840_v2, %s7933_s10 }
 0xbcc   :  { %v7842_v1 = vpop.eup %7841 }
 0xbcd   :  { %6143 = vrot.lane.b32.xlu1 %v7842_v1, %s7933_s10 }
 0xbcf   :  { %v6785_v11 = vpop.f32.mrf.mxu0 }
 0xbd0   :  { %v7844_v30 = vpop.eup %7843 }
 0xbd1   :  { %6145 = vrot.lane.b32.xlu0 %v7844_v30, %s7933_s10  ;;  %v6786_v38 = vpop.f32.mrf.mxu0 }
 0xbd2   :  { %v6787_v60 = vadd.f32 %v6786_v38, %v6785_v11 }
 0xbd3   :  { %v6788_v27 = vpop.f32.mrf.mxu0 }
 0xbd4   :  { %v7846_v35 = vpop.eup %7845  ;;  %v5999_v47 = vadd.f32 %v6787_v60, %v12705_v40 }
 0xbd5   :  { %6147 = vrot.lane.b32.xlu1 %v7846_v35, %s7933_s10  ;;  %v6789_v41 = vpop.f32.mrf.mxu0 }
 0xbd6   :  { %v6669_v49 = vmul.f32 -1.442695, %v5999_v47  ;;  %v6790_v18 = vadd.f32 %v6789_v41, %v6788_v27 }
 0xbd7   :  { %v6791_v12 = vpop.f32.mrf.mxu0 }
 0xbd8   :  { %7847 = vpow2.f32 %v6669_v49  ;;  %v6002_v39 = vadd.f32 %v6790_v18, %v12705_v40 }
 0xbd9   :  { %v6792_v37 = vpop.f32.mrf.mxu0 }
 0xbda   :  { %v6670_v58 = vmul.f32 -1.442695, %v6002_v39  ;;  %v6793_v34 = vadd.f32 %v6792_v37, %v6791_v12 }
 0xbdb   :  { %v6794_v59 = vpop.f32.mrf.mxu0 }
 0xbdc   :  { %7849 = vpow2.f32 %v6670_v58  ;;  %v6007_v43 = vadd.f32 %v6793_v34, %v12705_v40 }
 0xbdd   :  { %v6795_v21 = vpop.f32.mrf.mxu0 }
 0xbde   :  { %v6671_v25 = vmul.f32 -1.442695, %v6007_v43  ;;  %v6796_v32 = vadd.f32 %v6795_v21, %v6794_v59 }
 0xbe0   :  { %7851 = vpow2.f32 %v6671_v25  ;;  %v6010_v45 = vadd.f32 %v6796_v32, %v12705_v40 }
 0xbe2   :  { %v6672_v61 = vmul.f32 -1.442695, %v6010_v45 }
 0xbe4   :  { %7853 = vpow2.f32 %v6672_v61 }
 0xbe5   :  { %v7848_v15 = vpop.eup %7847 }
 0xbe6   :  { %v6073_v44 = vadd.f32 1.0, %v7848_v15 }
 0xbe8   :  { %7855 = vrcp.f32 %v6073_v44 }
 0xbe9   :  { %v7850_v63 = vpop.eup %7849 }
 0xbea   :  { %v6074_v24 = vadd.f32 1.0, %v7850_v63 }
 0xbec   :  { %7857 = vrcp.f32 %v6074_v24 }
 0xbed   :  { %v7852_v4 = vpop.eup %7851 }
 0xbee   :  { %v6075_v31 = vadd.f32 1.0, %v7852_v4 }
 0xbf0   :  { %7859 = vrcp.f32 %v6075_v31 }
 0xbf1   :  { %v7854_v6 = vpop.eup %7853 }
 0xbf2   :  { %v6076_v19 = vadd.f32 1.0, %v7854_v6 }
 0xbf4   :  { %7861 = vrcp.f32 %v6076_v19 }
 0xbf5   :  { %v7856_v23 = vpop.eup %7855 }
 0xbf6   :  { %6149 = vrot.lane.b32.xlu0 %v7856_v23, %s7933_s10 }
 0xbf9   :  { %v7858_v29 = vpop.eup %7857 }
 0xbfa   :  { %6151 = vrot.lane.b32.xlu1 %v7858_v29, %s7933_s10 }
 0xbfc   :  { %v6126_v40 = vpop.permute.xlu0 %6125 }
 0xbfd   :  { %v7860_v16 = vpop.eup %7859  ;;  %v6174_v28 = vsel %vm6173_vm1, %v12081_v52, %v6126_v40 }
 0xbfe   :  { %6190 = vst [vmem:[%s12836_s17] sm:$0xff] %v6174_v28  ;;  %6153 = vrot.lane.b32.xlu0 %v7860_v16, %s7933_s10 }
 0xc00   :  { %v6128_v7 = vpop.permute.xlu1 %6127 }
 0xc01   :  { %v7862_v42 = vpop.eup %7861  ;;  %v6175_v5 = vsel %vm6173_vm1, %v12087_v9, %v6128_v7 }
 0xc02   :  { %6191 = vst [vmem:[%s12836_s17 + $0x8] sm:$0xff] %v6175_v5  ;;  %6155 = vrot.lane.b32.xlu1 %v7862_v42, %s7933_s10 }
 0xc04   :  { %v6130_v46 = vpop.permute.xlu0 %6129 }
 0xc05   :  { %v6176_v52 = vsel %vm6173_vm1, %v12085_v33, %v6130_v46 }
 0xc06   :  { %6192 = vst [vmem:[%s12836_s17 + $0x10] sm:$0xff] %v6176_v52 }
 0xc08   :  { %v6132_v51 = vpop.permute.xlu1 %6131 }
 0xc09   :  { %v6177_v20 = vsel %vm6173_vm1, %v12093_v17, %v6132_v51 }
 0xc0a   :  { %6193 = vst [vmem:[%s12836_s17 + $0x18] sm:$0xff] %v6177_v20 }
 0xc1c   :  { %v6134_v9 = vpop.permute.xlu0 %6133 }
 0xc1d   :  { %v6178_v26 = vsel %vm6173_vm1, %v12097_v3, %v6134_v9 }
 0xc1e   :  { %6194 = vst [vmem:[%s12836_s17 + $0x20] sm:$0xff] %v6178_v26 }
 0xc20   :  { %v6136_v33 = vpop.permute.xlu1 %6135 }
 0xc21   :  { %v6179_v53 = vsel %vm6173_vm1, %v12103_v14, %v6136_v33 }
 0xc22   :  { %6195 = vst [vmem:[%s12836_s17 + $0x28] sm:$0xff] %v6179_v53 }
 0xc24   :  { %v6138_v17 = vpop.permute.xlu0 %6137 }
 0xc25   :  { %v6180_v13 = vsel %vm6173_vm1, %v12101_v48, %v6138_v17 }
 0xc26   :  { %6196 = vst [vmem:[%s12836_s17 + $0x30] sm:$0xff] %v6180_v13 }
 0xc28   :  { %v6140_v3 = vpop.permute.xlu1 %6139 }
 0xc29   :  { %v6181_v56 = vsel %vm6173_vm1, %v12109_v0, %v6140_v3 }
 0xc2a   :  { %6197 = vst [vmem:[%s12836_s17 + $0x38] sm:$0xff] %v6181_v56 }
 0xc3b   :  { %v6142_v14 = vpop.permute.xlu0 %6141 }
 0xc3c   :  { %v6182_v54 = vsel %vm6173_vm1, %v12117_v50, %v6142_v14 }
 0xc3d   :  { %6198 = vst [vmem:[%s12836_s17 + $0x40] sm:$0xff] %v6182_v54 }
 0xc3f   :  { %v6144_v48 = vpop.permute.xlu1 %6143 }
 0xc40   :  { %v6183_v2 = vsel %vm6173_vm1, %v12123_v55, %v6144_v48 }
 0xc41   :  { %6199 = vst [vmem:[%s12836_s17 + $0x48] sm:$0xff] %v6183_v2 }
 0xc43   :  { %v6146_v0 = vpop.permute.xlu0 %6145 }
 0xc44   :  { %v6184_v1 = vsel %vm6173_vm1, %v12121_v22, %v6146_v0 }
 0xc45   :  { %6200 = vst [vmem:[%s12836_s17 + $0x50] sm:$0xff] %v6184_v1 }
 0xc47   :  { %v6148_v50 = vpop.permute.xlu1 %6147 }
 0xc48   :  { %v6185_v11 = vsel %vm6173_vm1, %v12129_v8, %v6148_v50 }
 0xc49   :  { %6201 = vst [vmem:[%s12836_s17 + $0x58] sm:$0xff] %v6185_v11 }
 0xc68   :  { %v6150_v55 = vpop.permute.xlu0 %6149 }
 0xc69   :  { %v6186_v30 = vsel %vm6173_vm1, %v12137_v36, %v6150_v55 }
 0xc6a   :  { %6202 = vst [vmem:[%s12836_s17 + $0x60] sm:$0xff] %v6186_v30 }
 0xc6c   :  { %v6152_v22 = vpop.permute.xlu1 %6151 }
 0xc6d   :  { %v6187_v38 = vsel %vm6173_vm1, %v12143_v62, %v6152_v22 }
 0xc6e   :  { %6203 = vst [vmem:[%s12836_s17 + $0x68] sm:$0xff] %v6187_v38 }
 0xc70   :  { %v6154_v8 = vpop.permute.xlu0 %6153 }
 0xc71   :  { %v6188_v60 = vsel %vm6173_vm1, %v12141_v10, %v6154_v8 }
 0xc72   :  { %6204 = vst [vmem:[%s12836_s17 + $0x70] sm:$0xff] %v6188_v60 }
 0xc74   :  { %v6156_v36 = vpop.permute.xlu1 %6155 }
 0xc75   :  { %v6189_v27 = vsel %vm6173_vm1, %v12150_v57, %v6156_v36 }
 0xc76   :  { %6205 = vst [vmem:[%s12836_s17 + $0x78] sm:$0xff] %v6189_v27 }

</bundles_post_ra>
